<compile_context>
chip_gen: v7x
topology: tpu7x:2x2x1
jax: 0.10.0
libtpu: 0.0.40
codegen_flags: <defaults>
</compile_context>

<pallas_src>
import jax
import jax.numpy as jnp
import numpy as np
from jax.experimental import pallas as pl
from jax.experimental.pallas import tpu as pltpu


# ----------------------------------------------------------------------------
# Pallas kernels
# ----------------------------------------------------------------------------
def _conv_mm_kernel(p_ref, w_ref, b_ref, o_ref):
    """(bf16 patches @ bf16 folded weights) + bias -> LeakyReLU.  Layer 1."""
    y = jnp.dot(p_ref[...], w_ref[...], preferred_element_type=jnp.float32)
    y = y + b_ref[...]
    y = jnp.maximum(y, 0.2 * y)                  # LeakyReLU(0.2): one VPU max
    o_ref[...] = y.astype(o_ref.dtype)


def _make_tap_conv_kernel(ho, wo):
    """4x4 / stride-2 / pad-1 conv as 16 shifted matmuls over phase planes.

    p_ref : (4, 1, ho+1, wo+1, Cin) bf16. Plane t = ph*2+pw holds
            x_pad[:, 2a+ph, 2b+pw, :] of the 1-padded input for one batch elem.
    w_ref : (16, Cin, Cout) bf16 BN-folded weights, tap index t = kh*4+kw.
    b_ref : (1, Cout) f32 folded BN bias.
    o_ref : (ho*wo, Cout) bf16, rows ordered (io, jo).
    """
    def kernel(p_ref, w_ref, b_ref, o_ref):
        cin = p_ref.shape[-1]
        cout = o_ref.shape[-1]
        planes = [p_ref[t] for t in range(4)]       # each (1, ho+1, wo+1, Cin)
        acc = jnp.zeros((ho * wo, cout), jnp.float32)
        for kh in range(4):
            dh, ph = kh // 2, kh % 2
            for kw in range(4):
                dw, pw = kw // 2, kw % 2
                # x_pad[2io+kh, 2jo+kw] == plane[ph*2+pw][io+dh, jo+dw]
                tap = planes[ph * 2 + pw][:, dh:dh + ho, dw:dw + wo, :]
                tap = tap.reshape(ho * wo, cin)
                acc = acc + jnp.dot(tap, w_ref[kh * 4 + kw],
                                    preferred_element_type=jnp.float32)
        y = acc + b_ref[...]
        y = jnp.maximum(y, 0.2 * y)                 # LeakyReLU(0.2)
        o_ref[...] = y.astype(o_ref.dtype)
    return kernel


def _final_kernel(p_ref, w_ref, b_ref, w5_ref, o_ref):
    """Layer 4 (one Cout half) + BN + LeakyReLU fused with the layer-5 4x4
    VALID conv reduce.  Writes per-half partial logits; sigmoid is outside."""
    y = jnp.dot(p_ref[...], w_ref[0], preferred_element_type=jnp.float32)
    y = y + b_ref[0]                                 # folded BN bias (f32)
    y = jnp.maximum(y, 0.2 * y)                      # layer-4 LeakyReLU
    n = o_ref.shape[1]
    spatial = y.shape[0] // n                        # 16 = 4x4 layer-4 map
    t = (y.reshape(n, spatial, y.shape[-1])
         * w5_ref[0].astype(jnp.float32)[None])      # (n, 16, Chalf)
    s = jnp.sum(t, axis=2, keepdims=True)            # lane reduce   -> (n,16,1)
    o_ref[...] = jnp.sum(s, axis=1)[None]            # sublane reduce -> (1,n,1)


# ----------------------------------------------------------------------------
# pallas_call wrappers
# ----------------------------------------------------------------------------
def _conv1(patches, w_kc, bias, n):
    m, k = patches.shape
    cout = w_kc.shape[1]
    mb = m // n                                      # split M by batch
    cost = pl.CostEstimate(
        flops=2 * m * k * cout, transcendentals=0,
        bytes_accessed=patches.size * 2 + w_kc.size * 2 + bias.size * 4
        + m * cout * 2)
    return pl.pallas_call(
        _conv_mm_kernel,
        out_shape=jax.ShapeDtypeStruct((m, cout), jnp.bfloat16),
        grid=(n,),
        in_specs=[
            pl.BlockSpec((mb, k), lambda i: (i, 0)),
            pl.BlockSpec((k, cout), lambda i: (0, 0)),
            pl.BlockSpec((1, cout), lambda i: (0, 0)),
        ],
        out_specs=pl.BlockSpec((mb, cout), lambda i: (i, 0)),
        compiler_params=pltpu.CompilerParams(
            dimension_semantics=("parallel",)),
        cost_estimate=cost,
    )(patches, w_kc, bias)


def _conv_tap(planes, w_taps, bias, ho, wo):
    _, n, hp, wp, cin = planes.shape
    cout = w_taps.shape[-1]
    mb = ho * wo
    cost = pl.CostEstimate(
        flops=2 * n * mb * 16 * cin * cout, transcendentals=0,
        bytes_accessed=planes.size * 2 + w_taps.size * 2 + bias.size * 4
        + n * mb * cout * 2)
    return pl.pallas_call(
        _make_tap_conv_kernel(ho, wo),
        out_shape=jax.ShapeDtypeStruct((n * mb, cout), jnp.bfloat16),
        grid=(n,),
        in_specs=[
            pl.BlockSpec((4, 1, hp, wp, cin), lambda i: (0, i, 0, 0, 0)),
            pl.BlockSpec((16, cin, cout), lambda i: (0, 0, 0)),
            pl.BlockSpec((1, cout), lambda i: (0, 0)),
        ],
        out_specs=pl.BlockSpec((mb, cout), lambda i: (i, 0)),
        compiler_params=pltpu.CompilerParams(
            dimension_semantics=("parallel",)),
        cost_estimate=cost,
    )(planes, w_taps, bias)


def _final(patches, w4s, b4s, w5s):
    m, k = patches.shape                             # (N*16, 4096)
    nsplit, _, chalf = w4s.shape                     # (2, 4096, 256)
    n = m // 16
    cost = pl.CostEstimate(
        flops=2 * m * k * nsplit * chalf + 4 * m * nsplit * chalf,
        transcendentals=0,
        bytes_accessed=patches.size * 2 + w4s.size * 2 + b4s.size * 4
        + w5s.size * 2 + nsplit * n * 4)
    return pl.pallas_call(
        _final_kernel,
        out_shape=jax.ShapeDtypeStruct((nsplit, n, 1), jnp.float32),
        grid=(nsplit,),                              # Cout halves: both TCs
        in_specs=[
            pl.BlockSpec((m, k), lambda j: (0, 0)),
            pl.BlockSpec((1, k, chalf), lambda j: (j, 0, 0)),
            pl.BlockSpec((1, 1, chalf), lambda j: (j, 0, 0)),
            pl.BlockSpec((1, 16, chalf), lambda j: (j, 0, 0)),
        ],
        out_specs=pl.BlockSpec((1, n, 1), lambda j: (j, 0, 0)),
        compiler_params=pltpu.CompilerParams(
            dimension_semantics=("parallel",)),
        cost_estimate=cost,
    )(patches, w4s, b4s, w5s)


# ----------------------------------------------------------------------------
# XLA glue: im2col (layers 1 and 4) and phase planes (layers 2 and 3)
# ----------------------------------------------------------------------------
def _im2col_nhwc(x_nhwc, k, stride, pad):
    n, h, w, c = x_nhwc.shape
    ho = (h + 2 * pad - k) // stride + 1
    wo = (w + 2 * pad - k) // stride + 1
    xp = jnp.pad(x_nhwc, ((0, 0), (pad, pad), (pad, pad), (0, 0)))
    taps = []
    for kh in range(k):
        for kw in range(k):
            taps.append(xp[:, kh:kh + stride * ho:stride,
                           kw:kw + stride * wo:stride, :])
    p = jnp.stack(taps, axis=3)                      # (N, Ho, Wo, k*k, C)
    p = p.reshape(n * ho * wo, k * k * c).astype(jnp.bfloat16)
    return p, (n, ho, wo)


def _phase_planes(h_nhwc):
    """(N,H,W,C) -> (4, N, H/2+1, W/2+1, C): 1-padded input split by parity,
    plane t = ph*2+pw holds x_pad[:, ph::2, pw::2, :]."""
    hp = jnp.pad(h_nhwc, ((0, 0), (1, 1), (1, 1), (0, 0)))
    planes = [hp[:, ph::2, pw::2, :] for ph in (0, 1) for pw in (0, 1)]
    return jnp.stack(planes, axis=0)


# ----------------------------------------------------------------------------
# Parameters
# ----------------------------------------------------------------------------
def init_params(key):
    ndf = 64
    cfg = [  # (Cout, Cin, k, stride, pad, has_bn)
        (ndf,     3,       4, 2, 1, False),
        (ndf * 2, ndf,     4, 2, 1, True),
        (ndf * 4, ndf * 2, 4, 2, 1, True),
        (ndf * 8, ndf * 4, 4, 2, 1, True),
        (1,       ndf * 8, 4, 1, 0, False),
    ]
    params = []
    for (cout, cin, k, s, p, has_bn) in cfg:
        key, kw_, kg, kb, km, kv = jax.random.split(key, 6)
        std = 1.0 / float(np.sqrt(cin * k * k))
        w = std * jax.random.normal(kw_, (cout, cin, k, k), jnp.float32)
        if has_bn:
            gamma = 1.0 + 0.02 * jax.random.normal(kg, (cout,), jnp.float32)
            beta = 0.02 * jax.random.normal(kb, (cout,), jnp.float32)
            rmean = 0.05 * jax.random.normal(km, (cout,), jnp.float32)
            rvar = 1.0 + 0.1 * jax.random.uniform(kv, (cout,), jnp.float32)
            eps = 1e-5
            scale = gamma / jnp.sqrt(rvar + eps)
            bias = beta - rmean * scale
        else:
            scale = jnp.ones((cout,), jnp.float32)
            bias = jnp.zeros((cout,), jnp.float32)
        params.append(dict(w=w, scale=scale, bias=bias, stride=s, pad=p))
    return params


def prepare_params(raw):
    """Fold BN scale into bf16 weights, reorganized for the kernels."""
    def fold_flat(layer):                            # (K, Cout), K=(kh,kw,cin)
        w = layer["w"]
        cout, cin, k, _ = w.shape
        w_kc = jnp.transpose(w, (2, 3, 1, 0)).reshape(k * k * cin, cout)
        w_kc = (w_kc * layer["scale"][None, :]).astype(jnp.bfloat16)
        return w_kc, layer["bias"].reshape(1, cout).astype(jnp.float32)

    def fold_taps(layer):                            # (16, Cin, Cout)
        w = layer["w"]
        cout, cin, k, _ = w.shape
        wt = jnp.transpose(w, (2, 3, 1, 0)).reshape(k * k, cin, cout)
        wt = (wt * layer["scale"][None, None, :]).astype(jnp.bfloat16)
        return wt, layer["bias"].reshape(1, cout).astype(jnp.float32)

    w1, b1 = fold_flat(raw[0])
    w2, b2 = fold_taps(raw[1])
    w3, b3 = fold_taps(raw[2])
    w4, b4 = fold_flat(raw[3])                       # (4096, 512), (1, 512)
    c4 = w4.shape[1]
    ch = c4 // 2
    # Pre-split layer-4 Cout into two contiguous halves (one per grid step /
    # v7x TensorCore) so each half's weight DMA is contiguous.
    w4s = jnp.stack([w4[:, :ch], w4[:, ch:]], axis=0)        # (2, 4096, 256)
    b4s = jnp.stack([b4[:, :ch], b4[:, ch:]], axis=0)        # (2, 1, 256)
    w5 = raw[4]["w"][0]                              # (512, 4, 4)
    w5m = jnp.transpose(w5, (1, 2, 0)).reshape(16, c4).astype(jnp.bfloat16)
    w5s = jnp.stack([w5m[:, :ch], w5m[:, ch:]], axis=0)      # (2, 16, 256)
    return dict(w1=w1, b1=b1, w2=w2, b2=b2, w3=w3, b3=b3,
                w4=w4s, b4=b4s, w5=w5s)


# ----------------------------------------------------------------------------
# Forward pass (4 pallas_calls inside one jit) + pure-JAX reference
# ----------------------------------------------------------------------------
def _netD_forward_impl(x_nchw, kp):
    x = jnp.transpose(x_nchw, (0, 2, 3, 1)).astype(jnp.bfloat16)   # NHWC once
    n = x.shape[0]
    # Layer 1: Conv(3->64, 4,2,1) + LeakyReLU (im2col of the HBM input only).
    p1, (_, h1, w1) = _im2col_nhwc(x, 4, 2, 1)
    h = _conv1(p1, kp["w1"], kp["b1"], n).reshape(n, h1, w1, -1)
    # Dropout2d(0.5) is identity in eval mode.
    # Layer 2: Conv(64->128) + BN + LeakyReLU, 16-tap conv inside the kernel.
    h = _conv_tap(_phase_planes(h), kp["w2"], kp["b2"],
                  h1 // 2, w1 // 2).reshape(n, h1 // 2, w1 // 2, -1)
    # Layer 3: Conv(128->256) + BN + LeakyReLU.
    h = _conv_tap(_phase_planes(h), kp["w3"], kp["b3"],
                  h1 // 4, w1 // 4).reshape(n, h1 // 4, w1 // 4, -1)
    # Layer 4 + 5: Conv(256->512)+BN+LeakyReLU fused with the 4x4 conv logit,
    # split over two Cout halves (parallel grid axis).
    p4, _ = _im2col_nhwc(h, 4, 2, 1)                 # (N*16, 4096)
    partial = _final(p4, kp["w4"], kp["b4"], kp["w5"])        # (2, N, 1)
    return jax.nn.sigmoid(jnp.sum(partial, axis=0))           # (N, 1)


netD_forward = jax.jit(_netD_forward_impl)


def netD_reference(x_nchw, raw):
    h = x_nchw
    dn = ("NCHW", "OIHW", "NCHW")
    for i, layer in enumerate(raw):
        s, p = layer["stride"], layer["pad"]
        h = jax.lax.conv_general_dilated(
            h, layer["w"], window_strides=(s, s), padding=[(p, p), (p, p)],
            dimension_numbers=dn, precision=jax.lax.Precision.HIGHEST)
        h = (h * layer["scale"][None, :, None, None]
             + layer["bias"][None, :, None, None])
        if i < len(raw) - 1:
            h = jnp.where(h >= 0.0, h, 0.2 * h)
        else:
            h = jax.nn.sigmoid(h)
    return h.reshape(h.shape[0], 1)


if __name__ == "__main__":
    key = jax.random.PRNGKey(0)
    kparam_key, kx = jax.random.split(key)
    raw = init_params(kparam_key)
    # DCGAN discriminator requires 64x64 inputs (four stride-2 convs + final 4x4).
    x = jax.random.normal(kx, (2, 3, 64, 64), jnp.float32)
    kparams = prepare_params(raw)

    out = jax.block_until_ready(netD_forward(x, kparams))
    ref = jax.block_until_ready(netD_reference(x, raw))

    assert out.shape == (2, 1), out.shape
    np.testing.assert_allclose(np.asarray(out, dtype=np.float32),
                               np.asarray(ref, dtype=np.float32),
                               rtol=2e-2, atol=2e-2)
    print("KERNEL_OK")
</pallas_src>

<mosaic_0001>
module attributes {stable_mosaic.version = 11 : i64} {
  func.func @_conv_mm_kernel(%arg0: i32, %arg1: memref<1024x48xbf16, #tpu.memory_space<vmem>>, %arg2: memref<48x64xbf16, #tpu.memory_space<vmem>>, %arg3: memref<1x64xf32, #tpu.memory_space<vmem>>, %arg4: memref<1024x64xbf16, #tpu.memory_space<vmem>>) attributes {dimension_semantics = [#tpu.dimension_semantics<parallel>], iteration_bounds = array<i64: 2>, scalar_prefetch = 0 : i64, scratch_operands = 0 : i64, tpu.core_type = #tpu.core_type<tc>, window_params = [{transform_indices = @transform_0, window_bounds = array<i64: 1024, 48>}, {pipeline_mode = #tpu.pipeline_mode<synchronous>, transform_indices = @transform_1, window_bounds = array<i64: 48, 64>}, {pipeline_mode = #tpu.pipeline_mode<synchronous>, transform_indices = @transform_2, window_bounds = array<i64: 1, 64>}, {transform_indices = @transform_3, window_bounds = array<i64: 1024, 64>}]} {
    %c0 = arith.constant 0 : index
    %c0_0 = arith.constant 0 : index
    %0 = vector.load %arg1[%c0, %c0_0] : memref<1024x48xbf16, #tpu.memory_space<vmem>>, vector<1024x48xbf16>
    %c0_1 = arith.constant 0 : index
    %c0_2 = arith.constant 0 : index
    %1 = vector.load %arg2[%c0_1, %c0_2] : memref<48x64xbf16, #tpu.memory_space<vmem>>, vector<48x64xbf16>
    %cst = arith.constant dense<0.000000e+00> : vector<1024x64xf32>
    %2 = tpu.matmul %0, %1, %cst {dimension_numbers = #tpu.dot_dimension_numbers<[1], [0], [0], [1], [0, 0, 1, 1], [], []>} : vector<1024x48xbf16>, vector<48x64xbf16>, vector<1024x64xf32> -> vector<1024x64xf32>
    %c0_3 = arith.constant 0 : index
    %c0_4 = arith.constant 0 : index
    %3 = vector.load %arg3[%c0_3, %c0_4] : memref<1x64xf32, #tpu.memory_space<vmem>>, vector<1x64xf32>
    %4 = vector.broadcast %3 : vector<1x64xf32> to vector<1024x64xf32>
    %5 = arith.addf %2, %4 : vector<1024x64xf32>
    %cst_5 = arith.constant 2.000000e-01 : f32
    %6 = vector.broadcast %cst_5 : f32 to vector<1024x64xf32>
    %7 = arith.mulf %6, %5 : vector<1024x64xf32>
    %8 = arith.maximumf %5, %7 : vector<1024x64xf32>
    %9 = arith.truncf %8 : vector<1024x64xf32> to vector<1024x64xbf16>
    %c0_6 = arith.constant 0 : index
    %c0_7 = arith.constant 0 : index
    %10 = vector.load %arg4[%c0_6, %c0_7] : memref<1024x64xbf16, #tpu.memory_space<vmem>>, vector<1024x64xbf16>
    tpu.vector_store %arg4[%c0_6, %c0_7], %9 {strides = array<i32>} : memref<1024x64xbf16, #tpu.memory_space<vmem>>, vector<1024x64xbf16>,
    return
  }
  func.func @transform_0(%arg0: i32) -> (i32, i32) {
    %c0_i32 = arith.constant 0 : i32
    %c0_i32_0 = arith.constant 0 : i32
    return %arg0, %c0_i32 : i32, i32
  }
  func.func @transform_1(%arg0: i32) -> (i32, i32) {
    %c0_i32 = arith.constant 0 : i32
    %c0_i32_0 = arith.constant 0 : i32
    %c0_i32_1 = arith.constant 0 : i32
    return %c0_i32, %c0_i32_0 : i32, i32
  }
  func.func @transform_2(%arg0: i32) -> (i32, i32) {
    %c0_i32 = arith.constant 0 : i32
    %c0_i32_0 = arith.constant 0 : i32
    %c0_i32_1 = arith.constant 0 : i32
    return %c0_i32, %c0_i32_0 : i32, i32
  }
  func.func @transform_3(%arg0: i32) -> (i32, i32) {
    %c0_i32 = arith.constant 0 : i32
    %c0_i32_0 = arith.constant 0 : i32
    return %arg0, %c0_i32 : i32, i32
  }
}

module attributes {stable_mosaic.version = 11 : i64} {
  func.func @kernel(%arg0: i32, %arg1: memref<4x1x17x17x64xbf16, #tpu.memory_space<vmem>>, %arg2: memref<16x64x128xbf16, #tpu.memory_space<vmem>>, %arg3: memref<1x128xf32, #tpu.memory_space<vmem>>, %arg4: memref<256x128xbf16, #tpu.memory_space<vmem>>) attributes {dimension_semantics = [#tpu.dimension_semantics<parallel>], iteration_bounds = array<i64: 2>, scalar_prefetch = 0 : i64, scratch_operands = 0 : i64, tpu.core_type = #tpu.core_type<tc>, window_params = [{transform_indices = @transform_0, window_bounds = array<i64: 4, 1, 17, 17, 64>}, {pipeline_mode = #tpu.pipeline_mode<synchronous>, transform_indices = @transform_1, window_bounds = array<i64: 16, 64, 128>}, {pipeline_mode = #tpu.pipeline_mode<synchronous>, transform_indices = @transform_2, window_bounds = array<i64: 1, 128>}, {transform_indices = @transform_3, window_bounds = array<i64: 256, 128>}]} {
    %c0 = arith.constant 0 : index
    %c0_0 = arith.constant 0 : index
    %c0_1 = arith.constant 0 : index
    %c0_2 = arith.constant 0 : index
    %c0_3 = arith.constant 0 : index
    %0 = vector.load %arg1[%c0, %c0_0, %c0_1, %c0_2, %c0_3] : memref<4x1x17x17x64xbf16, #tpu.memory_space<vmem>>, vector<1x1x17x17x64xbf16>
    %1 = vector.shape_cast %0 : vector<1x1x17x17x64xbf16> to vector<1x17x17x64xbf16>
    %c1 = arith.constant 1 : index
    %c0_4 = arith.constant 0 : index
    %c0_5 = arith.constant 0 : index
    %c0_6 = arith.constant 0 : index
    %c0_7 = arith.constant 0 : index
    %2 = vector.load %arg1[%c1, %c0_4, %c0_5, %c0_6, %c0_7] : memref<4x1x17x17x64xbf16, #tpu.memory_space<vmem>>, vector<1x1x17x17x64xbf16>
    %3 = vector.shape_cast %2 : vector<1x1x17x17x64xbf16> to vector<1x17x17x64xbf16>
    %c2 = arith.constant 2 : index
    %c0_8 = arith.constant 0 : index
    %c0_9 = arith.constant 0 : index
    %c0_10 = arith.constant 0 : index
    %c0_11 = arith.constant 0 : index
    %4 = vector.load %arg1[%c2, %c0_8, %c0_9, %c0_10, %c0_11] : memref<4x1x17x17x64xbf16, #tpu.memory_space<vmem>>, vector<1x1x17x17x64xbf16>
    %5 = vector.shape_cast %4 : vector<1x1x17x17x64xbf16> to vector<1x17x17x64xbf16>
    %c3 = arith.constant 3 : index
    %c0_12 = arith.constant 0 : index
    %c0_13 = arith.constant 0 : index
    %c0_14 = arith.constant 0 : index
    %c0_15 = arith.constant 0 : index
    %6 = vector.load %arg1[%c3, %c0_12, %c0_13, %c0_14, %c0_15] : memref<4x1x17x17x64xbf16, #tpu.memory_space<vmem>>, vector<1x1x17x17x64xbf16>
    %7 = vector.shape_cast %6 : vector<1x1x17x17x64xbf16> to vector<1x17x17x64xbf16>
    %cst = arith.constant 0.000000e+00 : f32
    %8 = vector.broadcast %cst : f32 to vector<256x128xf32>
    %9 = vector.extract_strided_slice %1 {offsets = [0, 0, 0, 0], sizes = [1, 16, 16, 64], strides = [1, 1, 1, 1]} : vector<1x17x17x64xbf16> to vector<1x16x16x64xbf16>
    %10 = vector.shape_cast %9 : vector<1x16x16x64xbf16> to vector<256x64xbf16>
    %c0_16 = arith.constant 0 : index
    %c0_17 = arith.constant 0 : index
    %c0_18 = arith.constant 0 : index
    %11 = vector.load %arg2[%c0_16, %c0_17, %c0_18] : memref<16x64x128xbf16, #tpu.memory_space<vmem>>, vector<1x64x128xbf16>
    %12 = vector.shape_cast %11 : vector<1x64x128xbf16> to vector<64x128xbf16>
    %cst_19 = arith.constant dense<0.000000e+00> : vector<256x128xf32>
    %13 = tpu.matmul %10, %12, %cst_19 {dimension_numbers = #tpu.dot_dimension_numbers<[1], [0], [0], [1], [0, 0, 1, 1], [], []>} : vector<256x64xbf16>, vector<64x128xbf16>, vector<256x128xf32> -> vector<256x128xf32>
    %14 = arith.addf %8, %13 : vector<256x128xf32>
    %15 = vector.extract_strided_slice %3 {offsets = [0, 0, 0, 0], sizes = [1, 16, 16, 64], strides = [1, 1, 1, 1]} : vector<1x17x17x64xbf16> to vector<1x16x16x64xbf16>
    %16 = vector.shape_cast %15 : vector<1x16x16x64xbf16> to vector<256x64xbf16>
    %c1_20 = arith.constant 1 : index
    %c0_21 = arith.constant 0 : index
    %c0_22 = arith.constant 0 : index
    %17 = vector.load %arg2[%c1_20, %c0_21, %c0_22] : memref<16x64x128xbf16, #tpu.memory_space<vmem>>, vector<1x64x128xbf16>
    %18 = vector.shape_cast %17 : vector<1x64x128xbf16> to vector<64x128xbf16>
    %cst_23 = arith.constant dense<0.000000e+00> : vector<256x128xf32>
    %19 = tpu.matmul %16, %18, %cst_23 {dimension_numbers = #tpu.dot_dimension_numbers<[1], [0], [0], [1], [0, 0, 1, 1], [], []>} : vector<256x64xbf16>, vector<64x128xbf16>, vector<256x128xf32> -> vector<256x128xf32>
    %20 = arith.addf %14, %19 : vector<256x128xf32>
    %21 = vector.extract_strided_slice %1 {offsets = [0, 0, 1, 0], sizes = [1, 16, 16, 64], strides = [1, 1, 1, 1]} : vector<1x17x17x64xbf16> to vector<1x16x16x64xbf16>
    %22 = vector.shape_cast %21 : vector<1x16x16x64xbf16> to vector<256x64xbf16>
    %c2_24 = arith.constant 2 : index
    %c0_25 = arith.constant 0 : index
    %c0_26 = arith.constant 0 : index
    %23 = vector.load %arg2[%c2_24, %c0_25, %c0_26] : memref<16x64x128xbf16, #tpu.memory_space<vmem>>, vector<1x64x128xbf16>
    %24 = vector.shape_cast %23 : vector<1x64x128xbf16> to vector<64x128xbf16>
    %cst_27 = arith.constant dense<0.000000e+00> : vector<256x128xf32>
    %25 = tpu.matmul %22, %24, %cst_27 {dimension_numbers = #tpu.dot_dimension_numbers<[1], [0], [0], [1], [0, 0, 1, 1], [], []>} : vector<256x64xbf16>, vector<64x128xbf16>, vector<256x128xf32> -> vector<256x128xf32>
    %26 = arith.addf %20, %25 : vector<256x128xf32>
    %27 = vector.extract_strided_slice %3 {offsets = [0, 0, 1, 0], sizes = [1, 16, 16, 64], strides = [1, 1, 1, 1]} : vector<1x17x17x64xbf16> to vector<1x16x16x64xbf16>
    %28 = vector.shape_cast %27 : vector<1x16x16x64xbf16> to vector<256x64xbf16>
    %c3_28 = arith.constant 3 : index
    %c0_29 = arith.constant 0 : index
    %c0_30 = arith.constant 0 : index
    %29 = vector.load %arg2[%c3_28, %c0_29, %c0_30] : memref<16x64x128xbf16, #tpu.memory_space<vmem>>, vector<1x64x128xbf16>
    %30 = vector.shape_cast %29 : vector<1x64x128xbf16> to vector<64x128xbf16>
    %cst_31 = arith.constant dense<0.000000e+00> : vector<256x128xf32>
    %31 = tpu.matmul %28, %30, %cst_31 {dimension_numbers = #tpu.dot_dimension_numbers<[1], [0], [0], [1], [0, 0, 1, 1], [], []>} : vector<256x64xbf16>, vector<64x128xbf16>, vector<256x128xf32> -> vector<256x128xf32>
    %32 = arith.addf %26, %31 : vector<256x128xf32>
    %33 = vector.extract_strided_slice %5 {offsets = [0, 0, 0, 0], sizes = [1, 16, 16, 64], strides = [1, 1, 1, 1]} : vector<1x17x17x64xbf16> to vector<1x16x16x64xbf16>
    %34 = vector.shape_cast %33 : vector<1x16x16x64xbf16> to vector<256x64xbf16>
    %c4 = arith.constant 4 : index
    %c0_32 = arith.constant 0 : index
    %c0_33 = arith.constant 0 : index
    %35 = vector.load %arg2[%c4, %c0_32, %c0_33] : memref<16x64x128xbf16, #tpu.memory_space<vmem>>, vector<1x64x128xbf16>
    %36 = vector.shape_cast %35 : vector<1x64x128xbf16> to vector<64x128xbf16>
    %cst_34 = arith.constant dense<0.000000e+00> : vector<256x128xf32>
    %37 = tpu.matmul %34, %36, %cst_34 {dimension_numbers = #tpu.dot_dimension_numbers<[1], [0], [0], [1], [0, 0, 1, 1], [], []>} : vector<256x64xbf16>, vector<64x128xbf16>, vector<256x128xf32> -> vector<256x128xf32>
    %38 = arith.addf %32, %37 : vector<256x128xf32>
    %39 = vector.extract_strided_slice %7 {offsets = [0, 0, 0, 0], sizes = [1, 16, 16, 64], strides = [1, 1, 1, 1]} : vector<1x17x17x64xbf16> to vector<1x16x16x64xbf16>
    %40 = vector.shape_cast %39 : vector<1x16x16x64xbf16> to vector<256x64xbf16>
    %c5 = arith.constant 5 : index
    %c0_35 = arith.constant 0 : index
    %c0_36 = arith.constant 0 : index
    %41 = vector.load %arg2[%c5, %c0_35, %c0_36] : memref<16x64x128xbf16, #tpu.memory_space<vmem>>, vector<1x64x128xbf16>
    %42 = vector.shape_cast %41 : vector<1x64x128xbf16> to vector<64x128xbf16>
    %cst_37 = arith.constant dense<0.000000e+00> : vector<256x128xf32>
    %43 = tpu.matmul %40, %42, %cst_37 {dimension_numbers = #tpu.dot_dimension_numbers<[1], [0], [0], [1], [0, 0, 1, 1], [], []>} : vector<256x64xbf16>, vector<64x128xbf16>, vector<256x128xf32> -> vector<256x128xf32>
    %44 = arith.addf %38, %43 : vector<256x128xf32>
    %45 = vector.extract_strided_slice %5 {offsets = [0, 0, 1, 0], sizes = [1, 16, 16, 64], strides = [1, 1, 1, 1]} : vector<1x17x17x64xbf16> to vector<1x16x16x64xbf16>
    %46 = vector.shape_cast %45 : vector<1x16x16x64xbf16> to vector<256x64xbf16>
    %c6 = arith.constant 6 : index
    %c0_38 = arith.constant 0 : index
    %c0_39 = arith.constant 0 : index
    %47 = vector.load %arg2[%c6, %c0_38, %c0_39] : memref<16x64x128xbf16, #tpu.memory_space<vmem>>, vector<1x64x128xbf16>
    %48 = vector.shape_cast %47 : vector<1x64x128xbf16> to vector<64x128xbf16>
    %cst_40 = arith.constant dense<0.000000e+00> : vector<256x128xf32>
    %49 = tpu.matmul %46, %48, %cst_40 {dimension_numbers = #tpu.dot_dimension_numbers<[1], [0], [0], [1], [0, 0, 1, 1], [], []>} : vector<256x64xbf16>, vector<64x128xbf16>, vector<256x128xf32> -> vector<256x128xf32>
    %50 = arith.addf %44, %49 : vector<256x128xf32>
    %51 = vector.extract_strided_slice %7 {offsets = [0, 0, 1, 0], sizes = [1, 16, 16, 64], strides = [1, 1, 1, 1]} : vector<1x17x17x64xbf16> to vector<1x16x16x64xbf16>
    %52 = vector.shape_cast %51 : vector<1x16x16x64xbf16> to vector<256x64xbf16>
    %c7 = arith.constant 7 : index
    %c0_41 = arith.constant 0 : index
    %c0_42 = arith.constant 0 : index
    %53 = vector.load %arg2[%c7, %c0_41, %c0_42] : memref<16x64x128xbf16, #tpu.memory_space<vmem>>, vector<1x64x128xbf16>
    %54 = vector.shape_cast %53 : vector<1x64x128xbf16> to vector<64x128xbf16>
    %cst_43 = arith.constant dense<0.000000e+00> : vector<256x128xf32>
    %55 = tpu.matmul %52, %54, %cst_43 {dimension_numbers = #tpu.dot_dimension_numbers<[1], [0], [0], [1], [0, 0, 1, 1], [], []>} : vector<256x64xbf16>, vector<64x128xbf16>, vector<256x128xf32> -> vector<256x128xf32>
    %56 = arith.addf %50, %55 : vector<256x128xf32>
    %57 = vector.extract_strided_slice %1 {offsets = [0, 1, 0, 0], sizes = [1, 16, 16, 64], strides = [1, 1, 1, 1]} : vector<1x17x17x64xbf16> to vector<1x16x16x64xbf16>
    %58 = vector.shape_cast %57 : vector<1x16x16x64xbf16> to vector<256x64xbf16>
    %c8 = arith.constant 8 : index
    %c0_44 = arith.constant 0 : index
    %c0_45 = arith.constant 0 : index
    %59 = vector.load %arg2[%c8, %c0_44, %c0_45] : memref<16x64x128xbf16, #tpu.memory_space<vmem>>, vector<1x64x128xbf16>
    %60 = vector.shape_cast %59 : vector<1x64x128xbf16> to vector<64x128xbf16>
    %cst_46 = arith.constant dense<0.000000e+00> : vector<256x128xf32>
    %61 = tpu.matmul %58, %60, %cst_46 {dimension_numbers = #tpu.dot_dimension_numbers<[1], [0], [0], [1], [0, 0, 1, 1], [], []>} : vector<256x64xbf16>, vector<64x128xbf16>, vector<256x128xf32> -> vector<256x128xf32>
    %62 = arith.addf %56, %61 : vector<256x128xf32>
    %63 = vector.extract_strided_slice %3 {offsets = [0, 1, 0, 0], sizes = [1, 16, 16, 64], strides = [1, 1, 1, 1]} : vector<1x17x17x64xbf16> to vector<1x16x16x64xbf16>
    %64 = vector.shape_cast %63 : vector<1x16x16x64xbf16> to vector<256x64xbf16>
    %c9 = arith.constant 9 : index
    %c0_47 = arith.constant 0 : index
    %c0_48 = arith.constant 0 : index
    %65 = vector.load %arg2[%c9, %c0_47, %c0_48] : memref<16x64x128xbf16, #tpu.memory_space<vmem>>, vector<1x64x128xbf16>
    %66 = vector.shape_cast %65 : vector<1x64x128xbf16> to vector<64x128xbf16>
    %cst_49 = arith.constant dense<0.000000e+00> : vector<256x128xf32>
    %67 = tpu.matmul %64, %66, %cst_49 {dimension_numbers = #tpu.dot_dimension_numbers<[1], [0], [0], [1], [0, 0, 1, 1], [], []>} : vector<256x64xbf16>, vector<64x128xbf16>, vector<256x128xf32> -> vector<256x128xf32>
    %68 = arith.addf %62, %67 : vector<256x128xf32>
    %69 = vector.extract_strided_slice %1 {offsets = [0, 1, 1, 0], sizes = [1, 16, 16, 64], strides = [1, 1, 1, 1]} : vector<1x17x17x64xbf16> to vector<1x16x16x64xbf16>
    %70 = vector.shape_cast %69 : vector<1x16x16x64xbf16> to vector<256x64xbf16>
    %c10 = arith.constant 10 : index
    %c0_50 = arith.constant 0 : index
    %c0_51 = arith.constant 0 : index
    %71 = vector.load %arg2[%c10, %c0_50, %c0_51] : memref<16x64x128xbf16, #tpu.memory_space<vmem>>, vector<1x64x128xbf16>
    %72 = vector.shape_cast %71 : vector<1x64x128xbf16> to vector<64x128xbf16>
    %cst_52 = arith.constant dense<0.000000e+00> : vector<256x128xf32>
    %73 = tpu.matmul %70, %72, %cst_52 {dimension_numbers = #tpu.dot_dimension_numbers<[1], [0], [0], [1], [0, 0, 1, 1], [], []>} : vector<256x64xbf16>, vector<64x128xbf16>, vector<256x128xf32> -> vector<256x128xf32>
    %74 = arith.addf %68, %73 : vector<256x128xf32>
    %75 = vector.extract_strided_slice %3 {offsets = [0, 1, 1, 0], sizes = [1, 16, 16, 64], strides = [1, 1, 1, 1]} : vector<1x17x17x64xbf16> to vector<1x16x16x64xbf16>
    %76 = vector.shape_cast %75 : vector<1x16x16x64xbf16> to vector<256x64xbf16>
    %c11 = arith.constant 11 : index
    %c0_53 = arith.constant 0 : index
    %c0_54 = arith.constant 0 : index
    %77 = vector.load %arg2[%c11, %c0_53, %c0_54] : memref<16x64x128xbf16, #tpu.memory_space<vmem>>, vector<1x64x128xbf16>
    %78 = vector.shape_cast %77 : vector<1x64x128xbf16> to vector<64x128xbf16>
    %cst_55 = arith.constant dense<0.000000e+00> : vector<256x128xf32>
    %79 = tpu.matmul %76, %78, %cst_55 {dimension_numbers = #tpu.dot_dimension_numbers<[1], [0], [0], [1], [0, 0, 1, 1], [], []>} : vector<256x64xbf16>, vector<64x128xbf16>, vector<256x128xf32> -> vector<256x128xf32>
    %80 = arith.addf %74, %79 : vector<256x128xf32>
    %81 = vector.extract_strided_slice %5 {offsets = [0, 1, 0, 0], sizes = [1, 16, 16, 64], strides = [1, 1, 1, 1]} : vector<1x17x17x64xbf16> to vector<1x16x16x64xbf16>
    %82 = vector.shape_cast %81 : vector<1x16x16x64xbf16> to vector<256x64xbf16>
    %c12 = arith.constant 12 : index
    %c0_56 = arith.constant 0 : index
    %c0_57 = arith.constant 0 : index
    %83 = vector.load %arg2[%c12, %c0_56, %c0_57] : memref<16x64x128xbf16, #tpu.memory_space<vmem>>, vector<1x64x128xbf16>
    %84 = vector.shape_cast %83 : vector<1x64x128xbf16> to vector<64x128xbf16>
    %cst_58 = arith.constant dense<0.000000e+00> : vector<256x128xf32>
    %85 = tpu.matmul %82, %84, %cst_58 {dimension_numbers = #tpu.dot_dimension_numbers<[1], [0], [0], [1], [0, 0, 1, 1], [], []>} : vector<256x64xbf16>, vector<64x128xbf16>, vector<256x128xf32> -> vector<256x128xf32>
    %86 = arith.addf %80, %85 : vector<256x128xf32>
    %87 = vector.extract_strided_slice %7 {offsets = [0, 1, 0, 0], sizes = [1, 16, 16, 64], strides = [1, 1, 1, 1]} : vector<1x17x17x64xbf16> to vector<1x16x16x64xbf16>
    %88 = vector.shape_cast %87 : vector<1x16x16x64xbf16> to vector<256x64xbf16>
    %c13 = arith.constant 13 : index
    %c0_59 = arith.constant 0 : index
    %c0_60 = arith.constant 0 : index
    %89 = vector.load %arg2[%c13, %c0_59, %c0_60] : memref<16x64x128xbf16, #tpu.memory_space<vmem>>, vector<1x64x128xbf16>
    %90 = vector.shape_cast %89 : vector<1x64x128xbf16> to vector<64x128xbf16>
    %cst_61 = arith.constant dense<0.000000e+00> : vector<256x128xf32>
    %91 = tpu.matmul %88, %90, %cst_61 {dimension_numbers = #tpu.dot_dimension_numbers<[1], [0], [0], [1], [0, 0, 1, 1], [], []>} : vector<256x64xbf16>, vector<64x128xbf16>, vector<256x128xf32> -> vector<256x128xf32>
    %92 = arith.addf %86, %91 : vector<256x128xf32>
    %93 = vector.extract_strided_slice %5 {offsets = [0, 1, 1, 0], sizes = [1, 16, 16, 64], strides = [1, 1, 1, 1]} : vector<1x17x17x64xbf16> to vector<1x16x16x64xbf16>
    %94 = vector.shape_cast %93 : vector<1x16x16x64xbf16> to vector<256x64xbf16>
    %c14 = arith.constant 14 : index
    %c0_62 = arith.constant 0 : index
    %c0_63 = arith.constant 0 : index
    %95 = vector.load %arg2[%c14, %c0_62, %c0_63] : memref<16x64x128xbf16, #tpu.memory_space<vmem>>, vector<1x64x128xbf16>
    %96 = vector.shape_cast %95 : vector<1x64x128xbf16> to vector<64x128xbf16>
    %cst_64 = arith.constant dense<0.000000e+00> : vector<256x128xf32>
    %97 = tpu.matmul %94, %96, %cst_64 {dimension_numbers = #tpu.dot_dimension_numbers<[1], [0], [0], [1], [0, 0, 1, 1], [], []>} : vector<256x64xbf16>, vector<64x128xbf16>, vector<256x128xf32> -> vector<256x128xf32>
    %98 = arith.addf %92, %97 : vector<256x128xf32>
    %99 = vector.extract_strided_slice %7 {offsets = [0, 1, 1, 0], sizes = [1, 16, 16, 64], strides = [1, 1, 1, 1]} : vector<1x17x17x64xbf16> to vector<1x16x16x64xbf16>
    %100 = vector.shape_cast %99 : vector<1x16x16x64xbf16> to vector<256x64xbf16>
    %c15 = arith.constant 15 : index
    %c0_65 = arith.constant 0 : index
    %c0_66 = arith.constant 0 : index
    %101 = vector.load %arg2[%c15, %c0_65, %c0_66] : memref<16x64x128xbf16, #tpu.memory_space<vmem>>, vector<1x64x128xbf16>
    %102 = vector.shape_cast %101 : vector<1x64x128xbf16> to vector<64x128xbf16>
    %cst_67 = arith.constant dense<0.000000e+00> : vector<256x128xf32>
    %103 = tpu.matmul %100, %102, %cst_67 {dimension_numbers = #tpu.dot_dimension_numbers<[1], [0], [0], [1], [0, 0, 1, 1], [], []>} : vector<256x64xbf16>, vector<64x128xbf16>, vector<256x128xf32> -> vector<256x128xf32>
    %104 = arith.addf %98, %103 : vector<256x128xf32>
    %c0_68 = arith.constant 0 : index
    %c0_69 = arith.constant 0 : index
    %105 = vector.load %arg3[%c0_68, %c0_69] : memref<1x128xf32, #tpu.memory_space<vmem>>, vector<1x128xf32>
    %106 = vector.broadcast %105 : vector<1x128xf32> to vector<256x128xf32>
    %107 = arith.addf %104, %106 : vector<256x128xf32>
    %cst_70 = arith.constant 2.000000e-01 : f32
    %108 = vector.broadcast %cst_70 : f32 to vector<256x128xf32>
    %109 = arith.mulf %108, %107 : vector<256x128xf32>
    %110 = arith.maximumf %107, %109 : vector<256x128xf32>
    %111 = arith.truncf %110 : vector<256x128xf32> to vector<256x128xbf16>
    %c0_71 = arith.constant 0 : index
    %c0_72 = arith.constant 0 : index
    %112 = vector.load %arg4[%c0_71, %c0_72] : memref<256x128xbf16, #tpu.memory_space<vmem>>, vector<256x128xbf16>
    tpu.vector_store %arg4[%c0_71, %c0_72], %111 {strides = array<i32>} : memref<256x128xbf16, #tpu.memory_space<vmem>>, vector<256x128xbf16>,
    return
  }
  func.func @transform_0(%arg0: i32) -> (i32, i32, i32, i32, i32) {
    %c0_i32 = arith.constant 0 : i32
    %c0_i32_0 = arith.constant 0 : i32
    %c0_i32_1 = arith.constant 0 : i32
    %c0_i32_2 = arith.constant 0 : i32
    %c0_i32_3 = arith.constant 0 : i32
    return %c0_i32, %arg0, %c0_i32_0, %c0_i32_1, %c0_i32_2 : i32, i32, i32, i32, i32
  }
  func.func @transform_1(%arg0: i32) -> (i32, i32, i32) {
    %c0_i32 = arith.constant 0 : i32
    %c0_i32_0 = arith.constant 0 : i32
    %c0_i32_1 = arith.constant 0 : i32
    %c0_i32_2 = arith.constant 0 : i32
    return %c0_i32, %c0_i32_0, %c0_i32_1 : i32, i32, i32
  }
  func.func @transform_2(%arg0: i32) -> (i32, i32) {
    %c0_i32 = arith.constant 0 : i32
    %c0_i32_0 = arith.constant 0 : i32
    %c0_i32_1 = arith.constant 0 : i32
    return %c0_i32, %c0_i32_0 : i32, i32
  }
  func.func @transform_3(%arg0: i32) -> (i32, i32) {
    %c0_i32 = arith.constant 0 : i32
    %c0_i32_0 = arith.constant 0 : i32
    return %arg0, %c0_i32 : i32, i32
  }
}

module attributes {stable_mosaic.version = 11 : i64} {
  func.func @kernel(%arg0: i32, %arg1: memref<4x1x9x9x128xbf16, #tpu.memory_space<vmem>>, %arg2: memref<16x128x256xbf16, #tpu.memory_space<vmem>>, %arg3: memref<1x256xf32, #tpu.memory_space<vmem>>, %arg4: memref<64x256xbf16, #tpu.memory_space<vmem>>) attributes {dimension_semantics = [#tpu.dimension_semantics<parallel>], iteration_bounds = array<i64: 2>, scalar_prefetch = 0 : i64, scratch_operands = 0 : i64, tpu.core_type = #tpu.core_type<tc>, window_params = [{transform_indices = @transform_0, window_bounds = array<i64: 4, 1, 9, 9, 128>}, {pipeline_mode = #tpu.pipeline_mode<synchronous>, transform_indices = @transform_1, window_bounds = array<i64: 16, 128, 256>}, {pipeline_mode = #tpu.pipeline_mode<synchronous>, transform_indices = @transform_2, window_bounds = array<i64: 1, 256>}, {transform_indices = @transform_3, window_bounds = array<i64: 64, 256>}]} {
    %c0 = arith.constant 0 : index
    %c0_0 = arith.constant 0 : index
    %c0_1 = arith.constant 0 : index
    %c0_2 = arith.constant 0 : index
    %c0_3 = arith.constant 0 : index
    %0 = vector.load %arg1[%c0, %c0_0, %c0_1, %c0_2, %c0_3] : memref<4x1x9x9x128xbf16, #tpu.memory_space<vmem>>, vector<1x1x9x9x128xbf16>
    %1 = vector.shape_cast %0 : vector<1x1x9x9x128xbf16> to vector<1x9x9x128xbf16>
    %c1 = arith.constant 1 : index
    %c0_4 = arith.constant 0 : index
    %c0_5 = arith.constant 0 : index
    %c0_6 = arith.constant 0 : index
    %c0_7 = arith.constant 0 : index
    %2 = vector.load %arg1[%c1, %c0_4, %c0_5, %c0_6, %c0_7] : memref<4x1x9x9x128xbf16, #tpu.memory_space<vmem>>, vector<1x1x9x9x128xbf16>
    %3 = vector.shape_cast %2 : vector<1x1x9x9x128xbf16> to vector<1x9x9x128xbf16>
    %c2 = arith.constant 2 : index
    %c0_8 = arith.constant 0 : index
    %c0_9 = arith.constant 0 : index
    %c0_10 = arith.constant 0 : index
    %c0_11 = arith.constant 0 : index
    %4 = vector.load %arg1[%c2, %c0_8, %c0_9, %c0_10, %c0_11] : memref<4x1x9x9x128xbf16, #tpu.memory_space<vmem>>, vector<1x1x9x9x128xbf16>
    %5 = vector.shape_cast %4 : vector<1x1x9x9x128xbf16> to vector<1x9x9x128xbf16>
    %c3 = arith.constant 3 : index
    %c0_12 = arith.constant 0 : index
    %c0_13 = arith.constant 0 : index
    %c0_14 = arith.constant 0 : index
    %c0_15 = arith.constant 0 : index
    %6 = vector.load %arg1[%c3, %c0_12, %c0_13, %c0_14, %c0_15] : memref<4x1x9x9x128xbf16, #tpu.memory_space<vmem>>, vector<1x1x9x9x128xbf16>
    %7 = vector.shape_cast %6 : vector<1x1x9x9x128xbf16> to vector<1x9x9x128xbf16>
    %cst = arith.constant 0.000000e+00 : f32
    %8 = vector.broadcast %cst : f32 to vector<64x256xf32>
    %9 = vector.extract_strided_slice %1 {offsets = [0, 0, 0, 0], sizes = [1, 8, 8, 128], strides = [1, 1, 1, 1]} : vector<1x9x9x128xbf16> to vector<1x8x8x128xbf16>
    %10 = vector.shape_cast %9 : vector<1x8x8x128xbf16> to vector<64x128xbf16>
    %c0_16 = arith.constant 0 : index
    %c0_17 = arith.constant 0 : index
    %c0_18 = arith.constant 0 : index
    %11 = vector.load %arg2[%c0_16, %c0_17, %c0_18] : memref<16x128x256xbf16, #tpu.memory_space<vmem>>, vector<1x128x256xbf16>
    %12 = vector.shape_cast %11 : vector<1x128x256xbf16> to vector<128x256xbf16>
    %cst_19 = arith.constant dense<0.000000e+00> : vector<64x256xf32>
    %13 = tpu.matmul %10, %12, %cst_19 {dimension_numbers = #tpu.dot_dimension_numbers<[1], [0], [0], [1], [0, 0, 1, 1], [], []>} : vector<64x128xbf16>, vector<128x256xbf16>, vector<64x256xf32> -> vector<64x256xf32>
    %14 = arith.addf %8, %13 : vector<64x256xf32>
    %15 = vector.extract_strided_slice %3 {offsets = [0, 0, 0, 0], sizes = [1, 8, 8, 128], strides = [1, 1, 1, 1]} : vector<1x9x9x128xbf16> to vector<1x8x8x128xbf16>
    %16 = vector.shape_cast %15 : vector<1x8x8x128xbf16> to vector<64x128xbf16>
    %c1_20 = arith.constant 1 : index
    %c0_21 = arith.constant 0 : index
    %c0_22 = arith.constant 0 : index
    %17 = vector.load %arg2[%c1_20, %c0_21, %c0_22] : memref<16x128x256xbf16, #tpu.memory_space<vmem>>, vector<1x128x256xbf16>
    %18 = vector.shape_cast %17 : vector<1x128x256xbf16> to vector<128x256xbf16>
    %cst_23 = arith.constant dense<0.000000e+00> : vector<64x256xf32>
    %19 = tpu.matmul %16, %18, %cst_23 {dimension_numbers = #tpu.dot_dimension_numbers<[1], [0], [0], [1], [0, 0, 1, 1], [], []>} : vector<64x128xbf16>, vector<128x256xbf16>, vector<64x256xf32> -> vector<64x256xf32>
    %20 = arith.addf %14, %19 : vector<64x256xf32>
    %21 = vector.extract_strided_slice %1 {offsets = [0, 0, 1, 0], sizes = [1, 8, 8, 128], strides = [1, 1, 1, 1]} : vector<1x9x9x128xbf16> to vector<1x8x8x128xbf16>
    %22 = vector.shape_cast %21 : vector<1x8x8x128xbf16> to vector<64x128xbf16>
    %c2_24 = arith.constant 2 : index
    %c0_25 = arith.constant 0 : index
    %c0_26 = arith.constant 0 : index
    %23 = vector.load %arg2[%c2_24, %c0_25, %c0_26] : memref<16x128x256xbf16, #tpu.memory_space<vmem>>, vector<1x128x256xbf16>
    %24 = vector.shape_cast %23 : vector<1x128x256xbf16> to vector<128x256xbf16>
    %cst_27 = arith.constant dense<0.000000e+00> : vector<64x256xf32>
    %25 = tpu.matmul %22, %24, %cst_27 {dimension_numbers = #tpu.dot_dimension_numbers<[1], [0], [0], [1], [0, 0, 1, 1], [], []>} : vector<64x128xbf16>, vector<128x256xbf16>, vector<64x256xf32> -> vector<64x256xf32>
    %26 = arith.addf %20, %25 : vector<64x256xf32>
    %27 = vector.extract_strided_slice %3 {offsets = [0, 0, 1, 0], sizes = [1, 8, 8, 128], strides = [1, 1, 1, 1]} : vector<1x9x9x128xbf16> to vector<1x8x8x128xbf16>
    %28 = vector.shape_cast %27 : vector<1x8x8x128xbf16> to vector<64x128xbf16>
    %c3_28 = arith.constant 3 : index
    %c0_29 = arith.constant 0 : index
    %c0_30 = arith.constant 0 : index
    %29 = vector.load %arg2[%c3_28, %c0_29, %c0_30] : memref<16x128x256xbf16, #tpu.memory_space<vmem>>, vector<1x128x256xbf16>
    %30 = vector.shape_cast %29 : vector<1x128x256xbf16> to vector<128x256xbf16>
    %cst_31 = arith.constant dense<0.000000e+00> : vector<64x256xf32>
    %31 = tpu.matmul %28, %30, %cst_31 {dimension_numbers = #tpu.dot_dimension_numbers<[1], [0], [0], [1], [0, 0, 1, 1], [], []>} : vector<64x128xbf16>, vector<128x256xbf16>, vector<64x256xf32> -> vector<64x256xf32>
    %32 = arith.addf %26, %31 : vector<64x256xf32>
    %33 = vector.extract_strided_slice %5 {offsets = [0, 0, 0, 0], sizes = [1, 8, 8, 128], strides = [1, 1, 1, 1]} : vector<1x9x9x128xbf16> to vector<1x8x8x128xbf16>
    %34 = vector.shape_cast %33 : vector<1x8x8x128xbf16> to vector<64x128xbf16>
    %c4 = arith.constant 4 : index
    %c0_32 = arith.constant 0 : index
    %c0_33 = arith.constant 0 : index
    %35 = vector.load %arg2[%c4, %c0_32, %c0_33] : memref<16x128x256xbf16, #tpu.memory_space<vmem>>, vector<1x128x256xbf16>
    %36 = vector.shape_cast %35 : vector<1x128x256xbf16> to vector<128x256xbf16>
    %cst_34 = arith.constant dense<0.000000e+00> : vector<64x256xf32>
    %37 = tpu.matmul %34, %36, %cst_34 {dimension_numbers = #tpu.dot_dimension_numbers<[1], [0], [0], [1], [0, 0, 1, 1], [], []>} : vector<64x128xbf16>, vector<128x256xbf16>, vector<64x256xf32> -> vector<64x256xf32>
    %38 = arith.addf %32, %37 : vector<64x256xf32>
    %39 = vector.extract_strided_slice %7 {offsets = [0, 0, 0, 0], sizes = [1, 8, 8, 128], strides = [1, 1, 1, 1]} : vector<1x9x9x128xbf16> to vector<1x8x8x128xbf16>
    %40 = vector.shape_cast %39 : vector<1x8x8x128xbf16> to vector<64x128xbf16>
    %c5 = arith.constant 5 : index
    %c0_35 = arith.constant 0 : index
    %c0_36 = arith.constant 0 : index
    %41 = vector.load %arg2[%c5, %c0_35, %c0_36] : memref<16x128x256xbf16, #tpu.memory_space<vmem>>, vector<1x128x256xbf16>
    %42 = vector.shape_cast %41 : vector<1x128x256xbf16> to vector<128x256xbf16>
    %cst_37 = arith.constant dense<0.000000e+00> : vector<64x256xf32>
    %43 = tpu.matmul %40, %42, %cst_37 {dimension_numbers = #tpu.dot_dimension_numbers<[1], [0], [0], [1], [0, 0, 1, 1], [], []>} : vector<64x128xbf16>, vector<128x256xbf16>, vector<64x256xf32> -> vector<64x256xf32>
    %44 = arith.addf %38, %43 : vector<64x256xf32>
    %45 = vector.extract_strided_slice %5 {offsets = [0, 0, 1, 0], sizes = [1, 8, 8, 128], strides = [1, 1, 1, 1]} : vector<1x9x9x128xbf16> to vector<1x8x8x128xbf16>
    %46 = vector.shape_cast %45 : vector<1x8x8x128xbf16> to vector<64x128xbf16>
    %c6 = arith.constant 6 : index
    %c0_38 = arith.constant 0 : index
    %c0_39 = arith.constant 0 : index
    %47 = vector.load %arg2[%c6, %c0_38, %c0_39] : memref<16x128x256xbf16, #tpu.memory_space<vmem>>, vector<1x128x256xbf16>
    %48 = vector.shape_cast %47 : vector<1x128x256xbf16> to vector<128x256xbf16>
    %cst_40 = arith.constant dense<0.000000e+00> : vector<64x256xf32>
    %49 = tpu.matmul %46, %48, %cst_40 {dimension_numbers = #tpu.dot_dimension_numbers<[1], [0], [0], [1], [0, 0, 1, 1], [], []>} : vector<64x128xbf16>, vector<128x256xbf16>, vector<64x256xf32> -> vector<64x256xf32>
    %50 = arith.addf %44, %49 : vector<64x256xf32>
    %51 = vector.extract_strided_slice %7 {offsets = [0, 0, 1, 0], sizes = [1, 8, 8, 128], strides = [1, 1, 1, 1]} : vector<1x9x9x128xbf16> to vector<1x8x8x128xbf16>
    %52 = vector.shape_cast %51 : vector<1x8x8x128xbf16> to vector<64x128xbf16>
    %c7 = arith.constant 7 : index
    %c0_41 = arith.constant 0 : index
    %c0_42 = arith.constant 0 : index
    %53 = vector.load %arg2[%c7, %c0_41, %c0_42] : memref<16x128x256xbf16, #tpu.memory_space<vmem>>, vector<1x128x256xbf16>
    %54 = vector.shape_cast %53 : vector<1x128x256xbf16> to vector<128x256xbf16>
    %cst_43 = arith.constant dense<0.000000e+00> : vector<64x256xf32>
    %55 = tpu.matmul %52, %54, %cst_43 {dimension_numbers = #tpu.dot_dimension_numbers<[1], [0], [0], [1], [0, 0, 1, 1], [], []>} : vector<64x128xbf16>, vector<128x256xbf16>, vector<64x256xf32> -> vector<64x256xf32>
    %56 = arith.addf %50, %55 : vector<64x256xf32>
    %57 = vector.extract_strided_slice %1 {offsets = [0, 1, 0, 0], sizes = [1, 8, 8, 128], strides = [1, 1, 1, 1]} : vector<1x9x9x128xbf16> to vector<1x8x8x128xbf16>
    %58 = vector.shape_cast %57 : vector<1x8x8x128xbf16> to vector<64x128xbf16>
    %c8 = arith.constant 8 : index
    %c0_44 = arith.constant 0 : index
    %c0_45 = arith.constant 0 : index
    %59 = vector.load %arg2[%c8, %c0_44, %c0_45] : memref<16x128x256xbf16, #tpu.memory_space<vmem>>, vector<1x128x256xbf16>
    %60 = vector.shape_cast %59 : vector<1x128x256xbf16> to vector<128x256xbf16>
    %cst_46 = arith.constant dense<0.000000e+00> : vector<64x256xf32>
    %61 = tpu.matmul %58, %60, %cst_46 {dimension_numbers = #tpu.dot_dimension_numbers<[1], [0], [0], [1], [0, 0, 1, 1], [], []>} : vector<64x128xbf16>, vector<128x256xbf16>, vector<64x256xf32> -> vector<64x256xf32>
    %62 = arith.addf %56, %61 : vector<64x256xf32>
    %63 = vector.extract_strided_slice %3 {offsets = [0, 1, 0, 0], sizes = [1, 8, 8, 128], strides = [1, 1, 1, 1]} : vector<1x9x9x128xbf16> to vector<1x8x8x128xbf16>
    %64 = vector.shape_cast %63 : vector<1x8x8x128xbf16> to vector<64x128xbf16>
    %c9 = arith.constant 9 : index
    %c0_47 = arith.constant 0 : index
    %c0_48 = arith.constant 0 : index
    %65 = vector.load %arg2[%c9, %c0_47, %c0_48] : memref<16x128x256xbf16, #tpu.memory_space<vmem>>, vector<1x128x256xbf16>
    %66 = vector.shape_cast %65 : vector<1x128x256xbf16> to vector<128x256xbf16>
    %cst_49 = arith.constant dense<0.000000e+00> : vector<64x256xf32>
    %67 = tpu.matmul %64, %66, %cst_49 {dimension_numbers = #tpu.dot_dimension_numbers<[1], [0], [0], [1], [0, 0, 1, 1], [], []>} : vector<64x128xbf16>, vector<128x256xbf16>, vector<64x256xf32> -> vector<64x256xf32>
    %68 = arith.addf %62, %67 : vector<64x256xf32>
    %69 = vector.extract_strided_slice %1 {offsets = [0, 1, 1, 0], sizes = [1, 8, 8, 128], strides = [1, 1, 1, 1]} : vector<1x9x9x128xbf16> to vector<1x8x8x128xbf16>
    %70 = vector.shape_cast %69 : vector<1x8x8x128xbf16> to vector<64x128xbf16>
    %c10 = arith.constant 10 : index
    %c0_50 = arith.constant 0 : index
    %c0_51 = arith.constant 0 : index
    %71 = vector.load %arg2[%c10, %c0_50, %c0_51] : memref<16x128x256xbf16, #tpu.memory_space<vmem>>, vector<1x128x256xbf16>
    %72 = vector.shape_cast %71 : vector<1x128x256xbf16> to vector<128x256xbf16>
    %cst_52 = arith.constant dense<0.000000e+00> : vector<64x256xf32>
    %73 = tpu.matmul %70, %72, %cst_52 {dimension_numbers = #tpu.dot_dimension_numbers<[1], [0], [0], [1], [0, 0, 1, 1], [], []>} : vector<64x128xbf16>, vector<128x256xbf16>, vector<64x256xf32> -> vector<64x256xf32>
    %74 = arith.addf %68, %73 : vector<64x256xf32>
    %75 = vector.extract_strided_slice %3 {offsets = [0, 1, 1, 0], sizes = [1, 8, 8, 128], strides = [1, 1, 1, 1]} : vector<1x9x9x128xbf16> to vector<1x8x8x128xbf16>
    %76 = vector.shape_cast %75 : vector<1x8x8x128xbf16> to vector<64x128xbf16>
    %c11 = arith.constant 11 : index
    %c0_53 = arith.constant 0 : index
    %c0_54 = arith.constant 0 : index
    %77 = vector.load %arg2[%c11, %c0_53, %c0_54] : memref<16x128x256xbf16, #tpu.memory_space<vmem>>, vector<1x128x256xbf16>
    %78 = vector.shape_cast %77 : vector<1x128x256xbf16> to vector<128x256xbf16>
    %cst_55 = arith.constant dense<0.000000e+00> : vector<64x256xf32>
    %79 = tpu.matmul %76, %78, %cst_55 {dimension_numbers = #tpu.dot_dimension_numbers<[1], [0], [0], [1], [0, 0, 1, 1], [], []>} : vector<64x128xbf16>, vector<128x256xbf16>, vector<64x256xf32> -> vector<64x256xf32>
    %80 = arith.addf %74, %79 : vector<64x256xf32>
    %81 = vector.extract_strided_slice %5 {offsets = [0, 1, 0, 0], sizes = [1, 8, 8, 128], strides = [1, 1, 1, 1]} : vector<1x9x9x128xbf16> to vector<1x8x8x128xbf16>
    %82 = vector.shape_cast %81 : vector<1x8x8x128xbf16> to vector<64x128xbf16>
    %c12 = arith.constant 12 : index
    %c0_56 = arith.constant 0 : index
    %c0_57 = arith.constant 0 : index
    %83 = vector.load %arg2[%c12, %c0_56, %c0_57] : memref<16x128x256xbf16, #tpu.memory_space<vmem>>, vector<1x128x256xbf16>
    %84 = vector.shape_cast %83 : vector<1x128x256xbf16> to vector<128x256xbf16>
    %cst_58 = arith.constant dense<0.000000e+00> : vector<64x256xf32>
    %85 = tpu.matmul %82, %84, %cst_58 {dimension_numbers = #tpu.dot_dimension_numbers<[1], [0], [0], [1], [0, 0, 1, 1], [], []>} : vector<64x128xbf16>, vector<128x256xbf16>, vector<64x256xf32> -> vector<64x256xf32>
    %86 = arith.addf %80, %85 : vector<64x256xf32>
    %87 = vector.extract_strided_slice %7 {offsets = [0, 1, 0, 0], sizes = [1, 8, 8, 128], strides = [1, 1, 1, 1]} : vector<1x9x9x128xbf16> to vector<1x8x8x128xbf16>
    %88 = vector.shape_cast %87 : vector<1x8x8x128xbf16> to vector<64x128xbf16>
    %c13 = arith.constant 13 : index
    %c0_59 = arith.constant 0 : index
    %c0_60 = arith.constant 0 : index
    %89 = vector.load %arg2[%c13, %c0_59, %c0_60] : memref<16x128x256xbf16, #tpu.memory_space<vmem>>, vector<1x128x256xbf16>
    %90 = vector.shape_cast %89 : vector<1x128x256xbf16> to vector<128x256xbf16>
    %cst_61 = arith.constant dense<0.000000e+00> : vector<64x256xf32>
    %91 = tpu.matmul %88, %90, %cst_61 {dimension_numbers = #tpu.dot_dimension_numbers<[1], [0], [0], [1], [0, 0, 1, 1], [], []>} : vector<64x128xbf16>, vector<128x256xbf16>, vector<64x256xf32> -> vector<64x256xf32>
    %92 = arith.addf %86, %91 : vector<64x256xf32>
    %93 = vector.extract_strided_slice %5 {offsets = [0, 1, 1, 0], sizes = [1, 8, 8, 128], strides = [1, 1, 1, 1]} : vector<1x9x9x128xbf16> to vector<1x8x8x128xbf16>
    %94 = vector.shape_cast %93 : vector<1x8x8x128xbf16> to vector<64x128xbf16>
    %c14 = arith.constant 14 : index
    %c0_62 = arith.constant 0 : index
    %c0_63 = arith.constant 0 : index
    %95 = vector.load %arg2[%c14, %c0_62, %c0_63] : memref<16x128x256xbf16, #tpu.memory_space<vmem>>, vector<1x128x256xbf16>
    %96 = vector.shape_cast %95 : vector<1x128x256xbf16> to vector<128x256xbf16>
    %cst_64 = arith.constant dense<0.000000e+00> : vector<64x256xf32>
    %97 = tpu.matmul %94, %96, %cst_64 {dimension_numbers = #tpu.dot_dimension_numbers<[1], [0], [0], [1], [0, 0, 1, 1], [], []>} : vector<64x128xbf16>, vector<128x256xbf16>, vector<64x256xf32> -> vector<64x256xf32>
    %98 = arith.addf %92, %97 : vector<64x256xf32>
    %99 = vector.extract_strided_slice %7 {offsets = [0, 1, 1, 0], sizes = [1, 8, 8, 128], strides = [1, 1, 1, 1]} : vector<1x9x9x128xbf16> to vector<1x8x8x128xbf16>
    %100 = vector.shape_cast %99 : vector<1x8x8x128xbf16> to vector<64x128xbf16>
    %c15 = arith.constant 15 : index
    %c0_65 = arith.constant 0 : index
    %c0_66 = arith.constant 0 : index
    %101 = vector.load %arg2[%c15, %c0_65, %c0_66] : memref<16x128x256xbf16, #tpu.memory_space<vmem>>, vector<1x128x256xbf16>
    %102 = vector.shape_cast %101 : vector<1x128x256xbf16> to vector<128x256xbf16>
    %cst_67 = arith.constant dense<0.000000e+00> : vector<64x256xf32>
    %103 = tpu.matmul %100, %102, %cst_67 {dimension_numbers = #tpu.dot_dimension_numbers<[1], [0], [0], [1], [0, 0, 1, 1], [], []>} : vector<64x128xbf16>, vector<128x256xbf16>, vector<64x256xf32> -> vector<64x256xf32>
    %104 = arith.addf %98, %103 : vector<64x256xf32>
    %c0_68 = arith.constant 0 : index
    %c0_69 = arith.constant 0 : index
    %105 = vector.load %arg3[%c0_68, %c0_69] : memref<1x256xf32, #tpu.memory_space<vmem>>, vector<1x256xf32>
    %106 = vector.broadcast %105 : vector<1x256xf32> to vector<64x256xf32>
    %107 = arith.addf %104, %106 : vector<64x256xf32>
    %cst_70 = arith.constant 2.000000e-01 : f32
    %108 = vector.broadcast %cst_70 : f32 to vector<64x256xf32>
    %109 = arith.mulf %108, %107 : vector<64x256xf32>
    %110 = arith.maximumf %107, %109 : vector<64x256xf32>
    %111 = arith.truncf %110 : vector<64x256xf32> to vector<64x256xbf16>
    %c0_71 = arith.constant 0 : index
    %c0_72 = arith.constant 0 : index
    %112 = vector.load %arg4[%c0_71, %c0_72] : memref<64x256xbf16, #tpu.memory_space<vmem>>, vector<64x256xbf16>
    tpu.vector_store %arg4[%c0_71, %c0_72], %111 {strides = array<i32>} : memref<64x256xbf16, #tpu.memory_space<vmem>>, vector<64x256xbf16>,
    return
  }
  func.func @transform_0(%arg0: i32) -> (i32, i32, i32, i32, i32) {
    %c0_i32 = arith.constant 0 : i32
    %c0_i32_0 = arith.constant 0 : i32
    %c0_i32_1 = arith.constant 0 : i32
    %c0_i32_2 = arith.constant 0 : i32
    %c0_i32_3 = arith.constant 0 : i32
    return %c0_i32, %arg0, %c0_i32_0, %c0_i32_1, %c0_i32_2 : i32, i32, i32, i32, i32
  }
  func.func @transform_1(%arg0: i32) -> (i32, i32, i32) {
    %c0_i32 = arith.constant 0 : i32
    %c0_i32_0 = arith.constant 0 : i32
    %c0_i32_1 = arith.constant 0 : i32
    %c0_i32_2 = arith.constant 0 : i32
    return %c0_i32, %c0_i32_0, %c0_i32_1 : i32, i32, i32
  }
  func.func @transform_2(%arg0: i32) -> (i32, i32) {
    %c0_i32 = arith.constant 0 : i32
    %c0_i32_0 = arith.constant 0 : i32
    %c0_i32_1 = arith.constant 0 : i32
    return %c0_i32, %c0_i32_0 : i32, i32
  }
  func.func @transform_3(%arg0: i32) -> (i32, i32) {
    %c0_i32 = arith.constant 0 : i32
    %c0_i32_0 = arith.constant 0 : i32
    return %arg0, %c0_i32 : i32, i32
  }
}

module attributes {stable_mosaic.version = 11 : i64} {
  func.func @_final_kernel(%arg0: i32, %arg1: memref<32x4096xbf16, #tpu.memory_space<vmem>>, %arg2: memref<1x4096x256xbf16, #tpu.memory_space<vmem>>, %arg3: memref<1x1x256xf32, #tpu.memory_space<vmem>>, %arg4: memref<1x16x256xbf16, #tpu.memory_space<vmem>>, %arg5: memref<1x2x1xf32, #tpu.memory_space<vmem>>) attributes {dimension_semantics = [#tpu.dimension_semantics<parallel>], iteration_bounds = array<i64: 2>, scalar_prefetch = 0 : i64, scratch_operands = 0 : i64, tpu.core_type = #tpu.core_type<tc>, window_params = [{pipeline_mode = #tpu.pipeline_mode<synchronous>, transform_indices = @transform_0, window_bounds = array<i64: 32, 4096>}, {transform_indices = @transform_1, window_bounds = array<i64: 1, 4096, 256>}, {transform_indices = @transform_2, window_bounds = array<i64: 1, 1, 256>}, {transform_indices = @transform_3, window_bounds = array<i64: 1, 16, 256>}, {transform_indices = @transform_4, window_bounds = array<i64: 1, 2, 1>}]} {
    %c0 = arith.constant 0 : index
    %c0_0 = arith.constant 0 : index
    %0 = vector.load %arg1[%c0, %c0_0] : memref<32x4096xbf16, #tpu.memory_space<vmem>>, vector<32x4096xbf16>
    %c0_1 = arith.constant 0 : index
    %c0_2 = arith.constant 0 : index
    %c0_3 = arith.constant 0 : index
    %1 = vector.load %arg2[%c0_1, %c0_2, %c0_3] : memref<1x4096x256xbf16, #tpu.memory_space<vmem>>, vector<1x4096x256xbf16>
    %2 = vector.shape_cast %1 : vector<1x4096x256xbf16> to vector<4096x256xbf16>
    %cst = arith.constant dense<0.000000e+00> : vector<32x256xf32>
    %3 = tpu.matmul %0, %2, %cst {dimension_numbers = #tpu.dot_dimension_numbers<[1], [0], [0], [1], [0, 0, 1, 1], [], []>} : vector<32x4096xbf16>, vector<4096x256xbf16>, vector<32x256xf32> -> vector<32x256xf32>
    %c0_4 = arith.constant 0 : index
    %c0_5 = arith.constant 0 : index
    %c0_6 = arith.constant 0 : index
    %4 = vector.load %arg3[%c0_4, %c0_5, %c0_6] : memref<1x1x256xf32, #tpu.memory_space<vmem>>, vector<1x1x256xf32>
    %5 = vector.shape_cast %4 : vector<1x1x256xf32> to vector<1x256xf32>
    %6 = vector.broadcast %5 : vector<1x256xf32> to vector<32x256xf32>
    %7 = arith.addf %3, %6 : vector<32x256xf32>
    %cst_7 = arith.constant 2.000000e-01 : f32
    %8 = vector.broadcast %cst_7 : f32 to vector<32x256xf32>
    %9 = arith.mulf %8, %7 : vector<32x256xf32>
    %10 = arith.maximumf %7, %9 : vector<32x256xf32>
    %11 = vector.shape_cast %10 : vector<32x256xf32> to vector<2x16x256xf32>
    %c0_8 = arith.constant 0 : index
    %c0_9 = arith.constant 0 : index
    %c0_10 = arith.constant 0 : index
    %12 = vector.load %arg4[%c0_8, %c0_9, %c0_10] : memref<1x16x256xbf16, #tpu.memory_space<vmem>>, vector<1x16x256xbf16>
    %13 = vector.shape_cast %12 : vector<1x16x256xbf16> to vector<16x256xbf16>
    %14 = arith.extf %13 : vector<16x256xbf16> to vector<16x256xf32>
    %15 = vector.shape_cast %14 : vector<16x256xf32> to vector<1x16x256xf32>
    %16 = vector.broadcast %15 : vector<1x16x256xf32> to vector<2x16x256xf32>
    %17 = arith.mulf %11, %16 : vector<2x16x256xf32>
    %cst_11 = arith.constant dense<0.000000e+00> : vector<2x16xf32>
    %18 = vector.multi_reduction <add>, %17, %cst_11 [2] : vector<2x16x256xf32> to vector<2x16xf32>
    %19 = vector.shape_cast %18 : vector<2x16xf32> to vector<2x16x1xf32>
    %cst_12 = arith.constant dense<0.000000e+00> : vector<2x1xf32>
    %20 = vector.multi_reduction <add>, %19, %cst_12 [1] : vector<2x16x1xf32> to vector<2x1xf32>
    %21 = vector.shape_cast %20 : vector<2x1xf32> to vector<1x2x1xf32>
    %c0_13 = arith.constant 0 : index
    %c0_14 = arith.constant 0 : index
    %c0_15 = arith.constant 0 : index
    %22 = vector.load %arg5[%c0_13, %c0_14, %c0_15] : memref<1x2x1xf32, #tpu.memory_space<vmem>>, vector<1x2x1xf32>
    tpu.vector_store %arg5[%c0_13, %c0_14, %c0_15], %21 {strides = array<i32>} : memref<1x2x1xf32, #tpu.memory_space<vmem>>, vector<1x2x1xf32>,
    return
  }
  func.func @transform_0(%arg0: i32) -> (i32, i32) {
    %c0_i32 = arith.constant 0 : i32
    %c0_i32_0 = arith.constant 0 : i32
    %c0_i32_1 = arith.constant 0 : i32
    return %c0_i32, %c0_i32_0 : i32, i32
  }
  func.func @transform_1(%arg0: i32) -> (i32, i32, i32) {
    %c0_i32 = arith.constant 0 : i32
    %c0_i32_0 = arith.constant 0 : i32
    %c0_i32_1 = arith.constant 0 : i32
    return %arg0, %c0_i32, %c0_i32_0 : i32, i32, i32
  }
  func.func @transform_2(%arg0: i32) -> (i32, i32, i32) {
    %c0_i32 = arith.constant 0 : i32
    %c0_i32_0 = arith.constant 0 : i32
    %c0_i32_1 = arith.constant 0 : i32
    return %arg0, %c0_i32, %c0_i32_0 : i32, i32, i32
  }
  func.func @transform_3(%arg0: i32) -> (i32, i32, i32) {
    %c0_i32 = arith.constant 0 : i32
    %c0_i32_0 = arith.constant 0 : i32
    %c0_i32_1 = arith.constant 0 : i32
    return %arg0, %c0_i32, %c0_i32_0 : i32, i32, i32
  }
  func.func @transform_4(%arg0: i32) -> (i32, i32, i32) {
    %c0_i32 = arith.constant 0 : i32
    %c0_i32_0 = arith.constant 0 : i32
    %c0_i32_1 = arith.constant 0 : i32
    return %arg0, %c0_i32, %c0_i32_0 : i32, i32, i32
  }
}

</mosaic_0001>

<bundles_post_ra>
// kernel: _netD_forward_impl.4
= control target key start
LH: loop header
LB: loop body
LE: loop exit
PB: predicated region body
PF: predicated region fallthrough
CT: control target
= control target key end

     0   :  { %s3055_s12 = smov 0   ;;  %s3614_s0 = inlined_call_operand.vmem [shape: bf16[2048,48], index: 0, kind: input, shape index: {}]   ;;  %s3615_s1 = inlined_call_operand.vmem [shape: bf16[48,64], index: 1, kind: input, shape index: {}]   ;;  %s3616_s2 = inlined_call_operand.vmem [shape: f32[1,64], index: 2, kind: input, shape index: {}]   ;;  %s3617_s3 = inlined_call_operand.vmem [shape: bf16[2048,64], index: 3, kind: output, shape index: {}]  }
   0x1 LB: > { %s2345_s13 = sadd.s32 4294967295, %s3033_s12   ;;  %p2349_p0 = scmp.ge.s32.totalorder %s3033_s12, 1  ;;  %s3033_s12 = sphi %s3055_s12, %s13_s12  }
   0x2   : > { %p138_p1 = scmp.lt.s32.totalorder %s3033_s12, 3 }
   0x4   : > { %p139_p2 = pnand %p2349_p0, %p138_p1 }
   0x5   : > { %v2959_v0 = vld [vmem:[%s3615_s1] sm:$0xff] (!%p139_p2)   ;;  %s2350_s16 = sshll.u32 (!%p139_p2), %s2345_s13, 7  ;;  %v2960_v1 = vld [vmem:[%s3615_s1 + $0x8] sm:$0xff] (!%p139_p2)   ;;  %v2961_v2 = vld [vmem:[%s3615_s1 + $0x10] sm:$0xff] (!%p139_p2)   ;;  %vm654_vm0 = vcmask (!%p139_p2), 392192   ;;  %vm2160_vm1 = vcmask (!%p139_p2), 519168  }
   0x6   : > { %142 = sbr.rel (%p139_p2) target bundleno = 371 (0x173), region = 32  ;;  %p163_p3 = scmp.lt.s32.totalorder (!%p139_p2), %s2350_s16, 255  ;;  %2811 = vmatprep.subr.bf16.mxu0 (!%p139_p2), %v2959_v0  ;;  %2945 = vmatprep.subr.bf16.mxu1 (!%p139_p2), %v2959_v0 }
   0x7   : > { %2812 = vmatpush3.bf16.msra.mxu0 (!%p139_p2), %v2959_v0  ;;  %2948 = vmatpush3.bf16.msra.mxu1 (!%p139_p2), %v2959_v0 }
   0x8   : > { %2813 = vmatprep.subr.bf16.mxu0 (!%p139_p2), %v2960_v1  ;;  %2946 = vmatprep.subr.bf16.mxu1 (!%p139_p2), %v2960_v1 }
   0xb   : > { %2814 = vmatpush3.bf16.msra.mxu0 (!%p139_p2), %v2960_v1  ;;  %2949 = vmatpush3.bf16.msra.mxu1 (!%p139_p2), %v2960_v1 }
   0xc   : > { %2815 = vmatprep.subr.bf16.mxu0 (!%p139_p2), %v2961_v2  ;;  %2947 = vmatprep.subr.bf16.mxu1 (!%p139_p2), %v2961_v2 }
   0xd   : > { %s3619_s16 = smov (!%p163_p3, %s2350_s16), 255 }
   0xe   : > { %s2351_s21 = sshll.u32 %s3619_s16, 2 }
   0xf   : > { %s3080_s24 = scalar_lea.vmem %s3614_s0, %s2351_s21  ;;  %2816 = vmatpush3.bf16.msra.mxu0 %v2961_v2  ;;  %2950 = vmatpush3.bf16.msra.mxu1 %v2961_v2  ;;  %s3228_s29 = scalar_lea.vmem %s3617_s3, %s2351_s21 }
  0x10   : > { %v2962_v3 = vld [vmem:[%s3080_s24] sm:$0xff]   ;;  %v2964_v5 = vld [vmem:[%s3080_s24 + $0x8] sm:$0xff]   ;;  %v2966_v7 = vld [vmem:[%s3080_s24 + $0x10] sm:$0xff]  }
  0x11   : > { %v2963_v4 = vld [vmem:[%s3080_s24 + $0x100] sm:$0xff]   ;;  %2817 = vmatprep.mubr.msk.bf16.mxu0 %vm654_vm0, %v2962_v3  ;;  %v2965_v6 = vld [vmem:[%s3080_s24 + $0x108] sm:$0xff]   ;;  %v2967_v8 = vld [vmem:[%s3080_s24 + $0x110] sm:$0xff]  }
  0x12   : > { %2881 = vmatprep.mubr.msk.bf16.mxu1 %vm654_vm0, %v2963_v4  ;;  %2818 = vmatmul.mubr.msk.bf16.vlgmr.msra.gmra.mrb[0].mxu0 %vm654_vm0, %v2964_v5  ;;  %v2968_v9 = vld [vmem:[%s3080_s24 + $0x18] sm:$0xff]   ;;  %v2970_v11 = vld [vmem:[%s3080_s24 + $0x20] sm:$0xff]   ;;  %v2972_v13 = vld [vmem:[%s3080_s24 + $0x28] sm:$0xff]  }
  0x13   : > { %2882 = vmatmul.mubr.msk.bf16.vlgmr.msra.gmra.mrb[0].mxu1 %vm654_vm0, %v2965_v6  ;;  %2821 = vmatprep.mubr.msk.bf16.mxu0 %vm654_vm0, %v2966_v7  ;;  %v2969_v10 = vld [vmem:[%s3080_s24 + $0x118] sm:$0xff]   ;;  %v2971_v12 = vld [vmem:[%s3080_s24 + $0x120] sm:$0xff]   ;;  %v2973_v14 = vld [vmem:[%s3080_s24 + $0x128] sm:$0xff]  }
  0x14   : > { %2885 = vmatprep.mubr.msk.bf16.mxu1 %vm654_vm0, %v2967_v8  ;;  %v2974_v15 = vld [vmem:[%s3080_s24 + $0x30] sm:$0xff]   ;;  %v2976_v17 = vld [vmem:[%s3080_s24 + $0x38] sm:$0xff]   ;;  %v2978_v19 = vld [vmem:[%s3080_s24 + $0x40] sm:$0xff]  }
  0x15   : > { %v2975_v16 = vld [vmem:[%s3080_s24 + $0x130] sm:$0xff]   ;;  %v2977_v18 = vld [vmem:[%s3080_s24 + $0x138] sm:$0xff]   ;;  %v2979_v20 = vld [vmem:[%s3080_s24 + $0x140] sm:$0xff]  }
  0x16   : > { %v2980_v21 = vld [vmem:[%s3080_s24 + $0x48] sm:$0xff]   ;;  %v2982_v23 = vld [vmem:[%s3080_s24 + $0x50] sm:$0xff]   ;;  %v2984_v25 = vld [vmem:[%s3080_s24 + $0x58] sm:$0xff]  }
  0x17   : > { %v2981_v22 = vld [vmem:[%s3080_s24 + $0x148] sm:$0xff]   ;;  %v2983_v24 = vld [vmem:[%s3080_s24 + $0x150] sm:$0xff]   ;;  %v2985_v26 = vld [vmem:[%s3080_s24 + $0x158] sm:$0xff]  }
  0x18   : > { %v2986_v27 = vld [vmem:[%s3080_s24 + $0x60] sm:$0xff]   ;;  %v2988_v29 = vld [vmem:[%s3080_s24 + $0x68] sm:$0xff]   ;;  %v2990_v31 = vld [vmem:[%s3080_s24 + $0x70] sm:$0xff]  }
  0x19   : > { %v2987_v28 = vld [vmem:[%s3080_s24 + $0x160] sm:$0xff]   ;;  %v2989_v30 = vld [vmem:[%s3080_s24 + $0x168] sm:$0xff]   ;;  %v2991_v32 = vld [vmem:[%s3080_s24 + $0x170] sm:$0xff]  }
  0x1a   : > { %2822 = vmatmul.mubr.msk.bf16.gmra.mrb[4].mxu0 %vm654_vm0, %v2968_v9  ;;  %v2992_v33 = vld [vmem:[%s3080_s24 + $0x78] sm:$0xff]   ;;  %v2994_v35 = vld [vmem:[%s3080_s24 + $0x80] sm:$0xff]   ;;  %v2996_v37 = vld [vmem:[%s3080_s24 + $0x88] sm:$0xff]  }
  0x1b   : > { %2886 = vmatmul.mubr.msk.bf16.gmra.mrb[4].mxu1 %vm654_vm0, %v2969_v10  ;;  %2825 = vmatprep.mubr.msk.bf16.mxu0 %vm654_vm0, %v2970_v11  ;;  %v2993_v34 = vld [vmem:[%s3080_s24 + $0x178] sm:$0xff]   ;;  %v2995_v36 = vld [vmem:[%s3080_s24 + $0x180] sm:$0xff]   ;;  %v2997_v38 = vld [vmem:[%s3080_s24 + $0x188] sm:$0xff]  }
  0x1c   : > { %2889 = vmatprep.mubr.msk.bf16.mxu1 %vm654_vm0, %v2971_v12  ;;  %v2998_v39 = vld [vmem:[%s3080_s24 + $0x90] sm:$0xff]   ;;  %v3000_v41 = vld [vmem:[%s3080_s24 + $0x98] sm:$0xff]   ;;  %v3002_v43 = vld [vmem:[%s3080_s24 + $0xa0] sm:$0xff]  }
  0x1d   : > { %v2999_v40 = vld [vmem:[%s3080_s24 + $0x190] sm:$0xff]   ;;  %v3001_v42 = vld [vmem:[%s3080_s24 + $0x198] sm:$0xff]   ;;  %v3003_v44 = vld [vmem:[%s3080_s24 + $0x1a0] sm:$0xff]  }
  0x1e   : > { %v3004_v45 = vld [vmem:[%s3080_s24 + $0xa8] sm:$0xff]   ;;  %v3006_v47 = vld [vmem:[%s3080_s24 + $0xb0] sm:$0xff]   ;;  %v3008_v49 = vld [vmem:[%s3080_s24 + $0xb8] sm:$0xff]  }
  0x1f   : > { %v3005_v46 = vld [vmem:[%s3080_s24 + $0x1a8] sm:$0xff]   ;;  %v3007_v48 = vld [vmem:[%s3080_s24 + $0x1b0] sm:$0xff]   ;;  %v3009_v50 = vld [vmem:[%s3080_s24 + $0x1b8] sm:$0xff]  }
  0x20   : > { %v3010_v51 = vld [vmem:[%s3080_s24 + $0xc0] sm:$0xff]   ;;  %v3012_v53 = vld [vmem:[%s3080_s24 + $0xc8] sm:$0xff]   ;;  %v3014_v55 = vld [vmem:[%s3080_s24 + $0xd0] sm:$0xff]  }
  0x21   : > { %v3011_v52 = vld [vmem:[%s3080_s24 + $0x1c0] sm:$0xff]   ;;  %v3013_v54 = vld [vmem:[%s3080_s24 + $0x1c8] sm:$0xff]   ;;  %v3015_v56 = vld [vmem:[%s3080_s24 + $0x1d0] sm:$0xff]  }
  0x22   : > { %2826 = vmatmul.mubr.msk.bf16.gmra.mrb[8].mxu0 %vm654_vm0, %v2972_v13  ;;  %v3016_v57 = vld [vmem:[%s3080_s24 + $0xd8] sm:$0xff]   ;;  %v3018_v59 = vld [vmem:[%s3080_s24 + $0xe0] sm:$0xff]   ;;  %v3020_v61 = vld [vmem:[%s3080_s24 + $0xe8] sm:$0xff]  }
  0x23   : > { %2890 = vmatmul.mubr.msk.bf16.gmra.mrb[8].mxu1 %vm654_vm0, %v2973_v14  ;;  %2829 = vmatprep.mubr.msk.bf16.mxu0 %vm654_vm0, %v2974_v15  ;;  %v3017_v58 = vld [vmem:[%s3080_s24 + $0x1d8] sm:$0xff]   ;;  %v3019_v60 = vld [vmem:[%s3080_s24 + $0x1e0] sm:$0xff]   ;;  %v3021_v62 = vld [vmem:[%s3080_s24 + $0x1e8] sm:$0xff]  }
  0x24   : > { %2893 = vmatprep.mubr.msk.bf16.mxu1 %vm654_vm0, %v2975_v16  ;;  %v3022_v63 = vld [vmem:[%s3080_s24 + $0xf0] sm:$0xff]   ;;  %v3024_v1 = vld [vmem:[%s3080_s24 + $0xf8] sm:$0xff]   ;;  %v3213_v3 = vld [vmem:[%s3616_s2] ss:$0 sm:$0xff] }
  0x25   : > { %v3023_v0 = vld [vmem:[%s3080_s24 + $0x1f0] sm:$0xff]   ;;  %v3025_v2 = vld [vmem:[%s3080_s24 + $0x1f8] sm:$0xff]  }
  0x2a   : > { %2830 = vmatmul.mubr.msk.bf16.gmra.mrb[12].mxu0 %vm654_vm0, %v2976_v17 }
  0x2b   : > { %2894 = vmatmul.mubr.msk.bf16.gmra.mrb[12].mxu1 %vm654_vm0, %v2977_v18  ;;  %2833 = vmatprep.mubr.msk.bf16.mxu0 %vm654_vm0, %v2978_v19 }
  0x2c   : > { %2897 = vmatprep.mubr.msk.bf16.mxu1 %vm654_vm0, %v2979_v20 }
  0x32   : > { %2834 = vmatmul.mubr.msk.bf16.gmra.mrb[16].mxu0 %vm654_vm0, %v2980_v21 }
  0x33   : > { %2898 = vmatmul.mubr.msk.bf16.gmra.mrb[16].mxu1 %vm654_vm0, %v2981_v22  ;;  %2837 = vmatprep.mubr.msk.bf16.mxu0 %vm654_vm0, %v2982_v23 }
  0x34   : > { %2901 = vmatprep.mubr.msk.bf16.mxu1 %vm654_vm0, %v2983_v24 }
  0x3a   : > { %2838 = vmatmul.mubr.msk.bf16.gmra.mrb[20].mxu0 %vm654_vm0, %v2984_v25 }
  0x3b   : > { %2902 = vmatmul.mubr.msk.bf16.gmra.mrb[20].mxu1 %vm654_vm0, %v2985_v26  ;;  %2841 = vmatprep.mubr.msk.bf16.mxu0 %vm654_vm0, %v2986_v27 }
  0x3c   : > { %2905 = vmatprep.mubr.msk.bf16.mxu1 %vm654_vm0, %v2987_v28 }
  0x42   : > { %2842 = vmatmul.mubr.msk.bf16.gmra.mrb[24].mxu0 %vm654_vm0, %v2988_v29 }
  0x43   : > { %2906 = vmatmul.mubr.msk.bf16.gmra.mrb[24].mxu1 %vm654_vm0, %v2989_v30  ;;  %2845 = vmatprep.mubr.msk.bf16.mxu0 %vm654_vm0, %v2990_v31 }
  0x44   : > { %2909 = vmatprep.mubr.msk.bf16.mxu1 %vm654_vm0, %v2991_v32 }
  0x4a   : > { %2846 = vmatmul.mubr.msk.bf16.gmra.mrb[28].mxu0 %vm654_vm0, %v2992_v33 }
  0x4b   : > { %2910 = vmatmul.mubr.msk.bf16.gmra.mrb[28].mxu1 %vm654_vm0, %v2993_v34  ;;  %2849 = vmatprep.mubr.msk.bf16.mxu0 %vm654_vm0, %v2994_v35 }
  0x4c   : > { %2913 = vmatprep.mubr.msk.bf16.mxu1 %vm654_vm0, %v2995_v36 }
  0x52   : > { %2850 = vmatmul.mubr.msk.bf16.gmra.mrb[32].mxu0 %vm654_vm0, %v2996_v37 }
  0x53   : > { %2914 = vmatmul.mubr.msk.bf16.gmra.mrb[32].mxu1 %vm654_vm0, %v2997_v38  ;;  %2853 = vmatprep.mubr.msk.bf16.mxu0 %vm654_vm0, %v2998_v39 }
  0x54   : > { %2917 = vmatprep.mubr.msk.bf16.mxu1 %vm654_vm0, %v2999_v40 }
  0x5a   : > { %2854 = vmatmul.mubr.msk.bf16.gmra.mrb[36].mxu0 %vm654_vm0, %v3000_v41 }
  0x5b   : > { %2918 = vmatmul.mubr.msk.bf16.gmra.mrb[36].mxu1 %vm654_vm0, %v3001_v42  ;;  %2857 = vmatprep.mubr.msk.bf16.mxu0 %vm654_vm0, %v3002_v43 }
  0x5c   : > { %2921 = vmatprep.mubr.msk.bf16.mxu1 %vm654_vm0, %v3003_v44 }
  0x62   : > { %2858 = vmatmul.mubr.msk.bf16.gmra.mrb[40].mxu0 %vm654_vm0, %v3004_v45 }
  0x63   : > { %2922 = vmatmul.mubr.msk.bf16.gmra.mrb[40].mxu1 %vm654_vm0, %v3005_v46  ;;  %2861 = vmatprep.mubr.msk.bf16.mxu0 %vm654_vm0, %v3006_v47 }
  0x64   : > { %2925 = vmatprep.mubr.msk.bf16.mxu1 %vm654_vm0, %v3007_v48 }
  0x6a   : > { %2862 = vmatmul.mubr.msk.bf16.gmra.mrb[44].mxu0 %vm654_vm0, %v3008_v49 }
  0x6b   : > { %2926 = vmatmul.mubr.msk.bf16.gmra.mrb[44].mxu1 %vm654_vm0, %v3009_v50  ;;  %2865 = vmatprep.mubr.msk.bf16.mxu0 %vm654_vm0, %v3010_v51 }
  0x6c   : > { %2929 = vmatprep.mubr.msk.bf16.mxu1 %vm654_vm0, %v3011_v52 }
  0x72   : > { %2866 = vmatmul.mubr.msk.bf16.gmra.mrb[48].mxu0 %vm654_vm0, %v3012_v53 }
  0x73   : > { %2930 = vmatmul.mubr.msk.bf16.gmra.mrb[48].mxu1 %vm654_vm0, %v3013_v54  ;;  %2869 = vmatprep.mubr.msk.bf16.mxu0 %vm654_vm0, %v3014_v55 }
  0x74   : > { %2933 = vmatprep.mubr.msk.bf16.mxu1 %vm654_vm0, %v3015_v56 }
  0x7a   : > { %2870 = vmatmul.mubr.msk.bf16.gmra.mrb[52].mxu0 %vm654_vm0, %v3016_v57 }
  0x7b   : > { %2934 = vmatmul.mubr.msk.bf16.gmra.mrb[52].mxu1 %vm654_vm0, %v3017_v58  ;;  %2873 = vmatprep.mubr.msk.bf16.mxu0 %vm654_vm0, %v3018_v59 }
  0x7c   : > { %2937 = vmatprep.mubr.msk.bf16.mxu1 %vm654_vm0, %v3019_v60 }
  0x82   : > { %2874 = vmatmul.mubr.msk.bf16.gmra.mrb[56].mxu0 %vm654_vm0, %v3020_v61 }
  0x83   : > { %2938 = vmatmul.mubr.msk.bf16.gmra.mrb[56].mxu1 %vm654_vm0, %v3021_v62  ;;  %2877 = vmatprep.mubr.msk.bf16.mxu0 %vm654_vm0, %v3022_v63 }
  0x84   : > { %2941 = vmatprep.mubr.msk.bf16.mxu1 %vm654_vm0, %v3023_v0 }
  0x8a   : > { %2878 = vmatmul.mubr.msk.bf16.gmra.mrb[60].mxu0 %vm654_vm0, %v3024_v1 }
  0x8b   : > { %2942 = vmatmul.mubr.msk.bf16.gmra.mrb[60].mxu1 %vm654_vm0, %v3025_v2 }
  0xe5   : > { %v2819_v4 = vpop.f32.mrb[0].mxu0 }
  0xe6   : > { %v2883_v5 = vpop.f32.mrb[0].mxu1  ;;  %v890_v6 = vadd.f32 %v2819_v4, %v3213_v3  ;;  %v881_v8 = vpop.f32.mrb[1].mxu0 }
  0xe7   : > { %v1146_v7 = vadd.f32 %v2883_v5, %v3213_v3  ;;  %v1137_v9 = vpop.f32.mrb[1].mxu1  ;;  %v882_v10 = vadd.f32 %v3213_v3, %v881_v8  ;;  %v2820_v12 = vpop.f32.mrb[2].mxu0 }
  0xe8   : > { %v1138_v11 = vadd.f32 %v3213_v3, %v1137_v9  ;;  %v2884_v13 = vpop.f32.mrb[2].mxu1  ;;  %v1394_v14 = vmul.f32 0.2, %v890_v6  ;;  %v893_v16 = vadd.f32 %v2820_v12, %v3213_v3  ;;  %v884_v18 = vpop.f32.mrb[3].mxu0 }
  0xe9   : > { %v1458_v15 = vmul.f32 0.2, %v1146_v7  ;;  %v1149_v17 = vadd.f32 %v2884_v13, %v3213_v3  ;;  %v1140_v19 = vpop.f32.mrb[3].mxu1  ;;  %v1392_v20 = vmul.f32 0.2, %v882_v10  ;;  %v885_v22 = vadd.f32 %v3213_v3, %v884_v18 }
  0xea   : > { %v1456_v21 = vmul.f32 0.2, %v1138_v11  ;;  %v1141_v23 = vadd.f32 %v3213_v3, %v1140_v19  ;;  %v1522_v24 = vmax.f32 %v890_v6, %v1394_v14  ;;  %v1395_v26 = vmul.f32 0.2, %v893_v16 }
  0xeb   : > { %v1586_v25 = vmax.f32 %v1146_v7, %v1458_v15  ;;  %v1459_v27 = vmul.f32 0.2, %v1149_v17  ;;  %v1520_v28 = vmax.f32 %v882_v10, %v1392_v20  ;;  %v1393_v30 = vmul.f32 0.2, %v885_v22 }
  0xec   : > { %v1584_v29 = vmax.f32 %v1138_v11, %v1456_v21  ;;  %v1457_v31 = vmul.f32 0.2, %v1141_v23  ;;  %v2618_v32 = vpack.c.bf16 %v1522_v24, %v1522_v24  ;;  %v1523_v34 = vmax.f32 %v893_v16, %v1395_v26 }
  0xed   : > { %v2682_v33 = vpack.c.bf16 %v1586_v25, %v1586_v25  ;;  %v1587_v35 = vmax.f32 %v1149_v17, %v1459_v27  ;;  %v2616_v36 = vpack.c.bf16 %v1520_v28, %v1520_v28  ;;  %v1521_v38 = vmax.f32 %v885_v22, %v1393_v30  ;;  %v2823_v40 = vpop.f32.mrb[4].mxu0 }
  0xee   : > { %v2680_v37 = vpack.c.bf16 %v1584_v29, %v1584_v29  ;;  %v1585_v39 = vmax.f32 %v1141_v23, %v1457_v31  ;;  %v2887_v41 = vpop.f32.mrb[4].mxu1  ;;  %2163 = vst.msk [vmem:[%s3228_s29 + $0x8] sm:$0xf] %vm2160_vm1, %v2618_v32  ;;  %v2619_v42 = vpack.c.bf16 %v1523_v34, %v1523_v34  ;;  %v906_v44 = vadd.f32 %v2823_v40, %v3213_v3  ;;  %v897_v46 = vpop.f32.mrb[5].mxu0 }
  0xef   : > { %2227 = vst.msk [vmem:[%s3228_s29 + $0x108] sm:$0xf] %vm2160_vm1, %v2682_v33  ;;  %v2683_v43 = vpack.c.bf16 %v1587_v35, %v1587_v35  ;;  %v1162_v45 = vadd.f32 %v2887_v41, %v3213_v3  ;;  %v1153_v47 = vpop.f32.mrb[5].mxu1  ;;  %2161 = vst.msk [vmem:[%s3228_s29] sm:$0xf] %vm2160_vm1, %v2616_v36  ;;  %v2617_v48 = vpack.c.bf16 %v1521_v38, %v1521_v38  ;;  %v2824_v52 = vpop.f32.mrb[6].mxu0 }
  0xf0   : > { %2225 = vst.msk [vmem:[%s3228_s29 + $0x100] sm:$0xf] %vm2160_vm1, %v2680_v37  ;;  %v2681_v49 = vpack.c.bf16 %v1585_v39, %v1585_v39  ;;  %v898_v50 = vadd.f32 %v3213_v3, %v897_v46  ;;  %v1154_v51 = vadd.f32 %v3213_v3, %v1153_v47  ;;  %v2888_v53 = vpop.f32.mrb[6].mxu1  ;;  %2164 = vst.msk [vmem:[%s3228_s29 + $0xc] sm:$0xf] %vm2160_vm1, %v2619_v42  ;;  %v900_v58 = vpop.f32.mrb[7].mxu0 }
  0xf1   : > { %2228 = vst.msk [vmem:[%s3228_s29 + $0x10c] sm:$0xf] %vm2160_vm1, %v2683_v43  ;;  %v1398_v54 = vmul.f32 0.2, %v906_v44  ;;  %v1462_v55 = vmul.f32 0.2, %v1162_v45  ;;  %v909_v56 = vadd.f32 %v2824_v52, %v3213_v3  ;;  %v1165_v57 = vadd.f32 %v2888_v53, %v3213_v3 }
  0xf2   : > { %v1156_v59 = vpop.f32.mrb[7].mxu1  ;;  %2162 = vst.msk [vmem:[%s3228_s29 + $0x4] sm:$0xf] %vm2160_vm1, %v2617_v48  ;;  %2226 = vst.msk [vmem:[%s3228_s29 + $0x104] sm:$0xf] %vm2160_vm1, %v2681_v49  ;;  %v901_v62 = vadd.f32 %v3213_v3, %v900_v58 }
  0xf3   : > { %v1396_v60 = vmul.f32 0.2, %v898_v50  ;;  %v1460_v61 = vmul.f32 0.2, %v1154_v51  ;;  %v1157_v63 = vadd.f32 %v3213_v3, %v1156_v59  ;;  %v1526_v0 = vmax.f32 %v906_v44, %v1398_v54 }
  0xf4   : > { %v1590_v1 = vmax.f32 %v1162_v45, %v1462_v55  ;;  %v1399_v2 = vmul.f32 0.2, %v909_v56  ;;  %v1463_v4 = vmul.f32 0.2, %v1165_v57  ;;  %v1397_v7 = vmul.f32 0.2, %v901_v62 }
  0xf5   : > { %v1524_v5 = vmax.f32 %v898_v50, %v1396_v60  ;;  %v1588_v6 = vmax.f32 %v1154_v51, %v1460_v61  ;;  %v1461_v8 = vmul.f32 0.2, %v1157_v63  ;;  %v2622_v9 = vpack.c.bf16 %v1526_v0, %v1526_v0  ;;  %v2827_v17 = vpop.f32.mrb[8].mxu0 }
  0xf6   : > { %v2686_v10 = vpack.c.bf16 %v1590_v1, %v1590_v1  ;;  %v1527_v11 = vmax.f32 %v909_v56, %v1399_v2  ;;  %v1591_v12 = vmax.f32 %v1165_v57, %v1463_v4  ;;  %v1525_v15 = vmax.f32 %v901_v62, %v1397_v7  ;;  %v2891_v18 = vpop.f32.mrb[8].mxu1  ;;  %v913_v23 = vpop.f32.mrb[9].mxu0 }
  0xf7   : > { %v2620_v13 = vpack.c.bf16 %v1524_v5, %v1524_v5  ;;  %v2684_v14 = vpack.c.bf16 %v1588_v6, %v1588_v6  ;;  %v1589_v16 = vmax.f32 %v1157_v63, %v1461_v8  ;;  %2167 = vst.msk [vmem:[%s3228_s29 + $0x18] sm:$0xf] %vm2160_vm1, %v2622_v9  ;;  %v922_v21 = vadd.f32 %v2827_v17, %v3213_v3  ;;  %v1169_v24 = vpop.f32.mrb[9].mxu1  ;;  %v2828_v29 = vpop.f32.mrb[10].mxu0 }
  0xf8   : > { %2231 = vst.msk [vmem:[%s3228_s29 + $0x118] sm:$0xf] %vm2160_vm1, %v2686_v10  ;;  %v2623_v19 = vpack.c.bf16 %v1527_v11, %v1527_v11  ;;  %v2687_v20 = vpack.c.bf16 %v1591_v12, %v1591_v12  ;;  %v1178_v22 = vadd.f32 %v2891_v18, %v3213_v3  ;;  %v2621_v25 = vpack.c.bf16 %v1525_v15, %v1525_v15  ;;  %v2892_v30 = vpop.f32.mrb[10].mxu1  ;;  %v916_v35 = vpop.f32.mrb[11].mxu0 }
  0xf9   : > { %2165 = vst.msk [vmem:[%s3228_s29 + $0x10] sm:$0xf] %vm2160_vm1, %v2620_v13  ;;  %2229 = vst.msk [vmem:[%s3228_s29 + $0x110] sm:$0xf] %vm2160_vm1, %v2684_v14  ;;  %v2685_v26 = vpack.c.bf16 %v1589_v16, %v1589_v16  ;;  %v914_v27 = vadd.f32 %v3213_v3, %v913_v23  ;;  %v1170_v28 = vadd.f32 %v3213_v3, %v1169_v24  ;;  %v1402_v31 = vmul.f32 0.2, %v922_v21 }
  0xfa   : > { %2168 = vst.msk [vmem:[%s3228_s29 + $0x1c] sm:$0xf] %vm2160_vm1, %v2623_v19  ;;  %2232 = vst.msk [vmem:[%s3228_s29 + $0x11c] sm:$0xf] %vm2160_vm1, %v2687_v20  ;;  %v1466_v32 = vmul.f32 0.2, %v1178_v22  ;;  %v925_v33 = vadd.f32 %v2828_v29, %v3213_v3  ;;  %v1181_v34 = vadd.f32 %v2892_v30, %v3213_v3  ;;  %v917_v39 = vadd.f32 %v3213_v3, %v916_v35 }
  0xfb   : > { %v1172_v36 = vpop.f32.mrb[11].mxu1  ;;  %2166 = vst.msk [vmem:[%s3228_s29 + $0x14] sm:$0xf] %vm2160_vm1, %v2621_v25  ;;  %2230 = vst.msk [vmem:[%s3228_s29 + $0x114] sm:$0xf] %vm2160_vm1, %v2685_v26  ;;  %v1530_v41 = vmax.f32 %v922_v21, %v1402_v31 }
  0xfc   : > { %v1400_v37 = vmul.f32 0.2, %v914_v27  ;;  %v1464_v38 = vmul.f32 0.2, %v1170_v28  ;;  %v1173_v40 = vadd.f32 %v3213_v3, %v1172_v36  ;;  %v1594_v42 = vmax.f32 %v1178_v22, %v1466_v32 }
  0xfd   : > { %v1403_v43 = vmul.f32 0.2, %v925_v33  ;;  %v1467_v44 = vmul.f32 0.2, %v1181_v34  ;;  %v1401_v47 = vmul.f32 0.2, %v917_v39  ;;  %v2626_v49 = vpack.c.bf16 %v1530_v41, %v1530_v41 }
  0xfe   : > { %v1528_v45 = vmax.f32 %v914_v27, %v1400_v37  ;;  %v1592_v46 = vmax.f32 %v1170_v28, %v1464_v38  ;;  %v1465_v48 = vmul.f32 0.2, %v1173_v40  ;;  %v2690_v50 = vpack.c.bf16 %v1594_v42, %v1594_v42  ;;  %v2831_v57 = vpop.f32.mrb[12].mxu0  ;;  %v2895_v58 = vpop.f32.mrb[12].mxu1 }
  0xff   : > { %v1531_v51 = vmax.f32 %v925_v33, %v1403_v43  ;;  %v1595_v52 = vmax.f32 %v1181_v34, %v1467_v44  ;;  %v1529_v55 = vmax.f32 %v917_v39, %v1401_v47  ;;  %2171 = vst.msk [vmem:[%s3228_s29 + $0x28] sm:$0xf] %vm2160_vm1, %v2626_v49  ;;  %v938_v61 = vadd.f32 %v2831_v57, %v3213_v3  ;;  %v929_v63 = vpop.f32.mrb[13].mxu0  ;;  %v1185_v0 = vpop.f32.mrb[13].mxu1 }
 0x100   : > { %v2624_v53 = vpack.c.bf16 %v1528_v45, %v1528_v45  ;;  %v2688_v54 = vpack.c.bf16 %v1592_v46, %v1592_v46  ;;  %v1593_v56 = vmax.f32 %v1173_v40, %v1465_v48  ;;  %2235 = vst.msk [vmem:[%s3228_s29 + $0x128] sm:$0xf] %vm2160_vm1, %v2690_v50  ;;  %v1194_v62 = vadd.f32 %v2895_v58, %v3213_v3  ;;  %v2832_v6 = vpop.f32.mrb[14].mxu0  ;;  %v2896_v7 = vpop.f32.mrb[14].mxu1 }
 0x101   : > { %v2627_v59 = vpack.c.bf16 %v1531_v51, %v1531_v51  ;;  %v2691_v60 = vpack.c.bf16 %v1595_v52, %v1595_v52  ;;  %v2625_v1 = vpack.c.bf16 %v1529_v55, %v1529_v55  ;;  %v930_v4 = vadd.f32 %v3213_v3, %v929_v63  ;;  %v932_v12 = vpop.f32.mrb[15].mxu0  ;;  %v1188_v13 = vpop.f32.mrb[15].mxu1 }
 0x102   : > { %2169 = vst.msk [vmem:[%s3228_s29 + $0x20] sm:$0xf] %vm2160_vm1, %v2624_v53  ;;  %2233 = vst.msk [vmem:[%s3228_s29 + $0x120] sm:$0xf] %vm2160_vm1, %v2688_v54  ;;  %v2689_v2 = vpack.c.bf16 %v1593_v56, %v1593_v56  ;;  %v1186_v5 = vadd.f32 %v3213_v3, %v1185_v0  ;;  %v1406_v8 = vmul.f32 0.2, %v938_v61  ;;  %v941_v10 = vadd.f32 %v2832_v6, %v3213_v3 }
 0x103   : > { %2172 = vst.msk [vmem:[%s3228_s29 + $0x2c] sm:$0xf] %vm2160_vm1, %v2627_v59  ;;  %2236 = vst.msk [vmem:[%s3228_s29 + $0x12c] sm:$0xf] %vm2160_vm1, %v2691_v60  ;;  %v1470_v9 = vmul.f32 0.2, %v1194_v62  ;;  %v1197_v11 = vadd.f32 %v2896_v7, %v3213_v3  ;;  %v933_v16 = vadd.f32 %v3213_v3, %v932_v12  ;;  %v1189_v17 = vadd.f32 %v3213_v3, %v1188_v13 }
 0x104   : > { %2170 = vst.msk [vmem:[%s3228_s29 + $0x24] sm:$0xf] %vm2160_vm1, %v2625_v1  ;;  %2234 = vst.msk [vmem:[%s3228_s29 + $0x124] sm:$0xf] %vm2160_vm1, %v2689_v2  ;;  %v1404_v14 = vmul.f32 0.2, %v930_v4  ;;  %v1534_v18 = vmax.f32 %v938_v61, %v1406_v8 }
 0x105   : > { %v1468_v15 = vmul.f32 0.2, %v1186_v5  ;;  %v1598_v19 = vmax.f32 %v1194_v62, %v1470_v9  ;;  %v1407_v20 = vmul.f32 0.2, %v941_v10  ;;  %v1471_v21 = vmul.f32 0.2, %v1197_v11 }
 0x106   : > { %v1532_v22 = vmax.f32 %v930_v4, %v1404_v14  ;;  %v1405_v24 = vmul.f32 0.2, %v933_v16  ;;  %v1469_v25 = vmul.f32 0.2, %v1189_v17  ;;  %v2630_v26 = vpack.c.bf16 %v1534_v18, %v1534_v18  ;;  %v2835_v34 = vpop.f32.mrb[16].mxu0  ;;  %v2899_v35 = vpop.f32.mrb[16].mxu1 }
 0x107   : > { %v1596_v23 = vmax.f32 %v1186_v5, %v1468_v15  ;;  %v2694_v27 = vpack.c.bf16 %v1598_v19, %v1598_v19  ;;  %v1535_v28 = vmax.f32 %v941_v10, %v1407_v20  ;;  %v1599_v29 = vmax.f32 %v1197_v11, %v1471_v21  ;;  %v945_v40 = vpop.f32.mrb[17].mxu0  ;;  %v1201_v41 = vpop.f32.mrb[17].mxu1 }
 0x108   : > { %v2628_v30 = vpack.c.bf16 %v1532_v22, %v1532_v22  ;;  %v1533_v32 = vmax.f32 %v933_v16, %v1405_v24  ;;  %v1597_v33 = vmax.f32 %v1189_v17, %v1469_v25  ;;  %2175 = vst.msk [vmem:[%s3228_s29 + $0x38] sm:$0xf] %vm2160_vm1, %v2630_v26  ;;  %v954_v38 = vadd.f32 %v2835_v34, %v3213_v3  ;;  %v2836_v46 = vpop.f32.mrb[18].mxu0  ;;  %v2900_v47 = vpop.f32.mrb[18].mxu1 }
 0x109   : > { %v2692_v31 = vpack.c.bf16 %v1596_v23, %v1596_v23  ;;  %2239 = vst.msk [vmem:[%s3228_s29 + $0x138] sm:$0xf] %vm2160_vm1, %v2694_v27  ;;  %v2631_v36 = vpack.c.bf16 %v1535_v28, %v1535_v28  ;;  %v2695_v37 = vpack.c.bf16 %v1599_v29, %v1599_v29  ;;  %v1210_v39 = vadd.f32 %v2899_v35, %v3213_v3  ;;  %v948_v52 = vpop.f32.mrb[19].mxu0  ;;  %v1204_v53 = vpop.f32.mrb[19].mxu1 }
 0x10a   : > { %2173 = vst.msk [vmem:[%s3228_s29 + $0x30] sm:$0xf] %vm2160_vm1, %v2628_v30  ;;  %v2629_v42 = vpack.c.bf16 %v1533_v32, %v1533_v32  ;;  %v2693_v43 = vpack.c.bf16 %v1597_v33, %v1597_v33  ;;  %v946_v44 = vadd.f32 %v3213_v3, %v945_v40  ;;  %v1202_v45 = vadd.f32 %v3213_v3, %v1201_v41 }
 0x10b   : > { %2237 = vst.msk [vmem:[%s3228_s29 + $0x130] sm:$0xf] %vm2160_vm1, %v2692_v31  ;;  %2176 = vst.msk [vmem:[%s3228_s29 + $0x3c] sm:$0xf] %vm2160_vm1, %v2631_v36  ;;  %v1410_v48 = vmul.f32 0.2, %v954_v38  ;;  %v957_v50 = vadd.f32 %v2836_v46, %v3213_v3  ;;  %v1213_v51 = vadd.f32 %v2900_v47, %v3213_v3  ;;  %v949_v56 = vadd.f32 %v3213_v3, %v948_v52 }
 0x10c   : > { %2240 = vst.msk [vmem:[%s3228_s29 + $0x13c] sm:$0xf] %vm2160_vm1, %v2695_v37  ;;  %v1474_v49 = vmul.f32 0.2, %v1210_v39  ;;  %2174 = vst.msk [vmem:[%s3228_s29 + $0x34] sm:$0xf] %vm2160_vm1, %v2629_v42  ;;  %v1205_v57 = vadd.f32 %v3213_v3, %v1204_v53 }
 0x10d   : > { %2238 = vst.msk [vmem:[%s3228_s29 + $0x134] sm:$0xf] %vm2160_vm1, %v2693_v43  ;;  %v1408_v54 = vmul.f32 0.2, %v946_v44  ;;  %v1472_v55 = vmul.f32 0.2, %v1202_v45  ;;  %v1538_v58 = vmax.f32 %v954_v38, %v1410_v48 }
 0x10e   : > { %v1602_v59 = vmax.f32 %v1210_v39, %v1474_v49  ;;  %v1411_v60 = vmul.f32 0.2, %v957_v50  ;;  %v1475_v61 = vmul.f32 0.2, %v1213_v51  ;;  %v1409_v0 = vmul.f32 0.2, %v949_v56 }
 0x10f   : > { %v1536_v62 = vmax.f32 %v946_v44, %v1408_v54  ;;  %v1600_v63 = vmax.f32 %v1202_v45, %v1472_v55  ;;  %v1473_v1 = vmul.f32 0.2, %v1205_v57  ;;  %v2634_v2 = vpack.c.bf16 %v1538_v58, %v1538_v58  ;;  %v2839_v11 = vpop.f32.mrb[20].mxu0  ;;  %v2903_v12 = vpop.f32.mrb[20].mxu1 }
 0x110   : > { %v2698_v4 = vpack.c.bf16 %v1602_v59, %v1602_v59  ;;  %v1539_v5 = vmax.f32 %v957_v50, %v1411_v60  ;;  %v1603_v6 = vmax.f32 %v1213_v51, %v1475_v61  ;;  %v1537_v9 = vmax.f32 %v949_v56, %v1409_v0  ;;  %v961_v17 = vpop.f32.mrb[21].mxu0  ;;  %v1217_v18 = vpop.f32.mrb[21].mxu1 }
 0x111   : > { %v2632_v7 = vpack.c.bf16 %v1536_v62, %v1536_v62  ;;  %v2696_v8 = vpack.c.bf16 %v1600_v63, %v1600_v63  ;;  %v1601_v10 = vmax.f32 %v1205_v57, %v1473_v1  ;;  %2179 = vst.msk [vmem:[%s3228_s29 + $0x48] sm:$0xf] %vm2160_vm1, %v2634_v2  ;;  %v970_v15 = vadd.f32 %v2839_v11, %v3213_v3  ;;  %v2840_v23 = vpop.f32.mrb[22].mxu0  ;;  %v2904_v24 = vpop.f32.mrb[22].mxu1 }
 0x112   : > { %2243 = vst.msk [vmem:[%s3228_s29 + $0x148] sm:$0xf] %vm2160_vm1, %v2698_v4  ;;  %v2635_v13 = vpack.c.bf16 %v1539_v5, %v1539_v5  ;;  %v2699_v14 = vpack.c.bf16 %v1603_v6, %v1603_v6  ;;  %v1226_v16 = vadd.f32 %v2903_v12, %v3213_v3  ;;  %v2633_v19 = vpack.c.bf16 %v1537_v9, %v1537_v9  ;;  %v964_v29 = vpop.f32.mrb[23].mxu0  ;;  %v1220_v30 = vpop.f32.mrb[23].mxu1 }
 0x113   : > { %2177 = vst.msk [vmem:[%s3228_s29 + $0x40] sm:$0xf] %vm2160_vm1, %v2632_v7  ;;  %2241 = vst.msk [vmem:[%s3228_s29 + $0x140] sm:$0xf] %vm2160_vm1, %v2696_v8  ;;  %v2697_v20 = vpack.c.bf16 %v1601_v10, %v1601_v10  ;;  %v962_v21 = vadd.f32 %v3213_v3, %v961_v17  ;;  %v1218_v22 = vadd.f32 %v3213_v3, %v1217_v18  ;;  %v1414_v25 = vmul.f32 0.2, %v970_v15 }
 0x114   : > { %2180 = vst.msk [vmem:[%s3228_s29 + $0x4c] sm:$0xf] %vm2160_vm1, %v2635_v13  ;;  %2244 = vst.msk [vmem:[%s3228_s29 + $0x14c] sm:$0xf] %vm2160_vm1, %v2699_v14  ;;  %v1478_v26 = vmul.f32 0.2, %v1226_v16  ;;  %v973_v27 = vadd.f32 %v2840_v23, %v3213_v3  ;;  %v1229_v28 = vadd.f32 %v2904_v24, %v3213_v3  ;;  %v965_v33 = vadd.f32 %v3213_v3, %v964_v29 }
 0x115   : > { %2178 = vst.msk [vmem:[%s3228_s29 + $0x44] sm:$0xf] %vm2160_vm1, %v2633_v19  ;;  %2242 = vst.msk [vmem:[%s3228_s29 + $0x144] sm:$0xf] %vm2160_vm1, %v2697_v20  ;;  %v1412_v31 = vmul.f32 0.2, %v962_v21  ;;  %v1221_v34 = vadd.f32 %v3213_v3, %v1220_v30  ;;  %v1542_v35 = vmax.f32 %v970_v15, %v1414_v25 }
 0x116   : > { %v1476_v32 = vmul.f32 0.2, %v1218_v22  ;;  %v1606_v36 = vmax.f32 %v1226_v16, %v1478_v26  ;;  %v1415_v37 = vmul.f32 0.2, %v973_v27  ;;  %v1479_v38 = vmul.f32 0.2, %v1229_v28 }
 0x117   : > { %v1540_v39 = vmax.f32 %v962_v21, %v1412_v31  ;;  %v1413_v41 = vmul.f32 0.2, %v965_v33  ;;  %v1477_v42 = vmul.f32 0.2, %v1221_v34  ;;  %v2638_v43 = vpack.c.bf16 %v1542_v35, %v1542_v35  ;;  %v2843_v51 = vpop.f32.mrb[24].mxu0  ;;  %v2907_v52 = vpop.f32.mrb[24].mxu1 }
 0x118   : > { %v1604_v40 = vmax.f32 %v1218_v22, %v1476_v32  ;;  %v2702_v44 = vpack.c.bf16 %v1606_v36, %v1606_v36  ;;  %v1543_v45 = vmax.f32 %v973_v27, %v1415_v37  ;;  %v1607_v46 = vmax.f32 %v1229_v28, %v1479_v38  ;;  %v977_v57 = vpop.f32.mrb[25].mxu0  ;;  %v1233_v58 = vpop.f32.mrb[25].mxu1 }
 0x119   : > { %v2636_v47 = vpack.c.bf16 %v1540_v39, %v1540_v39  ;;  %v1541_v49 = vmax.f32 %v965_v33, %v1413_v41  ;;  %v1605_v50 = vmax.f32 %v1221_v34, %v1477_v42  ;;  %2183 = vst.msk [vmem:[%s3228_s29 + $0x58] sm:$0xf] %vm2160_vm1, %v2638_v43  ;;  %v986_v55 = vadd.f32 %v2843_v51, %v3213_v3  ;;  %v2844_v63 = vpop.f32.mrb[26].mxu0  ;;  %v2908_v0 = vpop.f32.mrb[26].mxu1 }
 0x11a   : > { %v2700_v48 = vpack.c.bf16 %v1604_v40, %v1604_v40  ;;  %2247 = vst.msk [vmem:[%s3228_s29 + $0x158] sm:$0xf] %vm2160_vm1, %v2702_v44  ;;  %v2639_v53 = vpack.c.bf16 %v1543_v45, %v1543_v45  ;;  %v2703_v54 = vpack.c.bf16 %v1607_v46, %v1607_v46  ;;  %v1242_v56 = vadd.f32 %v2907_v52, %v3213_v3  ;;  %v980_v6 = vpop.f32.mrb[27].mxu0  ;;  %v1236_v7 = vpop.f32.mrb[27].mxu1 }
 0x11b   : > { %2181 = vst.msk [vmem:[%s3228_s29 + $0x50] sm:$0xf] %vm2160_vm1, %v2636_v47  ;;  %v2637_v59 = vpack.c.bf16 %v1541_v49, %v1541_v49  ;;  %v2701_v60 = vpack.c.bf16 %v1605_v50, %v1605_v50  ;;  %v978_v61 = vadd.f32 %v3213_v3, %v977_v57  ;;  %v1234_v62 = vadd.f32 %v3213_v3, %v1233_v58 }
 0x11c   : > { %2245 = vst.msk [vmem:[%s3228_s29 + $0x150] sm:$0xf] %vm2160_vm1, %v2700_v48  ;;  %2184 = vst.msk [vmem:[%s3228_s29 + $0x5c] sm:$0xf] %vm2160_vm1, %v2639_v53  ;;  %v1418_v1 = vmul.f32 0.2, %v986_v55  ;;  %v989_v4 = vadd.f32 %v2844_v63, %v3213_v3  ;;  %v1245_v5 = vadd.f32 %v2908_v0, %v3213_v3  ;;  %v981_v10 = vadd.f32 %v3213_v3, %v980_v6 }
 0x11d   : > { %2248 = vst.msk [vmem:[%s3228_s29 + $0x15c] sm:$0xf] %vm2160_vm1, %v2703_v54  ;;  %v1482_v2 = vmul.f32 0.2, %v1242_v56  ;;  %2182 = vst.msk [vmem:[%s3228_s29 + $0x54] sm:$0xf] %vm2160_vm1, %v2637_v59  ;;  %v1237_v11 = vadd.f32 %v3213_v3, %v1236_v7 }
 0x11e   : > { %2246 = vst.msk [vmem:[%s3228_s29 + $0x154] sm:$0xf] %vm2160_vm1, %v2701_v60  ;;  %v1416_v8 = vmul.f32 0.2, %v978_v61  ;;  %v1480_v9 = vmul.f32 0.2, %v1234_v62  ;;  %v1546_v12 = vmax.f32 %v986_v55, %v1418_v1 }
 0x11f   : > { %v1610_v13 = vmax.f32 %v1242_v56, %v1482_v2  ;;  %v1419_v14 = vmul.f32 0.2, %v989_v4  ;;  %v1483_v15 = vmul.f32 0.2, %v1245_v5  ;;  %v1417_v18 = vmul.f32 0.2, %v981_v10 }
 0x120   : > { %v1544_v16 = vmax.f32 %v978_v61, %v1416_v8  ;;  %v1608_v17 = vmax.f32 %v1234_v62, %v1480_v9  ;;  %v1481_v19 = vmul.f32 0.2, %v1237_v11  ;;  %v2642_v20 = vpack.c.bf16 %v1546_v12, %v1546_v12  ;;  %v2847_v28 = vpop.f32.mrb[28].mxu0  ;;  %v2911_v29 = vpop.f32.mrb[28].mxu1 }
 0x121   : > { %v2706_v21 = vpack.c.bf16 %v1610_v13, %v1610_v13  ;;  %v1547_v22 = vmax.f32 %v989_v4, %v1419_v14  ;;  %v1611_v23 = vmax.f32 %v1245_v5, %v1483_v15  ;;  %v1545_v26 = vmax.f32 %v981_v10, %v1417_v18  ;;  %v993_v34 = vpop.f32.mrb[29].mxu0  ;;  %v1249_v35 = vpop.f32.mrb[29].mxu1 }
 0x122   : > { %v2640_v24 = vpack.c.bf16 %v1544_v16, %v1544_v16  ;;  %v2704_v25 = vpack.c.bf16 %v1608_v17, %v1608_v17  ;;  %v1609_v27 = vmax.f32 %v1237_v11, %v1481_v19  ;;  %2187 = vst.msk [vmem:[%s3228_s29 + $0x68] sm:$0xf] %vm2160_vm1, %v2642_v20  ;;  %v1002_v32 = vadd.f32 %v2847_v28, %v3213_v3  ;;  %v2848_v40 = vpop.f32.mrb[30].mxu0  ;;  %v2912_v41 = vpop.f32.mrb[30].mxu1 }
 0x123   : > { %2251 = vst.msk [vmem:[%s3228_s29 + $0x168] sm:$0xf] %vm2160_vm1, %v2706_v21  ;;  %v2643_v30 = vpack.c.bf16 %v1547_v22, %v1547_v22  ;;  %v2707_v31 = vpack.c.bf16 %v1611_v23, %v1611_v23  ;;  %v1258_v33 = vadd.f32 %v2911_v29, %v3213_v3  ;;  %v2641_v36 = vpack.c.bf16 %v1545_v26, %v1545_v26  ;;  %v996_v46 = vpop.f32.mrb[31].mxu0  ;;  %v1252_v47 = vpop.f32.mrb[31].mxu1 }
 0x124   : > { %2185 = vst.msk [vmem:[%s3228_s29 + $0x60] sm:$0xf] %vm2160_vm1, %v2640_v24  ;;  %2249 = vst.msk [vmem:[%s3228_s29 + $0x160] sm:$0xf] %vm2160_vm1, %v2704_v25  ;;  %v2705_v37 = vpack.c.bf16 %v1609_v27, %v1609_v27  ;;  %v994_v38 = vadd.f32 %v3213_v3, %v993_v34  ;;  %v1250_v39 = vadd.f32 %v3213_v3, %v1249_v35  ;;  %v1422_v42 = vmul.f32 0.2, %v1002_v32 }
 0x125   : > { %2188 = vst.msk [vmem:[%s3228_s29 + $0x6c] sm:$0xf] %vm2160_vm1, %v2643_v30  ;;  %2252 = vst.msk [vmem:[%s3228_s29 + $0x16c] sm:$0xf] %vm2160_vm1, %v2707_v31  ;;  %v1486_v43 = vmul.f32 0.2, %v1258_v33  ;;  %v1005_v44 = vadd.f32 %v2848_v40, %v3213_v3  ;;  %v1261_v45 = vadd.f32 %v2912_v41, %v3213_v3  ;;  %v997_v50 = vadd.f32 %v3213_v3, %v996_v46 }
 0x126   : > { %2186 = vst.msk [vmem:[%s3228_s29 + $0x64] sm:$0xf] %vm2160_vm1, %v2641_v36  ;;  %2250 = vst.msk [vmem:[%s3228_s29 + $0x164] sm:$0xf] %vm2160_vm1, %v2705_v37  ;;  %v1420_v48 = vmul.f32 0.2, %v994_v38  ;;  %v1253_v51 = vadd.f32 %v3213_v3, %v1252_v47  ;;  %v1550_v52 = vmax.f32 %v1002_v32, %v1422_v42 }
 0x127   : > { %v1484_v49 = vmul.f32 0.2, %v1250_v39  ;;  %v1614_v53 = vmax.f32 %v1258_v33, %v1486_v43  ;;  %v1423_v54 = vmul.f32 0.2, %v1005_v44  ;;  %v1487_v55 = vmul.f32 0.2, %v1261_v45 }
 0x128   : > { %v1548_v56 = vmax.f32 %v994_v38, %v1420_v48  ;;  %v1421_v58 = vmul.f32 0.2, %v997_v50  ;;  %v1485_v59 = vmul.f32 0.2, %v1253_v51  ;;  %v2646_v60 = vpack.c.bf16 %v1550_v52, %v1550_v52  ;;  %v2851_v5 = vpop.f32.mrb[32].mxu0  ;;  %v2915_v6 = vpop.f32.mrb[32].mxu1 }
 0x129   : > { %v1612_v57 = vmax.f32 %v1250_v39, %v1484_v49  ;;  %v2710_v61 = vpack.c.bf16 %v1614_v53, %v1614_v53  ;;  %v1551_v62 = vmax.f32 %v1005_v44, %v1423_v54  ;;  %v1615_v63 = vmax.f32 %v1261_v45, %v1487_v55  ;;  %v1009_v11 = vpop.f32.mrb[33].mxu0  ;;  %v1265_v12 = vpop.f32.mrb[33].mxu1 }
 0x12a   : > { %v2644_v0 = vpack.c.bf16 %v1548_v56, %v1548_v56  ;;  %v1549_v2 = vmax.f32 %v997_v50, %v1421_v58  ;;  %v1613_v4 = vmax.f32 %v1253_v51, %v1485_v59  ;;  %2191 = vst.msk [vmem:[%s3228_s29 + $0x78] sm:$0xf] %vm2160_vm1, %v2646_v60  ;;  %v1018_v9 = vadd.f32 %v2851_v5, %v3213_v3  ;;  %v2852_v17 = vpop.f32.mrb[34].mxu0  ;;  %v2916_v18 = vpop.f32.mrb[34].mxu1 }
 0x12b   : > { %v2708_v1 = vpack.c.bf16 %v1612_v57, %v1612_v57  ;;  %2255 = vst.msk [vmem:[%s3228_s29 + $0x178] sm:$0xf] %vm2160_vm1, %v2710_v61  ;;  %v2647_v7 = vpack.c.bf16 %v1551_v62, %v1551_v62  ;;  %v2711_v8 = vpack.c.bf16 %v1615_v63, %v1615_v63  ;;  %v1274_v10 = vadd.f32 %v2915_v6, %v3213_v3  ;;  %v1012_v23 = vpop.f32.mrb[35].mxu0  ;;  %v1268_v24 = vpop.f32.mrb[35].mxu1 }
 0x12c   : > { %2189 = vst.msk [vmem:[%s3228_s29 + $0x70] sm:$0xf] %vm2160_vm1, %v2644_v0  ;;  %v2645_v13 = vpack.c.bf16 %v1549_v2, %v1549_v2  ;;  %v2709_v14 = vpack.c.bf16 %v1613_v4, %v1613_v4  ;;  %v1010_v15 = vadd.f32 %v3213_v3, %v1009_v11  ;;  %v1266_v16 = vadd.f32 %v3213_v3, %v1265_v12 }
 0x12d   : > { %2253 = vst.msk [vmem:[%s3228_s29 + $0x170] sm:$0xf] %vm2160_vm1, %v2708_v1  ;;  %2192 = vst.msk [vmem:[%s3228_s29 + $0x7c] sm:$0xf] %vm2160_vm1, %v2647_v7  ;;  %v1426_v19 = vmul.f32 0.2, %v1018_v9  ;;  %v1021_v21 = vadd.f32 %v2852_v17, %v3213_v3  ;;  %v1277_v22 = vadd.f32 %v2916_v18, %v3213_v3  ;;  %v1013_v27 = vadd.f32 %v3213_v3, %v1012_v23 }
 0x12e   : > { %2256 = vst.msk [vmem:[%s3228_s29 + $0x17c] sm:$0xf] %vm2160_vm1, %v2711_v8  ;;  %v1490_v20 = vmul.f32 0.2, %v1274_v10  ;;  %2190 = vst.msk [vmem:[%s3228_s29 + $0x74] sm:$0xf] %vm2160_vm1, %v2645_v13  ;;  %v1269_v28 = vadd.f32 %v3213_v3, %v1268_v24 }
 0x12f   : > { %2254 = vst.msk [vmem:[%s3228_s29 + $0x174] sm:$0xf] %vm2160_vm1, %v2709_v14  ;;  %v1424_v25 = vmul.f32 0.2, %v1010_v15  ;;  %v1488_v26 = vmul.f32 0.2, %v1266_v16  ;;  %v1554_v29 = vmax.f32 %v1018_v9, %v1426_v19 }
 0x130   : > { %v1618_v30 = vmax.f32 %v1274_v10, %v1490_v20  ;;  %v1427_v31 = vmul.f32 0.2, %v1021_v21  ;;  %v1491_v32 = vmul.f32 0.2, %v1277_v22  ;;  %v1425_v35 = vmul.f32 0.2, %v1013_v27 }
 0x131   : > { %v1552_v33 = vmax.f32 %v1010_v15, %v1424_v25  ;;  %v1616_v34 = vmax.f32 %v1266_v16, %v1488_v26  ;;  %v1489_v36 = vmul.f32 0.2, %v1269_v28  ;;  %v2650_v37 = vpack.c.bf16 %v1554_v29, %v1554_v29  ;;  %v2855_v45 = vpop.f32.mrb[36].mxu0  ;;  %v2919_v46 = vpop.f32.mrb[36].mxu1 }
 0x132   : > { %v2714_v38 = vpack.c.bf16 %v1618_v30, %v1618_v30  ;;  %v1555_v39 = vmax.f32 %v1021_v21, %v1427_v31  ;;  %v1619_v40 = vmax.f32 %v1277_v22, %v1491_v32  ;;  %v1553_v43 = vmax.f32 %v1013_v27, %v1425_v35  ;;  %v1025_v51 = vpop.f32.mrb[37].mxu0  ;;  %v1281_v52 = vpop.f32.mrb[37].mxu1 }
 0x133   : > { %v2648_v41 = vpack.c.bf16 %v1552_v33, %v1552_v33  ;;  %v2712_v42 = vpack.c.bf16 %v1616_v34, %v1616_v34  ;;  %v1617_v44 = vmax.f32 %v1269_v28, %v1489_v36  ;;  %2195 = vst.msk [vmem:[%s3228_s29 + $0x88] sm:$0xf] %vm2160_vm1, %v2650_v37  ;;  %v1034_v49 = vadd.f32 %v2855_v45, %v3213_v3  ;;  %v2856_v57 = vpop.f32.mrb[38].mxu0  ;;  %v2920_v58 = vpop.f32.mrb[38].mxu1 }
 0x134   : > { %2259 = vst.msk [vmem:[%s3228_s29 + $0x188] sm:$0xf] %vm2160_vm1, %v2714_v38  ;;  %v2651_v47 = vpack.c.bf16 %v1555_v39, %v1555_v39  ;;  %v2715_v48 = vpack.c.bf16 %v1619_v40, %v1619_v40  ;;  %v1290_v50 = vadd.f32 %v2919_v46, %v3213_v3  ;;  %v2649_v53 = vpack.c.bf16 %v1553_v43, %v1553_v43  ;;  %v1028_v63 = vpop.f32.mrb[39].mxu0  ;;  %v1284_v0 = vpop.f32.mrb[39].mxu1 }
 0x135   : > { %2193 = vst.msk [vmem:[%s3228_s29 + $0x80] sm:$0xf] %vm2160_vm1, %v2648_v41  ;;  %2257 = vst.msk [vmem:[%s3228_s29 + $0x180] sm:$0xf] %vm2160_vm1, %v2712_v42  ;;  %v2713_v54 = vpack.c.bf16 %v1617_v44, %v1617_v44  ;;  %v1026_v55 = vadd.f32 %v3213_v3, %v1025_v51  ;;  %v1282_v56 = vadd.f32 %v3213_v3, %v1281_v52  ;;  %v1430_v59 = vmul.f32 0.2, %v1034_v49 }
 0x136   : > { %2196 = vst.msk [vmem:[%s3228_s29 + $0x8c] sm:$0xf] %vm2160_vm1, %v2651_v47  ;;  %2260 = vst.msk [vmem:[%s3228_s29 + $0x18c] sm:$0xf] %vm2160_vm1, %v2715_v48  ;;  %v1494_v60 = vmul.f32 0.2, %v1290_v50  ;;  %v1037_v61 = vadd.f32 %v2856_v57, %v3213_v3  ;;  %v1293_v62 = vadd.f32 %v2920_v58, %v3213_v3  ;;  %v1029_v4 = vadd.f32 %v3213_v3, %v1028_v63 }
 0x137   : > { %2194 = vst.msk [vmem:[%s3228_s29 + $0x84] sm:$0xf] %vm2160_vm1, %v2649_v53  ;;  %2258 = vst.msk [vmem:[%s3228_s29 + $0x184] sm:$0xf] %vm2160_vm1, %v2713_v54  ;;  %v1428_v1 = vmul.f32 0.2, %v1026_v55  ;;  %v1285_v5 = vadd.f32 %v3213_v3, %v1284_v0  ;;  %v1558_v6 = vmax.f32 %v1034_v49, %v1430_v59 }
 0x138   : > { %v1492_v2 = vmul.f32 0.2, %v1282_v56  ;;  %v1622_v7 = vmax.f32 %v1290_v50, %v1494_v60  ;;  %v1431_v8 = vmul.f32 0.2, %v1037_v61  ;;  %v1495_v9 = vmul.f32 0.2, %v1293_v62 }
 0x139   : > { %v1556_v10 = vmax.f32 %v1026_v55, %v1428_v1  ;;  %v1429_v12 = vmul.f32 0.2, %v1029_v4  ;;  %v1493_v13 = vmul.f32 0.2, %v1285_v5  ;;  %v2654_v14 = vpack.c.bf16 %v1558_v6, %v1558_v6  ;;  %v2859_v22 = vpop.f32.mrb[40].mxu0  ;;  %v2923_v23 = vpop.f32.mrb[40].mxu1 }
 0x13a   : > { %v1620_v11 = vmax.f32 %v1282_v56, %v1492_v2  ;;  %v2718_v15 = vpack.c.bf16 %v1622_v7, %v1622_v7  ;;  %v1559_v16 = vmax.f32 %v1037_v61, %v1431_v8  ;;  %v1623_v17 = vmax.f32 %v1293_v62, %v1495_v9  ;;  %v1041_v28 = vpop.f32.mrb[41].mxu0  ;;  %v1297_v29 = vpop.f32.mrb[41].mxu1  ;;  %v3477_v1 = vld [vmem:[%s3616_s2] ss:$0 sm:$0xff] }
 0x13b   : > { %v2652_v18 = vpack.c.bf16 %v1556_v10, %v1556_v10  ;;  %v1557_v20 = vmax.f32 %v1029_v4, %v1429_v12  ;;  %v1621_v21 = vmax.f32 %v1285_v5, %v1493_v13  ;;  %2199 = vst.msk [vmem:[%s3228_s29 + $0x98] sm:$0xf] %vm2160_vm1, %v2654_v14  ;;  %v1050_v26 = vadd.f32 %v2859_v22, %v3213_v3  ;;  %v2860_v34 = vpop.f32.mrb[42].mxu0  ;;  %v2924_v35 = vpop.f32.mrb[42].mxu1 }
 0x13c   : > { %v2716_v19 = vpack.c.bf16 %v1620_v11, %v1620_v11  ;;  %2263 = vst.msk [vmem:[%s3228_s29 + $0x198] sm:$0xf] %vm2160_vm1, %v2718_v15  ;;  %v2655_v24 = vpack.c.bf16 %v1559_v16, %v1559_v16  ;;  %v2719_v25 = vpack.c.bf16 %v1623_v17, %v1623_v17  ;;  %v1306_v27 = vadd.f32 %v2923_v23, %v3213_v3  ;;  %v1044_v40 = vpop.f32.mrb[43].mxu0  ;;  %v1300_v41 = vpop.f32.mrb[43].mxu1 }
 0x13d   : > { %2197 = vst.msk [vmem:[%s3228_s29 + $0x90] sm:$0xf] %vm2160_vm1, %v2652_v18  ;;  %v2653_v30 = vpack.c.bf16 %v1557_v20, %v1557_v20  ;;  %v2717_v31 = vpack.c.bf16 %v1621_v21, %v1621_v21  ;;  %v1042_v32 = vadd.f32 %v3213_v3, %v1041_v28  ;;  %v1298_v33 = vadd.f32 %v3213_v3, %v1297_v29  ;;  %v2863_v61 = vpop.f32.mrb[44].mxu0 }
 0x13e   : > { %2261 = vst.msk [vmem:[%s3228_s29 + $0x190] sm:$0xf] %vm2160_vm1, %v2716_v19  ;;  %2200 = vst.msk [vmem:[%s3228_s29 + $0x9c] sm:$0xf] %vm2160_vm1, %v2655_v24  ;;  %v1434_v36 = vmul.f32 0.2, %v1050_v26  ;;  %v1053_v38 = vadd.f32 %v2860_v34, %v3213_v3  ;;  %v1309_v39 = vadd.f32 %v2924_v35, %v3213_v3  ;;  %v1045_v44 = vadd.f32 %v3213_v3, %v1044_v40 }
 0x13f   : > { %2264 = vst.msk [vmem:[%s3228_s29 + $0x19c] sm:$0xf] %vm2160_vm1, %v2719_v25  ;;  %v1498_v37 = vmul.f32 0.2, %v1306_v27  ;;  %2198 = vst.msk [vmem:[%s3228_s29 + $0x94] sm:$0xf] %vm2160_vm1, %v2653_v30  ;;  %v1301_v45 = vadd.f32 %v3213_v3, %v1300_v41  ;;  %v1066_v2 = vadd.f32 %v3477_v1, %v2863_v61 }
 0x140   : > { %2262 = vst.msk [vmem:[%s3228_s29 + $0x194] sm:$0xf] %vm2160_vm1, %v2717_v31  ;;  %v1432_v42 = vmul.f32 0.2, %v1042_v32  ;;  %v1496_v43 = vmul.f32 0.2, %v1298_v33  ;;  %v1562_v46 = vmax.f32 %v1050_v26, %v1434_v36 }
 0x141   : > { %v1626_v47 = vmax.f32 %v1306_v27, %v1498_v37  ;;  %v1435_v48 = vmul.f32 0.2, %v1053_v38  ;;  %v1499_v49 = vmul.f32 0.2, %v1309_v39  ;;  %v1433_v52 = vmul.f32 0.2, %v1045_v44 }
 0x142   : > { %v1560_v50 = vmax.f32 %v1042_v32, %v1432_v42  ;;  %v1624_v51 = vmax.f32 %v1298_v33, %v1496_v43  ;;  %v1497_v53 = vmul.f32 0.2, %v1301_v45  ;;  %v2658_v54 = vpack.c.bf16 %v1562_v46, %v1562_v46  ;;  %v2927_v62 = vpop.f32.mrb[44].mxu1  ;;  %v1057_v5 = vpop.f32.mrb[45].mxu0 }
 0x143   : > { %v2722_v55 = vpack.c.bf16 %v1626_v47, %v1626_v47  ;;  %v1563_v56 = vmax.f32 %v1053_v38, %v1435_v48  ;;  %v1627_v57 = vmax.f32 %v1309_v39, %v1499_v49  ;;  %v1561_v60 = vmax.f32 %v1045_v44, %v1433_v52  ;;  %v1313_v6 = vpop.f32.mrb[45].mxu1  ;;  %v2864_v11 = vpop.f32.mrb[46].mxu0 }
 0x144   : > { %v2656_v58 = vpack.c.bf16 %v1560_v50, %v1560_v50  ;;  %v2720_v59 = vpack.c.bf16 %v1624_v51, %v1624_v51  ;;  %v1625_v3 = vmax.f32 %v1301_v45, %v1497_v53  ;;  %2203 = vst.msk [vmem:[%s3228_s29 + $0xa8] sm:$0xf] %vm2160_vm1, %v2658_v54  ;;  %v1322_v4 = vadd.f32 %v3477_v1, %v2927_v62  ;;  %v2928_v12 = vpop.f32.mrb[46].mxu1  ;;  %v1060_v17 = vpop.f32.mrb[47].mxu0 }
 0x145   : > { %2267 = vst.msk [vmem:[%s3228_s29 + $0x1a8] sm:$0xf] %vm2160_vm1, %v2722_v55  ;;  %v2659_v63 = vpack.c.bf16 %v1563_v56, %v1563_v56  ;;  %v2723_v0 = vpack.c.bf16 %v1627_v57, %v1627_v57  ;;  %v2657_v7 = vpack.c.bf16 %v1561_v60, %v1561_v60  ;;  %v1058_v9 = vadd.f32 %v3477_v1, %v1057_v5  ;;  %v1316_v18 = vpop.f32.mrb[47].mxu1  ;;  %v2867_v39 = vpop.f32.mrb[48].mxu0 }
 0x146   : > { %2201 = vst.msk [vmem:[%s3228_s29 + $0xa0] sm:$0xf] %vm2160_vm1, %v2656_v58  ;;  %2265 = vst.msk [vmem:[%s3228_s29 + $0x1a0] sm:$0xf] %vm2160_vm1, %v2720_v59  ;;  %v2721_v8 = vpack.c.bf16 %v1625_v3, %v1625_v3  ;;  %v1314_v10 = vadd.f32 %v3477_v1, %v1313_v6  ;;  %v1438_v13 = vmul.f32 0.2, %v1066_v2  ;;  %v1069_v15 = vadd.f32 %v3477_v1, %v2864_v11 }
 0x147   : > { %2204 = vst.msk [vmem:[%s3228_s29 + $0xac] sm:$0xf] %vm2160_vm1, %v2659_v63  ;;  %2268 = vst.msk [vmem:[%s3228_s29 + $0x1ac] sm:$0xf] %vm2160_vm1, %v2723_v0  ;;  %v1502_v14 = vmul.f32 0.2, %v1322_v4  ;;  %v1325_v16 = vadd.f32 %v3477_v1, %v2928_v12  ;;  %v1061_v21 = vadd.f32 %v3477_v1, %v1060_v17  ;;  %v1317_v22 = vadd.f32 %v3477_v1, %v1316_v18 }
 0x148   : > { %2202 = vst.msk [vmem:[%s3228_s29 + $0xa4] sm:$0xf] %vm2160_vm1, %v2657_v7  ;;  %2266 = vst.msk [vmem:[%s3228_s29 + $0x1a4] sm:$0xf] %vm2160_vm1, %v2721_v8  ;;  %v1436_v19 = vmul.f32 0.2, %v1058_v9  ;;  %v1566_v23 = vmax.f32 %v1066_v2, %v1438_v13  ;;  %v1082_v43 = vadd.f32 %v3477_v1, %v2867_v39 }
 0x149   : > { %v1500_v20 = vmul.f32 0.2, %v1314_v10  ;;  %v1630_v24 = vmax.f32 %v1322_v4, %v1502_v14  ;;  %v1439_v25 = vmul.f32 0.2, %v1069_v15  ;;  %v1503_v26 = vmul.f32 0.2, %v1325_v16 }
 0x14a   : > { %v1564_v27 = vmax.f32 %v1058_v9, %v1436_v19  ;;  %v1437_v29 = vmul.f32 0.2, %v1061_v21  ;;  %v1501_v30 = vmul.f32 0.2, %v1317_v22  ;;  %v2662_v31 = vpack.c.bf16 %v1566_v23, %v1566_v23  ;;  %v2931_v40 = vpop.f32.mrb[48].mxu1  ;;  %v1073_v45 = vpop.f32.mrb[49].mxu0 }
 0x14b   : > { %v1628_v28 = vmax.f32 %v1314_v10, %v1500_v20  ;;  %v2726_v32 = vpack.c.bf16 %v1630_v24, %v1630_v24  ;;  %v1567_v33 = vmax.f32 %v1069_v15, %v1439_v25  ;;  %v1631_v34 = vmax.f32 %v1325_v16, %v1503_v26  ;;  %v1329_v46 = vpop.f32.mrb[49].mxu1  ;;  %v2868_v51 = vpop.f32.mrb[50].mxu0 }
 0x14c   : > { %v2660_v35 = vpack.c.bf16 %v1564_v27, %v1564_v27  ;;  %v1565_v37 = vmax.f32 %v1061_v21, %v1437_v29  ;;  %v1629_v38 = vmax.f32 %v1317_v22, %v1501_v30  ;;  %2207 = vst.msk [vmem:[%s3228_s29 + $0xb8] sm:$0xf] %vm2160_vm1, %v2662_v31  ;;  %v1338_v44 = vadd.f32 %v3477_v1, %v2931_v40  ;;  %v2932_v52 = vpop.f32.mrb[50].mxu1  ;;  %v1076_v57 = vpop.f32.mrb[51].mxu0 }
 0x14d   : > { %v2724_v36 = vpack.c.bf16 %v1628_v28, %v1628_v28  ;;  %2271 = vst.msk [vmem:[%s3228_s29 + $0x1b8] sm:$0xf] %vm2160_vm1, %v2726_v32  ;;  %v2663_v41 = vpack.c.bf16 %v1567_v33, %v1567_v33  ;;  %v2727_v42 = vpack.c.bf16 %v1631_v34, %v1631_v34  ;;  %v1074_v49 = vadd.f32 %v3477_v1, %v1073_v45  ;;  %v1332_v58 = vpop.f32.mrb[51].mxu1  ;;  %v2871_v16 = vpop.f32.mrb[52].mxu0 }
 0x14e   : > { %2205 = vst.msk [vmem:[%s3228_s29 + $0xb0] sm:$0xf] %vm2160_vm1, %v2660_v35  ;;  %v2661_v47 = vpack.c.bf16 %v1565_v37, %v1565_v37  ;;  %v2725_v48 = vpack.c.bf16 %v1629_v38, %v1629_v38  ;;  %v1330_v50 = vadd.f32 %v3477_v1, %v1329_v46  ;;  %v1442_v53 = vmul.f32 0.2, %v1082_v43  ;;  %v2935_v17 = vpop.f32.mrb[52].mxu1  ;;  %v1089_v22 = vpop.f32.mrb[53].mxu0 }
 0x14f   : > { %2269 = vst.msk [vmem:[%s3228_s29 + $0x1b0] sm:$0xf] %vm2160_vm1, %v2724_v36  ;;  %2208 = vst.msk [vmem:[%s3228_s29 + $0xbc] sm:$0xf] %vm2160_vm1, %v2663_v41  ;;  %v1506_v54 = vmul.f32 0.2, %v1338_v44  ;;  %v1085_v55 = vadd.f32 %v3477_v1, %v2868_v51  ;;  %v1341_v56 = vadd.f32 %v3477_v1, %v2932_v52  ;;  %v1077_v3 = vadd.f32 %v3477_v1, %v1076_v57 }
 0x150   : > { %2272 = vst.msk [vmem:[%s3228_s29 + $0x1bc] sm:$0xf] %vm2160_vm1, %v2727_v42  ;;  %2206 = vst.msk [vmem:[%s3228_s29 + $0xb4] sm:$0xf] %vm2160_vm1, %v2661_v47  ;;  %v1440_v59 = vmul.f32 0.2, %v1074_v49  ;;  %v1333_v61 = vadd.f32 %v3477_v1, %v1332_v58  ;;  %v1570_v62 = vmax.f32 %v1082_v43, %v1442_v53  ;;  %v1098_v20 = vadd.f32 %v3477_v1, %v2871_v16 }
 0x151   : > { %2270 = vst.msk [vmem:[%s3228_s29 + $0x1b4] sm:$0xf] %vm2160_vm1, %v2725_v48  ;;  %v1504_v60 = vmul.f32 0.2, %v1330_v50  ;;  %v1634_v63 = vmax.f32 %v1338_v44, %v1506_v54  ;;  %v1443_v0 = vmul.f32 0.2, %v1085_v55  ;;  %v1354_v21 = vadd.f32 %v3477_v1, %v2935_v17 }
 0x152   : > { %v1507_v2 = vmul.f32 0.2, %v1341_v56  ;;  %v1568_v4 = vmax.f32 %v1074_v49, %v1440_v59  ;;  %v1441_v6 = vmul.f32 0.2, %v1077_v3  ;;  %v1505_v7 = vmul.f32 0.2, %v1333_v61 }
 0x153   : > { %v1632_v5 = vmax.f32 %v1330_v50, %v1504_v60  ;;  %v2666_v8 = vpack.c.bf16 %v1570_v62, %v1570_v62  ;;  %v2730_v9 = vpack.c.bf16 %v1634_v63, %v1634_v63  ;;  %v1571_v10 = vmax.f32 %v1085_v55, %v1443_v0  ;;  %v1345_v23 = vpop.f32.mrb[53].mxu1  ;;  %v2872_v28 = vpop.f32.mrb[54].mxu0 }
 0x154   : > { %v1635_v11 = vmax.f32 %v1341_v56, %v1507_v2  ;;  %v2664_v12 = vpack.c.bf16 %v1568_v4, %v1568_v4  ;;  %v1569_v14 = vmax.f32 %v1077_v3, %v1441_v6  ;;  %v1633_v15 = vmax.f32 %v1333_v61, %v1505_v7  ;;  %v2936_v29 = vpop.f32.mrb[54].mxu1  ;;  %v1092_v34 = vpop.f32.mrb[55].mxu0 }
 0x155   : > { %v2728_v13 = vpack.c.bf16 %v1632_v5, %v1632_v5  ;;  %2211 = vst.msk [vmem:[%s3228_s29 + $0xc8] sm:$0xf] %vm2160_vm1, %v2666_v8  ;;  %2275 = vst.msk [vmem:[%s3228_s29 + $0x1c8] sm:$0xf] %vm2160_vm1, %v2730_v9  ;;  %v2667_v18 = vpack.c.bf16 %v1571_v10, %v1571_v10  ;;  %v1090_v26 = vadd.f32 %v3477_v1, %v1089_v22  ;;  %v1446_v30 = vmul.f32 0.2, %v1098_v20 }
 0x156   : > { %v2731_v19 = vpack.c.bf16 %v1635_v11, %v1635_v11  ;;  %2209 = vst.msk [vmem:[%s3228_s29 + $0xc0] sm:$0xf] %vm2160_vm1, %v2664_v12  ;;  %v2665_v24 = vpack.c.bf16 %v1569_v14, %v1569_v14  ;;  %v2729_v25 = vpack.c.bf16 %v1633_v15, %v1633_v15  ;;  %v1346_v27 = vadd.f32 %v3477_v1, %v1345_v23  ;;  %v1348_v35 = vpop.f32.mrb[55].mxu1  ;;  %v2875_v56 = vpop.f32.mrb[56].mxu0 }
 0x157   : > { %2273 = vst.msk [vmem:[%s3228_s29 + $0x1c0] sm:$0xf] %vm2160_vm1, %v2728_v13  ;;  %2212 = vst.msk [vmem:[%s3228_s29 + $0xcc] sm:$0xf] %vm2160_vm1, %v2667_v18  ;;  %v1510_v31 = vmul.f32 0.2, %v1354_v21  ;;  %v1101_v32 = vadd.f32 %v3477_v1, %v2872_v28  ;;  %v1357_v33 = vadd.f32 %v3477_v1, %v2936_v29  ;;  %v1093_v38 = vadd.f32 %v3477_v1, %v1092_v34 }
 0x158   : > { %2276 = vst.msk [vmem:[%s3228_s29 + $0x1cc] sm:$0xf] %vm2160_vm1, %v2731_v19  ;;  %2210 = vst.msk [vmem:[%s3228_s29 + $0xc4] sm:$0xf] %vm2160_vm1, %v2665_v24  ;;  %v1444_v36 = vmul.f32 0.2, %v1090_v26  ;;  %v1349_v39 = vadd.f32 %v3477_v1, %v1348_v35  ;;  %v1574_v40 = vmax.f32 %v1098_v20, %v1446_v30  ;;  %v1114_v60 = vadd.f32 %v3477_v1, %v2875_v56 }
 0x159   : > { %2274 = vst.msk [vmem:[%s3228_s29 + $0x1c4] sm:$0xf] %vm2160_vm1, %v2729_v25  ;;  %v1508_v37 = vmul.f32 0.2, %v1346_v27  ;;  %v1638_v41 = vmax.f32 %v1354_v21, %v1510_v31  ;;  %v1447_v42 = vmul.f32 0.2, %v1101_v32 }
 0x15a   : > { %v1511_v43 = vmul.f32 0.2, %v1357_v33  ;;  %v1572_v44 = vmax.f32 %v1090_v26, %v1444_v36  ;;  %v1445_v46 = vmul.f32 0.2, %v1093_v38  ;;  %v1509_v47 = vmul.f32 0.2, %v1349_v39 }
 0x15b   : > { %v1636_v45 = vmax.f32 %v1346_v27, %v1508_v37  ;;  %v2670_v48 = vpack.c.bf16 %v1574_v40, %v1574_v40  ;;  %v2734_v49 = vpack.c.bf16 %v1638_v41, %v1638_v41  ;;  %v1575_v50 = vmax.f32 %v1101_v32, %v1447_v42  ;;  %v2939_v57 = vpop.f32.mrb[56].mxu1  ;;  %v1105_v61 = vpop.f32.mrb[57].mxu0 }
 0x15c   : > { %v1639_v51 = vmax.f32 %v1357_v33, %v1511_v43  ;;  %v2668_v52 = vpack.c.bf16 %v1572_v44, %v1572_v44  ;;  %v1573_v54 = vmax.f32 %v1093_v38, %v1445_v46  ;;  %v1637_v55 = vmax.f32 %v1349_v39, %v1509_v47  ;;  %v1361_v62 = vpop.f32.mrb[57].mxu1  ;;  %v2876_v5 = vpop.f32.mrb[58].mxu0 }
 0x15d   : > { %v2732_v53 = vpack.c.bf16 %v1636_v45, %v1636_v45  ;;  %2215 = vst.msk [vmem:[%s3228_s29 + $0xd8] sm:$0xf] %vm2160_vm1, %v2670_v48  ;;  %2279 = vst.msk [vmem:[%s3228_s29 + $0x1d8] sm:$0xf] %vm2160_vm1, %v2734_v49  ;;  %v2671_v58 = vpack.c.bf16 %v1575_v50, %v1575_v50  ;;  %v1370_v3 = vadd.f32 %v3477_v1, %v2939_v57  ;;  %v2940_v6 = vpop.f32.mrb[58].mxu1  ;;  %v1108_v11 = vpop.f32.mrb[59].mxu0 }
 0x15e   : > { %v2735_v59 = vpack.c.bf16 %v1639_v51, %v1639_v51  ;;  %2213 = vst.msk [vmem:[%s3228_s29 + $0xd0] sm:$0xf] %vm2160_vm1, %v2668_v52  ;;  %v2669_v63 = vpack.c.bf16 %v1573_v54, %v1573_v54  ;;  %v2733_v0 = vpack.c.bf16 %v1637_v55, %v1637_v55  ;;  %v1106_v2 = vadd.f32 %v3477_v1, %v1105_v61  ;;  %v1364_v12 = vpop.f32.mrb[59].mxu1  ;;  %v2879_v33 = vpop.f32.mrb[60].mxu0 }
 0x15f   : > { %2277 = vst.msk [vmem:[%s3228_s29 + $0x1d0] sm:$0xf] %vm2160_vm1, %v2732_v53  ;;  %v1362_v4 = vadd.f32 %v3477_v1, %v1361_v62  ;;  %2216 = vst.msk [vmem:[%s3228_s29 + $0xdc] sm:$0xf] %vm2160_vm1, %v2671_v58  ;;  %v1450_v7 = vmul.f32 0.2, %v1114_v60  ;;  %v1117_v9 = vadd.f32 %v3477_v1, %v2876_v5  ;;  %v1373_v10 = vadd.f32 %v3477_v1, %v2940_v6 }
 0x160   : > { %2280 = vst.msk [vmem:[%s3228_s29 + $0x1dc] sm:$0xf] %vm2160_vm1, %v2735_v59  ;;  %v1514_v8 = vmul.f32 0.2, %v1370_v3  ;;  %2214 = vst.msk [vmem:[%s3228_s29 + $0xd4] sm:$0xf] %vm2160_vm1, %v2669_v63  ;;  %v1109_v15 = vadd.f32 %v3477_v1, %v1108_v11  ;;  %v1365_v16 = vadd.f32 %v3477_v1, %v1364_v12  ;;  %v1130_v37 = vadd.f32 %v3477_v1, %v2879_v33 }
 0x161   : > { %2278 = vst.msk [vmem:[%s3228_s29 + $0x1d4] sm:$0xf] %vm2160_vm1, %v2733_v0  ;;  %v1448_v13 = vmul.f32 0.2, %v1106_v2  ;;  %v1512_v14 = vmul.f32 0.2, %v1362_v4  ;;  %v1578_v17 = vmax.f32 %v1114_v60, %v1450_v7 }
 0x162   : > { %v1642_v18 = vmax.f32 %v1370_v3, %v1514_v8  ;;  %v1451_v19 = vmul.f32 0.2, %v1117_v9  ;;  %v1515_v20 = vmul.f32 0.2, %v1373_v10  ;;  %v1449_v23 = vmul.f32 0.2, %v1109_v15 }
 0x163   : > { %v1576_v21 = vmax.f32 %v1106_v2, %v1448_v13  ;;  %v1640_v22 = vmax.f32 %v1362_v4, %v1512_v14  ;;  %v1513_v24 = vmul.f32 0.2, %v1365_v16  ;;  %v2674_v25 = vpack.c.bf16 %v1578_v17, %v1578_v17  ;;  %v2943_v34 = vpop.f32.mrb[60].mxu1  ;;  %v1121_v39 = vpop.f32.mrb[61].mxu0 }
 0x164   : > { %v2738_v26 = vpack.c.bf16 %v1642_v18, %v1642_v18  ;;  %v1579_v27 = vmax.f32 %v1117_v9, %v1451_v19  ;;  %v1643_v28 = vmax.f32 %v1373_v10, %v1515_v20  ;;  %v1577_v31 = vmax.f32 %v1109_v15, %v1449_v23  ;;  %v1377_v40 = vpop.f32.mrb[61].mxu1  ;;  %v2880_v45 = vpop.f32.mrb[62].mxu0 }
 0x165   : > { %v2672_v29 = vpack.c.bf16 %v1576_v21, %v1576_v21  ;;  %v2736_v30 = vpack.c.bf16 %v1640_v22, %v1640_v22  ;;  %v1641_v32 = vmax.f32 %v1365_v16, %v1513_v24  ;;  %2219 = vst.msk [vmem:[%s3228_s29 + $0xe8] sm:$0xf] %vm2160_vm1, %v2674_v25  ;;  %v1386_v38 = vadd.f32 %v3477_v1, %v2943_v34  ;;  %v2944_v46 = vpop.f32.mrb[62].mxu1  ;;  %v1124_v51 = vpop.f32.mrb[63].mxu0 }
 0x166   : > { %2283 = vst.msk [vmem:[%s3228_s29 + $0x1e8] sm:$0xf] %vm2160_vm1, %v2738_v26  ;;  %v2675_v35 = vpack.c.bf16 %v1579_v27, %v1579_v27  ;;  %v2739_v36 = vpack.c.bf16 %v1643_v28, %v1643_v28  ;;  %v2673_v41 = vpack.c.bf16 %v1577_v31, %v1577_v31  ;;  %v1122_v43 = vadd.f32 %v3477_v1, %v1121_v39  ;;  %v1380_v52 = vpop.f32.mrb[63].mxu1 }
 0x167   : > { %2217 = vst.msk [vmem:[%s3228_s29 + $0xe0] sm:$0xf] %vm2160_vm1, %v2672_v29  ;;  %2281 = vst.msk [vmem:[%s3228_s29 + $0x1e0] sm:$0xf] %vm2160_vm1, %v2736_v30  ;;  %v2737_v42 = vpack.c.bf16 %v1641_v32, %v1641_v32  ;;  %v1378_v44 = vadd.f32 %v3477_v1, %v1377_v40  ;;  %v1454_v47 = vmul.f32 0.2, %v1130_v37  ;;  %v1133_v49 = vadd.f32 %v3477_v1, %v2880_v45 }
 0x168   : > { %2220 = vst.msk [vmem:[%s3228_s29 + $0xec] sm:$0xf] %vm2160_vm1, %v2675_v35  ;;  %2284 = vst.msk [vmem:[%s3228_s29 + $0x1ec] sm:$0xf] %vm2160_vm1, %v2739_v36  ;;  %v1518_v48 = vmul.f32 0.2, %v1386_v38  ;;  %v1389_v50 = vadd.f32 %v3477_v1, %v2944_v46  ;;  %v1125_v55 = vadd.f32 %v3477_v1, %v1124_v51  ;;  %v1381_v56 = vadd.f32 %v3477_v1, %v1380_v52 }
 0x169   : > { %2218 = vst.msk [vmem:[%s3228_s29 + $0xe4] sm:$0xf] %vm2160_vm1, %v2673_v41  ;;  %2282 = vst.msk [vmem:[%s3228_s29 + $0x1e4] sm:$0xf] %vm2160_vm1, %v2737_v42  ;;  %v1452_v53 = vmul.f32 0.2, %v1122_v43  ;;  %v1582_v57 = vmax.f32 %v1130_v37, %v1454_v47 }
 0x16a   : > { %v1516_v54 = vmul.f32 0.2, %v1378_v44  ;;  %v1646_v58 = vmax.f32 %v1386_v38, %v1518_v48  ;;  %v1455_v59 = vmul.f32 0.2, %v1133_v49  ;;  %v1519_v60 = vmul.f32 0.2, %v1389_v50 }
 0x16b   : > { %v1580_v3 = vmax.f32 %v1122_v43, %v1452_v53  ;;  %v1453_v62 = vmul.f32 0.2, %v1125_v55  ;;  %v1517_v63 = vmul.f32 0.2, %v1381_v56  ;;  %v2678_v0 = vpack.c.bf16 %v1582_v57, %v1582_v57 }
 0x16c   : > { %v1644_v61 = vmax.f32 %v1378_v44, %v1516_v54  ;;  %v2742_v2 = vpack.c.bf16 %v1646_v58, %v1646_v58  ;;  %v1583_v4 = vmax.f32 %v1133_v49, %v1455_v59  ;;  %v1647_v5 = vmax.f32 %v1389_v50, %v1519_v60 }
 0x16d   : > { %v2676_v1 = vpack.c.bf16 %v1580_v3, %v1580_v3  ;;  %v1581_v7 = vmax.f32 %v1125_v55, %v1453_v62  ;;  %v1645_v8 = vmax.f32 %v1381_v56, %v1517_v63  ;;  %2223 = vst.msk [vmem:[%s3228_s29 + $0xf8] sm:$0xf] %vm2160_vm1, %v2678_v0 }
 0x16e   : > { %v2740_v6 = vpack.c.bf16 %v1644_v61, %v1644_v61  ;;  %2287 = vst.msk [vmem:[%s3228_s29 + $0x1f8] sm:$0xf] %vm2160_vm1, %v2742_v2  ;;  %v2679_v9 = vpack.c.bf16 %v1583_v4, %v1583_v4  ;;  %v2743_v10 = vpack.c.bf16 %v1647_v5, %v1647_v5 }
 0x16f   : > { %2221 = vst.msk [vmem:[%s3228_s29 + $0xf0] sm:$0xf] %vm2160_vm1, %v2676_v1  ;;  %v2677_v11 = vpack.c.bf16 %v1581_v7, %v1581_v7  ;;  %v2741_v12 = vpack.c.bf16 %v1645_v8, %v1645_v8 }
 0x170   : > { %2285 = vst.msk [vmem:[%s3228_s29 + $0x1f0] sm:$0xf] %vm2160_vm1, %v2740_v6  ;;  %2224 = vst.msk [vmem:[%s3228_s29 + $0xfc] sm:$0xf] %vm2160_vm1, %v2679_v9 }
 0x171   : > { %2288 = vst.msk [vmem:[%s3228_s29 + $0x1fc] sm:$0xf] %vm2160_vm1, %v2743_v10  ;;  %2222 = vst.msk [vmem:[%s3228_s29 + $0xf4] sm:$0xf] %vm2160_vm1, %v2677_v11 }
 0x172   : > { %2286 = vst.msk [vmem:[%s3228_s29 + $0x1f4] sm:$0xf] %vm2160_vm1, %v2741_v12 }
 0x173 PF: > { %s13_s12 = sadd.s32 1, %s3033_s12  }
 0x174   : > { %p10_p4 = scmp.ge.s32.totalorder %s13_s12, 4  }
 0x176   :  { %12 = sbr.rel (!%p10_p4) target bundleno = 1 (0x1), region = 62 }

// kernel: _netD_forward_impl.5
= control target key start
LH: loop header
LB: loop body
LE: loop exit
PB: predicated region body
PF: predicated region fallthrough
CT: control target
= control target key end

     0   :  { %s10240_s12 = smov 0   ;;  %s10242_s13 = smov 0   ;;  %s13063_s0 = inlined_call_operand.vmem [shape: bf16[4,2,17,17,64], index: 0, kind: input, shape index: {}]   ;;  %s13064_s1 = inlined_call_operand.vmem [shape: bf16[16,64,128], index: 1, kind: input, shape index: {}]   ;;  %s13065_s2 = inlined_call_operand.vmem [shape: f32[1,128], index: 2, kind: input, shape index: {}]   ;;  %s13066_s3 = inlined_call_operand.vmem [shape: bf16[512,128], index: 3, kind: output, shape index: {}]  }
   0x1   :  { %s10244_s14 = smov 0  }
   0x2 LB: > { %s7698_s15 = sadd.s32 4294967295, %s10218_s14   ;;  %s10257_s16 = sadd.s32 1, %s10218_s14   ;;  %s10218_s14 = sphi %s10244_s14, %s13495_s14   ;;  %s10214_s13 = sphi %s10242_s13, %s13494_s13   ;;  %s10210_s12 = sphi %s10240_s12, %s13493_s12  }
   0x3   : > { %s17_s17 = ssub.s32 %s10218_s14, %s10257_s16  ;;  %s20_s18 = sadd.s32 1, %s10214_s13 }
   0x4   : > { %p18_p0 = scmp.eq.s32.totalorder %s17_s17, 0  ;;  %p27_p1 = scmp.ne.s32.totalorder %s10214_s13, %s10210_s12 }
   0x5   : > { %p28_p2 = scmp.eq.s32.totalorder %s10218_s14, 0  ;;  %p7701_p4 = scmp.ge.s32.totalorder %s10218_s14, 2 }
   0x6   : > { %s10266_s19 = scalar_select %p18_p0, %s10214_s13, %s20_s18  }
   0x7   : > { %p29_p3 = por %p28_p2, %p27_p1  ;;  %127 = sbr.rel (%p7701_p4) target bundleno = 71 (0x47), region = 24 }
   0xe   : > { %130 = sbr.rel (!%p29_p3) target bundleno = 71 (0x47), region = 28  ;;  %s132_s20 = sand.u32 (%p29_p3), 1, %s10214_s13  }
   0xf   : > { %s10038_s21 = smul.u32 (%p29_p3), 204, %s10218_s14 }
  0x10   : > { %s10037_s22 = smul.u32 (%p29_p3), 816, %s132_s20 }
  0x11   : > { %s10274_s25 = scalar_lea.vmem (%p29_p3), %s13063_s0, %s10038_s21 }
  0x12   : > { %v153_v0 = vld [vmem:[%s10274_s25] sm:$0xff] (%p29_p3)   ;;  %v157_v1 = vld [vmem:[%s10274_s25 + $0x8] sm:$0xff] (%p29_p3)   ;;  %v161_v2 = vld [vmem:[%s10274_s25 + $0x10] sm:$0xff] (%p29_p3)   ;;  %s10279_s26 = scalar_lea.vmem (%p29_p3), [#allocation2], %s10037_s22 }
  0x13   : > { %154 = vst [vmem:[%s10279_s26] sm:$0xff] (%p29_p3), %v153_v0   ;;  %158 = vst [vmem:[%s10279_s26 + $0x8] sm:$0xff] (%p29_p3), %v157_v1   ;;  %v165_v3 = vld [vmem:[%s10274_s25 + $0x18] sm:$0xff] (%p29_p3)   ;;  %v169_v4 = vld [vmem:[%s10274_s25 + $0x20] sm:$0xff] (%p29_p3)  }
  0x14   : > { %162 = vst [vmem:[%s10279_s26 + $0x10] sm:$0xff] (%p29_p3), %v161_v2   ;;  %v173_v5 = vld [vmem:[%s10274_s25 + $0x28] sm:$0xff] (%p29_p3)   ;;  %166 = vst [vmem:[%s10279_s26 + $0x18] sm:$0xff] (%p29_p3), %v165_v3   ;;  %v177_v6 = vld [vmem:[%s10274_s25 + $0x30] sm:$0xff] (%p29_p3)  }
  0x15   : > { %170 = vst [vmem:[%s10279_s26 + $0x20] sm:$0xff] %v169_v4   ;;  %174 = vst [vmem:[%s10279_s26 + $0x28] sm:$0xff] %v173_v5   ;;  %v181_v7 = vld [vmem:[%s10274_s25 + $0x38] sm:$0xff]   ;;  %v185_v8 = vld [vmem:[%s10274_s25 + $0x40] sm:$0xff]  }
  0x16   : > { %178 = vst [vmem:[%s10279_s26 + $0x30] sm:$0xff] %v177_v6   ;;  %182 = vst [vmem:[%s10279_s26 + $0x38] sm:$0xff] %v181_v7   ;;  %v189_v9 = vld [vmem:[%s10274_s25 + $0x48] sm:$0xff]   ;;  %v193_v10 = vld [vmem:[%s10274_s25 + $0x50] sm:$0xff]  }
  0x17   : > { %186 = vst [vmem:[%s10279_s26 + $0x40] sm:$0xff] %v185_v8   ;;  %v197_v11 = vld [vmem:[%s10274_s25 + $0x58] sm:$0xff]   ;;  %190 = vst [vmem:[%s10279_s26 + $0x48] sm:$0xff] %v189_v9   ;;  %v201_v12 = vld [vmem:[%s10274_s25 + $0x60] sm:$0xff]  }
  0x18   : > { %194 = vst [vmem:[%s10279_s26 + $0x50] sm:$0xff] %v193_v10   ;;  %198 = vst [vmem:[%s10279_s26 + $0x58] sm:$0xff] %v197_v11   ;;  %v205_v13 = vld [vmem:[%s10274_s25 + $0x68] sm:$0xff]   ;;  %v209_v14 = vld [vmem:[%s10274_s25 + $0x70] sm:$0xff]  }
  0x19   : > { %202 = vst [vmem:[%s10279_s26 + $0x60] sm:$0xff] %v201_v12   ;;  %206 = vst [vmem:[%s10279_s26 + $0x68] sm:$0xff] %v205_v13   ;;  %v213_v15 = vld [vmem:[%s10274_s25 + $0x78] sm:$0xff]   ;;  %v217_v16 = vld [vmem:[%s10274_s25 + $0x80] sm:$0xff]  }
  0x1a   : > { %210 = vst [vmem:[%s10279_s26 + $0x70] sm:$0xff] %v209_v14   ;;  %v221_v17 = vld [vmem:[%s10274_s25 + $0x88] sm:$0xff]   ;;  %214 = vst [vmem:[%s10279_s26 + $0x78] sm:$0xff] %v213_v15   ;;  %v225_v18 = vld [vmem:[%s10274_s25 + $0x90] sm:$0xff]  }
  0x1b   : > { %218 = vst [vmem:[%s10279_s26 + $0x80] sm:$0xff] %v217_v16   ;;  %222 = vst [vmem:[%s10279_s26 + $0x88] sm:$0xff] %v221_v17   ;;  %v229_v19 = vld [vmem:[%s10274_s25 + $0x98] sm:$0xff]   ;;  %v233_v20 = vld [vmem:[%s10274_s25 + $0xa0] sm:$0xff]  }
  0x1c   : > { %226 = vst [vmem:[%s10279_s26 + $0x90] sm:$0xff] %v225_v18   ;;  %230 = vst [vmem:[%s10279_s26 + $0x98] sm:$0xff] %v229_v19   ;;  %v237_v21 = vld [vmem:[%s10274_s25 + $0xa8] sm:$0xff]   ;;  %v241_v22 = vld [vmem:[%s10274_s25 + $0xb0] sm:$0xff]  }
  0x1d   : > { %234 = vst [vmem:[%s10279_s26 + $0xa0] sm:$0xff] %v233_v20   ;;  %v245_v23 = vld [vmem:[%s10274_s25 + $0xb8] sm:$0xff]   ;;  %238 = vst [vmem:[%s10279_s26 + $0xa8] sm:$0xff] %v237_v21   ;;  %v249_v24 = vld [vmem:[%s10274_s25 + $0xc0] sm:$0xff]  }
  0x1e   : > { %242 = vst [vmem:[%s10279_s26 + $0xb0] sm:$0xff] %v241_v22   ;;  %246 = vst [vmem:[%s10279_s26 + $0xb8] sm:$0xff] %v245_v23   ;;  %v253_v25 = vld [vmem:[%s10274_s25 + $0xc8] sm:$0xf]  ;;  %v255_v26 = vld [vmem:[%s10274_s25 + $0x198] sm:$0xff]  }
  0x1f   : > { %250 = vst [vmem:[%s10279_s26 + $0xc0] sm:$0xff] %v249_v24   ;;  %254 = vst [vmem:[%s10279_s26 + $0xc8] sm:$0xf] %v253_v25  ;;  %v259_v27 = vld [vmem:[%s10274_s25 + $0x1a0] sm:$0xff]   ;;  %v263_v28 = vld [vmem:[%s10274_s25 + $0x1a8] sm:$0xff]  }
  0x20   : > { %256 = vst [vmem:[%s10279_s26 + $0xcc] sm:$0xff] %v255_v26   ;;  %v267_v29 = vld [vmem:[%s10274_s25 + $0x1b0] sm:$0xff]   ;;  %260 = vst [vmem:[%s10279_s26 + $0xd4] sm:$0xff] %v259_v27   ;;  %v271_v30 = vld [vmem:[%s10274_s25 + $0x1b8] sm:$0xff]  }
  0x21   : > { %264 = vst [vmem:[%s10279_s26 + $0xdc] sm:$0xff] %v263_v28   ;;  %268 = vst [vmem:[%s10279_s26 + $0xe4] sm:$0xff] %v267_v29   ;;  %v275_v31 = vld [vmem:[%s10274_s25 + $0x1c0] sm:$0xff]   ;;  %v279_v32 = vld [vmem:[%s10274_s25 + $0x1c8] sm:$0xff]  }
  0x22   : > { %272 = vst [vmem:[%s10279_s26 + $0xec] sm:$0xff] %v271_v30   ;;  %276 = vst [vmem:[%s10279_s26 + $0xf4] sm:$0xff] %v275_v31   ;;  %v283_v33 = vld [vmem:[%s10274_s25 + $0x1d0] sm:$0xff]   ;;  %v287_v34 = vld [vmem:[%s10274_s25 + $0x1d8] sm:$0xff]  }
  0x23   : > { %280 = vst [vmem:[%s10279_s26 + $0xfc] sm:$0xff] %v279_v32   ;;  %v291_v35 = vld [vmem:[%s10274_s25 + $0x1e0] sm:$0xff]   ;;  %284 = vst [vmem:[%s10279_s26 + $0x104] sm:$0xff] %v283_v33   ;;  %v295_v36 = vld [vmem:[%s10274_s25 + $0x1e8] sm:$0xff]  }
  0x24   : > { %288 = vst [vmem:[%s10279_s26 + $0x10c] sm:$0xff] %v287_v34   ;;  %292 = vst [vmem:[%s10279_s26 + $0x114] sm:$0xff] %v291_v35   ;;  %v299_v37 = vld [vmem:[%s10274_s25 + $0x1f0] sm:$0xff]   ;;  %v303_v38 = vld [vmem:[%s10274_s25 + $0x1f8] sm:$0xff]  }
  0x25   : > { %296 = vst [vmem:[%s10279_s26 + $0x11c] sm:$0xff] %v295_v36   ;;  %300 = vst [vmem:[%s10279_s26 + $0x124] sm:$0xff] %v299_v37   ;;  %v307_v39 = vld [vmem:[%s10274_s25 + $0x200] sm:$0xff]   ;;  %v311_v40 = vld [vmem:[%s10274_s25 + $0x208] sm:$0xff]  }
  0x26   : > { %304 = vst [vmem:[%s10279_s26 + $0x12c] sm:$0xff] %v303_v38   ;;  %v315_v41 = vld [vmem:[%s10274_s25 + $0x210] sm:$0xff]   ;;  %308 = vst [vmem:[%s10279_s26 + $0x134] sm:$0xff] %v307_v39   ;;  %v319_v42 = vld [vmem:[%s10274_s25 + $0x218] sm:$0xff]  }
  0x27   : > { %312 = vst [vmem:[%s10279_s26 + $0x13c] sm:$0xff] %v311_v40   ;;  %316 = vst [vmem:[%s10279_s26 + $0x144] sm:$0xff] %v315_v41   ;;  %v323_v43 = vld [vmem:[%s10274_s25 + $0x220] sm:$0xff]   ;;  %v327_v44 = vld [vmem:[%s10274_s25 + $0x228] sm:$0xff]  }
  0x28   : > { %320 = vst [vmem:[%s10279_s26 + $0x14c] sm:$0xff] %v319_v42   ;;  %324 = vst [vmem:[%s10279_s26 + $0x154] sm:$0xff] %v323_v43   ;;  %v331_v45 = vld [vmem:[%s10274_s25 + $0x230] sm:$0xff]   ;;  %v335_v46 = vld [vmem:[%s10274_s25 + $0x238] sm:$0xff]  }
  0x29   : > { %328 = vst [vmem:[%s10279_s26 + $0x15c] sm:$0xff] %v327_v44   ;;  %v339_v47 = vld [vmem:[%s10274_s25 + $0x240] sm:$0xff]   ;;  %332 = vst [vmem:[%s10279_s26 + $0x164] sm:$0xff] %v331_v45   ;;  %v343_v48 = vld [vmem:[%s10274_s25 + $0x248] sm:$0xff]  }
  0x2a   : > { %336 = vst [vmem:[%s10279_s26 + $0x16c] sm:$0xff] %v335_v46   ;;  %340 = vst [vmem:[%s10279_s26 + $0x174] sm:$0xff] %v339_v47   ;;  %v347_v49 = vld [vmem:[%s10274_s25 + $0x250] sm:$0xff]   ;;  %v351_v50 = vld [vmem:[%s10274_s25 + $0x258] sm:$0xff]  }
  0x2b   : > { %344 = vst [vmem:[%s10279_s26 + $0x17c] sm:$0xff] %v343_v48   ;;  %348 = vst [vmem:[%s10279_s26 + $0x184] sm:$0xff] %v347_v49   ;;  %v355_v51 = vld [vmem:[%s10274_s25 + $0x260] sm:$0xf]  ;;  %v357_v52 = vld [vmem:[%s10274_s25 + $0x330] sm:$0xff]  }
  0x2c   : > { %352 = vst [vmem:[%s10279_s26 + $0x18c] sm:$0xff] %v351_v50   ;;  %v361_v53 = vld [vmem:[%s10274_s25 + $0x338] sm:$0xff]   ;;  %356 = vst [vmem:[%s10279_s26 + $0x194] sm:$0xf] %v355_v51  ;;  %v365_v54 = vld [vmem:[%s10274_s25 + $0x340] sm:$0xff]  }
  0x2d   : > { %358 = vst [vmem:[%s10279_s26 + $0x198] sm:$0xff] %v357_v52   ;;  %362 = vst [vmem:[%s10279_s26 + $0x1a0] sm:$0xff] %v361_v53   ;;  %v369_v55 = vld [vmem:[%s10274_s25 + $0x348] sm:$0xff]   ;;  %v373_v56 = vld [vmem:[%s10274_s25 + $0x350] sm:$0xff]  }
  0x2e   : > { %366 = vst [vmem:[%s10279_s26 + $0x1a8] sm:$0xff] %v365_v54   ;;  %370 = vst [vmem:[%s10279_s26 + $0x1b0] sm:$0xff] %v369_v55   ;;  %v377_v57 = vld [vmem:[%s10274_s25 + $0x358] sm:$0xff]   ;;  %v381_v58 = vld [vmem:[%s10274_s25 + $0x360] sm:$0xff]  }
  0x2f   : > { %374 = vst [vmem:[%s10279_s26 + $0x1b8] sm:$0xff] %v373_v56   ;;  %v385_v59 = vld [vmem:[%s10274_s25 + $0x368] sm:$0xff]   ;;  %378 = vst [vmem:[%s10279_s26 + $0x1c0] sm:$0xff] %v377_v57   ;;  %v389_v60 = vld [vmem:[%s10274_s25 + $0x370] sm:$0xff]  }
  0x30   : > { %382 = vst [vmem:[%s10279_s26 + $0x1c8] sm:$0xff] %v381_v58   ;;  %386 = vst [vmem:[%s10279_s26 + $0x1d0] sm:$0xff] %v385_v59   ;;  %v393_v61 = vld [vmem:[%s10274_s25 + $0x378] sm:$0xff]   ;;  %v397_v62 = vld [vmem:[%s10274_s25 + $0x380] sm:$0xff]  }
  0x31   : > { %390 = vst [vmem:[%s10279_s26 + $0x1d8] sm:$0xff] %v389_v60   ;;  %394 = vst [vmem:[%s10279_s26 + $0x1e0] sm:$0xff] %v393_v61   ;;  %v401_v63 = vld [vmem:[%s10274_s25 + $0x388] sm:$0xff]   ;;  %v405_v0 = vld [vmem:[%s10274_s25 + $0x390] sm:$0xff]  }
  0x32   : > { %398 = vst [vmem:[%s10279_s26 + $0x1e8] sm:$0xff] %v397_v62   ;;  %v409_v1 = vld [vmem:[%s10274_s25 + $0x398] sm:$0xff]   ;;  %402 = vst [vmem:[%s10279_s26 + $0x1f0] sm:$0xff] %v401_v63   ;;  %v413_v2 = vld [vmem:[%s10274_s25 + $0x3a0] sm:$0xff]  }
  0x33   : > { %406 = vst [vmem:[%s10279_s26 + $0x1f8] sm:$0xff] %v405_v0   ;;  %410 = vst [vmem:[%s10279_s26 + $0x200] sm:$0xff] %v409_v1   ;;  %v417_v3 = vld [vmem:[%s10274_s25 + $0x3a8] sm:$0xff]   ;;  %v421_v4 = vld [vmem:[%s10274_s25 + $0x3b0] sm:$0xff]  }
  0x34   : > { %414 = vst [vmem:[%s10279_s26 + $0x208] sm:$0xff] %v413_v2   ;;  %418 = vst [vmem:[%s10279_s26 + $0x210] sm:$0xff] %v417_v3   ;;  %v425_v5 = vld [vmem:[%s10274_s25 + $0x3b8] sm:$0xff]   ;;  %v429_v6 = vld [vmem:[%s10274_s25 + $0x3c0] sm:$0xff]  }
  0x35   : > { %422 = vst [vmem:[%s10279_s26 + $0x218] sm:$0xff] %v421_v4   ;;  %v433_v7 = vld [vmem:[%s10274_s25 + $0x3c8] sm:$0xff]   ;;  %426 = vst [vmem:[%s10279_s26 + $0x220] sm:$0xff] %v425_v5   ;;  %v437_v8 = vld [vmem:[%s10274_s25 + $0x3d0] sm:$0xff]  }
  0x36   : > { %430 = vst [vmem:[%s10279_s26 + $0x228] sm:$0xff] %v429_v6   ;;  %434 = vst [vmem:[%s10279_s26 + $0x230] sm:$0xff] %v433_v7   ;;  %v441_v9 = vld [vmem:[%s10274_s25 + $0x3d8] sm:$0xff]   ;;  %v445_v10 = vld [vmem:[%s10274_s25 + $0x3e0] sm:$0xff]  }
  0x37   : > { %438 = vst [vmem:[%s10279_s26 + $0x238] sm:$0xff] %v437_v8   ;;  %442 = vst [vmem:[%s10279_s26 + $0x240] sm:$0xff] %v441_v9   ;;  %v449_v11 = vld [vmem:[%s10274_s25 + $0x3e8] sm:$0xff]   ;;  %v453_v12 = vld [vmem:[%s10274_s25 + $0x3f0] sm:$0xff]  }
  0x38   : > { %446 = vst [vmem:[%s10279_s26 + $0x248] sm:$0xff] %v445_v10   ;;  %v457_v13 = vld [vmem:[%s10274_s25 + $0x3f8] sm:$0xf]  ;;  %450 = vst [vmem:[%s10279_s26 + $0x250] sm:$0xff] %v449_v11   ;;  %v459_v14 = vld [vmem:[%s10274_s25 + $0x4c8] sm:$0xff]  }
  0x39   : > { %454 = vst [vmem:[%s10279_s26 + $0x258] sm:$0xff] %v453_v12   ;;  %458 = vst [vmem:[%s10279_s26 + $0x260] sm:$0xf] %v457_v13  ;;  %v463_v15 = vld [vmem:[%s10274_s25 + $0x4d0] sm:$0xff]   ;;  %v467_v16 = vld [vmem:[%s10274_s25 + $0x4d8] sm:$0xff]  }
  0x3a   : > { %460 = vst [vmem:[%s10279_s26 + $0x264] sm:$0xff] %v459_v14   ;;  %464 = vst [vmem:[%s10279_s26 + $0x26c] sm:$0xff] %v463_v15   ;;  %v471_v17 = vld [vmem:[%s10274_s25 + $0x4e0] sm:$0xff]   ;;  %v475_v18 = vld [vmem:[%s10274_s25 + $0x4e8] sm:$0xff]  }
  0x3b   : > { %468 = vst [vmem:[%s10279_s26 + $0x274] sm:$0xff] %v467_v16   ;;  %v479_v19 = vld [vmem:[%s10274_s25 + $0x4f0] sm:$0xff]   ;;  %472 = vst [vmem:[%s10279_s26 + $0x27c] sm:$0xff] %v471_v17   ;;  %v483_v20 = vld [vmem:[%s10274_s25 + $0x4f8] sm:$0xff]  }
  0x3c   : > { %476 = vst [vmem:[%s10279_s26 + $0x284] sm:$0xff] %v475_v18   ;;  %480 = vst [vmem:[%s10279_s26 + $0x28c] sm:$0xff] %v479_v19   ;;  %v487_v21 = vld [vmem:[%s10274_s25 + $0x500] sm:$0xff]   ;;  %v491_v22 = vld [vmem:[%s10274_s25 + $0x508] sm:$0xff]  }
  0x3d   : > { %484 = vst [vmem:[%s10279_s26 + $0x294] sm:$0xff] %v483_v20   ;;  %488 = vst [vmem:[%s10279_s26 + $0x29c] sm:$0xff] %v487_v21   ;;  %v495_v23 = vld [vmem:[%s10274_s25 + $0x510] sm:$0xff]   ;;  %v499_v24 = vld [vmem:[%s10274_s25 + $0x518] sm:$0xff]  }
  0x3e   : > { %492 = vst [vmem:[%s10279_s26 + $0x2a4] sm:$0xff] %v491_v22   ;;  %v503_v25 = vld [vmem:[%s10274_s25 + $0x520] sm:$0xff]   ;;  %496 = vst [vmem:[%s10279_s26 + $0x2ac] sm:$0xff] %v495_v23   ;;  %v507_v26 = vld [vmem:[%s10274_s25 + $0x528] sm:$0xff]  }
  0x3f   : > { %500 = vst [vmem:[%s10279_s26 + $0x2b4] sm:$0xff] %v499_v24   ;;  %504 = vst [vmem:[%s10279_s26 + $0x2bc] sm:$0xff] %v503_v25   ;;  %v511_v27 = vld [vmem:[%s10274_s25 + $0x530] sm:$0xff]   ;;  %v515_v28 = vld [vmem:[%s10274_s25 + $0x538] sm:$0xff]  }
  0x40   : > { %508 = vst [vmem:[%s10279_s26 + $0x2c4] sm:$0xff] %v507_v26   ;;  %512 = vst [vmem:[%s10279_s26 + $0x2cc] sm:$0xff] %v511_v27   ;;  %v519_v29 = vld [vmem:[%s10274_s25 + $0x540] sm:$0xff]   ;;  %v523_v30 = vld [vmem:[%s10274_s25 + $0x548] sm:$0xff]  }
  0x41   : > { %516 = vst [vmem:[%s10279_s26 + $0x2d4] sm:$0xff] %v515_v28   ;;  %v527_v31 = vld [vmem:[%s10274_s25 + $0x550] sm:$0xff]   ;;  %520 = vst [vmem:[%s10279_s26 + $0x2dc] sm:$0xff] %v519_v29   ;;  %v531_v32 = vld [vmem:[%s10274_s25 + $0x558] sm:$0xff]  }
  0x42   : > { %524 = vst [vmem:[%s10279_s26 + $0x2e4] sm:$0xff] %v523_v30   ;;  %528 = vst [vmem:[%s10279_s26 + $0x2ec] sm:$0xff] %v527_v31   ;;  %v535_v33 = vld [vmem:[%s10274_s25 + $0x560] sm:$0xff]   ;;  %v539_v34 = vld [vmem:[%s10274_s25 + $0x568] sm:$0xff]  }
  0x43   : > { %532 = vst [vmem:[%s10279_s26 + $0x2f4] sm:$0xff] %v531_v32   ;;  %536 = vst [vmem:[%s10279_s26 + $0x2fc] sm:$0xff] %v535_v33   ;;  %v543_v35 = vld [vmem:[%s10274_s25 + $0x570] sm:$0xff]   ;;  %v547_v36 = vld [vmem:[%s10274_s25 + $0x578] sm:$0xff]  }
  0x44   : > { %540 = vst [vmem:[%s10279_s26 + $0x304] sm:$0xff] %v539_v34   ;;  %v551_v37 = vld [vmem:[%s10274_s25 + $0x580] sm:$0xff]   ;;  %544 = vst [vmem:[%s10279_s26 + $0x30c] sm:$0xff] %v543_v35   ;;  %v555_v38 = vld [vmem:[%s10274_s25 + $0x588] sm:$0xff]  }
  0x45   : > { %548 = vst [vmem:[%s10279_s26 + $0x314] sm:$0xff] %v547_v36   ;;  %552 = vst [vmem:[%s10279_s26 + $0x31c] sm:$0xff] %v551_v37   ;;  %v559_v39 = vld [vmem:[%s10274_s25 + $0x590] sm:$0xf] }
  0x46   : > { %556 = vst [vmem:[%s10279_s26 + $0x324] sm:$0xff] %v555_v38   ;;  %560 = vst [vmem:[%s10279_s26 + $0x32c] sm:$0xf] %v559_v39 }
  0x47 PF: > { %p7703_p5 = scmp.ge.s32.totalorder %s10218_s14, 1  ;;  %p990_p6 = scmp.lt.s32.totalorder %s10218_s14, 3 }
  0x49   : > { %p991_p7 = pnand %p7703_p5, %p990_p6 }
  0x4b   : > { %994 = sbr.rel (%p991_p7) target bundleno = 851 (0x353), region = 69 }
  0x52   : > { %v10064_v40 = vld [vmem:[%s13064_s1 + $0x20] sm:$0xff]   ;;  %s997_s29 = sand.u32 1, %s10210_s12   ;;  %v10066_v42 = vld [vmem:[%s13064_s1 + $0x28] sm:$0xff]   ;;  %v10068_v44 = vld [vmem:[%s13064_s1 + $0x30] sm:$0xff]   ;;  %vm1355_vm0 = vcmask 523264   ;;  %s7704_s30 = sshll.u32 %s7698_s15, 5 }
  0x53   : > { %v10065_v41 = vld [vmem:[%s13064_s1 + $0x100] sm:$0xff]   ;;  %s10039_s5 = smul.u32 816, %s997_s29  ;;  %8917 = vmatprep.subr.bf16.mxu1 %v10064_v40  ;;  %v10067_v43 = vld [vmem:[%s13064_s1 + $0x108] sm:$0xff]   ;;  %v10069_v45 = vld [vmem:[%s13064_s1 + $0x110] sm:$0xff]   ;;  %vm1878_vm1 = vsmask.f32 3328 }
  0x54   : > { %9237 = vmatprep.subr.bf16.mxu0 %v10065_v41  ;;  %8918 = vmatpush3.bf16.msra.mxu1 %v10064_v40  ;;  %v10070_v46 = vld [vmem:[%s13064_s1 + $0x38] sm:$0xff]   ;;  %v10075_v61 = vld [vmem:[%s13064_s1] sm:$0xff]   ;;  %v10085_v27 = vld [vmem:[%s13064_s1 + $0x8] sm:$0xff]   ;;  %vm1879_vm2 = vsmask.f32 7440  ;;  %p1021_p8 = scmp.lt.s32.totalorder %s7704_s30, 63 }
  0x55   : > { %9238 = vmatpush3.bf16.msra.mxu0 %v10065_v41  ;;  %8919 = vmatprep.subr.bf16.mxu1 %v10066_v42  ;;  %s10510_s21 = scalar_lea.vmem [#allocation2], %s10039_s5  ;;  %v10071_v50 = vld [vmem:[%s13064_s1 + $0x118] sm:$0xff]   ;;  %v10077_v3 = vld [vmem:[%s13064_s1 + $0x120] sm:$0xff]   ;;  %v10087_v35 = vld [vmem:[%s13064_s1 + $0x128] sm:$0xff]  }
  0x56   : > { %9239 = vmatprep.subr.bf16.mxu0 %v10067_v43  ;;  %v7706_v47 = vld [vmem:[%s10510_s21 + $0xcc] sm:$0xf]  ;;  %v7707_v48 = vld [vmem:[%s10510_s21 + $0xd0] sm:$0xf]  ;;  %v7709_v60 = vld [vmem:[%s10510_s21 + $0xd8] sm:$0xf] }
  0x57   : > { %v1030_v49 = vld [vmem:[%s10510_s21 + $0xc] sm:$0xf]  ;;  %v7867_v51 = vcombine.low %v7706_v47, %v7707_v48  ;;  %v2588_v52 = vshrl.u32 %v7706_v47, 16  ;;  %v2591_v53 = vshll.u32 %v7706_v47, 16  ;;  %v2597_v54 = vshll.u32 %v7707_v48, 16  ;;  %vm10590_vm3 = vmor %vm1878_vm1, %vm1879_vm2  ;;  %s13497_s30 = smov (!%p1021_p8, %s7704_s30), 63 }
  0x58   : > { %8920 = vmatpush3.bf16.msra.mxu1 %v10066_v42  ;;  %v1031_v55 = vld [vmem:[%s10510_s21 + $0x10] sm:$0xf]  ;;  %v2601_v56 = vshrl.u32 %v7707_v48, 16  ;;  %v1906_v58 = vshrl.u32 %v1030_v49, 16  ;;  %v1909_v59 = vshll.u32 %v1030_v49, 16  ;;  %v2612_v11 = vshrl.u32 %v7709_v60, 16 }
  0x59   : > { %9240 = vmatpush3.bf16.msra.mxu0 %v10067_v43  ;;  %8921 = vmatprep.subr.bf16.mxu1 %v10068_v44  ;;  %v10519_v57 = vcombine.low %v1030_v49, %v1031_v55  ;;  %v2590_v62 = vrot.slane %v2588_v52, 4  ;;  %v2593_v63 = vrot.slane %v2591_v53, 5  ;;  %v10526_v0 = vrot.slane %v2597_v54, 5  ;;  %v7710_v2 = vld [vmem:[%s10510_s21 + $0xdc] sm:$0xf]  ;;  %s7705_s14 = sshll.u32 %s13497_s30, 2 }
  0x5a   : > { %9241 = vmatprep.subr.bf16.mxu0 %v10069_v45  ;;  %8925 = vmatprep.mubr.msk.bf16.mxu1 %vm1355_vm0, %v7867_v51  ;;  %v1915_v1 = vshll.u32 %v1031_v55, 16  ;;  %v2603_v4 = vrot.slane %v2601_v56, 4  ;;  %v1908_v5 = vrot.slane %v1906_v58, 4  ;;  %v1911_v6 = vrot.slane %v1909_v59, 5  ;;  %v1033_v12 = vld [vmem:[%s10510_s21 + $0x18] sm:$0xf]  ;;  %s13007_s7 = scalar_lea.vmem %s13066_s3, %s7705_s14 }
  0x5b   : > { %13148 = vst [vmem:[#allocation3_spill] sm:$0xff] %v10526_v0  ;;  %v1919_v7 = vshrl.u32 %v1031_v55, 16  ;;  %v2594_v8 = vor.u32 %v2593_v63, %v2590_v62  ;;  %9245 = vmatprep.mubr.msk.bf16.mxu0 %vm1355_vm0, %v10519_v57  ;;  %v10536_v10 = vcombine.low %v7709_v60, %v7710_v2  ;;  %v2615_v16 = vshll.u32 %v7709_v60, 16  ;;  %v1034_v17 = vld [vmem:[%s10510_s21 + $0x1c] sm:$0xf]  ;;  %v10097_v63 = vld [vmem:[%s13064_s1 + $0x130] sm:$0xff]  }
  0x5c   : > { %8922 = vmatpush3.bf16.msra.mxu1 %v10068_v44  ;;  %v10532_v9 = vrot.slane %v1915_v1, 5  ;;  %v2604_v13 = vor.u32 %v2603_v4, %v10526_v0  ;;  %v1912_v14 = vor.u32 %v1911_v6, %v1908_v5  ;;  %v10543_v19 = vrot.slane %v2612_v11, 4  ;;  %v7712_v26 = vld [vmem:[%s10510_s21 + $0xe4] sm:$0xf]  ;;  %v7713_v31 = vld [vmem:[%s10510_s21 + $0xe8] sm:$0xf] }
  0x5d   : > { %9242 = vmatpush3.bf16.msra.mxu0 %v10069_v45  ;;  %8923 = vmatprep.subr.bf16.mxu1 %v10070_v46  ;;  %v1921_v15 = vrot.slane %v1919_v7, 4  ;;  %v10541_v18 = vrot.slane %v2594_v8, 4  ;;  %v2621_v20 = vshll.u32 %v7710_v2, 16  ;;  %v2625_v21 = vshrl.u32 %v7710_v2, 16  ;;  %v1036_v40 = vld [vmem:[%s10510_s21 + $0x24] sm:$0xf] }
  0x5e   : > { %9243 = vmatprep.subr.bf16.mxu0 %v10071_v50  ;;  %13150 = vst [vmem:[#allocation5_spill] sm:$0xff] %v10543_v19  ;;  %v10545_v22 = vrot.slane %v2604_v13, 4  ;;  %v10547_v23 = vrot.slane %v1912_v14, 4  ;;  %v10550_v25 = vrot.slane %v2615_v16, 5  ;;  %v10560_v30 = vcombine.low %v1033_v12, %v1034_v17  ;;  %v1037_v45 = vld [vmem:[%s10510_s21 + $0x28] sm:$0xf] }
  0x5f   : > { %13149 = vst [vmem:[#allocation4_spill] sm:$0xff] %v10541_v18  ;;  %v1922_v24 = vor.u32 %v1921_v15, %v10532_v9  ;;  %v10556_v28 = vrot.slane %v2621_v20, 5  ;;  %v10558_v29 = vrot.slane %v2625_v21, 4  ;;  %v1930_v33 = vshrl.u32 %v1033_v12, 16  ;;  %v7715_v55 = vld [vmem:[%s10510_s21 + $0xf0] sm:$0xf] }
  0x60   : > { %8924 = vmatpush3.bf16.msra.mxu1 %v10070_v46  ;;  %13151 = vst [vmem:[#allocation6_spill] sm:$0xff] %v10545_v22  ;;  %13152 = vst [vmem:[#allocation7_spill] sm:$0xff] %v10550_v25  ;;  %v1933_v34 = vshll.u32 %v1033_v12, 16  ;;  %v1939_v36 = vshll.u32 %v1034_v17, 16  ;;  %v1943_v37 = vshrl.u32 %v1034_v17, 16  ;;  %v10572_v38 = vcombine.low %v7712_v26, %v7713_v31  ;;  %v10105_v6 = vld [vmem:[%s13064_s1 + $0x18] sm:$0xff]  }
  0x61   : > { %9244 = vmatpush3.bf16.msra.mxu0 %v10071_v50  ;;  %8957 = vmatprep.subr.bf16.mxu1 %v10075_v61  ;;  %13153 = vst [vmem:[#allocation8_spill] sm:$0xff] %v10556_v28  ;;  %13154 = vst [vmem:[#allocation9_spill] sm:$0xff] %v10558_v29  ;;  %v10563_v32 = vrot.slane %v1922_v24, 4  ;;  %v2636_v39 = vshrl.u32 %v7712_v26, 16  ;;  %v1932_v41 = vrot.slane %v1930_v33, 4  ;;  %v2639_v43 = vshll.u32 %v7712_v26, 16 }
  0x62   : > { %9277 = vmatprep.subr.bf16.mxu0 %v10077_v3  ;;  %v1935_v42 = vrot.slane %v1933_v34, 5  ;;  %v2645_v44 = vshll.u32 %v7713_v31, 16  ;;  %v10576_v46 = vrot.slane %v1939_v36, 5  ;;  %v1945_v47 = vrot.slane %v1943_v37, 4  ;;  %v10095_v50 = vld [vmem:[%s13064_s1 + $0x10] sm:$0xff]   ;;  %v10107_v14 = vld [vmem:[%s13064_s1 + $0x138] sm:$0xff]  }
  0x63   : > { %13155 = vst [vmem:[#allocation10_spill] sm:$0xff] %v10563_v32  ;;  %8926 = vmatmul.mubr.msk.bf16.vlgmr.msra.gmra.mrb[0].mxu1 %vm1355_vm0, %v10536_v10  ;;  %v2638_v48 = vrot.slane %v2636_v39, 4  ;;  %v2649_v49 = vshrl.u32 %v7713_v31, 16  ;;  %v2641_v52 = vrot.slane %v2639_v43, 5  ;;  %v10585_v54 = vcombine.low %v1036_v40, %v1037_v45  ;;  %v7716_v62 = vld [vmem:[%s10510_s21 + $0xf4] sm:$0xf] }
  0x64   : > { %9246 = vmatmul.mubr.msk.bf16.vlgmr.msra.gmra.mrb[0].mxu0 %vm1355_vm0, %v10560_v30  ;;  %8958 = vmatpush3.bf16.msra.mxu1 %v10075_v61  ;;  %13156 = vst [vmem:[#allocation11_spill] sm:$0xff] %v10576_v46  ;;  %v1936_v51 = vor.u32 %v1935_v42, %v1932_v41  ;;  %v10583_v53 = vrot.slane %v2645_v44, 5  ;;  %v1946_v58 = vor.u32 %v1945_v47, %v10576_v46  ;;  %v1954_v60 = vshrl.u32 %v1036_v40, 16  ;;  %v1039_v5 = vld [vmem:[%s10510_s21 + $0x30] sm:$0xf]  ;;  %v10191_v56 = vld [vmem:[%s13064_s1 + $0x1e8] sm:$0xff]  }
  0x65   : > { %9278 = vmatpush3.bf16.msra.mxu0 %v10077_v3  ;;  %8959 = vmatprep.subr.bf16.mxu1 %v10085_v27  ;;  %13158 = vst [vmem:[#allocation13_spill] sm:$0xff] %v10585_v54  ;;  %v2651_v59 = vrot.slane %v2649_v49, 4  ;;  %v1957_v61 = vshll.u32 %v1036_v40, 16  ;;  %v2642_v2 = vor.u32 %v2641_v52, %v2638_v48  ;;  %v1963_v3 = vshll.u32 %v1037_v45, 16  ;;  %v1040_v13 = vld [vmem:[%s10510_s21 + $0x34] sm:$0xf] }
  0x66   : > { %8929 = vmatprep.mubr.msk.bf16.mxu1 %vm1355_vm0, %v10572_v38  ;;  %9279 = vmatprep.subr.bf16.mxu0 %v10087_v35  ;;  %13157 = vst [vmem:[#allocation12_spill] sm:$0xff] %v10583_v53  ;;  %v10599_v1 = vrot.slane %v1936_v51, 4  ;;  %v1967_v4 = vshrl.u32 %v1037_v45, 16  ;;  %v10607_v7 = vrot.slane %v1946_v58, 4  ;;  %v10610_v11 = vrot.slane %v1954_v60, 4  ;;  %v10645_v41 = vld [vmem:[%s13064_s1 + $0x40] sm:$0xff]  }
  0x67   : > { %9249 = vmatprep.mubr.msk.bf16.mxu0 %vm1355_vm0, %v10585_v54  ;;  %v2652_v8 = vor.u32 %v2651_v59, %v10583_v53  ;;  %v10612_v12 = vrot.slane %v1957_v61, 5  ;;  %v10622_v16 = vrot.slane %v2642_v2, 4  ;;  %v10624_v17 = vrot.slane %v1963_v3, 5  ;;  %v7718_v21 = vld [vmem:[%s10510_s21 + $0xfc] sm:$0xf]  ;;  %v10650_v42 = vld [vmem:[%s13064_s1 + $0x140] sm:$0xff]  }
  0x68   : > { %8960 = vmatpush3.bf16.msra.mxu1 %v10085_v27  ;;  %13161 = vst [vmem:[#allocation14_spill] sm:$0xff] %v10599_v1  ;;  %13162 = vst [vmem:[#allocation15_spill] sm:$0xff] %v10607_v7  ;;  %v10626_v20 = vrot.slane %v1967_v4, 4  ;;  %v10631_v26 = vcombine.low %v7715_v55, %v7716_v62  ;;  %v2660_v27 = vshrl.u32 %v7715_v55, 16  ;;  %v2663_v31 = vshll.u32 %v7715_v55, 16 }
  0x69   : > { %9280 = vmatpush3.bf16.msra.mxu0 %v10087_v35  ;;  %8961 = vmatprep.subr.bf16.mxu1 %v10095_v50  ;;  %13163 = vst [vmem:[#allocation16_spill] sm:$0xff] %v10622_v16  ;;  %v10629_v24 = vrot.slane %v2652_v8, 4  ;;  %v7719_v33 = vld [vmem:[%s10510_s21 + $0x100] sm:$0xf]  ;;  %v2669_v35 = vshll.u32 %v7716_v62, 16  ;;  %v2673_v36 = vshrl.u32 %v7716_v62, 16  ;;  %v10638_v37 = vcombine.low %v1039_v5, %v1040_v13 }
  0x6a   : > { %9281 = vmatprep.subr.bf16.mxu0 %v10097_v63  ;;  %v1042_v39 = vld [vmem:[%s10510_s21 + $0x3c] sm:$0xf]  ;;  %v1043_v40 = vld [vmem:[%s10510_s21 + $0x40] sm:$0xf]  ;;  %v10654_v43 = vrot.slane %v2660_v27, 4  ;;  %v10656_v44 = vrot.slane %v2663_v31, 5  ;;  %v10669_v59 = vcombine.low %v7718_v21, %v7719_v33 }
  0x6b   : > { %13164 = vst [vmem:[#allocation17_spill] sm:$0xff] %v10629_v24  ;;  %13165 = vst [vmem:[#allocation18_spill] sm:$0xff] %v10638_v37  ;;  %8930 = vmatmul.mubr.msk.bf16.gmra.mrb[4].mxu1 %vm1355_vm0, %v10631_v26  ;;  %v1978_v45 = vshrl.u32 %v1039_v5, 16  ;;  %v1981_v47 = vshll.u32 %v1039_v5, 16  ;;  %v10658_v48 = vrot.slane %v2669_v35, 5  ;;  %v10660_v49 = vrot.slane %v2673_v36, 4 }
  0x6c   : > { %8962 = vmatpush3.bf16.msra.mxu1 %v10095_v50  ;;  %13166 = vst [vmem:[#allocation19_spill] sm:$0xff] %v10654_v43  ;;  %13167 = vst [vmem:[#allocation20_spill] sm:$0xff] %v10656_v44  ;;  %v1987_v50 = vshll.u32 %v1040_v13, 16  ;;  %v1991_v51 = vshrl.u32 %v1040_v13, 16  ;;  %9250 = vmatmul.mubr.msk.bf16.gmra.mrb[4].mxu0 %vm1355_vm0, %v10638_v37  ;;  %v7721_v52 = vld [vmem:[%s10510_s21 + $0x108] sm:$0xf]  ;;  %v10683_v27 = vcombine.low %v1042_v39, %v1043_v40 }
  0x6d   : > { %9282 = vmatpush3.bf16.msra.mxu0 %v10097_v63  ;;  %8963 = vmatprep.subr.bf16.mxu1 %v10105_v6  ;;  %13168 = vst [vmem:[#allocation21_spill] sm:$0xff] %v10658_v48  ;;  %13169 = vst [vmem:[#allocation22_spill] sm:$0xff] %v10660_v49  ;;  %v10665_v55 = vrot.slane %v1978_v45, 4  ;;  %v10667_v58 = vrot.slane %v1981_v47, 5  ;;  %v2684_v60 = vshrl.u32 %v7718_v21, 16  ;;  %v2687_v2 = vshll.u32 %v7718_v21, 16 }
  0x6e   : > { %9283 = vmatprep.subr.bf16.mxu0 %v10107_v14  ;;  %13170 = vst [vmem:[#allocation23_spill] sm:$0xff] %v10669_v59  ;;  %v7722_v61 = vld [vmem:[%s10510_s21 + $0x10c] sm:$0xf]  ;;  %v10672_v62 = vrot.slane %v1987_v50, 5  ;;  %v10674_v63 = vrot.slane %v1991_v51, 4  ;;  %v2693_v3 = vshll.u32 %v7719_v33, 16  ;;  %8933 = vmatprep.mubr.msk.bf16.mxu1 %vm1355_vm0, %v10669_v59 }
  0x6f   : > { %v1045_v4 = vld [vmem:[%s10510_s21 + $0x48] sm:$0xf]  ;;  %v1046_v5 = vld [vmem:[%s10510_s21 + $0x4c] sm:$0xf]  ;;  %v10681_v8 = vrot.slane %v2684_v60, 4  ;;  %v2697_v13 = vshrl.u32 %v7719_v33, 16  ;;  %9253 = vmatprep.mubr.msk.bf16.mxu0 %vm1355_vm0, %v10683_v27  ;;  %v10696_v33 = vcombine.low %v7721_v52, %v7722_v61 }
  0x70   : > { %8964 = vmatpush3.bf16.msra.mxu1 %v10105_v6  ;;  %13172 = vst [vmem:[#allocation25_spill] sm:$0xff] %v10683_v27  ;;  %v2002_v6 = vshrl.u32 %v1042_v39, 16  ;;  %v10686_v31 = vrot.slane %v2687_v2, 5  ;;  %v10688_v21 = vrot.slane %v2693_v3, 5  ;;  %v2005_v35 = vshll.u32 %v1042_v39, 16 }
  0x71   : > { %9284 = vmatpush3.bf16.msra.mxu0 %v10107_v14  ;;  %8997 = vmatprep.subr.bf16.mxu1 %v10645_v41  ;;  %13171 = vst [vmem:[#allocation24_spill] sm:$0xff] %v10681_v8  ;;  %v2011_v14 = vshll.u32 %v1043_v40, 16  ;;  %v10690_v36 = vrot.slane %v2697_v13, 4  ;;  %v2015_v47 = vshrl.u32 %v1043_v40, 16  ;;  %13176 = vst [vmem:[#allocation29_spill] sm:$0xff] %v10696_v33  ;;  %v2708_v60 = vshrl.u32 %v7721_v52, 16 }
  0x72   : > { %9317 = vmatprep.subr.bf16.mxu0 %v10650_v42  ;;  %13173 = vst [vmem:[#allocation26_spill] sm:$0xff] %v10686_v31  ;;  %13174 = vst [vmem:[#allocation27_spill] sm:$0xff] %v10688_v21  ;;  %v10692_v45 = vrot.slane %v2002_v6, 4  ;;  %v10698_v50 = vrot.slane %v2005_v35, 5  ;;  %v2711_v2 = vshll.u32 %v7721_v52, 16  ;;  %v2717_v40 = vshll.u32 %v7722_v61, 16 }
  0x73   : > { %13175 = vst [vmem:[#allocation28_spill] sm:$0xff] %v10690_v36  ;;  %v10700_v51 = vrot.slane %v2011_v14, 5  ;;  %v7724_v39 = vld [vmem:[%s10510_s21 + $0x114] sm:$0xf]  ;;  %v10703_v3 = vrot.slane %v2015_v47, 4  ;;  %8934 = vmatmul.mubr.msk.bf16.gmra.mrb[8].mxu1 %vm1355_vm0, %v10696_v33  ;;  %v2721_v13 = vshrl.u32 %v7722_v61, 16  ;;  %v10707_v6 = vcombine.low %v1045_v4, %v1046_v5 }
  0x74   : > { %v7725_v34 = vld [vmem:[%s10510_s21 + $0x118] sm:$0xf]  ;;  %v10710_v15 = vrot.slane %v2708_v60, 4  ;;  %v10712_v35 = vrot.slane %v2711_v2, 5  ;;  %v2026_v14 = vshrl.u32 %v1045_v4, 16  ;;  %v2029_v53 = vshll.u32 %v1045_v4, 16 }
  0x75   : > { %13177 = vst [vmem:[#allocation30_spill] sm:$0xff] %v10707_v6  ;;  %v1048_v52 = vld [vmem:[%s10510_s21 + $0x54] sm:$0xf]  ;;  %v10715_v47 = vrot.slane %v2717_v40, 5  ;;  %v10717_v16 = vrot.slane %v2721_v13, 4  ;;  %v2035_v36 = vshll.u32 %v1046_v5, 16  ;;  %9254 = vmatmul.mubr.msk.bf16.gmra.mrb[8].mxu0 %vm1355_vm0, %v10707_v6  ;;  %v10726_v2 = vcombine.low %v7724_v39, %v7725_v34 }
  0x76   : > { %13178 = vst [vmem:[#allocation31_spill] sm:$0xff] %v10710_v15  ;;  %13179 = vst [vmem:[#allocation32_spill] sm:$0xff] %v10712_v35  ;;  %v2039_v21 = vshrl.u32 %v1046_v5, 16  ;;  %v1049_v61 = vld [vmem:[%s10510_s21 + $0x58] sm:$0xf]  ;;  %v10722_v24 = vrot.slane %v2026_v14, 4 }
  0x77   : > { %13180 = vst [vmem:[#allocation33_spill] sm:$0xff] %v10715_v47  ;;  %13181 = vst [vmem:[#allocation34_spill] sm:$0xff] %v10717_v16  ;;  %v10724_v60 = vrot.slane %v2029_v53, 5  ;;  %v2732_v4 = vshrl.u32 %v7724_v39, 16  ;;  %v7727_v35 = vld [vmem:[%s10510_s21 + $0x120] sm:$0xf]  ;;  %8937 = vmatprep.mubr.msk.bf16.mxu1 %vm1355_vm0, %v10726_v2  ;;  %v10738_v15 = vcombine.low %v1048_v52, %v1049_v61 }
  0x78   : > { %13182 = vst [vmem:[#allocation35_spill] sm:$0xff] %v10726_v2  ;;  %v10729_v40 = vrot.slane %v2035_v36, 5  ;;  %v10731_v13 = vrot.slane %v2039_v21, 4  ;;  %v2735_v16 = vshll.u32 %v7724_v39, 16  ;;  %v2741_v5 = vshll.u32 %v7725_v34, 16 }
  0x79   : > { %v7728_v47 = vld [vmem:[%s10510_s21 + $0x124] sm:$0xf]  ;;  %v10736_v14 = vrot.slane %v2732_v4, 4  ;;  %v2745_v53 = vshrl.u32 %v7725_v34, 16  ;;  %13184 = vst [vmem:[#allocation37_spill] sm:$0xff] %v10738_v15  ;;  %v2050_v31 = vshrl.u32 %v1048_v52, 16  ;;  %9257 = vmatprep.mubr.msk.bf16.mxu0 %vm1355_vm0, %v10738_v15 }
  0x7a   : > { %v1051_v8 = vld [vmem:[%s10510_s21 + $0x60] sm:$0xf]  ;;  %v10741_v49 = vrot.slane %v2735_v16, 5  ;;  %v10743_v36 = vrot.slane %v2741_v5, 5  ;;  %v2053_v21 = vshll.u32 %v1048_v52, 16  ;;  %v2059_v39 = vshll.u32 %v1049_v61, 16 }
  0x7b   : > { %13183 = vst [vmem:[#allocation36_spill] sm:$0xff] %v10736_v14  ;;  %v1052_v48 = vld [vmem:[%s10510_s21 + $0x64] sm:$0xf]  ;;  %v10746_v44 = vrot.slane %v2745_v53, 4  ;;  %v10748_v43 = vrot.slane %v2050_v31, 4  ;;  %v2063_v4 = vshrl.u32 %v1049_v61, 16  ;;  %v10752_v34 = vcombine.low %v7727_v35, %v7728_v47 }
  0x7c   : > { %13185 = vst [vmem:[#allocation38_spill] sm:$0xff] %v10741_v49  ;;  %13186 = vst [vmem:[#allocation39_spill] sm:$0xff] %v10743_v36  ;;  %v7730_v14 = vld [vmem:[%s10510_s21 + $0x12c] sm:$0xf]  ;;  %v10755_v16 = vrot.slane %v2053_v21, 5  ;;  %v10757_v5 = vrot.slane %v2059_v39, 5 }
  0x7d   : > { %13187 = vst [vmem:[#allocation40_spill] sm:$0xff] %v10746_v44  ;;  %13188 = vst [vmem:[#allocation41_spill] sm:$0xff] %v10752_v34  ;;  %v2756_v52 = vshrl.u32 %v7727_v35, 16  ;;  %v2759_v36 = vshll.u32 %v7727_v35, 16  ;;  %v7731_v49 = vld [vmem:[%s10510_s21 + $0x130] sm:$0xf]  ;;  %8938 = vmatmul.mubr.msk.bf16.gmra.mrb[12].mxu1 %vm1355_vm0, %v10752_v34  ;;  %v10764_v44 = vcombine.low %v1051_v8, %v1052_v48 }
  0x7e   : > { %v10760_v53 = vrot.slane %v2063_v4, 4  ;;  %v2765_v31 = vshll.u32 %v7728_v47, 16  ;;  %v2769_v61 = vshrl.u32 %v7728_v47, 16  ;;  %v1054_v22 = vld [vmem:[%s10510_s21 + $0x6c] sm:$0xf]  ;;  %v2074_v39 = vshrl.u32 %v1051_v8, 16 }
  0x7f   : > { %13189 = vst [vmem:[#allocation42_spill] sm:$0xff] %v10764_v44  ;;  %v10767_v29 = vrot.slane %v2756_v52, 4  ;;  %v10769_v21 = vrot.slane %v2759_v36, 5  ;;  %v2077_v28 = vshll.u32 %v1051_v8, 16  ;;  %v1055_v35 = vld [vmem:[%s10510_s21 + $0x70] sm:$0xf]  ;;  %9258 = vmatmul.mubr.msk.bf16.gmra.mrb[12].mxu0 %vm1355_vm0, %v10764_v44  ;;  %v10784_v36 = vcombine.low %v7730_v14, %v7731_v49 }
  0x80   : > { %v10772_v25 = vrot.slane %v2765_v31, 5  ;;  %v10774_v4 = vrot.slane %v2769_v61, 4  ;;  %v2083_v19 = vshll.u32 %v1052_v48, 16  ;;  %v2087_v18 = vshrl.u32 %v1052_v48, 16  ;;  %v7733_v47 = vld [vmem:[%s10510_s21 + $0x138] sm:$0xf] }
  0x81   : > { %13190 = vst [vmem:[#allocation43_spill] sm:$0xff] %v10767_v29  ;;  %13191 = vst [vmem:[#allocation44_spill] sm:$0xff] %v10769_v21  ;;  %v7734_v0 = vld [vmem:[%s10510_s21 + $0x13c] sm:$0xf]  ;;  %v10780_v15 = vrot.slane %v2074_v39, 4  ;;  %v10782_v52 = vrot.slane %v2077_v28, 5  ;;  %8941 = vmatprep.mubr.msk.bf16.mxu1 %vm1355_vm0, %v10784_v36  ;;  %v10794_v39 = vcombine.low %v1054_v22, %v1055_v35 }
  0x82   : > { %13192 = vst [vmem:[#allocation45_spill] sm:$0xff] %v10772_v25  ;;  %13193 = vst [vmem:[#allocation46_spill] sm:$0xff] %v10774_v4  ;;  %v2780_v8 = vshrl.u32 %v7730_v14, 16  ;;  %v10786_v31 = vrot.slane %v2083_v19, 5  ;;  %v10788_v61 = vrot.slane %v2087_v18, 4  ;;  %v2783_v4 = vshll.u32 %v7730_v14, 16 }
  0x83   : > { %13194 = vst [vmem:[#allocation47_spill] sm:$0xff] %v10784_v36  ;;  %v2789_v48 = vshll.u32 %v7731_v49, 16  ;;  %v2793_v21 = vshrl.u32 %v7731_v49, 16  ;;  %13196 = vst [vmem:[#allocation49_spill] sm:$0xff] %v10794_v39  ;;  %v2098_v28 = vshrl.u32 %v1054_v22, 16  ;;  %v2101_v19 = vshll.u32 %v1054_v22, 16  ;;  %9261 = vmatprep.mubr.msk.bf16.mxu0 %vm1355_vm0, %v10794_v39 }
  0x84   : > { %v10792_v25 = vrot.slane %v2780_v8, 4  ;;  %v1057_v29 = vld [vmem:[%s10510_s21 + $0x78] sm:$0xf]  ;;  %v10797_v44 = vrot.slane %v2783_v4, 5  ;;  %v2107_v2 = vshll.u32 %v1055_v35, 16  ;;  %v2111_v36 = vshrl.u32 %v1055_v35, 16 }
  0x85   : > { %v10799_v34 = vrot.slane %v2789_v48, 5  ;;  %v1058_v18 = vld [vmem:[%s10510_s21 + $0x7c] sm:$0xf]  ;;  %v10802_v14 = vrot.slane %v2793_v21, 4  ;;  %v10804_v6 = vrot.slane %v2098_v28, 4  ;;  %v10808_v49 = vcombine.low %v7733_v47, %v7734_v0 }
  0x86   : > { %13195 = vst [vmem:[#allocation48_spill] sm:$0xff] %v10792_v25  ;;  %13197 = vst [vmem:[#allocation50_spill] sm:$0xff] %v10797_v44  ;;  %v10810_v8 = vrot.slane %v2101_v19, 5  ;;  %v10812_v4 = vrot.slane %v2107_v2, 5  ;;  %v2804_v48 = vshrl.u32 %v7733_v47, 16  ;;  %v2807_v22 = vshll.u32 %v7733_v47, 16 }
  0x87   : > { %13198 = vst [vmem:[#allocation51_spill] sm:$0xff] %v10799_v34  ;;  %13199 = vst [vmem:[#allocation52_spill] sm:$0xff] %v10802_v14  ;;  %v10814_v34 = vrot.slane %v2111_v36, 4  ;;  %8942 = vmatmul.mubr.msk.bf16.gmra.mrb[16].mxu1 %vm1355_vm0, %v10808_v49  ;;  %v2813_v21 = vshll.u32 %v7734_v0, 16  ;;  %v2817_v35 = vshrl.u32 %v7734_v0, 16  ;;  %v10818_v28 = vcombine.low %v1057_v29, %v1058_v18 }
  0x88   : > { %13200 = vst [vmem:[#allocation53_spill] sm:$0xff] %v10808_v49  ;;  %v7736_v14 = vld [vmem:[%s10510_s21 + $0x144] sm:$0xf]  ;;  %v10821_v44 = vrot.slane %v2804_v48, 4  ;;  %v10823_v19 = vrot.slane %v2807_v22, 5  ;;  %v2122_v2 = vshrl.u32 %v1057_v29, 16 }
  0x89   : > { %13201 = vst [vmem:[#allocation54_spill] sm:$0xff] %v10818_v28  ;;  %v2125_v25 = vshll.u32 %v1057_v29, 16  ;;  %v7737_v39 = vld [vmem:[%s10510_s21 + $0x148] sm:$0xf]  ;;  %v10826_v47 = vrot.slane %v2813_v21, 5  ;;  %v10828_v36 = vrot.slane %v2817_v35, 4  ;;  %9262 = vmatmul.mubr.msk.bf16.gmra.mrb[16].mxu0 %vm1355_vm0, %v10818_v28 }
  0x8a   : > { %13202 = vst [vmem:[#allocation55_spill] sm:$0xff] %v10821_v44  ;;  %13203 = vst [vmem:[#allocation56_spill] sm:$0xff] %v10823_v19  ;;  %v2131_v27 = vshll.u32 %v1058_v18, 16  ;;  %v2135_v49 = vshrl.u32 %v1058_v18, 16  ;;  %v1060_v0 = vld [vmem:[%s10510_s21 + $0x84] sm:$0xf]  ;;  %v10837_v22 = vcombine.low %v7736_v14, %v7737_v39 }
  0x8b   : > { %13204 = vst [vmem:[#allocation57_spill] sm:$0xff] %v10826_v47  ;;  %13205 = vst [vmem:[#allocation58_spill] sm:$0xff] %v10828_v36  ;;  %v10833_v46 = vrot.slane %v2122_v2, 4  ;;  %v10835_v48 = vrot.slane %v2125_v25, 5  ;;  %v2828_v29 = vshrl.u32 %v7736_v14, 16  ;;  %v2831_v36 = vshll.u32 %v7736_v14, 16 }
  0x8c   : > { %13206 = vst [vmem:[#allocation59_spill] sm:$0xff] %v10837_v22  ;;  %v1061_v19 = vld [vmem:[%s10510_s21 + $0x88] sm:$0xf]  ;;  %v10840_v21 = vrot.slane %v2131_v27, 5  ;;  %v10842_v35 = vrot.slane %v2135_v49, 4  ;;  %v2837_v18 = vshll.u32 %v7737_v39, 16  ;;  %8945 = vmatprep.mubr.msk.bf16.mxu1 %vm1355_vm0, %v10837_v22 }
  0x8d   : > { %v7739_v47 = vld [vmem:[%s10510_s21 + $0x150] sm:$0xf]  ;;  %v10847_v2 = vrot.slane %v2828_v29, 4  ;;  %v2841_v25 = vshrl.u32 %v7737_v39, 16  ;;  %v10849_v44 = vcombine.low %v1060_v0, %v1061_v19  ;;  %v2146_v28 = vshrl.u32 %v1060_v0, 16 }
  0x8e   : > { %v7740_v1 = vld [vmem:[%s10510_s21 + $0x154] sm:$0xf]  ;;  %v10852_v7 = vrot.slane %v2831_v36, 5  ;;  %v10854_v27 = vrot.slane %v2837_v18, 5  ;;  %v2149_v49 = vshll.u32 %v1060_v0, 16  ;;  %v2155_v14 = vshll.u32 %v1061_v19, 16 }
  0x8f   : > { %13207 = vst [vmem:[#allocation60_spill] sm:$0xff] %v10847_v2  ;;  %13208 = vst [vmem:[#allocation61_spill] sm:$0xff] %v10849_v44  ;;  %v1063_v33 = vld [vmem:[%s10510_s21 + $0x90] sm:$0xf]  ;;  %v10857_v59 = vrot.slane %v2841_v25, 4  ;;  %v10859_v22 = vrot.slane %v2146_v28, 4  ;;  %9265 = vmatprep.mubr.msk.bf16.mxu0 %vm1355_vm0, %v10849_v44  ;;  %v10863_v39 = vcombine.low %v7739_v47, %v7740_v1 }
  0x90   : > { %13209 = vst [vmem:[#allocation62_spill] sm:$0xff] %v10852_v7  ;;  %13210 = vst [vmem:[#allocation63_spill] sm:$0xff] %v10854_v27  ;;  %v2159_v29 = vshrl.u32 %v1061_v19, 16  ;;  %v1064_v2 = vld [vmem:[%s10510_s21 + $0x94] sm:$0xf]  ;;  %v10866_v36 = vrot.slane %v2149_v49, 5 }
  0x91   : > { %13211 = vst [vmem:[#allocation64_spill] sm:$0xff] %v10857_v59  ;;  %13212 = vst [vmem:[#allocation65_spill] sm:$0xff] %v10863_v39  ;;  %v10868_v18 = vrot.slane %v2155_v14, 5  ;;  %v2852_v0 = vshrl.u32 %v7739_v47, 16  ;;  %v2855_v27 = vshll.u32 %v7739_v47, 16  ;;  %8946 = vmatmul.mubr.msk.bf16.gmra.mrb[20].mxu1 %vm1355_vm0, %v10863_v39  ;;  %v2861_v28 = vshll.u32 %v7740_v1, 16 }
  0x92   : > { %v7742_v7 = vld [vmem:[%s10510_s21 + $0x15c] sm:$0xf]  ;;  %v10871_v25 = vrot.slane %v2159_v29, 4  ;;  %v2865_v19 = vshrl.u32 %v7740_v1, 16  ;;  %v10875_v59 = vcombine.low %v1063_v33, %v1064_v2  ;;  %v7743_v44 = vld [vmem:[%s10510_s21 + $0x160] sm:$0xf] }
  0x93   : > { %13213 = vst [vmem:[#allocation66_spill] sm:$0xff] %v10868_v18  ;;  %v10878_v32 = vrot.slane %v2852_v0, 4  ;;  %v10880_v49 = vrot.slane %v2855_v27, 5  ;;  %v2170_v14 = vshrl.u32 %v1063_v33, 16  ;;  %v2173_v37 = vshll.u32 %v1063_v33, 16 }
  0x94   : > { %13214 = vst [vmem:[#allocation67_spill] sm:$0xff] %v10871_v25  ;;  %13215 = vst [vmem:[#allocation68_spill] sm:$0xff] %v10875_v59  ;;  %v1066_v47 = vld [vmem:[%s10510_s21 + $0x9c] sm:$0xf]  ;;  %v10883_v29 = vrot.slane %v2861_v28, 5  ;;  %v10885_v54 = vrot.slane %v2865_v19, 4  ;;  %9266 = vmatmul.mubr.msk.bf16.gmra.mrb[20].mxu0 %vm1355_vm0, %v10875_v59  ;;  %v10894_v27 = vcombine.low %v7742_v7, %v7743_v44 }
  0x95   : > { %13216 = vst [vmem:[#allocation69_spill] sm:$0xff] %v10878_v32  ;;  %13217 = vst [vmem:[#allocation70_spill] sm:$0xff] %v10880_v49  ;;  %v2179_v25 = vshll.u32 %v1064_v2, 16  ;;  %v2183_v39 = vshrl.u32 %v1064_v2, 16  ;;  %v1067_v1 = vld [vmem:[%s10510_s21 + $0xa0] sm:$0xf] }
  0x96   : > { %13218 = vst [vmem:[#allocation71_spill] sm:$0xff] %v10883_v29  ;;  %13219 = vst [vmem:[#allocation72_spill] sm:$0xff] %v10885_v54  ;;  %v10890_v18 = vrot.slane %v2170_v14, 4  ;;  %v10892_v0 = vrot.slane %v2173_v37, 5  ;;  %v2876_v49 = vshrl.u32 %v7742_v7, 16  ;;  %v2879_v19 = vshll.u32 %v7742_v7, 16  ;;  %8949 = vmatprep.mubr.msk.bf16.mxu1 %vm1355_vm0, %v10894_v27 }
  0x97   : > { %13222 = vst [vmem:[#allocation75_spill] sm:$0xff] %v10894_v27  ;;  %v7745_v33 = vld [vmem:[%s10510_s21 + $0x168] sm:$0xf]  ;;  %v10897_v32 = vrot.slane %v2179_v25, 5  ;;  %v10899_v28 = vrot.slane %v2183_v39, 4  ;;  %v2885_v54 = vshll.u32 %v7743_v44, 16  ;;  %v10906_v37 = vcombine.low %v1066_v47, %v1067_v1 }
  0x98   : > { %13220 = vst [vmem:[#allocation73_spill] sm:$0xff] %v10890_v18  ;;  %13221 = vst [vmem:[#allocation74_spill] sm:$0xff] %v10892_v0  ;;  %v7746_v2 = vld [vmem:[%s10510_s21 + $0x16c] sm:$0xf]  ;;  %v10904_v29 = vrot.slane %v2876_v49, 4  ;;  %v2889_v14 = vshrl.u32 %v7743_v44, 16 }
  0x99   : > { %13223 = vst [vmem:[#allocation76_spill] sm:$0xff] %v10897_v32  ;;  %13224 = vst [vmem:[#allocation77_spill] sm:$0xff] %v10899_v28  ;;  %v2194_v59 = vshrl.u32 %v1066_v47, 16  ;;  %v10908_v0 = vrot.slane %v2879_v19, 5  ;;  %v10910_v25 = vrot.slane %v2885_v54, 5  ;;  %v2197_v39 = vshll.u32 %v1066_v47, 16  ;;  %9269 = vmatprep.mubr.msk.bf16.mxu0 %vm1355_vm0, %v10906_v37 }
  0x9a   : > { %13225 = vst [vmem:[#allocation78_spill] sm:$0xff] %v10904_v29  ;;  %13226 = vst [vmem:[#allocation79_spill] sm:$0xff] %v10906_v37  ;;  %v2203_v28 = vshll.u32 %v1067_v1, 16  ;;  %v10912_v7 = vrot.slane %v2889_v14, 4  ;;  %v2207_v18 = vshrl.u32 %v1067_v1, 16  ;;  %v10918_v49 = vcombine.low %v7745_v33, %v7746_v2 }
  0x9b   : > { %13227 = vst [vmem:[#allocation80_spill] sm:$0xff] %v10908_v0  ;;  %13228 = vst [vmem:[#allocation81_spill] sm:$0xff] %v10910_v25  ;;  %v10914_v32 = vrot.slane %v2194_v59, 4  ;;  %v1069_v44 = vld [vmem:[%s10510_s21 + $0xa8] sm:$0xf]  ;;  %v10921_v29 = vrot.slane %v2197_v39, 5 }
  0x9c   : > { %13229 = vst [vmem:[#allocation82_spill] sm:$0xff] %v10912_v7  ;;  %13230 = vst [vmem:[#allocation83_spill] sm:$0xff] %v10918_v49  ;;  %v10923_v27 = vrot.slane %v2203_v28, 5  ;;  %v2900_v19 = vshrl.u32 %v7745_v33, 16  ;;  %v2903_v54 = vshll.u32 %v7745_v33, 16  ;;  %v10926_v25 = vrot.slane %v2207_v18, 4  ;;  %8950 = vmatmul.mubr.msk.bf16.gmra.mrb[24].mxu1 %vm1355_vm0, %v10918_v49 }
  0x9d   : > { %13231 = vst [vmem:[#allocation84_spill] sm:$0xff] %v10921_v29  ;;  %v1070_v47 = vld [vmem:[%s10510_s21 + $0xac] sm:$0xf]  ;;  %v2909_v59 = vshll.u32 %v7746_v2, 16  ;;  %v2913_v1 = vshrl.u32 %v7746_v2, 16  ;;  %v2218_v28 = vshrl.u32 %v1069_v44, 16 }
  0x9e   : > { %13232 = vst [vmem:[#allocation85_spill] sm:$0xff] %v10923_v27  ;;  %13233 = vst [vmem:[#allocation86_spill] sm:$0xff] %v10926_v25  ;;  %v10930_v14 = vcombine.low %v1069_v44, %v1070_v47  ;;  %v10932_v7 = vrot.slane %v2900_v19, 4  ;;  %v10934_v39 = vrot.slane %v2903_v54, 5  ;;  %v2221_v0 = vshll.u32 %v1069_v44, 16 }
  0x9f   : > { %v10936_v33 = vrot.slane %v2909_v59, 5  ;;  %v10938_v37 = vrot.slane %v2913_v1, 4  ;;  %v2227_v18 = vshll.u32 %v1070_v47, 16  ;;  %v2231_v25 = vshrl.u32 %v1070_v47, 16  ;;  %v7748_v2 = vld [vmem:[%s10510_s21 + $0x174] sm:$0xf] }
  0xa0   : > { %13234 = vst [vmem:[#allocation87_spill] sm:$0xff] %v10930_v14  ;;  %13235 = vst [vmem:[#allocation88_spill] sm:$0xff] %v10932_v7  ;;  %9270 = vmatmul.mubr.msk.bf16.gmra.mrb[24].mxu0 %vm1355_vm0, %v10930_v14  ;;  %v10943_v49 = vrot.slane %v2218_v28, 4  ;;  %v10945_v19 = vrot.slane %v2221_v0, 5  ;;  %v7749_v54 = vld [vmem:[%s10510_s21 + $0x178] sm:$0xf] }
  0xa1   : > { %13236 = vst [vmem:[#allocation89_spill] sm:$0xff] %v10934_v39  ;;  %13237 = vst [vmem:[#allocation90_spill] sm:$0xff] %v10936_v33  ;;  %v2924_v39 = vshrl.u32 %v7748_v2, 16  ;;  %v2927_v7 = vshll.u32 %v7748_v2, 16  ;;  %v10948_v44 = vrot.slane %v2227_v18, 5  ;;  %v10950_v59 = vrot.slane %v2231_v25, 4 }
  0xa2   : > { %13238 = vst [vmem:[#allocation91_spill] sm:$0xff] %v10938_v37  ;;  %13239 = vst [vmem:[#allocation92_spill] sm:$0xff] %v10943_v49  ;;  %v10952_v1 = vcombine.low %v7748_v2, %v7749_v54  ;;  %v2933_v47 = vshll.u32 %v7749_v54, 16  ;;  %v1072_v37 = vld [vmem:[%s10510_s21 + $0xb4] sm:$0xf]  ;;  %v2937_v28 = vshrl.u32 %v7749_v54, 16 }
  0xa3   : > { %13240 = vst [vmem:[#allocation93_spill] sm:$0xff] %v10945_v19  ;;  %13241 = vst [vmem:[#allocation94_spill] sm:$0xff] %v10948_v44  ;;  %v10955_v33 = vrot.slane %v2924_v39, 4  ;;  %v10957_v14 = vrot.slane %v2927_v7, 5  ;;  %v1073_v0 = vld [vmem:[%s10510_s21 + $0xb8] sm:$0xf] }
  0xa4   : > { %13242 = vst [vmem:[#allocation95_spill] sm:$0xff] %v10950_v59  ;;  %13243 = vst [vmem:[#allocation96_spill] sm:$0xff] %v10952_v1  ;;  %v2242_v19 = vshrl.u32 %v1072_v37, 16  ;;  %8953 = vmatprep.mubr.msk.bf16.mxu1 %vm1355_vm0, %v10952_v1  ;;  %v10962_v18 = vrot.slane %v2933_v47, 5  ;;  %v10964_v25 = vcombine.low %v1072_v37, %v1073_v0  ;;  %v2245_v2 = vshll.u32 %v1072_v37, 16 }
  0xa5   : > { %13244 = vst [vmem:[#allocation97_spill] sm:$0xff] %v10955_v33  ;;  %13245 = vst [vmem:[#allocation98_spill] sm:$0xff] %v10957_v14  ;;  %v2251_v59 = vshll.u32 %v1073_v0, 16  ;;  %v7751_v44 = vld [vmem:[%s10510_s21 + $0x180] sm:$0xf]  ;;  %v10967_v49 = vrot.slane %v2937_v28, 4 }
  0xa6   : > { %13246 = vst [vmem:[#allocation99_spill] sm:$0xff] %v10962_v18  ;;  %13247 = vst [vmem:[#allocation100_spill] sm:$0xff] %v10964_v25  ;;  %v10969_v39 = vrot.slane %v2242_v19, 4  ;;  %v2255_v7 = vshrl.u32 %v1073_v0, 16  ;;  %v7752_v54 = vld [vmem:[%s10510_s21 + $0x184] sm:$0xf]  ;;  %9273 = vmatprep.mubr.msk.bf16.mxu0 %vm1355_vm0, %v10964_v25 }
  0xa7   : > { %13248 = vst [vmem:[#allocation101_spill] sm:$0xff] %v10967_v49  ;;  %v2948_v14 = vshrl.u32 %v7751_v44, 16  ;;  %v10972_v33 = vrot.slane %v2245_v2, 5  ;;  %v10974_v1 = vrot.slane %v2251_v59, 5  ;;  %v10978_v47 = vcombine.low %v7751_v44, %v7752_v54  ;;  %v1075_v18 = vld [vmem:[%s10510_s21 + $0xc0] sm:$0xf] }
  0xa8   : > { %13249 = vst [vmem:[#allocation102_spill] sm:$0xff] %v10969_v39  ;;  %v2951_v37 = vshll.u32 %v7751_v44, 16  ;;  %v10981_v28 = vrot.slane %v2255_v7, 4  ;;  %v2957_v0 = vshll.u32 %v7752_v54, 16  ;;  %v2961_v49 = vshrl.u32 %v7752_v54, 16 }
  0xa9   : > { %13250 = vst [vmem:[#allocation103_spill] sm:$0xff] %v10972_v33  ;;  %13251 = vst [vmem:[#allocation104_spill] sm:$0xff] %v10974_v1  ;;  %v10983_v19 = vrot.slane %v2948_v14, 4  ;;  %v1076_v39 = vld [vmem:[%s10510_s21 + $0xc4] sm:$0xf]  ;;  %8954 = vmatmul.mubr.msk.bf16.gmra.mrb[28].mxu1 %vm1355_vm0, %v10978_v47  ;;  %v5882_v1 = vshrl.u32 %v1075_v18, 16 }
  0xaa   : > { %13252 = vst [vmem:[#allocation105_spill] sm:$0xff] %v10978_v47  ;;  %13253 = vst [vmem:[#allocation106_spill] sm:$0xff] %v10981_v28  ;;  %v10988_v59 = vrot.slane %v2951_v37, 5  ;;  %v8211_v2 = vcombine.low %v1075_v18, %v1076_v39  ;;  %v5885_v25 = vshll.u32 %v1075_v18, 16  ;;  %v1027_v33 = vld [vmem:[%s10510_s21] sm:$0xf] }
  0xab   : > { %13254 = vst [vmem:[#allocation107_spill] sm:$0xff] %v10983_v19  ;;  %v10991_v27 = vrot.slane %v2957_v0, 5  ;;  %v10993_v44 = vrot.slane %v2961_v49, 4  ;;  %v5891_v7 = vshll.u32 %v1076_v39, 16  ;;  %v5895_v28 = vshrl.u32 %v1076_v39, 16 }
  0xac   : > { %13255 = vst [vmem:[#allocation108_spill] sm:$0xff] %v10988_v59  ;;  %v1028_v14 = vld [vmem:[%s10510_s21 + $0x4] sm:$0xf]  ;;  %9274 = vmatmul.mubr.msk.bf16.gmra.mrb[28].mxu0 %vm1355_vm0, %v8211_v2  ;;  %v10997_v54 = vrot.slane %v5882_v1, 4  ;;  %v10999_v19 = vrot.slane %v5885_v25, 5  ;;  %v1882_v37 = vshrl.u32 %v1027_v33, 16 }
  0xad   : > { %13256 = vst [vmem:[#allocation109_spill] sm:$0xff] %v10991_v27  ;;  %13257 = vst [vmem:[#allocation110_spill] sm:$0xff] %v10993_v44  ;;  %v7903_v47 = vcombine.low %v1027_v33, %v1028_v14  ;;  %v11001_v59 = vrot.slane %v5891_v7, 5  ;;  %v11003_v29 = vrot.slane %v5895_v28, 4  ;;  %v1885_v18 = vshll.u32 %v1027_v33, 16  ;;  %9285 = vmatprep.mubr.msk.bf16.mxu0 %vm1355_vm0, %v10536_v10  ;;  %v10115_v1 = vld [vmem:[%s13064_s1 + $0x48] sm:$0xff]  }
  0xae   : > { %13258 = vst [vmem:[#allocation111_spill] sm:$0xff] %v10999_v19  ;;  %v1891_v0 = vshll.u32 %v1028_v14, 16  ;;  %v1884_v49 = vrot.slane %v1882_v37, 4  ;;  %v1895_v39 = vshrl.u32 %v1028_v14, 16  ;;  %v1960_v33 = vor.u32 %v10612_v12, %v10610_v11  ;;  %v10116_v14 = vld [vmem:[%s13064_s1 + $0x148] sm:$0xff]  }
  0xaf   : > { %13259 = vst [vmem:[#allocation112_spill] sm:$0xff] %v11001_v59  ;;  %13260 = vst [vmem:[#allocation113_spill] sm:$0xff] %v11003_v29  ;;  %8965 = vmatprep.mubr.msk.bf16.mxu1 %vm1355_vm0, %v7903_v47  ;;  %v1887_v28 = vrot.slane %v1885_v18, 5  ;;  %v1970_v10 = vor.u32 %v10626_v20, %v10624_v17  ;;  %v1032_v11 = vld [vmem:[%s10510_s21 + $0x14] sm:$0x1] }
  0xb0   : > { %v11017_v2 = vrot.slane %v1891_v0, 5  ;;  %v1897_v7 = vrot.slane %v1895_v39, 4  ;;  %v11026_v37 = vrot.slane %v1960_v33, 4  ;;  %v10117_v33 = vld [vmem:[%s13064_s1 + $0x50] sm:$0xff]   ;;  %v1029_v0 = vld [vmem:[%s10510_s21 + $0x8] sm:$0x1] }
  0xb1   : > { %v1888_v18 = vor.u32 %v1887_v28, %v1884_v49  ;;  %8966 = vmatmul.mubr.msk.bf16.vlgmr.msra.gmra.mrb[0].mxu1 %vm1355_vm0, %v10519_v57  ;;  %v11056_v57 = vld [vmem:[%s10510_s21 + $0x18c] sm:$0xf]  ;;  %v1901_v47 = vshll.u32 %v1029_v0, 16  ;;  %v1044_v19 = vld [vmem:[%s10510_s21 + $0x44] sm:$0x1] }
  0xb2   : > { %v1898_v49 = vor.u32 %v1897_v7, %v11017_v2  ;;  %8998 = vmatpush3.bf16.msra.mxu1 %v10645_v41  ;;  %8969 = vmatprep.mubr.msk.bf16.mxu1 %vm1355_vm0, %v10560_v30  ;;  %13261 = vst [vmem:[#allocation114_spill] sm:$0xff] %v11056_v57  ;;  %v11067_v41 = vld [vmem:[%s10510_s21 + $0x190] sm:$0xf]  ;;  %v6138_v30 = vshrl.u32 %v11056_v57, 16  ;;  %v6141_v39 = vshll.u32 %v11056_v57, 16  ;;  %v10119_v28 = vld [vmem:[%s13064_s1 + $0x58] sm:$0xff]  }
  0xb3   : > { %8999 = vmatprep.subr.bf16.mxu1 %v10115_v1  ;;  %13262 = vst [vmem:[#allocation115_spill] sm:$0xff] %v11067_v41  ;;  %v6147_v12 = vshll.u32 %v11067_v41, 16  ;;  %v6151_v25 = vshrl.u32 %v11067_v41, 16  ;;  %v1889_v7 = vrot.slane %v1888_v18, 4  ;;  %v10120_v0 = vld [vmem:[%s13064_s1 + $0x158] sm:$0xff]   ;;  %v13271_v57 = vld [vmem:[#allocation13_spill] sm:$0xff] }
  0xb4   : > { %9286 = vmatmul.mubr.msk.bf16.vlgmr.msra.gmra.mrb[0].mxu0 %vm1355_vm0, %v10572_v38  ;;  %v10118_v38 = vld [vmem:[%s13064_s1 + $0x150] sm:$0xff]   ;;  %v11087_v20 = vrot.slane %v6138_v30, 4  ;;  %v1925_v30 = vshll.u32 %v1032_v11, 16  ;;  %v13267_v11 = vld [vmem:[#allocation66_spill] sm:$0xff] }
  0xb5   : > { %9318 = vmatpush3.bf16.msra.mxu0 %v10650_v42  ;;  %9289 = vmatprep.mubr.msk.bf16.mxu0 %vm1355_vm0, %v10631_v26  ;;  %v11089_v42 = vrot.slane %v6141_v39, 5  ;;  %v1899_v26 = vrot.slane %v1898_v49, 4  ;;  %v11094_v44 = vrot.slane %v6147_v12, 5  ;;  %v11096_v27 = vrot.slane %v6151_v25, 4  ;;  %v1035_v39 = vld [vmem:[%s10510_s21 + $0x20] sm:$0x1] }
  0xb6   : > { %9319 = vmatprep.subr.bf16.mxu0 %v10116_v14  ;;  %13263 = vst [vmem:[#allocation116_spill] sm:$0xff] %v11087_v20  ;;  %9000 = vmatpush3.bf16.msra.mxu1 %v10115_v1  ;;  %v1894_v18 = vsel %vm10590_vm3, %v1889_v7, %v11017_v2  ;;  %v1903_v1 = vrot.slane %v1901_v47, 5  ;;  %v1971_v49 = vrot.slane %v1970_v10, 4  ;;  %v1038_v2 = vld [vmem:[%s10510_s21 + $0x2c] sm:$0x1]  ;;  %v13268_v7 = vld [vmem:[#allocation67_spill] sm:$0xff]  ;;  %v13273_v47 = vor.u32 %v10674_v63, %v10672_v62 }
  0xb7   : > { %13264 = vst [vmem:[#allocation117_spill] sm:$0xff] %v11089_v42  ;;  %13265 = vst [vmem:[#allocation118_spill] sm:$0xff] %v11094_v44  ;;  %9001 = vmatprep.subr.bf16.mxu1 %v10117_v33  ;;  %v1949_v44 = vshll.u32 %v1035_v39, 16  ;;  %v13269_v20 = vld [vmem:[#allocation73_spill] sm:$0xff]  ;;  %v13270_v41 = vld [vmem:[#allocation74_spill] sm:$0xff]  ;;  %v13272_v42 = vor.u32 %v10667_v58, %v10665_v55  ;;  %v13277_v58 = vsel %vm10590_vm3, %v10547_v23, %v10532_v9 }
  0xb8   : > { %13266 = vst [vmem:[#allocation119_spill] sm:$0xff] %v11096_v27  ;;  %v1927_v27 = vrot.slane %v1925_v30, 5  ;;  %v1904_v10 = vsel %vm10590_vm3, %v1899_v26, %v1903_v1  ;;  %v1973_v30 = vshll.u32 %v1038_v2, 16  ;;  %v1041_v39 = vld [vmem:[%s10510_s21 + $0x38] sm:$0x1]  ;;  %v13276_v55 = vld [vmem:[#allocation23_spill] sm:$0xff] }
  0xb9   : > { %9320 = vmatpush3.bf16.msra.mxu0 %v10116_v14  ;;  %8970 = vmatmul.mubr.msk.bf16.gmra.mrb[4].mxu1 %vm1355_vm0, %v13271_v57  ;;  %v11121_v14 = vld [vmem:[%s13064_s1 + $0x60] sm:$0xff]   ;;  %v1985_v25 = vrot.slane %v13272_v42, 4  ;;  %v1995_v57 = vrot.slane %v13273_v47, 4  ;;  %v13274_v12 = vld [vmem:[#allocation18_spill] sm:$0xff]  ;;  %v11132_v26 = vcombine.low %v1894_v18, %v1904_v10  ;;  %v1951_v29 = vrot.slane %v1949_v44, 5 }
  0xba   : > { %9321 = vmatprep.subr.bf16.mxu0 %v10118_v38  ;;  %8973 = vmatprep.mubr.msk.bf16.mxu1 %vm1355_vm0, %v13274_v12  ;;  %v13275_v1 = vld [vmem:[#allocation10_spill] sm:$0xff]  ;;  %v1997_v59 = vshll.u32 %v1041_v39, 16  ;;  %v13278_v44 = vor.u32 %v10698_v50, %v10692_v45  ;;  %v1047_v18 = vld [vmem:[%s10510_s21 + $0x50] sm:$0x1]  ;;  %v13281_v10 = vor.u32 %v10703_v3, %v10700_v51 }
  0xbb   : > { %9002 = vmatpush3.bf16.msra.mxu1 %v10117_v33  ;;  %v1928_v2 = vsel %vm10590_vm3, %v13275_v1, %v1927_v27  ;;  %v1975_v33 = vrot.slane %v1973_v30, 5  ;;  %v1990_v27 = vsel %vm10590_vm3, %v1985_v25, %v10672_v62  ;;  %v13279_v12 = vld [vmem:[#allocation29_spill] sm:$0xff]  ;;  %v13280_v47 = vld [vmem:[#allocation15_spill] sm:$0xff]  ;;  %v2021_v62 = vshll.u32 %v1044_v19, 16  ;;  %v13282_v45 = vld [vmem:[#allocation14_spill] sm:$0xff] }
  0xbc   : > { %9290 = vmatmul.mubr.msk.bf16.gmra.mrb[4].mxu0 %vm1355_vm0, %v13276_v55  ;;  %9003 = vmatprep.subr.bf16.mxu1 %v10119_v28  ;;  %v11145_v63 = vcombine.low %v13277_v58, %v1928_v2  ;;  %v2009_v42 = vrot.slane %v13278_v44, 4  ;;  %v1952_v9 = vsel %vm10590_vm3, %v13280_v47, %v1951_v29  ;;  %v1999_v23 = vrot.slane %v1997_v59, 5  ;;  %v13283_v50 = vld [vmem:[#allocation11_spill] sm:$0xff]  ;;  %v1050_v1 = vld [vmem:[%s10510_s21 + $0x5c] sm:$0x1] }
  0xbd   : > { %9293 = vmatprep.mubr.msk.bf16.mxu0 %vm1355_vm0, %v13279_v12  ;;  %9322 = vmatpush3.bf16.msra.mxu0 %v10118_v38  ;;  %v2019_v30 = vrot.slane %v13281_v10, 4  ;;  %v13284_v25 = vsel %vm10590_vm3, %v13282_v45, %v13283_v50  ;;  %v11172_v38 = vld [vmem:[%s13064_s1 + $0x160] sm:$0xff]   ;;  %v1976_v29 = vsel %vm10590_vm3, %v1971_v49, %v1975_v33  ;;  %v13285_v19 = vor.u32 %v10724_v60, %v10722_v24  ;;  %v1053_v24 = vld [vmem:[%s10510_s21 + $0x68] sm:$0x1] }
  0xbe   : > { %9323 = vmatprep.subr.bf16.mxu0 %v10120_v0  ;;  %v11167_v39 = vcombine.low %v13284_v25, %v1952_v9  ;;  %v2014_v3 = vsel %vm10590_vm3, %v2009_v42, %v10700_v51  ;;  %v13286_v2 = vsel %vm10590_vm3, %v11026_v37, %v10624_v17  ;;  %v2000_v49 = vsel %vm10590_vm3, %v1995_v57, %v1999_v23  ;;  %v1056_v9 = vld [vmem:[%s10510_s21 + $0x74] sm:$0x1] }
  0xbf   : > { %v2033_v59 = vrot.slane %v13285_v19, 4  ;;  %9004 = vmatpush3.bf16.msra.mxu1 %v10119_v28  ;;  %v11188_v55 = vcombine.low %v13286_v2, %v1976_v29  ;;  %v2023_v58 = vrot.slane %v2021_v62, 5  ;;  %v13287_v51 = vor.u32 %v10731_v13, %v10729_v40  ;;  %v13295_v45 = vld [vmem:[#allocation35_spill] sm:$0xff]  ;;  %v13298_v19 = vld [vmem:[#allocation41_spill] sm:$0xff] }
  0xc0   : > { %9037 = vmatprep.subr.bf16.mxu1 %v11121_v14  ;;  %v11197_v60 = vcombine.low %v1990_v27, %v2000_v49  ;;  %v2045_v37 = vshll.u32 %v1047_v18, 16  ;;  %v13288_v28 = vor.u32 %v10755_v16, %v10748_v43  ;;  %v13289_v13 = vor.u32 %v10760_v53, %v10757_v5  ;;  %v1059_v29 = vld [vmem:[%s10510_s21 + $0x80] sm:$0x1] }
  0xc1   : > { %v2043_v33 = vrot.slane %v13287_v51, 4  ;;  %v2038_v17 = vsel %vm10590_vm3, %v2033_v59, %v10729_v40  ;;  %9324 = vmatpush3.bf16.msra.mxu0 %v10120_v0  ;;  %v2024_v57 = vsel %vm10590_vm3, %v2019_v30, %v2023_v58  ;;  %v2069_v12 = vshll.u32 %v1050_v1, 16  ;;  %v13291_v40 = vld [vmem:[#allocation25_spill] sm:$0xff]  ;;  %v1062_v1 = vld [vmem:[%s10510_s21 + $0x8c] sm:$0x1] }
  0xc2   : > { %v2057_v44 = vrot.slane %v13288_v28, 4  ;;  %v2067_v42 = vrot.slane %v13289_v13, 4  ;;  %v13290_v27 = vor.u32 %v10782_v52, %v10780_v15  ;;  %8974 = vmatmul.mubr.msk.bf16.gmra.mrb[8].mxu1 %vm1355_vm0, %v13291_v40  ;;  %9357 = vmatprep.subr.bf16.mxu0 %v11172_v38  ;;  %v11217_v43 = vcombine.low %v2014_v3, %v2024_v57  ;;  %v13293_v15 = vld [vmem:[#allocation30_spill] sm:$0xff] }
  0xc3   : > { %v2047_v16 = vrot.slane %v2045_v37, 5  ;;  %v13292_v0 = vor.u32 %v10788_v61, %v10786_v31  ;;  %8977 = vmatprep.mubr.msk.bf16.mxu1 %vm1355_vm0, %v13293_v15  ;;  %v2071_v52 = vrot.slane %v2069_v12, 5  ;;  %v2093_v10 = vshll.u32 %v1053_v24, 16  ;;  %v1065_v51 = vld [vmem:[%s10510_s21 + $0x98] sm:$0x1]  ;;  %v13308_v15 = vld [vmem:[#allocation85_spill] sm:$0xff] }
  0xc4   : > { %v2081_v47 = vrot.slane %v13290_v27, 4  ;;  %v2062_v53 = vsel %vm10590_vm3, %v2057_v44, %v10757_v5  ;;  %v13294_v30 = vor.u32 %v10810_v8, %v10804_v6  ;;  %9294 = vmatmul.mubr.msk.bf16.gmra.mrb[8].mxu0 %vm1355_vm0, %v13295_v45  ;;  %v13296_v61 = vor.u32 %v10814_v34, %v10812_v4  ;;  %v13304_v27 = vld [vmem:[#allocation77_spill] sm:$0xff] }
  0xc5   : > { %v2091_v18 = vrot.slane %v13292_v0, 4  ;;  %v2048_v5 = vsel %vm10590_vm3, %v2043_v33, %v2047_v16  ;;  %v2117_v25 = vshll.u32 %v1056_v9, 16  ;;  %9297 = vmatprep.mubr.msk.bf16.mxu0 %vm1355_vm0, %v13298_v19  ;;  %v2072_v8 = vsel %vm10590_vm3, %v2067_v42, %v2071_v52  ;;  %v1068_v42 = vld [vmem:[%s10510_s21 + $0xa4] sm:$0x1]  ;;  %v13306_v16 = vld [vmem:[#allocation84_spill] sm:$0xff]  ;;  %v13307_v0 = vld [vmem:[#allocation42_spill] sm:$0xff] }
  0xc6   : > { %v2086_v23 = vsel %vm10590_vm3, %v2081_v47, %v10786_v31  ;;  %v2105_v62 = vrot.slane %v13294_v30, 4  ;;  %v2115_v50 = vrot.slane %v13296_v61, 4  ;;  %v13297_v31 = vor.u32 %v10835_v48, %v10833_v46  ;;  %v13305_v9 = vld [vmem:[#allocation37_spill] sm:$0xff]  ;;  %v13309_v52 = vld [vmem:[#allocation86_spill] sm:$0xff] }
  0xc7   : > { %v11246_v6 = vcombine.low %v2038_v17, %v2048_v5  ;;  %v2095_v59 = vrot.slane %v2093_v10, 5  ;;  %v11254_v2 = vcombine.low %v2062_v53, %v2072_v8  ;;  %v2119_v49 = vrot.slane %v2117_v25, 5  ;;  %v1071_v30 = vld [vmem:[%s10510_s21 + $0xb0] sm:$0x1] }
  0xc8   : > { %v2129_v3 = vrot.slane %v13297_v31, 4  ;;  %v2110_v34 = vsel %vm10590_vm3, %v2105_v62, %v10812_v4  ;;  %v13299_v48 = vor.u32 %v10842_v35, %v10840_v21  ;;  %v2141_v24 = vshll.u32 %v1059_v29, 16  ;;  %v13310_v62 = vld [vmem:[#allocation47_spill] sm:$0xff]  ;;  %v13313_v19 = vld [vmem:[#allocation93_spill] sm:$0xff] }
  0xc9   : > { %v2096_v33 = vsel %vm10590_vm3, %v2091_v18, %v2095_v59  ;;  %v13300_v4 = vor.u32 %v10866_v36, %v10859_v22  ;;  %v13301_v37 = vor.u32 %v13268_v7, %v13267_v11  ;;  %v2120_v57 = vsel %vm10590_vm3, %v2115_v50, %v2119_v49  ;;  %v13303_v7 = vld [vmem:[#allocation76_spill] sm:$0xff]  ;;  %v13311_v50 = vld [vmem:[#allocation53_spill] sm:$0xff]  ;;  %v13315_v49 = vld [vmem:[#allocation95_spill] sm:$0xff] }
  0xca   : > { %v2134_v46 = vsel %vm10590_vm3, %v2129_v3, %v10840_v21  ;;  %v2139_v58 = vrot.slane %v13299_v48, 4  ;;  %v11271_v44 = vcombine.low %v2086_v23, %v2096_v33  ;;  %v2165_v21 = vshll.u32 %v1062_v1, 16  ;;  %8978 = vmatmul.mubr.msk.bf16.gmra.mrb[12].mxu1 %vm1355_vm0, %v13305_v9  ;;  %v13312_v3 = vld [vmem:[#allocation92_spill] sm:$0xff]  ;;  %v13314_v1 = vld [vmem:[#allocation94_spill] sm:$0xff] }
  0xcb   : > { %v2153_v17 = vrot.slane %v13300_v4, 4  ;;  %v2163_v28 = vrot.slane %v13301_v37, 4  ;;  %v13302_v35 = vor.u32 %v13270_v41, %v13269_v20  ;;  %v11279_v12 = vcombine.low %v2110_v34, %v2120_v57  ;;  %8981 = vmatprep.mubr.msk.bf16.mxu1 %vm1355_vm0, %v13307_v0  ;;  %v13316_v4 = vld [vmem:[#allocation102_spill] sm:$0xff]  ;;  %v13323_v0 = vld [vmem:[#allocation113_spill] sm:$0xff] }
  0xcc   : > { %v2143_v22 = vrot.slane %v2141_v24, 5  ;;  %v2186_v47 = vor.u32 %v13304_v27, %v13303_v7  ;;  %v2167_v40 = vrot.slane %v2165_v21, 5  ;;  %v2189_v41 = vshll.u32 %v1065_v51, 16  ;;  %9298 = vmatmul.mubr.msk.bf16.gmra.mrb[12].mxu0 %vm1355_vm0, %v13310_v62  ;;  %v13325_v62 = vld [vmem:[#allocation59_spill] sm:$0xff] }
  0xcd   : > { %v2177_v13 = vrot.slane %v13302_v35, 4  ;;  %v2158_v36 = vsel %vm10590_vm3, %v2153_v17, %v13267_v11  ;;  %v2200_v53 = vor.u32 %v13306_v16, %v10914_v32  ;;  %v2210_v23 = vor.u32 %v13309_v52, %v13308_v15  ;;  %9301 = vmatprep.mubr.msk.bf16.mxu0 %vm1355_vm0, %v13311_v50  ;;  %v13317_v17 = vld [vmem:[#allocation103_spill] sm:$0xff]  ;;  %v13327_v50 = vld [vmem:[#allocation4_spill] sm:$0xff] }
  0xce   : > { %v2144_v11 = vsel %vm10590_vm3, %v2139_v58, %v2143_v22  ;;  %v2187_v18 = vrot.slane %v2186_v47, 4  ;;  %v2213_v10 = vshll.u32 %v1068_v42, 16  ;;  %v2168_v32 = vsel %vm10590_vm3, %v2163_v28, %v2167_v40  ;;  %v1074_v58 = vld [vmem:[%s10510_s21 + $0xbc] sm:$0x1]  ;;  %v1077_v28 = vld [vmem:[%s10510_s21 + $0xc8] sm:$0x1] }
  0xcf   : > { %v2182_v20 = vsel %vm10590_vm3, %v2177_v13, %v13303_v7  ;;  %v11302_v45 = vcombine.low %v2134_v46, %v2144_v11  ;;  %v2191_v5 = vrot.slane %v2189_v41, 5  ;;  %v2201_v61 = vrot.slane %v2200_v53, 4  ;;  %v13318_v13 = vld [vmem:[#allocation104_spill] sm:$0xff]  ;;  %v13319_v42 = vld [vmem:[#allocation106_spill] sm:$0xff]  ;;  %v13320_v47 = vld [vmem:[#allocation111_spill] sm:$0xff] }
  0xd0   : > { %v11308_v25 = vcombine.low %v2158_v36, %v2168_v32  ;;  %v2211_v29 = vrot.slane %v2210_v23, 4  ;;  %v2215_v31 = vrot.slane %v2213_v10, 5  ;;  %v2224_v8 = vor.u32 %v13313_v19, %v13312_v3  ;;  %v7708_v40 = vld [vmem:[%s10510_s21 + $0xd4] sm:$0x1]  ;;  %v13322_v53 = vld [vmem:[#allocation112_spill] sm:$0xff] }
  0xd1   : > { %v2192_v59 = vsel %vm10590_vm3, %v2187_v18, %v2191_v5  ;;  %v2206_v34 = vsel %vm10590_vm3, %v2201_v61, %v13308_v15  ;;  %v2234_v46 = vor.u32 %v13315_v49, %v13314_v1  ;;  %v2237_v48 = vshll.u32 %v1071_v30, 16  ;;  %v13324_v15 = vld [vmem:[#allocation54_spill] sm:$0xff]  ;;  %v7711_v30 = vld [vmem:[%s10510_s21 + $0xe0] sm:$0x1] }
  0xd2   : > { %v11320_v51 = vcombine.low %v2182_v20, %v2192_v59  ;;  %v2216_v33 = vsel %vm10590_vm3, %v2211_v29, %v2215_v31  ;;  %v2225_v24 = vrot.slane %v2224_v8, 4  ;;  %v2248_v37 = vor.u32 %v13317_v17, %v13316_v4  ;;  %v13321_v20 = vld [vmem:[#allocation49_spill] sm:$0xff]  ;;  %v13326_v61 = vld [vmem:[#allocation3_spill] sm:$0xff]  ;;  %v7714_v3 = vld [vmem:[%s10510_s21 + $0xec] sm:$0x1] }
  0xd3   : > { %v11327_v57 = vcombine.low %v2206_v34, %v2216_v33  ;;  %v2235_v21 = vrot.slane %v2234_v46, 4  ;;  %v2239_v35 = vrot.slane %v2237_v48, 5  ;;  %v2258_v22 = vor.u32 %v13319_v42, %v13318_v13  ;;  %8982 = vmatmul.mubr.msk.bf16.gmra.mrb[16].mxu1 %vm1355_vm0, %v13321_v20  ;;  %v13328_v19 = vld [vmem:[#allocation65_spill] sm:$0xff]  ;;  %v13331_v46 = vld [vmem:[#allocation8_spill] sm:$0xff]  ;;  %v13337_v20 = vld [vmem:[#allocation22_spill] sm:$0xff] }
  0xd4   : > { %v2230_v36 = vsel %vm10590_vm3, %v2225_v24, %v13314_v1  ;;  %v2249_v7 = vrot.slane %v2248_v37, 4  ;;  %v2261_v27 = vshll.u32 %v1074_v58, 16  ;;  %v5888_v9 = vor.u32 %v13320_v47, %v10997_v54  ;;  %8985 = vmatprep.mubr.msk.bf16.mxu1 %vm1355_vm0, %v13324_v15  ;;  %9302 = vmatmul.mubr.msk.bf16.gmra.mrb[16].mxu0 %vm1355_vm0, %v13325_v62  ;;  %v13329_v34 = vld [vmem:[#allocation5_spill] sm:$0xff]  ;;  %v13330_v1 = vld [vmem:[#allocation7_spill] sm:$0xff]  ;;  %v7717_v37 = vld [vmem:[%s10510_s21 + $0xf8] sm:$0x1] }
  0xd5   : > { %v2240_v41 = vsel %vm10590_vm3, %v2235_v21, %v2239_v35  ;;  %v2259_v16 = vrot.slane %v2258_v22, 4  ;;  %v5898_v11 = vor.u32 %v13323_v0, %v13322_v53  ;;  %v5901_v18 = vshll.u32 %v1077_v28, 16  ;;  %9305 = vmatprep.mubr.msk.bf16.mxu0 %vm1355_vm0, %v13328_v19  ;;  %v13332_v48 = vld [vmem:[#allocation9_spill] sm:$0xff]  ;;  %v13333_v22 = vld [vmem:[#allocation6_spill] sm:$0xff]  ;;  %v13335_v47 = vld [vmem:[#allocation20_spill] sm:$0xff] }
  0xd6   : > { %v11345_v52 = vcombine.low %v2230_v36, %v2240_v41  ;;  %v2254_v54 = vsel %vm10590_vm3, %v2249_v7, %v13318_v13  ;;  %v2263_v23 = vrot.slane %v2261_v27, 5  ;;  %v5889_v10 = vrot.slane %v5888_v9, 4  ;;  %v7720_v42 = vld [vmem:[%s10510_s21 + $0x104] sm:$0x1] }
  0xd7   : > { %v5899_v32 = vrot.slane %v5898_v11, 4  ;;  %v5903_v5 = vrot.slane %v5901_v18, 5  ;;  %v2600_v29 = vsel %vm10590_vm3, %v13327_v50, %v13326_v61  ;;  %v2607_v31 = vshll.u32 %v7708_v40, 16  ;;  %v13334_v27 = vld [vmem:[#allocation19_spill] sm:$0xff]  ;;  %v13336_v40 = vld [vmem:[#allocation21_spill] sm:$0xff] }
  0xd8   : > { %v2264_v8 = vsel %vm10590_vm3, %v2259_v16, %v2263_v23  ;;  %v5894_v59 = vsel %vm10590_vm3, %v5889_v10, %v13322_v53  ;;  %v2618_v49 = vor.u32 %v13330_v1, %v13329_v34  ;;  %v2628_v58 = vor.u32 %v13332_v48, %v13331_v46  ;;  %v13338_v18 = vld [vmem:[#allocation61_spill] sm:$0xff]  ;;  %v13339_v10 = vld [vmem:[#allocation24_spill] sm:$0xff] }
  0xd9   : > { %v11369_v33 = vcombine.low %v2254_v54, %v2264_v8  ;;  %v5904_v24 = vsel %vm10590_vm3, %v5899_v32, %v5903_v5  ;;  %v2609_v4 = vrot.slane %v2607_v31, 5  ;;  %v2631_v17 = vshll.u32 %v7711_v30, 16  ;;  %v13340_v30 = vld [vmem:[#allocation26_spill] sm:$0xff]  ;;  %v13341_v32 = vld [vmem:[#allocation68_spill] sm:$0xff]  ;;  %v13342_v61 = vld [vmem:[#allocation17_spill] sm:$0xff] }
  0xda   : > { %v11374_v28 = vcombine.low %v5894_v59, %v5904_v24  ;;  %v2619_v21 = vrot.slane %v2618_v49, 4  ;;  %v2629_v35 = vrot.slane %v2628_v58, 4  ;;  %v2655_v13 = vshll.u32 %v7714_v3, 16  ;;  %v13343_v31 = vld [vmem:[#allocation27_spill] sm:$0xff]  ;;  %v13344_v3 = vld [vmem:[#allocation28_spill] sm:$0xff] }
  0xdb   : > { %v2610_v36 = vsel %vm10590_vm3, %v13333_v22, %v2609_v4  ;;  %v2633_v7 = vrot.slane %v2631_v17, 5  ;;  %v2666_v9 = vor.u32 %v13335_v47, %v13334_v27  ;;  %v2676_v41 = vor.u32 %v13337_v20, %v13336_v40  ;;  %8986 = vmatmul.mubr.msk.bf16.gmra.mrb[20].mxu1 %vm1355_vm0, %v13338_v18  ;;  %v7723_v8 = vld [vmem:[%s10510_s21 + $0x110] sm:$0x1]  ;;  %v13346_v34 = vld [vmem:[#allocation16_spill] sm:$0xff] }
  0xdc   : > { %v11384_v16 = vcombine.low %v2600_v29, %v2610_v36  ;;  %v2624_v53 = vsel %vm10590_vm3, %v2619_v21, %v13331_v46  ;;  %v2657_v0 = vrot.slane %v2655_v13, 5  ;;  %v2679_v11 = vshll.u32 %v7717_v37, 16  ;;  %8989 = vmatprep.mubr.msk.bf16.mxu1 %vm1355_vm0, %v13341_v32  ;;  %v13345_v59 = vld [vmem:[#allocation75_spill] sm:$0xff]  ;;  %v13347_v1 = vld [vmem:[#allocation12_spill] sm:$0xff]  ;;  %v13352_v36 = vld [vmem:[#allocation33_spill] sm:$0xff] }
  0xdd   : > { %v2634_v15 = vsel %vm10590_vm3, %v2629_v35, %v2633_v7  ;;  %v2667_v54 = vrot.slane %v2666_v9, 4  ;;  %v2677_v23 = vrot.slane %v2676_v41, 4  ;;  %v2690_v62 = vor.u32 %v13340_v30, %v13339_v10  ;;  %9306 = vmatmul.mubr.msk.bf16.gmra.mrb[20].mxu0 %vm1355_vm0, %v13345_v59  ;;  %v7726_v4 = vld [vmem:[%s10510_s21 + $0x11c] sm:$0x1]  ;;  %v13349_v17 = vld [vmem:[#allocation83_spill] sm:$0xff] }
  0xde   : > { %v11397_v5 = vcombine.low %v2624_v53, %v2634_v15  ;;  %v2658_v50 = vsel %vm10590_vm3, %v13342_v61, %v2657_v0  ;;  %v2681_v29 = vrot.slane %v2679_v11, 5  ;;  %v2700_v19 = vor.u32 %v13344_v3, %v13343_v31  ;;  %9309 = vmatprep.mubr.msk.bf16.mxu0 %vm1355_vm0, %v13349_v17  ;;  %v13350_v35 = vld [vmem:[#allocation31_spill] sm:$0xff]  ;;  %v13351_v13 = vld [vmem:[#allocation32_spill] sm:$0xff]  ;;  %v13353_v7 = vld [vmem:[#allocation34_spill] sm:$0xff] }
  0xdf   : > { %v13348_v49 = vsel %vm10590_vm3, %v13346_v34, %v13347_v1  ;;  %v2672_v48 = vsel %vm10590_vm3, %v2667_v54, %v13336_v40  ;;  %v2691_v58 = vrot.slane %v2690_v62, 4  ;;  %v2703_v24 = vshll.u32 %v7720_v42, 16  ;;  %v7729_v20 = vld [vmem:[%s10510_s21 + $0x128] sm:$0x1]  ;;  %v13356_v15 = vld [vmem:[#allocation39_spill] sm:$0xff] }
  0xe0   : > { %v11412_v46 = vcombine.low %v13348_v49, %v2658_v50  ;;  %v2682_v37 = vsel %vm10590_vm3, %v2677_v23, %v2681_v29  ;;  %v2701_v21 = vrot.slane %v2700_v19, 4  ;;  %v2714_v22 = vor.u32 %v13351_v13, %v13350_v35  ;;  %v13354_v0 = vld [vmem:[#allocation36_spill] sm:$0xff]  ;;  %v13355_v11 = vld [vmem:[#allocation38_spill] sm:$0xff]  ;;  %v13358_v32 = vld [vmem:[#allocation43_spill] sm:$0xff] }
  0xe1   : > { %v2724_v27 = vor.u32 %v13353_v7, %v13352_v36  ;;  %v11426_v47 = vcombine.low %v2672_v48, %v2682_v37  ;;  %v2696_v42 = vsel %vm10590_vm3, %v2691_v58, %v13343_v31  ;;  %v2705_v9 = vrot.slane %v2703_v24, 5  ;;  %v13357_v54 = vld [vmem:[#allocation40_spill] sm:$0xff]  ;;  %v13361_v49 = vld [vmem:[#allocation45_spill] sm:$0xff]  ;;  %v13362_v48 = vld [vmem:[#allocation46_spill] sm:$0xff] }
  0xe2   : > { %v2727_v40 = vshll.u32 %v7723_v8, 16  ;;  %v2715_v41 = vrot.slane %v2714_v22, 4  ;;  %v2738_v18 = vor.u32 %v13355_v11, %v13354_v0  ;;  %v2748_v23 = vor.u32 %v13357_v54, %v13356_v15  ;;  %v13359_v61 = vld [vmem:[#allocation44_spill] sm:$0xff]  ;;  %v13360_v8 = vld [vmem:[#allocation79_spill] sm:$0xff]  ;;  %v13365_v13 = vld [vmem:[#allocation50_spill] sm:$0xff] }
  0xe3   : > { %v2725_v53 = vrot.slane %v2724_v27, 4  ;;  %v2706_v10 = vsel %vm10590_vm3, %v2701_v21, %v2705_v9  ;;  %v2751_v62 = vshll.u32 %v7726_v4, 16  ;;  %v2762_v50 = vor.u32 %v13359_v61, %v13358_v32  ;;  %8990 = vmatmul.mubr.msk.bf16.gmra.mrb[24].mxu1 %vm1355_vm0, %v13360_v8  ;;  %v7732_v24 = vld [vmem:[%s10510_s21 + $0x134] sm:$0x1]  ;;  %v13364_v35 = vld [vmem:[#allocation48_spill] sm:$0xff]  ;;  %v13373_v61 = vld [vmem:[#allocation58_spill] sm:$0xff] }
  0xe4   : > { %v2729_v30 = vrot.slane %v2727_v40, 5  ;;  %v11440_v29 = vcombine.low %v2696_v42, %v2706_v10  ;;  %v2720_v31 = vsel %vm10590_vm3, %v2715_v41, %v13352_v36  ;;  %v2739_v3 = vrot.slane %v2738_v18, 4  ;;  %v13363_v4 = vld [vmem:[#allocation87_spill] sm:$0xff]  ;;  %v13366_v7 = vld [vmem:[#allocation96_spill] sm:$0xff]  ;;  %v13369_v0 = vld [vmem:[#allocation105_spill] sm:$0xff] }
  0xe5   : > { %v2749_v19 = vrot.slane %v2748_v23, 4  ;;  %v2753_v34 = vrot.slane %v2751_v62, 5  ;;  %v2763_v1 = vrot.slane %v2762_v50, 4  ;;  %v2772_v58 = vor.u32 %v13362_v48, %v13361_v49  ;;  %8993 = vmatprep.mubr.msk.bf16.mxu1 %vm1355_vm0, %v13363_v4  ;;  %v7735_v36 = vld [vmem:[%s10510_s21 + $0x140] sm:$0x1]  ;;  %9310 = vmatmul.mubr.msk.bf16.gmra.mrb[24].mxu0 %vm1355_vm0, %v13366_v7  ;;  %v13368_v41 = vld [vmem:[#allocation52_spill] sm:$0xff] }
  0xe6   : > { %v2730_v59 = vsel %vm10590_vm3, %v2725_v53, %v2729_v30  ;;  %v2744_v37 = vsel %vm10590_vm3, %v2739_v3, %v13356_v15  ;;  %v2775_v21 = vshll.u32 %v7729_v20, 16  ;;  %v2786_v22 = vor.u32 %v13365_v13, %v13364_v35  ;;  %v13367_v40 = vld [vmem:[#allocation51_spill] sm:$0xff]  ;;  %v7738_v20 = vld [vmem:[%s10510_s21 + $0x14c] sm:$0x1]  ;;  %9313 = vmatprep.mubr.msk.bf16.mxu0 %vm1355_vm0, %v13369_v0  ;;  %v13372_v32 = vld [vmem:[#allocation57_spill] sm:$0xff] }
  0xe7   : > { %v11454_v17 = vcombine.low %v2720_v31, %v2730_v59  ;;  %v2754_v27 = vsel %vm10590_vm3, %v2749_v19, %v2753_v34  ;;  %v2768_v42 = vsel %vm10590_vm3, %v2763_v1, %v13361_v49  ;;  %v2773_v9 = vrot.slane %v2772_v58, 4  ;;  %v13370_v10 = vld [vmem:[#allocation55_spill] sm:$0xff]  ;;  %v13371_v30 = vld [vmem:[#allocation56_spill] sm:$0xff]  ;;  %v13375_v34 = vld [vmem:[#allocation62_spill] sm:$0xff] }
  0xe8   : > { %v2796_v53 = vor.u32 %v13368_v41, %v13367_v40  ;;  %v11474_v11 = vcombine.low %v2744_v37, %v2754_v27  ;;  %v2777_v18 = vrot.slane %v2775_v21, 5  ;;  %v2787_v15 = vrot.slane %v2786_v22, 4  ;;  %v13374_v59 = vld [vmem:[#allocation60_spill] sm:$0xff]  ;;  %v7744_v37 = vld [vmem:[%s10510_s21 + $0x164] sm:$0x1] }
  0xe9   : > { %v2799_v54 = vshll.u32 %v7732_v24, 16  ;;  %v2810_v62 = vor.u32 %v13371_v30, %v13370_v10  ;;  %v2820_v50 = vor.u32 %v13373_v61, %v13372_v32  ;;  %v2823_v31 = vshll.u32 %v7735_v36, 16  ;;  %v7741_v49 = vld [vmem:[%s10510_s21 + $0x158] sm:$0x1]  ;;  %v13376_v13 = vld [vmem:[#allocation63_spill] sm:$0xff]  ;;  %v13379_v41 = vld [vmem:[#allocation69_spill] sm:$0xff] }
  0xea   : > { %v2797_v23 = vrot.slane %v2796_v53, 4  ;;  %v2778_v3 = vsel %vm10590_vm3, %v2773_v9, %v2777_v18  ;;  %v2792_v19 = vsel %vm10590_vm3, %v2787_v15, %v13367_v40  ;;  %v2834_v1 = vor.u32 %v13375_v34, %v13374_v59  ;;  %v13377_v22 = vld [vmem:[#allocation64_spill] sm:$0xff]  ;;  %v13380_v53 = vld [vmem:[#allocation70_spill] sm:$0xff]  ;;  %v13382_v10 = vld [vmem:[#allocation115_spill] sm:$0xff] }
  0xeb   : > { %v2801_v8 = vrot.slane %v2799_v54, 5  ;;  %v11488_v48 = vcombine.low %v2768_v42, %v2778_v3  ;;  %v2811_v58 = vrot.slane %v2810_v62, 4  ;;  %v2821_v24 = vrot.slane %v2820_v50, 4  ;;  %v13378_v27 = vld [vmem:[#allocation100_spill] sm:$0xff]  ;;  %v13388_v59 = vld [vmem:[#allocation81_spill] sm:$0xff]  ;;  %v13389_v34 = vld [vmem:[#allocation82_spill] sm:$0xff] }
  0xec   : > { %v2825_v4 = vrot.slane %v2823_v31, 5  ;;  %v2835_v35 = vrot.slane %v2834_v1, 4  ;;  %v2844_v36 = vor.u32 %v13377_v22, %v13376_v13  ;;  %v2847_v7 = vshll.u32 %v7738_v20, 16  ;;  %8994 = vmatmul.mubr.msk.bf16.gmra.mrb[28].mxu1 %vm1355_vm0, %v13378_v27  ;;  %v13385_v61 = vld [vmem:[#allocation72_spill] sm:$0xff] }
  0xed   : > { %v2802_v21 = vsel %vm10590_vm3, %v2797_v23, %v2801_v8  ;;  %v2816_v42 = vsel %vm10590_vm3, %v2811_v58, %v13372_v32  ;;  %v2858_v0 = vor.u32 %v13380_v53, %v13379_v41  ;;  %9005 = vmatprep.mubr.msk.bf16.mxu1 %vm1355_vm0, %v11132_v26  ;;  %v13381_v23 = vld [vmem:[#allocation114_spill] sm:$0xff]  ;;  %v13384_v32 = vld [vmem:[#allocation71_spill] sm:$0xff]  ;;  %v2871_v31 = vshll.u32 %v7741_v49, 16  ;;  %v13387_v3 = vld [vmem:[#allocation80_spill] sm:$0xff] }
  0xee   : > { %v11497_v9 = vcombine.low %v2792_v19, %v2802_v21  ;;  %v2826_v40 = vsel %vm10590_vm3, %v2821_v24, %v2825_v4  ;;  %v2840_v18 = vsel %vm10590_vm3, %v2835_v35, %v13376_v13  ;;  %v2845_v15 = vrot.slane %v2844_v36, 4  ;;  %v13386_v26 = vld [vmem:[#allocation78_spill] sm:$0xff]  ;;  %v7747_v24 = vld [vmem:[%s10510_s21 + $0x170] sm:$0x1]  ;;  %v13390_v4 = vld [vmem:[#allocation88_spill] sm:$0xff] }
  0xef   : > { %v11508_v20 = vcombine.low %v2816_v42, %v2826_v40  ;;  %v2849_v54 = vrot.slane %v2847_v7, 5  ;;  %v13383_v30 = vcombine.low %v13381_v23, %v13382_v10  ;;  %v2859_v62 = vrot.slane %v2858_v0, 4  ;;  %v13391_v21 = vld [vmem:[#allocation89_spill] sm:$0xff]  ;;  %v7750_v7 = vld [vmem:[%s10510_s21 + $0x17c] sm:$0x1] }
  0xf0   : > { %v2868_v50 = vor.u32 %v13385_v61, %v13384_v32  ;;  %v2882_v19 = vor.u32 %v13387_v3, %v13386_v26  ;;  %v2892_v1 = vor.u32 %v13389_v34, %v13388_v59  ;;  %v2895_v58 = vshll.u32 %v7744_v37, 16  ;;  %v10124_v37 = vld [vmem:[%s13064_s1 + $0x68] sm:$0xff]   ;;  %v13392_v0 = vld [vmem:[#allocation90_spill] sm:$0xff]  ;;  %v13394_v23 = vld [vmem:[#allocation97_spill] sm:$0xff] }
  0xf1   : > { %9314 = vmatmul.mubr.msk.bf16.gmra.mrb[28].mxu0 %vm1355_vm0, %v13383_v30  ;;  %v2850_v8 = vsel %vm10590_vm3, %v2845_v15, %v2849_v54  ;;  %v2906_v35 = vor.u32 %v13391_v21, %v13390_v4  ;;  %v2864_v49 = vsel %vm10590_vm3, %v2859_v62, %v13384_v32  ;;  %v2873_v36 = vrot.slane %v2871_v31, 5  ;;  %v13395_v10 = vld [vmem:[#allocation98_spill] sm:$0xff]  ;;  %v10125_v26 = vld [vmem:[%s13064_s1 + $0x168] sm:$0xff]   ;;  %v7756_v34 = vld [vmem:[%s10510_s21 + $0x194] sm:$0x1] }
  0xf2   : > { %9325 = vmatprep.mubr.msk.bf16.mxu0 %vm1355_vm0, %v11145_v63  ;;  %v11530_v13 = vcombine.low %v2840_v18, %v2850_v8  ;;  %v2869_v22 = vrot.slane %v2868_v50, 4  ;;  %v2883_v27 = vrot.slane %v2882_v19, 4  ;;  %v2893_v42 = vrot.slane %v2892_v1, 4  ;;  %v13393_v18 = vld [vmem:[#allocation91_spill] sm:$0xff]  ;;  %v7753_v31 = vld [vmem:[%s10510_s21 + $0x188] sm:$0x1] }
  0xf3   : > { %v2897_v40 = vrot.slane %v2895_v58, 5  ;;  %v2907_v41 = vrot.slane %v2906_v35, 4  ;;  %v2916_v15 = vor.u32 %v13393_v18, %v13392_v0  ;;  %v2919_v54 = vshll.u32 %v7747_v24, 16  ;;  %v13396_v1 = vld [vmem:[#allocation99_spill] sm:$0xff]  ;;  %v13397_v58 = vld [vmem:[#allocation101_spill] sm:$0xff]  ;;  %v13399_v21 = vld [vmem:[#allocation108_spill] sm:$0xff] }
  0xf4   : > { %v2874_v53 = vsel %vm10590_vm3, %v2869_v22, %v2873_v36  ;;  %v2930_v30 = vor.u32 %v13395_v10, %v13394_v23  ;;  %v2888_v32 = vsel %vm10590_vm3, %v2883_v27, %v13388_v59  ;;  %9006 = vmatmul.mubr.msk.bf16.vlgmr.msra.gmra.mrb[0].mxu1 %vm1355_vm0, %v11145_v63  ;;  %v2940_v24 = vor.u32 %v13397_v58, %v13396_v1  ;;  %v13398_v63 = vld [vmem:[#allocation107_spill] sm:$0xff]  ;;  %v13401_v22 = vld [vmem:[#allocation110_spill] sm:$0xff] }
  0xf5   : > { %v11545_v62 = vcombine.low %v2864_v49, %v2874_v53  ;;  %v2898_v61 = vsel %vm10590_vm3, %v2893_v42, %v2897_v40  ;;  %v2912_v50 = vsel %vm10590_vm3, %v2907_v41, %v13392_v0  ;;  %v2917_v19 = vrot.slane %v2916_v15, 4  ;;  %9038 = vmatpush3.bf16.msra.mxu1 %v11121_v14  ;;  %9009 = vmatprep.mubr.msk.bf16.mxu1 %vm1355_vm0, %v11167_v39  ;;  %v13400_v49 = vld [vmem:[#allocation109_spill] sm:$0xff]  ;;  %v13402_v40 = vld [vmem:[#allocation116_spill] sm:$0xff] }
  0xf6   : > { %v11561_v3 = vcombine.low %v2888_v32, %v2898_v61  ;;  %v2921_v8 = vrot.slane %v2919_v54, 5  ;;  %v2931_v59 = vrot.slane %v2930_v30, 4  ;;  %v2943_v4 = vshll.u32 %v7750_v7, 16  ;;  %9039 = vmatprep.subr.bf16.mxu1 %v10124_v37  ;;  %v10126_v14 = vld [vmem:[%s13064_s1 + $0x70] sm:$0xff]   ;;  %v13404_v32 = vld [vmem:[#allocation118_spill] sm:$0xff]  ;;  %v13405_v61 = vld [vmem:[#allocation119_spill] sm:$0xff] }
  0xf7   : > { %v2954_v35 = vor.u32 %v13399_v21, %v13398_v63  ;;  %v2964_v36 = vor.u32 %v13401_v22, %v13400_v49  ;;  %v2967_v42 = vshll.u32 %v7753_v31, 16  ;;  %v13403_v41 = vld [vmem:[#allocation117_spill] sm:$0xff]  ;;  %v2941_v0 = vrot.slane %v2940_v24, 4  ;;  %v10131_v21 = vld [vmem:[%s13064_s1 + $0x180] sm:$0xff]  }
  0xf8   : > { %v2922_v27 = vsel %vm10590_vm3, %v2917_v19, %v2921_v8  ;;  %v2936_v7 = vsel %vm10590_vm3, %v2931_v59, %v13396_v1  ;;  %v6144_v53 = vor.u32 %v13403_v41, %v13402_v40  ;;  %v2945_v18 = vrot.slane %v2943_v4, 5  ;;  %v10127_v54 = vld [vmem:[%s13064_s1 + $0x170] sm:$0xff]   ;;  %v10128_v8 = vld [vmem:[%s13064_s1 + $0x78] sm:$0xff]  }
  0xf9   : > { %9326 = vmatmul.mubr.msk.bf16.vlgmr.msra.gmra.mrb[0].mxu0 %vm1355_vm0, %v11167_v39  ;;  %v11588_v39 = vcombine.low %v2912_v50, %v2922_v27  ;;  %v2955_v15 = vrot.slane %v2954_v35, 4  ;;  %v2965_v23 = vrot.slane %v2964_v36, 4  ;;  %v2969_v10 = vrot.slane %v2967_v42, 5  ;;  %9040 = vmatpush3.bf16.msra.mxu1 %v10124_v37  ;;  %v7766_v35 = vld [vmem:[%s10510_s21 + $0x1bc] sm:$0xf] }
  0xfa   : > { %9358 = vmatpush3.bf16.msra.mxu0 %v11172_v38  ;;  %9329 = vmatprep.mubr.msk.bf16.mxu0 %vm1355_vm0, %v11188_v55  ;;  %v6145_v30 = vrot.slane %v6144_v53, 4  ;;  %v6154_v31 = vor.u32 %v13405_v61, %v13404_v32  ;;  %v2946_v38 = vsel %vm10590_vm3, %v2941_v0, %v2945_v18  ;;  %v6157_v19 = vshll.u32 %v7756_v34, 16  ;;  %v10129_v34 = vld [vmem:[%s13064_s1 + $0x178] sm:$0xff]   ;;  %v7767_v27 = vld [vmem:[%s10510_s21 + $0x1c0] sm:$0xf] }
  0xfb   : > { %9359 = vmatprep.subr.bf16.mxu0 %v10125_v26  ;;  %v2960_v50 = vsel %vm10590_vm3, %v2955_v15, %v13400_v49  ;;  %9041 = vmatprep.subr.bf16.mxu1 %v10126_v14  ;;  %v11603_v59 = vcombine.low %v2936_v7, %v2946_v38  ;;  %v2970_v1 = vsel %vm10590_vm3, %v2965_v23, %v2969_v10 }
  0xfc   : > { %v6150_v37 = vsel %vm10590_vm3, %v6145_v30, %v13404_v32  ;;  %v6155_v58 = vrot.slane %v6154_v31, 4  ;;  %v11610_v24 = vcombine.low %v2960_v50, %v2970_v1  ;;  %v6159_v4 = vrot.slane %v6157_v19, 5  ;;  %9010 = vmatmul.mubr.msk.bf16.gmra.mrb[4].mxu1 %vm1355_vm0, %v11188_v55  ;;  %v10130_v55 = vld [vmem:[%s13064_s1 + $0x80] sm:$0xff]   ;;  %v7769_v30 = vld [vmem:[%s10510_s21 + $0x1c8] sm:$0xf] }
  0xfd   : > { %9013 = vmatprep.mubr.msk.bf16.mxu1 %vm1355_vm0, %v11197_v60  ;;  %9042 = vmatpush3.bf16.msra.mxu1 %v10126_v14  ;;  %v7770_v32 = vld [vmem:[%s10510_s21 + $0x1cc] sm:$0xf]  ;;  %v4074_v50 = vshrl.u32 %v7766_v35, 16  ;;  %v7772_v19 = vld [vmem:[%s10510_s21 + $0x1d4] sm:$0xf]  ;;  %v4077_v1 = vshll.u32 %v7766_v35, 16 }
  0xfe   : > { %9360 = vmatpush3.bf16.msra.mxu0 %v10125_v26  ;;  %v6160_v63 = vsel %vm10590_vm3, %v6155_v58, %v6159_v4  ;;  %9043 = vmatprep.subr.bf16.mxu1 %v10128_v8  ;;  %v4087_v58 = vshrl.u32 %v7767_v27, 16  ;;  %v7773_v4 = vld [vmem:[%s10510_s21 + $0x1d8] sm:$0xf] }
  0xff   : > { %9361 = vmatprep.subr.bf16.mxu0 %v10127_v54  ;;  %v11626_v26 = vcombine.low %v6150_v37, %v6160_v63  ;;  %v4083_v37 = vshll.u32 %v7767_v27, 16  ;;  %v4107_v63 = vshll.u32 %v7770_v32, 16 }
 0x101   : > { %9330 = vmatmul.mubr.msk.bf16.gmra.mrb[4].mxu0 %vm1355_vm0, %v11197_v60  ;;  %9044 = vmatpush3.bf16.msra.mxu1 %v10128_v8  ;;  %v10132_v60 = vld [vmem:[%s13064_s1 + $0x88] sm:$0xff]  }
 0x102   : > { %9333 = vmatprep.mubr.msk.bf16.mxu0 %vm1355_vm0, %v11217_v43  ;;  %9362 = vmatpush3.bf16.msra.mxu0 %v10127_v54 }
 0x103   : > { %9363 = vmatprep.subr.bf16.mxu0 %v10129_v34  ;;  %9077 = vmatprep.subr.bf16.mxu1 %v10130_v55 }
 0x104   : > { %9014 = vmatmul.mubr.msk.bf16.gmra.mrb[8].mxu1 %vm1355_vm0, %v11217_v43  ;;  %v10133_v43 = vld [vmem:[%s13064_s1 + $0x188] sm:$0xff]  }
 0x105   : > { %9017 = vmatprep.mubr.msk.bf16.mxu1 %vm1355_vm0, %v11246_v6 }
 0x106   : > { %9364 = vmatpush3.bf16.msra.mxu0 %v10129_v34  ;;  %v4101_v34 = vshll.u32 %v7769_v30, 16 }
 0x107   : > { %9397 = vmatprep.subr.bf16.mxu0 %v10131_v21 }
 0x109   : > { %9334 = vmatmul.mubr.msk.bf16.gmra.mrb[8].mxu0 %vm1355_vm0, %v11246_v6  ;;  %v10134_v6 = vld [vmem:[%s13064_s1 + $0x90] sm:$0xff]  }
 0x10a   : > { %9337 = vmatprep.mubr.msk.bf16.mxu0 %vm1355_vm0, %v11254_v2 }
 0x10c   : > { %9018 = vmatmul.mubr.msk.bf16.gmra.mrb[12].mxu1 %vm1355_vm0, %v11254_v2  ;;  %v10135_v2 = vld [vmem:[%s13064_s1 + $0x190] sm:$0xff]  }
 0x10d   : > { %9021 = vmatprep.mubr.msk.bf16.mxu1 %vm1355_vm0, %v11271_v44 }
 0x111   : > { %9338 = vmatmul.mubr.msk.bf16.gmra.mrb[12].mxu0 %vm1355_vm0, %v11271_v44  ;;  %v10136_v44 = vld [vmem:[%s13064_s1 + $0x98] sm:$0xff]  }
 0x112   : > { %9341 = vmatprep.mubr.msk.bf16.mxu0 %vm1355_vm0, %v11279_v12 }
 0x114   : > { %9022 = vmatmul.mubr.msk.bf16.gmra.mrb[16].mxu1 %vm1355_vm0, %v11279_v12  ;;  %v10137_v12 = vld [vmem:[%s13064_s1 + $0x198] sm:$0xff]  }
 0x115   : > { %9025 = vmatprep.mubr.msk.bf16.mxu1 %vm1355_vm0, %v11302_v45 }
 0x119   : > { %9342 = vmatmul.mubr.msk.bf16.gmra.mrb[16].mxu0 %vm1355_vm0, %v11302_v45  ;;  %v11716_v45 = vld [vmem:[%s13064_s1 + $0xa0] sm:$0xff]  }
 0x11a   : > { %9345 = vmatprep.mubr.msk.bf16.mxu0 %vm1355_vm0, %v11308_v25 }
 0x11c   : > { %9026 = vmatmul.mubr.msk.bf16.gmra.mrb[20].mxu1 %vm1355_vm0, %v11308_v25  ;;  %v11723_v25 = vld [vmem:[%s13064_s1 + $0x1a0] sm:$0xff]  }
 0x11d   : > { %9029 = vmatprep.mubr.msk.bf16.mxu1 %vm1355_vm0, %v11320_v51 }
 0x121   : > { %9346 = vmatmul.mubr.msk.bf16.gmra.mrb[20].mxu0 %vm1355_vm0, %v11320_v51  ;;  %v11742_v51 = vld [vmem:[%s10510_s21 + $0x198] sm:$0xf] }
 0x122   : > { %9349 = vmatprep.mubr.msk.bf16.mxu0 %vm1355_vm0, %v11327_v57 }
 0x124   : > { %9030 = vmatmul.mubr.msk.bf16.gmra.mrb[24].mxu1 %vm1355_vm0, %v11327_v57  ;;  %v11745_v57 = vld [vmem:[%s10510_s21 + $0x19c] sm:$0xf] }
 0x125   : > { %9033 = vmatprep.mubr.msk.bf16.mxu1 %vm1355_vm0, %v11345_v52 }
 0x129   : > { %9350 = vmatmul.mubr.msk.bf16.gmra.mrb[24].mxu0 %vm1355_vm0, %v11345_v52  ;;  %v4002_v52 = vshrl.u32 %v11742_v51, 16 }
 0x12a   : > { %9353 = vmatprep.mubr.msk.bf16.mxu0 %vm1355_vm0, %v11369_v33 }
 0x12b   : > { %v11761_v7 = vrot.slane %v4002_v52, 4 }
 0x12c   : > { %9034 = vmatmul.mubr.msk.bf16.gmra.mrb[28].mxu1 %vm1355_vm0, %v11369_v33  ;;  %v4005_v33 = vshll.u32 %v11742_v51, 16 }
 0x12d   : > { %9045 = vmatprep.mubr.msk.bf16.mxu1 %vm1355_vm0, %v11384_v16  ;;  %v7761_v16 = vld [vmem:[%s10510_s21 + $0x1a8] sm:$0xf] }
 0x12e   : > { %v11763_v42 = vrot.slane %v4005_v33, 5 }
 0x131   : > { %9354 = vmatmul.mubr.msk.bf16.gmra.mrb[28].mxu0 %vm1355_vm0, %v11374_v28  ;;  %v7760_v28 = vld [vmem:[%s10510_s21 + $0x1a4] sm:$0xf] }
 0x132   : > { %9365 = vmatprep.mubr.msk.bf16.mxu0 %vm1355_vm0, %v11397_v5  ;;  %v11765_v40 = vcombine.low %v7760_v28, %v7761_v16 }
 0x134   : > { %9046 = vmatmul.mubr.msk.bf16.vlgmr.msra.gmra.mrb[0].mxu1 %vm1355_vm0, %v11397_v5  ;;  %v4011_v5 = vshll.u32 %v11745_v57, 16 }
 0x135   : > { %9078 = vmatpush3.bf16.msra.mxu1 %v10130_v55  ;;  %9049 = vmatprep.mubr.msk.bf16.mxu1 %vm1355_vm0, %v11412_v46  ;;  %v4111_v55 = vshrl.u32 %v7770_v32, 16 }
 0x136   : > { %9079 = vmatprep.subr.bf16.mxu1 %v10132_v60  ;;  %v11769_v53 = vrot.slane %v4011_v5, 5  ;;  %v11809_v5 = vrot.slane %v4083_v37, 5 }
 0x139   : > { %9366 = vmatmul.mubr.msk.bf16.vlgmr.msra.gmra.mrb[0].mxu0 %vm1355_vm0, %v11412_v46  ;;  %9080 = vmatpush3.bf16.msra.mxu1 %v10132_v60  ;;  %v4015_v46 = vshrl.u32 %v11745_v57, 16  ;;  %v4122_v60 = vshrl.u32 %v7772_v19, 16 }
 0x13a   : > { %9398 = vmatpush3.bf16.msra.mxu0 %v10131_v21  ;;  %9369 = vmatprep.mubr.msk.bf16.mxu0 %vm1355_vm0, %v11426_v47  ;;  %v7775_v21 = vld [vmem:[%s10510_s21 + $0x1e0] sm:$0xf] }
 0x13b   : > { %9399 = vmatprep.subr.bf16.mxu0 %v10133_v43  ;;  %9081 = vmatprep.subr.bf16.mxu1 %v10134_v6  ;;  %v11771_v0 = vrot.slane %v4015_v46, 4  ;;  %v4146_v52 = vshrl.u32 %v7775_v21, 16  ;;  %v4149_v33 = vshll.u32 %v7775_v21, 16  ;;  %v11811_v46 = vrot.slane %v4087_v58, 4 }
 0x13c   : > { %9050 = vmatmul.mubr.msk.bf16.gmra.mrb[4].mxu1 %vm1355_vm0, %v11426_v47  ;;  %v4026_v47 = vshrl.u32 %v7760_v28, 16 }
 0x13d   : > { %9053 = vmatprep.mubr.msk.bf16.mxu1 %vm1355_vm0, %v11440_v29  ;;  %9082 = vmatpush3.bf16.msra.mxu1 %v10134_v6  ;;  %v4131_v6 = vshll.u32 %v7773_v4, 16 }
 0x13e   : > { %9400 = vmatpush3.bf16.msra.mxu0 %v10133_v43  ;;  %9083 = vmatprep.subr.bf16.mxu1 %v10136_v44  ;;  %v11773_v18 = vrot.slane %v4026_v47, 4  ;;  %v4125_v43 = vshll.u32 %v7772_v19, 16  ;;  %v11813_v47 = vcombine.low %v7769_v30, %v7770_v32  ;;  %v7779_v32 = vld [vmem:[%s10510_s21 + $0x1f0] sm:$0xf] }
 0x13f   : > { %9401 = vmatprep.subr.bf16.mxu0 %v10135_v2  ;;  %v4179_v37 = vshll.u32 %v7779_v32, 16  ;;  %v4183_v58 = vshrl.u32 %v7779_v32, 16 }
 0x141   : > { %9370 = vmatmul.mubr.msk.bf16.gmra.mrb[4].mxu0 %vm1355_vm0, %v11440_v29  ;;  %9084 = vmatpush3.bf16.msra.mxu1 %v10136_v44  ;;  %v4029_v29 = vshll.u32 %v7760_v28, 16  ;;  %v7776_v44 = vld [vmem:[%s10510_s21 + $0x1e4] sm:$0xf] }
 0x142   : > { %9373 = vmatprep.mubr.msk.bf16.mxu0 %vm1355_vm0, %v11454_v17  ;;  %9402 = vmatpush3.bf16.msra.mxu0 %v10135_v2  ;;  %v4135_v2 = vshrl.u32 %v7773_v4, 16  ;;  %v4155_v28 = vshll.u32 %v7776_v44, 16 }
 0x143   : > { %9403 = vmatprep.subr.bf16.mxu0 %v10137_v12  ;;  %9117 = vmatprep.subr.bf16.mxu1 %v11716_v45  ;;  %v11775_v15 = vrot.slane %v4029_v29, 5 }
 0x144   : > { %9054 = vmatmul.mubr.msk.bf16.gmra.mrb[8].mxu1 %vm1355_vm0, %v11454_v17  ;;  %v7763_v17 = vld [vmem:[%s10510_s21 + $0x1b0] sm:$0xf] }
 0x145   : > { %9057 = vmatprep.mubr.msk.bf16.mxu1 %vm1355_vm0, %v11474_v11  ;;  %v4050_v22 = vshrl.u32 %v7763_v17, 16  ;;  %v4053_v36 = vshll.u32 %v7763_v17, 16 }
 0x146   : > { %9404 = vmatpush3.bf16.msra.mxu0 %v10137_v12  ;;  %v11805_v12 = vrot.slane %v4074_v50, 4 }
 0x147   : > { %9437 = vmatprep.subr.bf16.mxu0 %v11723_v25  ;;  %v11791_v61 = vrot.slane %v4050_v22, 4  ;;  %v11793_v31 = vrot.slane %v4053_v36, 5  ;;  %v11831_v22 = vrot.slane %v4131_v6, 5  ;;  %v7778_v36 = vld [vmem:[%s10510_s21 + $0x1ec] sm:$0xf] }
 0x148   : > { %v4170_v50 = vshrl.u32 %v7778_v36, 16  ;;  %v11854_v6 = vcombine.low %v7778_v36, %v7779_v32 }
 0x149   : > { %9374 = vmatmul.mubr.msk.bf16.gmra.mrb[8].mxu0 %vm1355_vm0, %v11474_v11  ;;  %v4035_v11 = vshll.u32 %v7761_v16, 16 }
 0x14a   : > { %9377 = vmatprep.mubr.msk.bf16.mxu0 %vm1355_vm0, %v11488_v48  ;;  %13410 = vst [vmem:[#allocation13_spill] sm:$0xff] %v11854_v6 }
 0x14b   : > { %v11779_v54 = vrot.slane %v4035_v11, 5  ;;  %v11821_v11 = vrot.slane %v4107_v63, 5  ;;  %v7782_v63 = vld [vmem:[%s10510_s21 + $0x1fc] sm:$0xf] }
 0x14c   : > { %9058 = vmatmul.mubr.msk.bf16.gmra.mrb[12].mxu1 %vm1355_vm0, %v11488_v48  ;;  %v4039_v48 = vshrl.u32 %v7761_v16, 16  ;;  %v11807_v16 = vrot.slane %v4077_v1, 5  ;;  %v4173_v1 = vshll.u32 %v7778_v36, 16  ;;  %v11868_v36 = vrot.slane %v4179_v37, 5 }
 0x14d   : > { %9061 = vmatprep.mubr.msk.bf16.mxu1 %vm1355_vm0, %v11497_v9 }
 0x14e   : > { %v11781_v23 = vrot.slane %v4039_v48, 4  ;;  %v11823_v48 = vrot.slane %v4111_v55, 4  ;;  %13413 = vst [vmem:[#allocation23_spill] sm:$0xff] %v11868_v36 }
 0x151   : > { %9378 = vmatmul.mubr.msk.bf16.gmra.mrb[12].mxu0 %vm1355_vm0, %v11497_v9  ;;  %v7764_v9 = vld [vmem:[%s10510_s21 + $0x1b4] sm:$0xf] }
 0x152   : > { %9381 = vmatprep.mubr.msk.bf16.mxu0 %vm1355_vm0, %v11508_v20  ;;  %v4059_v14 = vshll.u32 %v7764_v9, 16  ;;  %v4063_v41 = vshrl.u32 %v7764_v9, 16  ;;  %v11783_v10 = vcombine.low %v7763_v17, %v7764_v9  ;;  %v11819_v17 = vrot.slane %v4101_v34, 5 }
 0x153   : > { %v11827_v9 = vrot.slane %v4122_v60, 4  ;;  %v11850_v34 = vcombine.low %v7775_v21, %v7776_v44  ;;  %v11862_v21 = vrot.slane %v4173_v1, 5 }
 0x154   : > { %9062 = vmatmul.mubr.msk.bf16.gmra.mrb[16].mxu1 %vm1355_vm0, %v11508_v20  ;;  %v11785_v20 = vcombine.low %v7766_v35, %v7767_v27  ;;  %v11795_v38 = vrot.slane %v4059_v14, 5  ;;  %v11800_v8 = vrot.slane %v4063_v41, 4  ;;  %v11829_v35 = vrot.slane %v4125_v43, 5  ;;  %v7784_v43 = vld [vmem:[%s10510_s21 + $0x204] sm:$0xf] }
 0x155   : > { %9065 = vmatprep.mubr.msk.bf16.mxu1 %vm1355_vm0, %v11530_v13  ;;  %v11838_v14 = vrot.slane %v4146_v52, 4  ;;  %v11840_v27 = vrot.slane %v4149_v33, 5  ;;  %v11842_v41 = vrot.slane %v4155_v28, 5  ;;  %13409 = vst [vmem:[#allocation74_spill] sm:$0xff] %v11850_v34  ;;  %v4207_v52 = vshrl.u32 %v7782_v63, 16  ;;  %13411 = vst [vmem:[#allocation18_spill] sm:$0xff] %v11862_v21 }
 0x156   : > { %v7785_v33 = vld [vmem:[%s10510_s21 + $0x208] sm:$0xf]  ;;  %v4218_v28 = vshrl.u32 %v7784_v43, 16 }
 0x157   : > { %13406 = vst [vmem:[#allocation66_spill] sm:$0xff] %v11838_v14  ;;  %13407 = vst [vmem:[#allocation67_spill] sm:$0xff] %v11840_v27  ;;  %v4227_v27 = vshll.u32 %v7785_v33, 16  ;;  %v4231_v14 = vshrl.u32 %v7785_v33, 16  ;;  %v11880_v1 = vrot.slane %v4207_v52, 4 }
 0x158   : > { %13408 = vst [vmem:[#allocation73_spill] sm:$0xff] %v11842_v41  ;;  %v4221_v41 = vshll.u32 %v7784_v43, 16 }
 0x159   : > { %9382 = vmatmul.mubr.msk.bf16.gmra.mrb[16].mxu0 %vm1355_vm0, %v11530_v13  ;;  %v4098_v13 = vshrl.u32 %v7769_v30, 16  ;;  %v4159_v30 = vshrl.u32 %v7776_v44, 16  ;;  %13418 = vst [vmem:[#allocation25_spill] sm:$0xff] %v11880_v1  ;;  %v11899_v1 = vcombine.low %v7784_v43, %v7785_v33 }
 0x15a   : > { %9385 = vmatprep.mubr.msk.bf16.mxu0 %vm1355_vm0, %v11545_v62  ;;  %v11887_v37 = vrot.slane %v4221_v41, 5 }
 0x15b   : > { %v11817_v29 = vrot.slane %v4098_v13, 4  ;;  %v7781_v13 = vld [vmem:[%s10510_s21 + $0x1f8] sm:$0xf]  ;;  %v11857_v49 = vrot.slane %v4159_v30, 4  ;;  %v11870_v30 = vrot.slane %v4183_v58, 4  ;;  %v11889_v58 = vrot.slane %v4227_v27, 5 }
 0x15c   : > { %9066 = vmatmul.mubr.msk.bf16.gmra.mrb[20].mxu1 %vm1355_vm0, %v11545_v62  ;;  %v11833_v62 = vrot.slane %v4135_v2, 4  ;;  %v4194_v55 = vshrl.u32 %v7781_v13, 16  ;;  %v4197_v60 = vshll.u32 %v7781_v13, 16  ;;  %v4203_v2 = vshll.u32 %v7782_v63, 16  ;;  %13420 = vst [vmem:[#allocation35_spill] sm:$0xff] %v11887_v37 }
 0x15d   : > { %9069 = vmatprep.mubr.msk.bf16.mxu1 %vm1355_vm0, %v11561_v3  ;;  %v11864_v44 = vcombine.low %v7781_v13, %v7782_v63  ;;  %13414 = vst [vmem:[#allocation29_spill] sm:$0xff] %v11870_v30  ;;  %v11882_v13 = vrot.slane %v4218_v28, 4  ;;  %13421 = vst [vmem:[#allocation41_spill] sm:$0xff] %v11889_v58 }
 0x15e   : > { %v11872_v32 = vrot.slane %v4194_v55, 4  ;;  %v11874_v6 = vrot.slane %v4197_v60, 5  ;;  %v11891_v55 = vrot.slane %v4231_v14, 4  ;;  %v7793_v14 = vld [vmem:[%s10510_s21 + $0x228] sm:$0xf] }
 0x15f   : > { %13412 = vst [vmem:[#allocation10_spill] sm:$0xff] %v11864_v44  ;;  %13419 = vst [vmem:[#allocation30_spill] sm:$0xff] %v11882_v13  ;;  %v7791_v13 = vld [vmem:[%s10510_s21 + $0x220] sm:$0xf] }
 0x160   : > { %13415 = vst [vmem:[#allocation15_spill] sm:$0xff] %v11872_v32  ;;  %13416 = vst [vmem:[#allocation14_spill] sm:$0xff] %v11874_v6  ;;  %v4275_v27 = vshll.u32 %v7791_v13, 16  ;;  %v4279_v58 = vshrl.u32 %v7791_v13, 16  ;;  %v4293_v6 = vshll.u32 %v7793_v14, 16 }
 0x161   : > { %9386 = vmatmul.mubr.msk.bf16.gmra.mrb[20].mxu0 %vm1355_vm0, %v11561_v3  ;;  %v11848_v3 = vcombine.low %v7772_v19, %v7773_v4  ;;  %v7787_v19 = vld [vmem:[%s10510_s21 + $0x210] sm:$0xf]  ;;  %v11860_v4 = vrot.slane %v4170_v50, 4  ;;  %v11878_v50 = vrot.slane %v4203_v2, 5  ;;  %13422 = vst [vmem:[#allocation76_spill] sm:$0xff] %v11891_v55 }
 0x162   : > { %9389 = vmatprep.mubr.msk.bf16.mxu0 %vm1355_vm0, %v11588_v39  ;;  %v4242_v34 = vshrl.u32 %v7787_v19, 16  ;;  %v4245_v63 = vshll.u32 %v7787_v19, 16  ;;  %v7790_v2 = vld [vmem:[%s10510_s21 + $0x21c] sm:$0xf]  ;;  %v7794_v55 = vld [vmem:[%s10510_s21 + $0x22c] sm:$0xf] }
 0x163   : > { %13417 = vst [vmem:[#allocation11_spill] sm:$0xff] %v11878_v50  ;;  %v4266_v44 = vshrl.u32 %v7790_v2, 16  ;;  %v4290_v50 = vshrl.u32 %v7793_v14, 16  ;;  %v4299_v32 = vshll.u32 %v7794_v55, 16  ;;  %v4303_v30 = vshrl.u32 %v7794_v55, 16 }
 0x164   : > { %9070 = vmatmul.mubr.msk.bf16.gmra.mrb[24].mxu1 %vm1355_vm0, %v11588_v39  ;;  %v7788_v39 = vld [vmem:[%s10510_s21 + $0x214] sm:$0xf]  ;;  %v11896_v52 = vrot.slane %v4242_v34, 4  ;;  %v11905_v37 = vrot.slane %v4245_v63, 5  ;;  %v11912_v33 = vcombine.low %v7790_v2, %v7791_v13  ;;  %v7797_v63 = vld [vmem:[%s10510_s21 + $0x238] sm:$0xf] }
 0x165   : > { %9073 = vmatprep.mubr.msk.bf16.mxu1 %vm1355_vm0, %v11603_v59  ;;  %v4251_v60 = vshll.u32 %v7788_v39, 16  ;;  %v4255_v28 = vshrl.u32 %v7788_v39, 16  ;;  %v11901_v41 = vcombine.low %v7787_v19, %v7788_v39  ;;  %v7796_v34 = vld [vmem:[%s10510_s21 + $0x234] sm:$0xf]  ;;  %v11914_v19 = vrot.slane %v4266_v44, 4 }
 0x166   : > { %13423 = vst [vmem:[#allocation77_spill] sm:$0xff] %v11896_v52  ;;  %13425 = vst [vmem:[#allocation84_spill] sm:$0xff] %v11905_v37  ;;  %v4314_v36 = vshrl.u32 %v7796_v34, 16  ;;  %v4317_v21 = vshll.u32 %v7796_v34, 16  ;;  %v4327_v37 = vshrl.u32 %v7797_v63, 16  ;;  %v11929_v44 = vcombine.low %v7793_v14, %v7794_v55 }
 0x167   : > { %13424 = vst [vmem:[#allocation37_spill] sm:$0xff] %v11901_v41  ;;  %v11908_v52 = vrot.slane %v4251_v60, 5  ;;  %v11910_v43 = vrot.slane %v4255_v28, 4  ;;  %v11921_v41 = vrot.slane %v4275_v27, 5  ;;  %v11923_v60 = vrot.slane %v4279_v58, 4 }
 0x168   : > { %v13427_v28 = vcombine.low %v11742_v51, %v11745_v57  ;;  %v11931_v13 = vrot.slane %v4290_v50, 4  ;;  %v11940_v58 = vrot.slane %v4303_v30, 4  ;;  %v11942_v27 = vcombine.low %v7796_v34, %v7797_v63  ;;  %v7762_v30 = vld [vmem:[%s10510_s21 + $0x1ac] sm:$0x1] }
 0x169   : > { %9390 = vmatmul.mubr.msk.bf16.gmra.mrb[24].mxu0 %vm1355_vm0, %v11603_v59  ;;  %v4269_v59 = vshll.u32 %v7790_v2, 16  ;;  %13426 = vst [vmem:[#allocation42_spill] sm:$0xff] %v11908_v52  ;;  %v4323_v52 = vshll.u32 %v7797_v63, 16  ;;  %v11933_v2 = vrot.slane %v4293_v6, 5  ;;  %v11944_v51 = vrot.slane %v4314_v36, 4 }
 0x16a   : > { %9393 = vmatprep.mubr.msk.bf16.mxu0 %vm1355_vm0, %v11610_v24  ;;  %13428 = vst [vmem:[#allocation85_spill] sm:$0xff] %v11942_v27  ;;  %v11946_v57 = vrot.slane %v4317_v21, 5  ;;  %v11951_v6 = vld [vmem:[%s10510_s21 + $0x240] sm:$0xf]  ;;  %v4032_v55 = vor.u32 %v11775_v15, %v11773_v18  ;;  %v11962_v21 = vrot.slane %v4327_v37, 4  ;;  %v4042_v18 = vor.u32 %v11781_v23, %v11779_v54 }
 0x16b   : > { %v11916_v39 = vrot.slane %v4269_v59, 5  ;;  %v7759_v59 = vld [vmem:[%s10510_s21 + $0x1a0] sm:$0x1]  ;;  %v11960_v36 = vrot.slane %v4323_v52, 5  ;;  %v4338_v14 = vshrl.u32 %v11951_v6, 16  ;;  %v4341_v34 = vshll.u32 %v11951_v6, 16 }
 0x16c   : > { %9074 = vmatmul.mubr.msk.bf16.gmra.mrb[28].mxu1 %vm1355_vm0, %v11610_v24  ;;  %v11935_v24 = vrot.slane %v4299_v32, 5  ;;  %v4008_v32 = vor.u32 %v11763_v42, %v11761_v7  ;;  %v4021_v50 = vshll.u32 %v7759_v59, 16  ;;  %v7765_v63 = vld [vmem:[%s10510_s21 + $0x1b8] sm:$0x1]  ;;  %v4033_v27 = vrot.slane %v4032_v55, 4 }
 0x16d   : > { %9085 = vmatprep.mubr.msk.bf16.mxu1 %vm1355_vm0, %v13427_v28  ;;  %v4045_v15 = vshll.u32 %v7762_v30, 16  ;;  %v4056_v37 = vor.u32 %v11793_v31, %v11791_v61  ;;  %v4066_v52 = vor.u32 %v11800_v8, %v11795_v38  ;;  %v4069_v23 = vshll.u32 %v7765_v63, 16  ;;  %v10148_v61 = vld [vmem:[%s13064_s1 + $0x1a8] sm:$0xff]   ;;  %v7800_v31 = vld [vmem:[%s10510_s21 + $0x244] sm:$0xf] }
 0x16e   : > { %v4009_v28 = vrot.slane %v4008_v32, 4  ;;  %v4023_v42 = vrot.slane %v4021_v50, 5  ;;  %v7768_v63 = vld [vmem:[%s10510_s21 + $0x1c4] sm:$0x1] }
 0x16f   : > { %v4047_v50 = vrot.slane %v4045_v15, 5  ;;  %v4057_v30 = vrot.slane %v4056_v37, 4  ;;  %v4067_v55 = vrot.slane %v4066_v52, 4  ;;  %v7771_v15 = vld [vmem:[%s10510_s21 + $0x1d0] sm:$0x1]  ;;  %v4090_v52 = vor.u32 %v11811_v46, %v11809_v5  ;;  %v10158_v46 = vld [vmem:[%s13064_s1 + $0xb8] sm:$0xff]  }
 0x170   : > { %v4014_v59 = vsel %vm10590_vm3, %v4009_v28, %v11769_v53  ;;  %v10152_v28 = vld [vmem:[%s13064_s1 + $0xb0] sm:$0xff]  }
 0x171   : > { %9394 = vmatmul.mubr.msk.bf16.gmra.mrb[28].mxu0 %vm1355_vm0, %v11626_v26  ;;  %v4018_v26 = vor.u32 %v11771_v0, %v11769_v53  ;;  %v10146_v0 = vld [vmem:[%s13064_s1 + $0xa8] sm:$0xff]   ;;  %v4043_v53 = vrot.slane %v4042_v18, 4  ;;  %v4093_v18 = vshll.u32 %v7768_v63, 16 }
 0x172   : > { %9405 = vmatprep.mubr.msk.bf16.mxu0 %vm1355_vm0, %v11765_v40 }
 0x173   : > { %v4019_v7 = vrot.slane %v4018_v26, 4  ;;  %v4038_v26 = vsel %vm10590_vm3, %v4033_v27, %v11779_v54  ;;  %v4347_v54 = vshll.u32 %v7800_v31, 16  ;;  %v4351_v27 = vshrl.u32 %v7800_v31, 16 }
 0x174   : > { %9086 = vmatmul.mubr.msk.bf16.vlgmr.msra.gmra.mrb[0].mxu1 %vm1355_vm0, %v11765_v40  ;;  %v4071_v40 = vrot.slane %v4069_v23, 5  ;;  %v4091_v23 = vrot.slane %v4090_v52, 4 }
 0x175   : > { %v4024_v32 = vsel %vm10590_vm3, %v4019_v7, %v4023_v42  ;;  %9118 = vmatpush3.bf16.msra.mxu1 %v11716_v45  ;;  %9089 = vmatprep.mubr.msk.bf16.mxu1 %vm1355_vm0, %v11783_v10  ;;  %v4048_v7 = vsel %vm10590_vm3, %v4043_v53, %v4047_v50  ;;  %v4062_v45 = vsel %vm10590_vm3, %v4057_v30, %v11795_v38  ;;  %v10154_v38 = vld [vmem:[%s13064_s1 + $0x1b0] sm:$0xff]   ;;  %v12044_v63 = vrot.slane %v4351_v27, 4 }
 0x176   : > { %v11990_v8 = vcombine.low %v4014_v59, %v4024_v32  ;;  %9119 = vmatprep.subr.bf16.mxu1 %v10146_v0  ;;  %v4080_v42 = vor.u32 %v11807_v16, %v11805_v12  ;;  %v4072_v37 = vsel %vm10590_vm3, %v4067_v55, %v4071_v40  ;;  %v4117_v59 = vshll.u32 %v7771_v15, 16  ;;  %v7802_v40 = vld [vmem:[%s10510_s21 + $0x24c] sm:$0xf] }
 0x177   : > { %v4095_v16 = vrot.slane %v4093_v18, 5  ;;  %v4104_v32 = vor.u32 %v11819_v17, %v11817_v29  ;;  %v4114_v53 = vor.u32 %v11823_v48, %v11821_v11  ;;  %v12033_v30 = vcombine.low %v11951_v6, %v7800_v31  ;;  %v7803_v29 = vld [vmem:[%s10510_s21 + $0x250] sm:$0xf]  ;;  %v12068_v18 = vld [vmem:[%s10510_s21 + $0x258] sm:$0xf] }
 0x178   : > { %13429 = vst [vmem:[#allocation86_spill] sm:$0xff] %v11990_v8  ;;  %v4081_v12 = vrot.slane %v4080_v42, 4  ;;  %v4119_v50 = vrot.slane %v4117_v59, 5  ;;  %v12035_v55 = vrot.slane %v4341_v34, 5  ;;  %v4362_v34 = vshrl.u32 %v7802_v40, 16 }
 0x179   : > { %9406 = vmatmul.mubr.msk.bf16.vlgmr.msra.gmra.mrb[0].mxu0 %vm1355_vm0, %v11783_v10  ;;  %v12012_v10 = vcombine.low %v4038_v26, %v4048_v7  ;;  %9120 = vmatpush3.bf16.msra.mxu1 %v10146_v0  ;;  %v12028_v26 = vrot.slane %v4338_v14, 4  ;;  %v4105_v0 = vrot.slane %v4104_v32, 4  ;;  %v12042_v14 = vrot.slane %v4347_v54, 5  ;;  %v7774_v42 = vld [vmem:[%s10510_s21 + $0x1dc] sm:$0x1]  ;;  %v13437_v32 = vld [vmem:[#allocation67_spill] sm:$0xff] }
 0x17a   : > { %9438 = vmatpush3.bf16.msra.mxu0 %v11723_v25  ;;  %9409 = vmatprep.mubr.msk.bf16.mxu0 %vm1355_vm0, %v11785_v20  ;;  %v12021_v25 = vcombine.low %v4062_v45, %v4072_v37  ;;  %v4086_v17 = vsel %vm10590_vm3, %v4081_v12, %v11809_v5  ;;  %v4096_v48 = vsel %vm10590_vm3, %v4091_v23, %v4095_v16  ;;  %v4115_v6 = vrot.slane %v4114_v53, 4  ;;  %v10160_v5 = vld [vmem:[%s13064_s1 + $0x1b8] sm:$0xff]   ;;  %v13438_v53 = vld [vmem:[#allocation73_spill] sm:$0xff] }
 0x17b   : > { %13430 = vst [vmem:[#allocation47_spill] sm:$0xff] %v12012_v10  ;;  %9439 = vmatprep.subr.bf16.mxu0 %v10148_v61  ;;  %9121 = vmatprep.subr.bf16.mxu1 %v10152_v28  ;;  %v12053_v31 = vcombine.low %v4086_v17, %v4096_v48  ;;  %v4110_v54 = vsel %vm10590_vm3, %v4105_v0, %v11821_v11  ;;  %v4371_v27 = vshll.u32 %v7803_v29, 16  ;;  %v4375_v7 = vshrl.u32 %v7803_v29, 16  ;;  %v12073_v11 = vld [vmem:[%s13064_s1 + $0xc0] sm:$0xff]   ;;  %v7777_v59 = vld [vmem:[%s10510_s21 + $0x1e8] sm:$0x1] }
 0x17c   : > { %13431 = vst [vmem:[#allocation53_spill] sm:$0xff] %v12021_v25  ;;  %9090 = vmatmul.mubr.msk.bf16.gmra.mrb[4].mxu1 %vm1355_vm0, %v11785_v20  ;;  %v12060_v20 = vcombine.low %v7802_v40, %v7803_v29  ;;  %v4120_v45 = vsel %vm10590_vm3, %v4115_v6, %v4119_v50  ;;  %13433 = vst [vmem:[#allocation93_spill] sm:$0xff] %v12073_v11  ;;  %v4128_v15 = vor.u32 %v11829_v35, %v11827_v9  ;;  %v13436_v16 = vld [vmem:[#allocation66_spill] sm:$0xff] }
 0x17d   : > { %13432 = vst [vmem:[#allocation92_spill] sm:$0xff] %v12053_v31  ;;  %9093 = vmatprep.mubr.msk.bf16.mxu1 %vm1355_vm0, %v11813_v47  ;;  %9122 = vmatpush3.bf16.msra.mxu1 %v10152_v28  ;;  %v12075_v28 = vcombine.low %v4110_v54, %v4120_v45  ;;  %v4138_v37 = vor.u32 %v11833_v62, %v11831_v22  ;;  %v4141_v52 = vshll.u32 %v7774_v42, 16  ;;  %v6862_v12 = vshrl.u32 %v12068_v18, 16  ;;  %v12096_v62 = vld [vmem:[%s13064_s1 + $0x1c0] sm:$0xff]  }
 0x17e   : > { %9440 = vmatpush3.bf16.msra.mxu0 %v10148_v61  ;;  %v4365_v61 = vshll.u32 %v7802_v40, 16  ;;  %9123 = vmatprep.subr.bf16.mxu1 %v10158_v46  ;;  %v4152_v23 = vor.u32 %v13437_v32, %v13436_v16  ;;  %v4162_v50 = vor.u32 %v11857_v49, %v13438_v53  ;;  %v4165_v9 = vshll.u32 %v7777_v59, 16  ;;  %13439 = vst [vmem:[#allocation102_spill] sm:$0xff] %v12096_v62  ;;  %v13442_v16 = vld [vmem:[#allocation74_spill] sm:$0xff] }
 0x17f   : > { %9441 = vmatprep.subr.bf16.mxu0 %v10154_v38  ;;  %13434 = vst [vmem:[#allocation94_spill] sm:$0xff] %v12075_v28  ;;  %v6865_v35 = vshll.u32 %v12068_v18, 16  ;;  %v4139_v40 = vrot.slane %v4138_v37, 4  ;;  %v4143_v29 = vrot.slane %v4141_v52, 5  ;;  %v12099_v49 = vrot.slane %v4362_v34, 4 }
 0x180   : > { %v4153_v0 = vrot.slane %v4152_v23, 4  ;;  %v4163_v48 = vrot.slane %v4162_v50, 4  ;;  %v4167_v6 = vrot.slane %v4165_v9, 5  ;;  %v12132_v32 = vrot.slane %v6862_v12, 4  ;;  %v12145_v50 = vld [vmem:[%s10510_s21 + $0x268] sm:$0xf] }
 0x181   : > { %9410 = vmatmul.mubr.msk.bf16.gmra.mrb[4].mxu0 %vm1355_vm0, %v11813_v47  ;;  %v12085_v47 = vld [vmem:[%s10510_s21 + $0x25c] sm:$0xf]  ;;  %9124 = vmatpush3.bf16.msra.mxu1 %v10158_v46  ;;  %v4144_v42 = vsel %vm10590_vm3, %v4139_v40, %v4143_v29  ;;  %v12108_v46 = vrot.slane %v4365_v61, 5  ;;  %v12134_v23 = vrot.slane %v6865_v35, 5  ;;  %v13444_v12 = vld [vmem:[#allocation23_spill] sm:$0xff]  ;;  %v13445_v40 = vld [vmem:[#allocation29_spill] sm:$0xff] }
 0x182   : > { %9413 = vmatprep.mubr.msk.bf16.mxu0 %vm1355_vm0, %v11848_v3  ;;  %9442 = vmatpush3.bf16.msra.mxu0 %v10154_v38  ;;  %13435 = vst [vmem:[#allocation95_spill] sm:$0xff] %v12085_v47  ;;  %v4129_v38 = vrot.slane %v4128_v15, 4  ;;  %v6871_v17 = vshll.u32 %v12085_v47, 16  ;;  %v6875_v54 = vshrl.u32 %v12085_v47, 16  ;;  %v12111_v15 = vld [vmem:[%s10510_s21 + $0x264] sm:$0xf]  ;;  %v4158_v34 = vsel %vm10590_vm3, %v4153_v0, %v13438_v53 }
 0x183   : > { %9443 = vmatprep.subr.bf16.mxu0 %v10160_v5  ;;  %9157 = vmatprep.subr.bf16.mxu1 %v12073_v11  ;;  %v4168_v52 = vsel %vm10590_vm3, %v4163_v48, %v4167_v6  ;;  %v4708_v61 = vshrl.u32 %v12111_v15, 16  ;;  %v13443_v9 = vld [vmem:[#allocation18_spill] sm:$0xff]  ;;  %v4186_v35 = vor.u32 %v13445_v40, %v13444_v12  ;;  %v13446_v0 = vld [vmem:[#allocation13_spill] sm:$0xff]  ;;  %v4717_v48 = vshll.u32 %v12145_v50, 16  ;;  %v13447_v6 = vld [vmem:[#allocation15_spill] sm:$0xff] }
 0x184   : > { %v4134_v45 = vsel %vm10590_vm3, %v4129_v38, %v11831_v22  ;;  %9094 = vmatmul.mubr.msk.bf16.gmra.mrb[8].mxu1 %vm1355_vm0, %v11848_v3  ;;  %v12122_v22 = vrot.slane %v4371_v27, 5  ;;  %v12128_v59 = vcombine.low %v4158_v34, %v4168_v52  ;;  %v12136_v53 = vrot.slane %v6871_v17, 5  ;;  %v7780_v27 = vld [vmem:[%s10510_s21 + $0x1f4] sm:$0x1]  ;;  %v7783_v17 = vld [vmem:[%s10510_s21 + $0x200] sm:$0x1] }
 0x185   : > { %v12113_v37 = vcombine.low %v4134_v45, %v4144_v42  ;;  %9097 = vmatprep.mubr.msk.bf16.mxu1 %vm1355_vm0, %v13442_v16  ;;  %v4711_v3 = vshll.u32 %v12111_v15, 16  ;;  %v4176_v38 = vor.u32 %v13443_v9, %v11860_v4  ;;  %v4189_v29 = vshll.u32 %v7780_v27, 16  ;;  %v13448_v45 = vld [vmem:[#allocation14_spill] sm:$0xff]  ;;  %v13450_v34 = vld [vmem:[#allocation25_spill] sm:$0xff] }
 0x186   : > { %9444 = vmatpush3.bf16.msra.mxu0 %v10160_v5  ;;  %v12124_v5 = vrot.slane %v4375_v7, 4  ;;  %13441 = vst [vmem:[#allocation104_spill] sm:$0xff] %v12128_v59  ;;  %v12142_v7 = vrot.slane %v6875_v54, 4  ;;  %v4200_v42 = vor.u32 %v13448_v45, %v13447_v6  ;;  %v13449_v54 = vld [vmem:[#allocation11_spill] sm:$0xff]  ;;  %v4721_v4 = vshrl.u32 %v12145_v50, 16 }
 0x187   : > { %13440 = vst [vmem:[#allocation103_spill] sm:$0xff] %v12113_v37  ;;  %9477 = vmatprep.subr.bf16.mxu0 %v12096_v62  ;;  %v4210_v52 = vor.u32 %v13450_v34, %v13449_v54  ;;  %v7811_v9 = vld [vmem:[%s10510_s21 + $0x270] sm:$0xf]  ;;  %v4177_v59 = vrot.slane %v4176_v38, 4  ;;  %v4187_v40 = vrot.slane %v4186_v35, 4  ;;  %v4191_v27 = vrot.slane %v4189_v29, 5 }
 0x188   : > { %v4732_v37 = vshrl.u32 %v7811_v9, 16  ;;  %v4201_v28 = vrot.slane %v4200_v42, 4  ;;  %v12161_v10 = vrot.slane %v4708_v61, 4  ;;  %v12163_v8 = vrot.slane %v4711_v3, 5  ;;  %v7812_v45 = vld [vmem:[%s10510_s21 + $0x274] sm:$0xf] }
 0x189   : > { %9414 = vmatmul.mubr.msk.bf16.gmra.mrb[8].mxu0 %vm1355_vm0, %v13442_v16  ;;  %v4213_v16 = vshll.u32 %v7783_v17, 16  ;;  %v4211_v31 = vrot.slane %v4210_v52, 4  ;;  %v4182_v6 = vsel %vm10590_vm3, %v4177_v59, %v13444_v12  ;;  %v4192_v17 = vsel %vm10590_vm3, %v4187_v40, %v4191_v27  ;;  %v13456_v34 = vld [vmem:[#allocation10_spill] sm:$0xff]  ;;  %v13460_v40 = vld [vmem:[#allocation35_spill] sm:$0xff] }
 0x18a   : > { %9417 = vmatprep.mubr.msk.bf16.mxu0 %vm1355_vm0, %v13446_v0  ;;  %13451 = vst [vmem:[#allocation106_spill] sm:$0xff] %v12161_v10  ;;  %13452 = vst [vmem:[#allocation111_spill] sm:$0xff] %v12163_v8  ;;  %v4735_v38 = vshll.u32 %v7811_v9, 16  ;;  %v12171_v35 = vcombine.low %v4182_v6, %v4192_v17  ;;  %v4206_v61 = vsel %vm10590_vm3, %v4201_v28, %v13449_v54  ;;  %v12180_v59 = vrot.slane %v4717_v48, 5  ;;  %v12195_v48 = vld [vmem:[%s10510_s21 + $0x27c] sm:$0xf] }
 0x18b   : > { %v4215_v25 = vrot.slane %v4213_v16, 5  ;;  %v4741_v12 = vshll.u32 %v7812_v45, 16  ;;  %v4745_v29 = vshrl.u32 %v7812_v45, 16  ;;  %v7786_v54 = vld [vmem:[%s10510_s21 + $0x20c] sm:$0x1]  ;;  %v4756_v52 = vshrl.u32 %v12195_v48, 16 }
 0x18c   : > { %13453 = vst [vmem:[#allocation49_spill] sm:$0xff] %v12171_v35  ;;  %9098 = vmatmul.mubr.msk.bf16.gmra.mrb[12].mxu1 %vm1355_vm0, %v13446_v0  ;;  %13454 = vst [vmem:[#allocation112_spill] sm:$0xff] %v12180_v59  ;;  %v12192_v0 = vrot.slane %v4732_v37, 4  ;;  %v13459_v16 = vld [vmem:[#allocation30_spill] sm:$0xff]  ;;  %v13461_v6 = vld [vmem:[#allocation41_spill] sm:$0xff]  ;;  %v12218_v10 = vrot.slane %v4735_v38, 5  ;;  %v12238_v38 = vcombine.low %v7811_v9, %v7812_v45 }
 0x18d   : > { %v4216_v3 = vsel %vm10590_vm3, %v4211_v31, %v4215_v25  ;;  %9101 = vmatprep.mubr.msk.bf16.mxu1 %vm1355_vm0, %v13456_v34  ;;  %v12190_v31 = vrot.slane %v4721_v4, 4  ;;  %v4224_v27 = vor.u32 %v13460_v40, %v13459_v16  ;;  %v13462_v17 = vld [vmem:[#allocation76_spill] sm:$0xff]  ;;  %v12209_v37 = vld [vmem:[%s10510_s21 + $0x280] sm:$0xf]  ;;  %v4759_v4 = vshll.u32 %v12195_v48, 16  ;;  %v13465_v35 = vld [vmem:[#allocation42_spill] sm:$0xff] }
 0x18e   : > { %v12182_v42 = vcombine.low %v4206_v61, %v4216_v3  ;;  %13458 = vst [vmem:[#allocation59_spill] sm:$0xff] %v12192_v0  ;;  %v4234_v61 = vor.u32 %v13462_v17, %v13461_v6  ;;  %v4237_v3 = vshll.u32 %v7786_v54, 16  ;;  %v7789_v28 = vld [vmem:[%s10510_s21 + $0x218] sm:$0x1]  ;;  %v13463_v25 = vld [vmem:[#allocation77_spill] sm:$0xff]  ;;  %v4258_v62 = vor.u32 %v11910_v43, %v13465_v35 }
 0x18f   : > { %13457 = vst [vmem:[#allocation54_spill] sm:$0xff] %v12190_v31  ;;  %v4261_v11 = vshll.u32 %v7789_v28, 16  ;;  %v4765_v16 = vshll.u32 %v12209_v37, 16  ;;  %v4225_v40 = vrot.slane %v4224_v27, 4  ;;  %v4769_v0 = vshrl.u32 %v12209_v37, 16 }
 0x190   : > { %13455 = vst [vmem:[#allocation113_spill] sm:$0xff] %v12182_v42  ;;  %v13464_v42 = vld [vmem:[#allocation84_spill] sm:$0xff]  ;;  %v4235_v17 = vrot.slane %v4234_v61, 4  ;;  %v4239_v54 = vrot.slane %v4237_v3, 5  ;;  %v4259_v59 = vrot.slane %v4258_v62, 4  ;;  %v12220_v47 = vrot.slane %v4741_v12, 5 }
 0x191   : > { %9418 = vmatmul.mubr.msk.bf16.gmra.mrb[12].mxu0 %vm1355_vm0, %v13456_v34  ;;  %v4248_v34 = vor.u32 %v13464_v42, %v13463_v25  ;;  %v4263_v8 = vrot.slane %v4261_v11, 5  ;;  %v4230_v43 = vsel %vm10590_vm3, %v4225_v40, %v13461_v6  ;;  %v12227_v28 = vrot.slane %v4745_v29, 4  ;;  %v7817_v27 = vld [vmem:[%s10510_s21 + $0x288] sm:$0xf]  ;;  %v7818_v6 = vld [vmem:[%s10510_s21 + $0x28c] sm:$0xf] }
 0x192   : > { %9421 = vmatprep.mubr.msk.bf16.mxu0 %vm1355_vm0, %v11899_v1  ;;  %v4240_v42 = vsel %vm10590_vm3, %v4235_v17, %v4239_v54  ;;  %v12240_v12 = vrot.slane %v4756_v52, 4  ;;  %v12242_v29 = vrot.slane %v4759_v4, 5  ;;  %v13467_v3 = vld [vmem:[#allocation37_spill] sm:$0xff]  ;;  %v4783_v9 = vshll.u32 %v7817_v27, 16 }
 0x193   : > { %v4249_v31 = vrot.slane %v4248_v34, 4  ;;  %v12229_v25 = vcombine.low %v4230_v43, %v4240_v42  ;;  %v4264_v62 = vsel %vm10590_vm3, %v4259_v59, %v4263_v8  ;;  %v12252_v8 = vrot.slane %v4769_v0, 4  ;;  %v7792_v45 = vld [vmem:[%s10510_s21 + $0x224] sm:$0x1]  ;;  %v7795_v34 = vld [vmem:[%s10510_s21 + $0x230] sm:$0x1] }
 0x194   : > { %9102 = vmatmul.mubr.msk.bf16.gmra.mrb[16].mxu1 %vm1355_vm0, %v11899_v1  ;;  %v4780_v1 = vshrl.u32 %v7817_v27, 16  ;;  %v4789_v59 = vshll.u32 %v7818_v6, 16  ;;  %v4282_v52 = vor.u32 %v11923_v60, %v11921_v41  ;;  %v4285_v4 = vshll.u32 %v7792_v45, 16 }
 0x195   : > { %v4254_v11 = vsel %vm10590_vm3, %v4249_v31, %v13465_v35  ;;  %9105 = vmatprep.mubr.msk.bf16.mxu1 %vm1355_vm0, %v13467_v3  ;;  %v12250_v35 = vrot.slane %v4765_v16, 5  ;;  %v4272_v31 = vor.u32 %v11916_v39, %v11914_v19  ;;  %v4793_v0 = vshrl.u32 %v7818_v6, 16  ;;  %v12265_v16 = vld [vmem:[%s10510_s21 + $0x294] sm:$0xf] }
 0x196   : > { %v12246_v61 = vcombine.low %v4254_v11, %v4264_v62  ;;  %v4296_v40 = vor.u32 %v11933_v2, %v11931_v13  ;;  %v4306_v17 = vor.u32 %v11940_v58, %v11935_v24  ;;  %v4309_v54 = vshll.u32 %v7795_v34, 16 }
 0x197   : > { %v4804_v19 = vshrl.u32 %v12265_v16, 16  ;;  %v4273_v39 = vrot.slane %v4272_v31, 4  ;;  %v4283_v60 = vrot.slane %v4282_v52, 4  ;;  %v4287_v43 = vrot.slane %v4285_v4, 5  ;;  %v12285_v31 = vld [vmem:[%s10510_s21 + $0x298] sm:$0xf] }
 0x198   : > { %13466 = vst [vmem:[#allocation3_spill] sm:$0xff] %v12246_v61  ;;  %v4807_v42 = vshll.u32 %v12265_v16, 16  ;;  %v4297_v11 = vrot.slane %v4296_v40, 4  ;;  %v4307_v62 = vrot.slane %v4306_v17, 4  ;;  %v12273_v45 = vrot.slane %v4780_v1, 4 }
 0x199   : > { %9422 = vmatmul.mubr.msk.bf16.gmra.mrb[16].mxu0 %vm1355_vm0, %v13467_v3  ;;  %v4311_v3 = vrot.slane %v4309_v54, 5  ;;  %v12275_v61 = vrot.slane %v4783_v9, 5  ;;  %v4278_v13 = vsel %vm10590_vm3, %v4273_v39, %v11921_v41  ;;  %v4288_v2 = vsel %vm10590_vm3, %v4283_v60, %v4287_v43  ;;  %v12315_v17 = vld [vmem:[%s10510_s21 + $0x2a0] sm:$0xf]  ;;  %v7798_v54 = vld [vmem:[%s10510_s21 + $0x23c] sm:$0x1] }
 0x19a   : > { %9425 = vmatprep.mubr.msk.bf16.mxu0 %vm1355_vm0, %v11912_v33  ;;  %v12282_v58 = vrot.slane %v4789_v59, 5  ;;  %v12287_v52 = vcombine.low %v4278_v13, %v4288_v2  ;;  %v4302_v1 = vsel %vm10590_vm3, %v4297_v11, %v11935_v24  ;;  %v12296_v41 = vrot.slane %v4793_v0, 4  ;;  %v12339_v13 = vld [vmem:[%s10510_s21 + $0x2ac] sm:$0xf] }
 0x19b   : > { %v4312_v9 = vsel %vm10590_vm3, %v4307_v62, %v4311_v3  ;;  %v4813_v59 = vshll.u32 %v12285_v31, 16  ;;  %v4817_v4 = vshrl.u32 %v12285_v31, 16  ;;  %v12306_v24 = vcombine.low %v12195_v48, %v12209_v37 }
 0x19c   : > { %9106 = vmatmul.mubr.msk.bf16.gmra.mrb[20].mxu1 %vm1355_vm0, %v11912_v33  ;;  %v12300_v34 = vcombine.low %v4302_v1, %v4312_v9  ;;  %v12308_v40 = vcombine.low %v7817_v27, %v7818_v6  ;;  %v12310_v33 = vrot.slane %v4804_v19, 4  ;;  %v12312_v0 = vrot.slane %v4807_v42, 5  ;;  %v7801_v27 = vld [vmem:[%s10510_s21 + $0x248] sm:$0x1]  ;;  %v13468_v6 = vld [vmem:[#allocation85_spill] sm:$0xff] }
 0x19d   : > { %9109 = vmatprep.mubr.msk.bf16.mxu1 %vm1355_vm0, %v11929_v44  ;;  %v4828_v39 = vshrl.u32 %v12315_v17, 16  ;;  %v4320_v60 = vor.u32 %v11946_v57, %v11944_v51  ;;  %v4330_v48 = vor.u32 %v11962_v21, %v11960_v36  ;;  %v4333_v37 = vshll.u32 %v7798_v54, 16  ;;  %v12329_v19 = vld [vmem:[%s10510_s21 + $0x2a4] sm:$0xf] }
 0x19e   : > { %v4831_v43 = vshll.u32 %v12315_v17, 16  ;;  %v4354_v42 = vor.u32 %v12044_v63, %v12042_v14  ;;  %v4357_v11 = vshll.u32 %v7801_v27, 16  ;;  %v4837_v51 = vshll.u32 %v12329_v19, 16 }
 0x19f   : > { %v4321_v57 = vrot.slane %v4320_v60, 4  ;;  %v4331_v21 = vrot.slane %v4330_v48, 4  ;;  %v4335_v62 = vrot.slane %v4333_v37, 5  ;;  %v4841_v3 = vshrl.u32 %v12329_v19, 16 }
 0x1a0   : > { %v4355_v1 = vrot.slane %v4354_v42, 4  ;;  %v4359_v9 = vrot.slane %v4357_v11, 5  ;;  %v12341_v54 = vrot.slane %v4813_v59, 5  ;;  %v12349_v60 = vrot.slane %v4817_v4, 4 }
 0x1a1   : > { %9426 = vmatmul.mubr.msk.bf16.gmra.mrb[20].mxu0 %vm1355_vm0, %v11929_v44  ;;  %v4344_v44 = vor.u32 %v12035_v55, %v12028_v26  ;;  %v4852_v26 = vshrl.u32 %v12339_v13, 16  ;;  %v4326_v55 = vsel %vm10590_vm3, %v4321_v57, %v11960_v36  ;;  %v4336_v63 = vsel %vm10590_vm3, %v4331_v21, %v4335_v62  ;;  %v12384_v57 = vld [vmem:[%s10510_s21 + $0x2b8] sm:$0xf] }
 0x1a2   : > { %9429 = vmatprep.mubr.msk.bf16.mxu0 %vm1355_vm0, %v13468_v6  ;;  %v12351_v48 = vcombine.low %v4326_v55, %v4336_v63  ;;  %v4360_v59 = vsel %vm10590_vm3, %v4355_v1, %v4359_v9  ;;  %v12360_v36 = vrot.slane %v4828_v39, 4  ;;  %v12362_v27 = vrot.slane %v4831_v43, 5  ;;  %v7804_v43 = vld [vmem:[%s10510_s21 + $0x254] sm:$0x1]  ;;  %v12399_v55 = vld [vmem:[%s10510_s21 + $0x2bc] sm:$0xf] }
 0x1a3   : > { %v4345_v2 = vrot.slane %v4344_v44, 4  ;;  %v12364_v4 = vrot.slane %v4837_v51, 5  ;;  %v12367_v44 = vld [vmem:[%s10510_s21 + $0x2b0] sm:$0xf]  ;;  %v4855_v11 = vshll.u32 %v12339_v13, 16  ;;  %v12381_v51 = vrot.slane %v4852_v26, 4 }
 0x1a4   : > { %13469 = vst [vmem:[#allocation4_spill] sm:$0xff] %v12351_v48  ;;  %9110 = vmatmul.mubr.msk.bf16.gmra.mrb[24].mxu1 %vm1355_vm0, %v13468_v6  ;;  %v4861_v39 = vshll.u32 %v12367_v44, 16  ;;  %v4865_v6 = vshrl.u32 %v12367_v44, 16  ;;  %v4368_v21 = vor.u32 %v12108_v46, %v12099_v49  ;;  %v4378_v62 = vor.u32 %v12124_v5, %v12122_v22 }
 0x1a5   : > { %v4350_v37 = vsel %vm10590_vm3, %v4345_v2, %v12042_v14  ;;  %9113 = vmatprep.mubr.msk.bf16.mxu1 %vm1355_vm0, %v12033_v30  ;;  %v12373_v14 = vrot.slane %v4841_v3, 4  ;;  %v4381_v3 = vshll.u32 %v7804_v43, 16  ;;  %v7807_v2 = vld [vmem:[%s10510_s21 + $0x260] sm:$0x1]  ;;  %v4876_v1 = vshrl.u32 %v12384_v57, 16 }
 0x1a6   : > { %v12369_v42 = vcombine.low %v4350_v37, %v4360_v59  ;;  %v6878_v9 = vor.u32 %v12142_v7, %v12136_v53  ;;  %v6881_v26 = vshll.u32 %v7807_v2, 16  ;;  %v4879_v49 = vshll.u32 %v12384_v57, 16  ;;  %v12429_v2 = vld [vmem:[%s10510_s21 + $0x2c4] sm:$0xf] }
 0x1a7   : > { %v4369_v46 = vrot.slane %v4368_v21, 4  ;;  %v4379_v5 = vrot.slane %v4378_v62, 4  ;;  %v4383_v63 = vrot.slane %v4381_v3, 5  ;;  %v4885_v37 = vshll.u32 %v12399_v55, 16 }
 0x1a8   : > { %13470 = vst [vmem:[#allocation65_spill] sm:$0xff] %v12369_v42  ;;  %v6879_v43 = vrot.slane %v6878_v9, 4  ;;  %v6883_v42 = vrot.slane %v6881_v26, 5  ;;  %v12403_v48 = vrot.slane %v4855_v11, 5  ;;  %v12412_v21 = vrot.slane %v4865_v6, 4 }
 0x1a9   : > { %9430 = vmatmul.mubr.msk.bf16.gmra.mrb[24].mxu0 %vm1355_vm0, %v12033_v30  ;;  %v6868_v30 = vor.u32 %v12134_v23, %v12132_v32  ;;  %v12405_v32 = vrot.slane %v4861_v39, 5  ;;  %v4374_v23 = vsel %vm10590_vm3, %v4369_v46, %v12122_v22  ;;  %v4384_v7 = vsel %vm10590_vm3, %v4379_v5, %v4383_v63  ;;  %v7810_v26 = vld [vmem:[%s10510_s21 + $0x26c] sm:$0x1]  ;;  %v13472_v46 = vld [vmem:[#allocation95_spill] sm:$0xff] }
 0x1aa   : > { %9433 = vmatprep.mubr.msk.bf16.mxu0 %vm1355_vm0, %v12060_v20  ;;  %v12414_v62 = vcombine.low %v4374_v23, %v4384_v7  ;;  %v6884_v39 = vsel %vm10590_vm3, %v6879_v43, %v6883_v42  ;;  %v12423_v22 = vrot.slane %v4876_v1, 4  ;;  %v12425_v3 = vrot.slane %v4879_v49, 5  ;;  %v7813_v49 = vld [vmem:[%s10510_s21 + $0x278] sm:$0x1]  ;;  %v13475_v5 = vld [vmem:[#allocation111_spill] sm:$0xff] }
 0x1ab   : > { %v6869_v59 = vrot.slane %v6868_v30, 4  ;;  %v4889_v6 = vshrl.u32 %v12399_v55, 16  ;;  %v13471_v9 = vcombine.low %v12111_v15, %v12145_v50  ;;  %v12445_v42 = vrot.slane %v4885_v37, 5  ;;  %v13474_v50 = vld [vmem:[#allocation106_spill] sm:$0xff] }
 0x1ac   : > { %9114 = vmatmul.mubr.msk.bf16.gmra.mrb[28].mxu1 %vm1355_vm0, %v12060_v20  ;;  %v12443_v20 = vcombine.low %v12315_v17, %v12329_v19  ;;  %v4900_v1 = vshrl.u32 %v12429_v2, 16  ;;  %v13473_v15 = vcombine.low %v12068_v18, %v13472_v46  ;;  %v4714_v63 = vor.u32 %v13475_v5, %v13474_v50  ;;  %v13478_v17 = vld [vmem:[#allocation59_spill] sm:$0xff] }
 0x1ad   : > { %v6874_v11 = vsel %vm10590_vm3, %v6869_v59, %v12136_v53  ;;  %9125 = vmatprep.mubr.msk.bf16.mxu1 %vm1355_vm0, %v13471_v9  ;;  %v12439_v53 = vcombine.low %v12265_v16, %v12285_v31  ;;  %v13476_v16 = vld [vmem:[#allocation112_spill] sm:$0xff]  ;;  %v13477_v31 = vld [vmem:[#allocation54_spill] sm:$0xff]  ;;  %v4727_v43 = vshll.u32 %v7810_v26, 16  ;;  %v4738_v19 = vor.u32 %v12218_v10, %v13478_v17  ;;  %v7816_v18 = vld [vmem:[%s10510_s21 + $0x284] sm:$0x1] }
 0x1ae   : > { %v12431_v30 = vcombine.low %v6874_v11, %v6884_v39  ;;  %v4724_v59 = vor.u32 %v13477_v31, %v13476_v16  ;;  %v4748_v37 = vor.u32 %v12227_v28, %v12220_v47  ;;  %v4751_v23 = vshll.u32 %v7813_v49, 16  ;;  %v10171_v28 = vld [vmem:[%s13064_s1 + $0xc8] sm:$0xff]  }
 0x1af   : > { %v4762_v7 = vor.u32 %v12242_v29, %v12240_v12  ;;  %v4772_v11 = vor.u32 %v12252_v8, %v12250_v35  ;;  %v4715_v39 = vrot.slane %v4714_v63, 4  ;;  %v4729_v26 = vrot.slane %v4727_v43, 5  ;;  %v10173_v63 = vld [vmem:[%s13064_s1 + $0x1c8] sm:$0xff]  }
 0x1b0   : > { %v4725_v9 = vrot.slane %v4724_v59, 4  ;;  %v4739_v46 = vrot.slane %v4738_v19, 4  ;;  %v4753_v10 = vrot.slane %v4751_v23, 5  ;;  %v4775_v49 = vshll.u32 %v7816_v18, 16  ;;  %v7833_v17 = vld [vmem:[%s10510_s21 + $0x2c8] sm:$0xf] }
 0x1b1   : > { %9434 = vmatmul.mubr.msk.bf16.gmra.mrb[28].mxu0 %vm1355_vm0, %v13473_v15  ;;  %v4749_v15 = vrot.slane %v4748_v37, 4  ;;  %v4763_v50 = vrot.slane %v4762_v7, 4  ;;  %v4773_v5 = vrot.slane %v4772_v11, 4  ;;  %v4720_v12 = vsel %vm10590_vm3, %v4715_v39, %v13476_v16  ;;  %v12501_v19 = vld [vmem:[%s10510_s21 + $0x2d0] sm:$0xf] }
 0x1b2   : > { %9445 = vmatprep.mubr.msk.bf16.mxu0 %vm1355_vm0, %v12238_v38  ;;  %v4730_v29 = vsel %vm10590_vm3, %v4725_v9, %v4729_v26  ;;  %v4744_v8 = vsel %vm10590_vm3, %v4739_v46, %v12220_v47  ;;  %v12483_v31 = vrot.slane %v4889_v6, 4  ;;  %v12496_v47 = vcombine.low %v12339_v13, %v12367_v44  ;;  %v13479_v18 = vld [vmem:[#allocation93_spill] sm:$0xff]  ;;  %v7822_v46 = vld [vmem:[%s10510_s21 + $0x29c] sm:$0x1] }
 0x1b3   : > { %v12485_v59 = vcombine.low %v4720_v12, %v4730_v29  ;;  %v4754_v16 = vsel %vm10590_vm3, %v4749_v15, %v4753_v10  ;;  %v4768_v43 = vsel %vm10590_vm3, %v4763_v50, %v12250_v35  ;;  %v4903_v6 = vshll.u32 %v12429_v2, 16  ;;  %v7819_v7 = vld [vmem:[%s10510_s21 + $0x290] sm:$0x1]  ;;  %v13480_v15 = vld [vmem:[#allocation102_spill] sm:$0xff] }
 0x1b4   : > { %9126 = vmatmul.mubr.msk.bf16.vlgmr.msra.gmra.mrb[0].mxu1 %vm1355_vm0, %v12238_v38  ;;  %v12503_v37 = vcombine.low %v4744_v8, %v4754_v16  ;;  %v4777_v23 = vrot.slane %v4775_v49, 5  ;;  %v12508_v38 = vrot.slane %v4900_v1, 4  ;;  %v4909_v35 = vshll.u32 %v7833_v17, 16  ;;  %v10177_v11 = vld [vmem:[%s13064_s1 + $0xd0] sm:$0xff]  }
 0x1b5   : > { %9158 = vmatpush3.bf16.msra.mxu1 %v13479_v18  ;;  %9129 = vmatprep.mubr.msk.bf16.mxu1 %vm1355_vm0, %v12306_v24  ;;  %v4913_v13 = vshrl.u32 %v7833_v17, 16  ;;  %v4924_v44 = vshrl.u32 %v12501_v19, 16  ;;  %v4786_v1 = vor.u32 %v12275_v61, %v12273_v45  ;;  %v4796_v9 = vor.u32 %v12296_v41, %v12282_v58 }
 0x1b6   : > { %9159 = vmatprep.subr.bf16.mxu1 %v10171_v28  ;;  %v4778_v39 = vsel %vm10590_vm3, %v4773_v5, %v4777_v23  ;;  %v4799_v26 = vshll.u32 %v7819_v7, 16  ;;  %v4810_v50 = vor.u32 %v12312_v0, %v12310_v33  ;;  %v4820_v61 = vor.u32 %v12349_v60, %v12341_v54  ;;  %v10179_v5 = vld [vmem:[%s13064_s1 + $0x1d0] sm:$0xff]   ;;  %v10183_v23 = vld [vmem:[%s13064_s1 + $0xd8] sm:$0xff]  }
 0x1b7   : > { %v12530_v10 = vcombine.low %v4768_v43, %v4778_v39  ;;  %v4823_v45 = vshll.u32 %v7822_v46, 16  ;;  %v4927_v41 = vshll.u32 %v12501_v19, 16  ;;  %v4787_v12 = vrot.slane %v4786_v1, 4  ;;  %v7839_v46 = vld [vmem:[%s10510_s21 + $0x2e0] sm:$0xf] }
 0x1b8   : > { %v4797_v29 = vrot.slane %v4796_v9, 4  ;;  %v4801_v8 = vrot.slane %v4799_v26, 5  ;;  %v4811_v16 = vrot.slane %v4810_v50, 4  ;;  %v4821_v43 = vrot.slane %v4820_v61, 4  ;;  %v10185_v9 = vld [vmem:[%s13064_s1 + $0x1d8] sm:$0xff]  }
 0x1b9   : > { %9446 = vmatmul.mubr.msk.bf16.vlgmr.msra.gmra.mrb[0].mxu0 %vm1355_vm0, %v12306_v24  ;;  %v12528_v24 = vld [vmem:[%s10510_s21 + $0x2d4] sm:$0xf]  ;;  %9160 = vmatpush3.bf16.msra.mxu1 %v10171_v28  ;;  %v4825_v33 = vrot.slane %v4823_v45, 5  ;;  %v12541_v0 = vrot.slane %v4903_v6, 5  ;;  %v12543_v60 = vrot.slane %v4909_v35, 5  ;;  %v4792_v18 = vsel %vm10590_vm3, %v4787_v12, %v12282_v58 }
 0x1ba   : > { %9478 = vmatpush3.bf16.msra.mxu0 %v13480_v15  ;;  %9449 = vmatprep.mubr.msk.bf16.mxu0 %vm1355_vm0, %v12308_v40  ;;  %v4933_v49 = vshll.u32 %v12528_v24, 16  ;;  %v4802_v28 = vsel %vm10590_vm3, %v4797_v29, %v4801_v8  ;;  %v12553_v7 = vrot.slane %v4913_v13, 4  ;;  %v4816_v35 = vsel %vm10590_vm3, %v4811_v16, %v12341_v54  ;;  %v7838_v13 = vld [vmem:[%s10510_s21 + $0x2dc] sm:$0xf]  ;;  %v7825_v50 = vld [vmem:[%s10510_s21 + $0x2a8] sm:$0x1] }
 0x1bb   : > { %9479 = vmatprep.subr.bf16.mxu0 %v10173_v63  ;;  %9161 = vmatprep.subr.bf16.mxu1 %v10177_v11  ;;  %v12555_v6 = vcombine.low %v4792_v18, %v4802_v28  ;;  %v4826_v39 = vsel %vm10590_vm3, %v4821_v43, %v4825_v33  ;;  %v12564_v58 = vrot.slane %v4924_v44, 4  ;;  %v12566_v1 = vrot.slane %v4927_v41, 5  ;;  %v12593_v45 = vld [vmem:[%s13064_s1 + $0xe0] sm:$0xff]  }
 0x1bc   : > { %9130 = vmatmul.mubr.msk.bf16.gmra.mrb[4].mxu1 %vm1355_vm0, %v12308_v40  ;;  %v12573_v54 = vcombine.low %v4816_v35, %v4826_v39  ;;  %v12579_v40 = vcombine.low %v12384_v57, %v12399_v55  ;;  %v12582_v44 = vcombine.low %v12429_v2, %v7833_v17  ;;  %v12584_v26 = vrot.slane %v4933_v49, 5  ;;  %v7828_v17 = vld [vmem:[%s10510_s21 + $0x2b4] sm:$0x1] }
 0x1bd   : > { %9133 = vmatprep.mubr.msk.bf16.mxu1 %vm1355_vm0, %v12439_v53  ;;  %v4948_v15 = vshrl.u32 %v7838_v13, 16  ;;  %9162 = vmatpush3.bf16.msra.mxu1 %v10177_v11  ;;  %v4951_v61 = vshll.u32 %v7838_v13, 16  ;;  %v4834_v57 = vor.u32 %v12362_v27, %v12360_v36  ;;  %v4844_v55 = vor.u32 %v12373_v14, %v12364_v4  ;;  %v12609_v36 = vld [vmem:[%s13064_s1 + $0x1e0] sm:$0xff]  }
 0x1be   : > { %9480 = vmatpush3.bf16.msra.mxu0 %v10173_v63  ;;  %v4937_v63 = vshrl.u32 %v12528_v24, 16  ;;  %9163 = vmatprep.subr.bf16.mxu1 %v10183_v23  ;;  %v4847_v2 = vshll.u32 %v7825_v50, 16  ;;  %v4957_v11 = vshll.u32 %v7839_v46, 16  ;;  %v4868_v41 = vor.u32 %v12412_v21, %v12405_v32 }
 0x1bf   : > { %9481 = vmatprep.subr.bf16.mxu0 %v10179_v5  ;;  %v4871_v12 = vshll.u32 %v7828_v17, 16  ;;  %v4961_v29 = vshrl.u32 %v7839_v46, 16  ;;  %v4835_v27 = vrot.slane %v4834_v57, 4  ;;  %v4845_v14 = vrot.slane %v4844_v55, 4  ;;  %v12650_v55 = vld [vmem:[%s10510_s21 + $0x2f4] sm:$0xf] }
 0x1c0   : > { %v4849_v8 = vrot.slane %v4847_v2, 5  ;;  %v12611_v49 = vrot.slane %v4937_v63, 4  ;;  %v12613_v21 = vrot.slane %v4948_v15, 4  ;;  %v12615_v16 = vrot.slane %v4951_v61, 5  ;;  %v7842_v63 = vld [vmem:[%s10510_s21 + $0x2ec] sm:$0xf] }
 0x1c1   : > { %9450 = vmatmul.mubr.msk.bf16.gmra.mrb[4].mxu0 %vm1355_vm0, %v12439_v53  ;;  %v4858_v53 = vor.u32 %v12403_v48, %v12381_v51  ;;  %9164 = vmatpush3.bf16.msra.mxu1 %v10183_v23  ;;  %v4869_v48 = vrot.slane %v4868_v41, 4  ;;  %v4873_v51 = vrot.slane %v4871_v12, 5  ;;  %v4840_v43 = vsel %vm10590_vm3, %v4835_v27, %v12364_v4  ;;  %v7841_v23 = vld [vmem:[%s10510_s21 + $0x2e8] sm:$0xf]  ;;  %v7831_v2 = vld [vmem:[%s10510_s21 + $0x2c0] sm:$0x1] }
 0x1c2   : > { %9453 = vmatprep.mubr.msk.bf16.mxu0 %vm1355_vm0, %v12443_v20  ;;  %9482 = vmatpush3.bf16.msra.mxu0 %v10179_v5  ;;  %v4850_v33 = vsel %vm10590_vm3, %v4845_v14, %v4849_v8  ;;  %v12623_v18 = vrot.slane %v4957_v11, 5  ;;  %v12635_v4 = vrot.slane %v4961_v29, 4  ;;  %v4972_v15 = vshrl.u32 %v7841_v23, 16 }
 0x1c3   : > { %9483 = vmatprep.subr.bf16.mxu0 %v10185_v9  ;;  %v4859_v5 = vrot.slane %v4858_v53, 4  ;;  %9197 = vmatprep.subr.bf16.mxu1 %v12593_v45  ;;  %v12626_v28 = vcombine.low %v4840_v43, %v4850_v33  ;;  %v4874_v39 = vsel %vm10590_vm3, %v4869_v48, %v4873_v51  ;;  %v12647_v61 = vcombine.low %v7838_v13, %v7839_v46  ;;  %v12664_v13 = vld [vmem:[%s10510_s21 + $0x2f8] sm:$0xf] }
 0x1c4   : > { %9134 = vmatmul.mubr.msk.bf16.gmra.mrb[8].mxu1 %vm1355_vm0, %v12443_v20  ;;  %v4981_v20 = vshll.u32 %v7842_v63, 16  ;;  %v4985_v57 = vshrl.u32 %v7842_v63, 16  ;;  %v4996_v17 = vshrl.u32 %v12650_v55, 16  ;;  %v4882_v11 = vor.u32 %v12425_v3, %v12423_v22 }
 0x1c5   : > { %v4864_v35 = vsel %vm10590_vm3, %v4859_v5, %v12405_v32  ;;  %9137 = vmatprep.mubr.msk.bf16.mxu1 %vm1355_vm0, %v12496_v47  ;;  %v12645_v32 = vcombine.low %v12501_v19, %v12528_v24  ;;  %v4892_v53 = vor.u32 %v12483_v31, %v12445_v42  ;;  %v4895_v19 = vshll.u32 %v7831_v2, 16  ;;  %v7834_v24 = vld [vmem:[%s10510_s21 + $0x2cc] sm:$0x1] }
 0x1c6   : > { %9484 = vmatpush3.bf16.msra.mxu0 %v10185_v9  ;;  %v4975_v9 = vshll.u32 %v7841_v23, 16  ;;  %v12639_v50 = vcombine.low %v4864_v35, %v4874_v39  ;;  %v4999_v46 = vshll.u32 %v12650_v55, 16  ;;  %v4916_v41 = vor.u32 %v12553_v7, %v12543_v60 }
 0x1c7   : > { %9517 = vmatprep.subr.bf16.mxu0 %v12609_v36  ;;  %v4919_v12 = vshll.u32 %v7834_v24, 16  ;;  %v5005_v22 = vshll.u32 %v12664_v13, 16  ;;  %v4883_v3 = vrot.slane %v4882_v11, 4  ;;  %v4893_v31 = vrot.slane %v4892_v53, 4  ;;  %v7840_v24 = vld [vmem:[%s10510_s21 + $0x2e4] sm:$0x1] }
 0x1c8   : > { %v4897_v29 = vrot.slane %v4895_v19, 5  ;;  %v5009_v27 = vshrl.u32 %v12664_v13, 16  ;;  %v4917_v8 = vrot.slane %v4916_v41, 4  ;;  %v12673_v48 = vcombine.low %v7841_v23, %v7842_v63  ;;  %v7847_v63 = vld [vmem:[%s10510_s21 + $0x300] sm:$0xf] }
 0x1c9   : > { %9454 = vmatmul.mubr.msk.bf16.gmra.mrb[8].mxu0 %vm1355_vm0, %v12496_v47  ;;  %v4906_v47 = vor.u32 %v12541_v0, %v12508_v38  ;;  %v4921_v5 = vrot.slane %v4919_v12, 5  ;;  %v12675_v51 = vrot.slane %v4972_v15, 4  ;;  %v4888_v38 = vsel %vm10590_vm3, %v4883_v3, %v12445_v42 }
 0x1ca   : > { %9457 = vmatprep.mubr.msk.bf16.mxu0 %vm1355_vm0, %v12579_v40  ;;  %v4898_v0 = vsel %vm10590_vm3, %v4893_v31, %v4897_v29  ;;  %v12682_v7 = vrot.slane %v4975_v9, 5  ;;  %v12693_v42 = vrot.slane %v4981_v20, 5  ;;  %v12695_v35 = vrot.slane %v4985_v57, 4  ;;  %v7837_v20 = vld [vmem:[%s10510_s21 + $0x2d8] sm:$0x1] }
 0x1cb   : > { %v4907_v14 = vrot.slane %v4906_v47, 4  ;;  %v12684_v43 = vcombine.low %v4888_v38, %v4898_v0  ;;  %v4922_v23 = vsel %vm10590_vm3, %v4917_v8, %v4921_v5  ;;  %v12697_v39 = vrot.slane %v4996_v17, 4  ;;  %v7848_v57 = vld [vmem:[%s10510_s21 + $0x304] sm:$0xf]  ;;  %v7851_v5 = vld [vmem:[%s10510_s21 + $0x310] sm:$0xf] }
 0x1cc   : > { %9138 = vmatmul.mubr.msk.bf16.gmra.mrb[12].mxu1 %vm1355_vm0, %v12579_v40  ;;  %v12706_v9 = vrot.slane %v5005_v22, 5  ;;  %v12708_v2 = vrot.slane %v5009_v27, 4  ;;  %v5020_v40 = vshrl.u32 %v7847_v63, 16  ;;  %v5023_v17 = vshll.u32 %v7847_v63, 16  ;;  %v12726_v22 = vld [vmem:[%s10510_s21 + $0x30c] sm:$0xf] }
 0x1cd   : > { %v4912_v33 = vsel %vm10590_vm3, %v4907_v14, %v12543_v60  ;;  %9141 = vmatprep.mubr.msk.bf16.mxu1 %vm1355_vm0, %v12582_v44  ;;  %v12704_v60 = vrot.slane %v4999_v46, 5  ;;  %v4930_v11 = vor.u32 %v12566_v1, %v12564_v58  ;;  %v4940_v53 = vor.u32 %v12611_v49, %v12584_v26 }
 0x1ce   : > { %v12700_v15 = vcombine.low %v4912_v33, %v4922_v23  ;;  %v4943_v19 = vshll.u32 %v7837_v20, 16  ;;  %v5029_v46 = vshll.u32 %v7848_v57, 16  ;;  %v4954_v47 = vor.u32 %v12615_v16, %v12613_v21 }
 0x1cf   : > { %v4967_v41 = vshll.u32 %v7840_v24, 16  ;;  %v5033_v12 = vshrl.u32 %v7848_v57, 16  ;;  %v4931_v58 = vrot.slane %v4930_v11, 4  ;;  %v4941_v1 = vrot.slane %v4940_v53, 4 }
 0x1d0   : > { %v4945_v49 = vrot.slane %v4943_v19, 5  ;;  %v5044_v3 = vshrl.u32 %v12726_v22, 16  ;;  %v4955_v31 = vrot.slane %v4954_v47, 4  ;;  %v12729_v14 = vrot.slane %v5020_v40, 4  ;;  %v7843_v19 = vld [vmem:[%s10510_s21 + $0x2f0] sm:$0x1] }
 0x1d1   : > { %9458 = vmatmul.mubr.msk.bf16.gmra.mrb[12].mxu0 %vm1355_vm0, %v12582_v44  ;;  %v4964_v44 = vor.u32 %v12635_v4, %v12623_v18  ;;  %v4969_v27 = vrot.slane %v4967_v41, 5  ;;  %v12731_v8 = vrot.slane %v5023_v17, 5  ;;  %v4936_v21 = vsel %vm10590_vm3, %v4931_v58, %v12584_v26  ;;  %v7846_v41 = vld [vmem:[%s10510_s21 + $0x2fc] sm:$0x1] }
 0x1d2   : > { %9461 = vmatprep.mubr.msk.bf16.mxu0 %vm1355_vm0, %v12645_v32  ;;  %v4946_v16 = vsel %vm10590_vm3, %v4941_v1, %v4945_v49  ;;  %v12738_v4 = vrot.slane %v5029_v46, 5  ;;  %v4960_v0 = vsel %vm10590_vm3, %v4955_v31, %v12623_v18  ;;  %v12750_v26 = vrot.slane %v5033_v12, 4 }
 0x1d3   : > { %v4965_v29 = vrot.slane %v4964_v44, 4  ;;  %v12741_v38 = vcombine.low %v4936_v21, %v4946_v16  ;;  %v5047_v23 = vshll.u32 %v12726_v22, 16  ;;  %v5053_v40 = vshll.u32 %v7851_v5, 16 }
 0x1d4   : > { %9142 = vmatmul.mubr.msk.bf16.gmra.mrb[16].mxu1 %vm1355_vm0, %v12645_v32  ;;  %v8091_v18 = vcombine.low %v12650_v55, %v12664_v13  ;;  %v12759_v17 = vcombine.low %v7847_v63, %v7848_v57  ;;  %v5046_v11 = vrot.slane %v5044_v3, 4  ;;  %v5057_v53 = vshrl.u32 %v7851_v5, 16  ;;  %v7853_v32 = vld [vmem:[%s10510_s21 + $0x318] sm:$0xf]  ;;  %v7854_v55 = vld [vmem:[%s10510_s21 + $0x31c] sm:$0xf] }
 0x1d5   : > { %v4970_v33 = vsel %vm10590_vm3, %v4965_v29, %v4969_v27  ;;  %9145 = vmatprep.mubr.msk.bf16.mxu1 %vm1355_vm0, %v12647_v61  ;;  %v5068_v24 = vshrl.u32 %v7853_v32, 16  ;;  %v4978_v46 = vor.u32 %v12682_v7, %v12675_v51  ;;  %v4988_v47 = vor.u32 %v12695_v35, %v12693_v42 }
 0x1d6   : > { %v12753_v20 = vcombine.low %v4960_v0, %v4970_v33  ;;  %v4991_v44 = vshll.u32 %v7843_v19, 16  ;;  %v5071_v13 = vshll.u32 %v7853_v32, 16  ;;  %v5002_v63 = vor.u32 %v12704_v60, %v12697_v39 }
 0x1d7   : > { %v5015_v57 = vshll.u32 %v7846_v41, 16  ;;  %v5077_v12 = vshll.u32 %v7854_v55, 16  ;;  %v4979_v58 = vrot.slane %v4978_v46, 4  ;;  %v4989_v51 = vrot.slane %v4988_v47, 4 }
 0x1d8   : > { %v4993_v7 = vrot.slane %v4991_v44, 5  ;;  %v5049_v1 = vrot.slane %v5047_v23, 5  ;;  %v5003_v35 = vrot.slane %v5002_v63, 4  ;;  %v5055_v31 = vrot.slane %v5053_v40, 5  ;;  %v12792_v23 = vld [vmem:[%s10510_s21 + $0x324] sm:$0xf] }
 0x1d9   : > { %9462 = vmatmul.mubr.msk.bf16.gmra.mrb[16].mxu0 %vm1355_vm0, %v12647_v61  ;;  %v5012_v61 = vor.u32 %v12708_v2, %v12706_v9  ;;  %v5017_v3 = vrot.slane %v5015_v57, 5  ;;  %v5059_v29 = vrot.slane %v5057_v53, 4  ;;  %v4984_v39 = vsel %vm10590_vm3, %v4979_v58, %v12693_v42  ;;  %v7849_v44 = vld [vmem:[%s10510_s21 + $0x308] sm:$0x1]  ;;  %v7852_v63 = vld [vmem:[%s10510_s21 + $0x314] sm:$0x1] }
 0x1da   : > { %9465 = vmatprep.mubr.msk.bf16.mxu0 %vm1355_vm0, %v12673_v48  ;;  %v4994_v60 = vsel %vm10590_vm3, %v4989_v51, %v4993_v7  ;;  %v5081_v2 = vshrl.u32 %v7854_v55, 16  ;;  %v5008_v21 = vsel %vm10590_vm3, %v5003_v35, %v12706_v9  ;;  %v5070_v0 = vrot.slane %v5068_v24, 4  ;;  %v7857_v9 = vld [vmem:[%s10510_s21 + $0x328] sm:$0xf] }
 0x1db   : > { %v5013_v49 = vrot.slane %v5012_v61, 4  ;;  %v12782_v27 = vcombine.low %v4984_v39, %v4994_v60  ;;  %v5073_v33 = vrot.slane %v5071_v13, 5  ;;  %v5079_v42 = vrot.slane %v5077_v12, 5 }
 0x1dc   : > { %9146 = vmatmul.mubr.msk.bf16.gmra.mrb[20].mxu1 %vm1355_vm0, %v12673_v48  ;;  %v8093_v53 = vcombine.low %v12726_v22, %v7851_v5  ;;  %v8094_v19 = vcombine.low %v7853_v32, %v7854_v55  ;;  %v7118_v46 = vshrl.u32 %v12792_v23, 16  ;;  %v7121_v47 = vshll.u32 %v12792_v23, 16 }
 0x1dd   : > { %v5018_v16 = vsel %vm10590_vm3, %v5013_v49, %v5017_v3  ;;  %9149 = vmatprep.mubr.msk.bf16.mxu1 %vm1355_vm0, %v8091_v18  ;;  %v7127_v48 = vshll.u32 %v7857_v9, 16  ;;  %v5026_v24 = vor.u32 %v12731_v8, %v12729_v14  ;;  %v5036_v41 = vor.u32 %v12750_v26, %v12738_v4 }
 0x1de   : > { %v12794_v40 = vcombine.low %v5008_v21, %v5018_v16  ;;  %v5039_v13 = vshll.u32 %v7849_v44, 16  ;;  %v7131_v22 = vshrl.u32 %v7857_v9, 16  ;;  %v5050_v5 = vor.u32 %v5049_v1, %v5046_v11  ;;  %v7858_v16 = vld [vmem:[%s10510_s21 + $0x32c] sm:$0x1] }
 0x1df   : > { %v5060_v32 = vor.u32 %v5059_v29, %v5055_v31  ;;  %v5063_v55 = vshll.u32 %v7852_v63, 16  ;;  %v5083_v61 = vrot.slane %v5081_v2, 4  ;;  %v5027_v57 = vrot.slane %v5026_v24, 4 }
 0x1e0   : > { %v5037_v12 = vrot.slane %v5036_v41, 4  ;;  %v7120_v58 = vrot.slane %v7118_v46, 4  ;;  %v5051_v51 = vrot.slane %v5050_v5, 4  ;;  %v7123_v7 = vrot.slane %v7121_v47, 5 }
 0x1e1   : > { %9466 = vmatmul.mubr.msk.bf16.gmra.mrb[20].mxu0 %vm1355_vm0, %v8091_v18  ;;  %v5041_v18 = vrot.slane %v5039_v13, 5  ;;  %v5061_v14 = vrot.slane %v5060_v32, 4  ;;  %v5065_v8 = vrot.slane %v5063_v55, 5  ;;  %v7129_v26 = vrot.slane %v7127_v48, 5  ;;  %v13481_v55 = vld [vmem:[#allocation86_spill] sm:$0xff] }
 0x1e2   : > { %9469 = vmatprep.mubr.msk.bf16.mxu0 %vm1355_vm0, %v12759_v17  ;;  %v5032_v35 = vsel %vm10590_vm3, %v5027_v57, %v12738_v4  ;;  %v7133_v1 = vrot.slane %v7131_v22, 4  ;;  %v5056_v3 = vsel %vm10590_vm3, %v5051_v51, %v5055_v31  ;;  %v7855_v4 = vld [vmem:[%s10510_s21 + $0x320] sm:$0x1]  ;;  %v5074_v60 = vor.u32 %v5073_v33, %v5070_v0  ;;  %v10194_v57 = vld [vmem:[%s13064_s1 + $0xf8] sm:$0xff]  }
 0x1e3   : > { %v5042_v11 = vsel %vm10590_vm3, %v5037_v12, %v5041_v18  ;;  %v5066_v29 = vsel %vm10590_vm3, %v5061_v14, %v5065_v8  ;;  %v5084_v2 = vor.u32 %v5083_v61, %v5079_v42  ;;  %v5087_v21 = vshll.u32 %v7855_v4, 16  ;;  %v13484_v61 = vld [vmem:[#allocation92_spill] sm:$0xff]  ;;  %v13485_v12 = vld [vmem:[#allocation94_spill] sm:$0xff]  ;;  %v13486_v18 = vld [vmem:[#allocation103_spill] sm:$0xff] }
 0x1e4   : > { %v12815_v49 = vcombine.low %v5032_v35, %v5042_v11  ;;  %9150 = vmatmul.mubr.msk.bf16.gmra.mrb[24].mxu1 %vm1355_vm0, %v12759_v17  ;;  %v12823_v39 = vcombine.low %v5056_v3, %v5066_v29  ;;  %v7124_v31 = vor.u32 %v7123_v7, %v7120_v58  ;;  %v7134_v46 = vor.u32 %v7133_v1, %v7129_v26  ;;  %v13487_v58 = vld [vmem:[#allocation104_spill] sm:$0xff]  ;;  %v13488_v51 = vld [vmem:[#allocation49_spill] sm:$0xff]  ;;  %v13490_v8 = vld [vmem:[#allocation3_spill] sm:$0xff] }
 0x1e5   : > { %9153 = vmatprep.mubr.msk.bf16.mxu1 %vm1355_vm0, %v8093_v53  ;;  %v7137_v47 = vshll.u32 %v7858_v16, 16  ;;  %v5075_v44 = vrot.slane %v5074_v60, 4  ;;  %v5085_v48 = vrot.slane %v5084_v2, 4  ;;  %v5089_v24 = vrot.slane %v5087_v21, 5  ;;  %v13489_v14 = vld [vmem:[#allocation113_spill] sm:$0xff]  ;;  %v13491_v7 = vld [vmem:[#allocation4_spill] sm:$0xff] }
 0x1e6   : > { %v7125_v17 = vrot.slane %v7124_v31, 4  ;;  %v7135_v41 = vrot.slane %v7134_v46, 4  ;;  %v8356_v63 = vcombine.low %v12792_v23, %v7857_v9  ;;  %v10190_v23 = vld [vmem:[%s13064_s1 + $0xe8] sm:$0xff]   ;;  %v10192_v9 = vld [vmem:[%s13064_s1 + $0xf0] sm:$0xff]  }
 0x1e7   : > { %v7139_v13 = vrot.slane %v7137_v47, 5  ;;  %v5090_v0 = vsel %vm10590_vm3, %v5085_v48, %v5089_v24 }
 0x1e8   : > { %v7130_v22 = vsel %vm10590_vm3, %v7125_v17, %v7129_v26 }
 0x1e9   : > { %9470 = vmatmul.mubr.msk.bf16.gmra.mrb[24].mxu0 %vm1355_vm0, %v8093_v53  ;;  %v5080_v53 = vsel %vm10590_vm3, %v5075_v44, %v5079_v42  ;;  %v7140_v5 = vsel %vm10590_vm3, %v7135_v41, %v7139_v13  ;;  %v13482_v42 = vld [vmem:[#allocation47_spill] sm:$0xff] }
 0x1ea   : > { %9473 = vmatprep.mubr.msk.bf16.mxu0 %vm1355_vm0, %v8094_v19  ;;  %v12835_v33 = vcombine.low %v5080_v53, %v5090_v0  ;;  %v12842_v32 = vcombine.low %v7130_v22, %v7140_v5 }
 0x1ec   : > { %9154 = vmatmul.mubr.msk.bf16.gmra.mrb[28].mxu1 %vm1355_vm0, %v8094_v19  ;;  %v13483_v19 = vld [vmem:[#allocation53_spill] sm:$0xff] }
 0x1ed   : > { %9165 = vmatprep.mubr.msk.bf16.mxu1 %vm1355_vm0, %v13481_v55 }
 0x1f1   : > { %9474 = vmatmul.mubr.msk.bf16.gmra.mrb[28].mxu0 %vm1355_vm0, %v8356_v63 }
 0x1f2   : > { %9485 = vmatprep.mubr.msk.bf16.mxu0 %vm1355_vm0, %v13482_v42 }
 0x1f4   : > { %9166 = vmatmul.mubr.msk.bf16.vlgmr.msra.gmra.mrb[0].mxu1 %vm1355_vm0, %v13482_v42 }
 0x1f5   : > { %9198 = vmatpush3.bf16.msra.mxu1 %v12593_v45  ;;  %9169 = vmatprep.mubr.msk.bf16.mxu1 %vm1355_vm0, %v13483_v19  ;;  %v10193_v45 = vld [vmem:[%s13064_s1 + $0x1f0] sm:$0xff]  }
 0x1f6   : > { %9199 = vmatprep.subr.bf16.mxu1 %v10190_v23 }
 0x1f9   : > { %9486 = vmatmul.mubr.msk.bf16.vlgmr.msra.gmra.mrb[0].mxu0 %vm1355_vm0, %v13483_v19  ;;  %9200 = vmatpush3.bf16.msra.mxu1 %v10190_v23 }
 0x1fa   : > { %9518 = vmatpush3.bf16.msra.mxu0 %v12609_v36  ;;  %9489 = vmatprep.mubr.msk.bf16.mxu0 %vm1355_vm0, %v13484_v61  ;;  %v10195_v36 = vld [vmem:[%s13064_s1 + $0x1f8] sm:$0xff]  }
 0x1fb   : > { %9519 = vmatprep.subr.bf16.mxu0 %v10191_v56  ;;  %9201 = vmatprep.subr.bf16.mxu1 %v10192_v9 }
 0x1fc   : > { %9170 = vmatmul.mubr.msk.bf16.gmra.mrb[4].mxu1 %vm1355_vm0, %v13484_v61 }
 0x1fd   : > { %9173 = vmatprep.mubr.msk.bf16.mxu1 %vm1355_vm0, %v13485_v12  ;;  %9202 = vmatpush3.bf16.msra.mxu1 %v10192_v9 }
 0x1fe   : > { %9520 = vmatpush3.bf16.msra.mxu0 %v10191_v56  ;;  %9203 = vmatprep.subr.bf16.mxu1 %v10194_v57 }
 0x1ff   : > { %9521 = vmatprep.subr.bf16.mxu0 %v10193_v45 }
 0x201   : > { %9490 = vmatmul.mubr.msk.bf16.gmra.mrb[4].mxu0 %vm1355_vm0, %v13485_v12  ;;  %9204 = vmatpush3.bf16.msra.mxu1 %v10194_v57 }
 0x202   : > { %9493 = vmatprep.mubr.msk.bf16.mxu0 %vm1355_vm0, %v13486_v18  ;;  %9522 = vmatpush3.bf16.msra.mxu0 %v10193_v45 }
 0x203   : > { %9523 = vmatprep.subr.bf16.mxu0 %v10195_v36 }
 0x204   : > { %9174 = vmatmul.mubr.msk.bf16.gmra.mrb[8].mxu1 %vm1355_vm0, %v13486_v18 }
 0x205   : > { %9177 = vmatprep.mubr.msk.bf16.mxu1 %vm1355_vm0, %v13487_v58 }
 0x206   : > { %9524 = vmatpush3.bf16.msra.mxu0 %v10195_v36 }
 0x209   : > { %9494 = vmatmul.mubr.msk.bf16.gmra.mrb[8].mxu0 %vm1355_vm0, %v13487_v58 }
 0x20a   : > { %9497 = vmatprep.mubr.msk.bf16.mxu0 %vm1355_vm0, %v13488_v51 }
 0x20c   : > { %9178 = vmatmul.mubr.msk.bf16.gmra.mrb[12].mxu1 %vm1355_vm0, %v13488_v51 }
 0x20d   : > { %9181 = vmatprep.mubr.msk.bf16.mxu1 %vm1355_vm0, %v13489_v14 }
 0x211   : > { %9498 = vmatmul.mubr.msk.bf16.gmra.mrb[12].mxu0 %vm1355_vm0, %v13489_v14 }
 0x212   : > { %9501 = vmatprep.mubr.msk.bf16.mxu0 %vm1355_vm0, %v12229_v25 }
 0x214   : > { %9182 = vmatmul.mubr.msk.bf16.gmra.mrb[16].mxu1 %vm1355_vm0, %v12229_v25  ;;  %v13492_v25 = vld [vmem:[#allocation65_spill] sm:$0xff] }
 0x215   : > { %9185 = vmatprep.mubr.msk.bf16.mxu1 %vm1355_vm0, %v13490_v8 }
 0x219   : > { %9502 = vmatmul.mubr.msk.bf16.gmra.mrb[16].mxu0 %vm1355_vm0, %v13490_v8 }
 0x21a   : > { %9505 = vmatprep.mubr.msk.bf16.mxu0 %vm1355_vm0, %v12287_v52 }
 0x21c   : > { %9186 = vmatmul.mubr.msk.bf16.gmra.mrb[20].mxu1 %vm1355_vm0, %v12287_v52 }
 0x21d   : > { %9189 = vmatprep.mubr.msk.bf16.mxu1 %vm1355_vm0, %v12300_v34 }
 0x221   : > { %9506 = vmatmul.mubr.msk.bf16.gmra.mrb[20].mxu0 %vm1355_vm0, %v12300_v34 }
 0x222   : > { %9509 = vmatprep.mubr.msk.bf16.mxu0 %vm1355_vm0, %v13491_v7 }
 0x224   : > { %9190 = vmatmul.mubr.msk.bf16.gmra.mrb[24].mxu1 %vm1355_vm0, %v13491_v7 }
 0x225   : > { %9193 = vmatprep.mubr.msk.bf16.mxu1 %vm1355_vm0, %v13492_v25 }
 0x229   : > { %9510 = vmatmul.mubr.msk.bf16.gmra.mrb[24].mxu0 %vm1355_vm0, %v13492_v25 }
 0x22a   : > { %9513 = vmatprep.mubr.msk.bf16.mxu0 %vm1355_vm0, %v12414_v62 }
 0x22c   : > { %9194 = vmatmul.mubr.msk.bf16.gmra.mrb[28].mxu1 %vm1355_vm0, %v12414_v62 }
 0x22d   : > { %9205 = vmatprep.mubr.msk.bf16.mxu1 %vm1355_vm0, %v12485_v59 }
 0x231   : > { %9514 = vmatmul.mubr.msk.bf16.gmra.mrb[28].mxu0 %vm1355_vm0, %v12431_v30  ;;  %v12998_v30 = vld [vmem:[%s13065_s2] ss:$0 sm:$0xff] }
 0x232   : > { %9525 = vmatprep.mubr.msk.bf16.mxu0 %vm1355_vm0, %v12503_v37 }
 0x234   : > { %9206 = vmatmul.mubr.msk.bf16.vlgmr.msra.gmra.mrb[0].mxu1 %vm1355_vm0, %v12503_v37 }
 0x235   : > { %9209 = vmatprep.mubr.msk.bf16.mxu1 %vm1355_vm0, %v12530_v10 }
 0x239   : > { %9526 = vmatmul.mubr.msk.bf16.vlgmr.msra.gmra.mrb[0].mxu0 %vm1355_vm0, %v12530_v10 }
 0x23a   : > { %9529 = vmatprep.mubr.msk.bf16.mxu0 %vm1355_vm0, %v12555_v6 }
 0x23c   : > { %9210 = vmatmul.mubr.msk.bf16.gmra.mrb[4].mxu1 %vm1355_vm0, %v12555_v6 }
 0x23d   : > { %9213 = vmatprep.mubr.msk.bf16.mxu1 %vm1355_vm0, %v12573_v54 }
 0x241   : > { %9530 = vmatmul.mubr.msk.bf16.gmra.mrb[4].mxu0 %vm1355_vm0, %v12573_v54 }
 0x242   : > { %9533 = vmatprep.mubr.msk.bf16.mxu0 %vm1355_vm0, %v12626_v28 }
 0x244   : > { %9214 = vmatmul.mubr.msk.bf16.gmra.mrb[8].mxu1 %vm1355_vm0, %v12626_v28 }
 0x245   : > { %9217 = vmatprep.mubr.msk.bf16.mxu1 %vm1355_vm0, %v12639_v50 }
 0x249   : > { %9534 = vmatmul.mubr.msk.bf16.gmra.mrb[8].mxu0 %vm1355_vm0, %v12639_v50 }
 0x24a   : > { %9537 = vmatprep.mubr.msk.bf16.mxu0 %vm1355_vm0, %v12684_v43 }
 0x24c   : > { %9218 = vmatmul.mubr.msk.bf16.gmra.mrb[12].mxu1 %vm1355_vm0, %v12684_v43 }
 0x24d   : > { %9221 = vmatprep.mubr.msk.bf16.mxu1 %vm1355_vm0, %v12700_v15 }
 0x251   : > { %9538 = vmatmul.mubr.msk.bf16.gmra.mrb[12].mxu0 %vm1355_vm0, %v12700_v15 }
 0x252   : > { %9541 = vmatprep.mubr.msk.bf16.mxu0 %vm1355_vm0, %v12741_v38 }
 0x254   : > { %9222 = vmatmul.mubr.msk.bf16.gmra.mrb[16].mxu1 %vm1355_vm0, %v12741_v38 }
 0x255   : > { %9225 = vmatprep.mubr.msk.bf16.mxu1 %vm1355_vm0, %v12753_v20 }
 0x259   : > { %9542 = vmatmul.mubr.msk.bf16.gmra.mrb[16].mxu0 %vm1355_vm0, %v12753_v20 }
 0x25a   : > { %9545 = vmatprep.mubr.msk.bf16.mxu0 %vm1355_vm0, %v12782_v27 }
 0x25c   : > { %9226 = vmatmul.mubr.msk.bf16.gmra.mrb[20].mxu1 %vm1355_vm0, %v12782_v27 }
 0x25d   : > { %9229 = vmatprep.mubr.msk.bf16.mxu1 %vm1355_vm0, %v12794_v40 }
 0x261   : > { %9546 = vmatmul.mubr.msk.bf16.gmra.mrb[20].mxu0 %vm1355_vm0, %v12794_v40 }
 0x262   : > { %9549 = vmatprep.mubr.msk.bf16.mxu0 %vm1355_vm0, %v12815_v49 }
 0x264   : > { %9230 = vmatmul.mubr.msk.bf16.gmra.mrb[24].mxu1 %vm1355_vm0, %v12815_v49 }
 0x265   : > { %9233 = vmatprep.mubr.msk.bf16.mxu1 %vm1355_vm0, %v12823_v39 }
 0x269   : > { %9550 = vmatmul.mubr.msk.bf16.gmra.mrb[24].mxu0 %vm1355_vm0, %v12823_v39 }
 0x26a   : > { %9553 = vmatprep.mubr.msk.bf16.mxu0 %vm1355_vm0, %v12835_v33 }
 0x26c   : > { %9234 = vmatmul.mubr.msk.bf16.gmra.mrb[28].mxu1 %vm1355_vm0, %v12835_v33 }
 0x271   : > { %9554 = vmatmul.mubr.msk.bf16.gmra.mrb[28].mxu0 %vm1355_vm0, %v12842_v32 }
 0x307   : > { %v9207_v52 = vpop.f32.mrb[0].mxu1 }
 0x308   : > { %v5254_v34 = vpop.f32.mrb[1].mxu1 }
 0x309   : > { %v9208_v59 = vpop.f32.mrb[2].mxu1 }
 0x30a   : > { %v5257_v6 = vpop.f32.mrb[3].mxu1 }
 0x30c   : > { %v9527_v62 = vpop.f32.mrb[0].mxu0 }
 0x30d   : > { %v9557_v37 = vadd.f32 %v9527_v62, %v9207_v52  ;;  %v7214_v10 = vpop.f32.mrb[1].mxu0 }
 0x30e   : > { %v9558_v54 = vadd.f32 %v7214_v10, %v5254_v34  ;;  %v9528_v28 = vpop.f32.mrb[2].mxu0 }
 0x30f   : > { %v7382_v50 = vadd.f32 %v9557_v37, %v12998_v30  ;;  %v9559_v43 = vadd.f32 %v9528_v28, %v9208_v59  ;;  %v7217_v15 = vpop.f32.mrb[3].mxu0  ;;  %v9211_v11 = vpop.f32.mrb[4].mxu1 }
 0x310   : > { %v7380_v38 = vadd.f32 %v9558_v54, %v12998_v30  ;;  %v9560_v20 = vadd.f32 %v7217_v15, %v5257_v6  ;;  %v5270_v49 = vpop.f32.mrb[5].mxu1 }
 0x311   : > { %v7414_v27 = vmul.f32 0.2, %v7382_v50  ;;  %v7383_v40 = vadd.f32 %v9559_v43, %v12998_v30  ;;  %v9212_v39 = vpop.f32.mrb[6].mxu1 }
 0x312   : > { %v7412_v26 = vmul.f32 0.2, %v7380_v38  ;;  %v7381_v35 = vadd.f32 %v9560_v20, %v12998_v30  ;;  %v5273_v16 = vpop.f32.mrb[7].mxu1 }
 0x313   : > { %v7415_v1 = vmul.f32 0.2, %v7383_v40  ;;  %v7446_v4 = vmax.f32 %v7382_v50, %v7414_v27 }
 0x314   : > { %v7413_v3 = vmul.f32 0.2, %v7381_v35  ;;  %v9531_v29 = vpop.f32.mrb[4].mxu0  ;;  %v7444_v31 = vmax.f32 %v7380_v38, %v7412_v26 }
 0x315   : > { %v7447_v60 = vmax.f32 %v7383_v40, %v7415_v1  ;;  %v9561_v2 = vadd.f32 %v9531_v29, %v9211_v11  ;;  %v7230_v21 = vpop.f32.mrb[5].mxu0 }
 0x316   : > { %v7445_v46 = vmax.f32 %v7381_v35, %v7413_v3  ;;  %v9562_v47 = vadd.f32 %v7230_v21, %v5270_v49  ;;  %v9532_v44 = vpop.f32.mrb[6].mxu0 }
 0x317   : > { %v8510_v48 = vpack.c.bf16 %v7447_v60, %v7446_v4  ;;  %v7386_v24 = vadd.f32 %v9561_v2, %v12998_v30  ;;  %v9563_v17 = vadd.f32 %v9532_v44, %v9212_v39  ;;  %v7233_v41 = vpop.f32.mrb[7].mxu0  ;;  %v9215_v32 = vpop.f32.mrb[8].mxu1 }
 0x318   : > { %v8505_v13 = vpack.c.bf16 %v7445_v46, %v7444_v31  ;;  %v7384_v63 = vadd.f32 %v9562_v47, %v12998_v30  ;;  %v9564_v53 = vadd.f32 %v7233_v41, %v5273_v16  ;;  %v5286_v42 = vpop.f32.mrb[9].mxu1 }
 0x319   : > { %8582 = vst [vmem:[%s13007_s7 + $0x8] sm:$0xff] %v8510_v48   ;;  %v7418_v0 = vmul.f32 0.2, %v7386_v24  ;;  %v7387_v33 = vadd.f32 %v9563_v17, %v12998_v30  ;;  %v9216_v19 = vpop.f32.mrb[10].mxu1 }
 0x31a   : > { %8506 = vst [vmem:[%s13007_s7] sm:$0xff] %v8505_v13   ;;  %v7416_v22 = vmul.f32 0.2, %v7384_v63  ;;  %v7385_v5 = vadd.f32 %v9564_v53, %v12998_v30  ;;  %v5289_v36 = vpop.f32.mrb[11].mxu1 }
 0x31b   : > { %v7419_v55 = vmul.f32 0.2, %v7387_v33  ;;  %v7450_v9 = vmax.f32 %v7386_v24, %v7418_v0 }
 0x31c   : > { %v7417_v23 = vmul.f32 0.2, %v7385_v5  ;;  %v9535_v56 = vpop.f32.mrb[8].mxu0  ;;  %v7448_v12 = vmax.f32 %v7384_v63, %v7416_v22 }
 0x31d   : > { %v7451_v61 = vmax.f32 %v7387_v33, %v7419_v55  ;;  %v9565_v45 = vadd.f32 %v9535_v56, %v9215_v32  ;;  %v7246_v57 = vpop.f32.mrb[9].mxu0 }
 0x31e   : > { %v7449_v18 = vmax.f32 %v7385_v5, %v7417_v23  ;;  %v9566_v58 = vadd.f32 %v7246_v57, %v5286_v42  ;;  %v9536_v51 = vpop.f32.mrb[10].mxu0 }
 0x31f   : > { %v8520_v14 = vpack.c.bf16 %v7451_v61, %v7450_v9  ;;  %v7390_v8 = vadd.f32 %v9565_v45, %v12998_v30  ;;  %v9567_v7 = vadd.f32 %v9536_v51, %v9216_v19  ;;  %v7249_v25 = vpop.f32.mrb[11].mxu0  ;;  %v9219_v54 = vpop.f32.mrb[12].mxu1 }
 0x320   : > { %v8515_v52 = vpack.c.bf16 %v7449_v18, %v7448_v12  ;;  %v7388_v34 = vadd.f32 %v9566_v58, %v12998_v30  ;;  %v9568_v62 = vadd.f32 %v7249_v25, %v5289_v36  ;;  %v5302_v50 = vpop.f32.mrb[13].mxu1 }
 0x321   : > { %8584 = vst [vmem:[%s13007_s7 + $0x18] sm:$0xff] %v8520_v14   ;;  %v7422_v59 = vmul.f32 0.2, %v7390_v8  ;;  %v7391_v37 = vadd.f32 %v9567_v7, %v12998_v30  ;;  %v9220_v38 = vpop.f32.mrb[14].mxu1 }
 0x322   : > { %8583 = vst [vmem:[%s13007_s7 + $0x10] sm:$0xff] %v8515_v52   ;;  %v7420_v10 = vmul.f32 0.2, %v7388_v34  ;;  %v7389_v6 = vadd.f32 %v9568_v62, %v12998_v30  ;;  %v5305_v35 = vpop.f32.mrb[15].mxu1 }
 0x323   : > { %v7423_v28 = vmul.f32 0.2, %v7391_v37  ;;  %v7454_v20 = vmax.f32 %v7390_v8, %v7422_v59 }
 0x324   : > { %v7421_v43 = vmul.f32 0.2, %v7389_v6  ;;  %v9539_v15 = vpop.f32.mrb[12].mxu0  ;;  %v7452_v11 = vmax.f32 %v7388_v34, %v7420_v10 }
 0x325   : > { %v7455_v27 = vmax.f32 %v7391_v37, %v7423_v28  ;;  %v9569_v40 = vadd.f32 %v9539_v15, %v9219_v54  ;;  %v7262_v26 = vpop.f32.mrb[13].mxu0 }
 0x326   : > { %v7453_v1 = vmax.f32 %v7389_v6, %v7421_v43  ;;  %v9570_v49 = vadd.f32 %v7262_v26, %v5302_v50  ;;  %v9540_v3 = vpop.f32.mrb[14].mxu0 }
 0x327   : > { %v8530_v29 = vpack.c.bf16 %v7455_v27, %v7454_v20  ;;  %v7394_v39 = vadd.f32 %v9569_v40, %v12998_v30  ;;  %v9571_v4 = vadd.f32 %v9540_v3, %v9220_v38  ;;  %v7265_v60 = vpop.f32.mrb[15].mxu0  ;;  %v9223_v48 = vpop.f32.mrb[16].mxu1 }
 0x328   : > { %v8525_v2 = vpack.c.bf16 %v7453_v1, %v7452_v11  ;;  %v7392_v21 = vadd.f32 %v9570_v49, %v12998_v30  ;;  %v9572_v16 = vadd.f32 %v7265_v60, %v5305_v35  ;;  %v5318_v17 = vpop.f32.mrb[17].mxu1 }
 0x329   : > { %8586 = vst [vmem:[%s13007_s7 + $0x28] sm:$0xff] %v8530_v29   ;;  %v7426_v31 = vmul.f32 0.2, %v7394_v39  ;;  %v7395_v46 = vadd.f32 %v9571_v4, %v12998_v30  ;;  %v9224_v63 = vpop.f32.mrb[18].mxu1 }
 0x32a   : > { %8585 = vst [vmem:[%s13007_s7 + $0x20] sm:$0xff] %v8525_v2   ;;  %v7424_v47 = vmul.f32 0.2, %v7392_v21  ;;  %v7393_v44 = vadd.f32 %v9572_v16, %v12998_v30  ;;  %v5321_v5 = vpop.f32.mrb[19].mxu1 }
 0x32b   : > { %v7427_v24 = vmul.f32 0.2, %v7395_v46  ;;  %v7458_v53 = vmax.f32 %v7394_v39, %v7426_v31 }
 0x32c   : > { %v7425_v41 = vmul.f32 0.2, %v7393_v44  ;;  %v9543_v13 = vpop.f32.mrb[16].mxu0  ;;  %v7456_v32 = vmax.f32 %v7392_v21, %v7424_v47 }
 0x32d   : > { %v7459_v0 = vmax.f32 %v7395_v46, %v7427_v24  ;;  %v9573_v33 = vadd.f32 %v9543_v13, %v9223_v48  ;;  %v7278_v22 = vpop.f32.mrb[17].mxu0 }
 0x32e   : > { %v7457_v55 = vmax.f32 %v7393_v44, %v7425_v41  ;;  %v9574_v42 = vadd.f32 %v7278_v22, %v5318_v17  ;;  %v9544_v23 = vpop.f32.mrb[18].mxu0 }
 0x32f   : > { %v8540_v56 = vpack.c.bf16 %v7459_v0, %v7458_v53  ;;  %v7398_v19 = vadd.f32 %v9573_v33, %v12998_v30  ;;  %v9575_v9 = vadd.f32 %v9544_v23, %v9224_v63  ;;  %v7281_v61 = vpop.f32.mrb[19].mxu0  ;;  %v9227_v14 = vpop.f32.mrb[20].mxu1 }
 0x330   : > { %v8535_v45 = vpack.c.bf16 %v7457_v55, %v7456_v32  ;;  %v7396_v57 = vadd.f32 %v9574_v42, %v12998_v30  ;;  %v9576_v36 = vadd.f32 %v7281_v61, %v5321_v5  ;;  %v5334_v7 = vpop.f32.mrb[21].mxu1 }
 0x331   : > { %8588 = vst [vmem:[%s13007_s7 + $0x38] sm:$0xff] %v8540_v56   ;;  %v7430_v12 = vmul.f32 0.2, %v7398_v19  ;;  %v7399_v18 = vadd.f32 %v9575_v9, %v12998_v30  ;;  %v9228_v34 = vpop.f32.mrb[22].mxu1 }
 0x332   : > { %8587 = vst [vmem:[%s13007_s7 + $0x30] sm:$0xff] %v8535_v45   ;;  %v7428_v58 = vmul.f32 0.2, %v7396_v57  ;;  %v7397_v51 = vadd.f32 %v9576_v36, %v12998_v30  ;;  %v5337_v6 = vpop.f32.mrb[23].mxu1 }
 0x333   : > { %v7431_v8 = vmul.f32 0.2, %v7399_v18  ;;  %v7462_v62 = vmax.f32 %v7398_v19, %v7430_v12 }
 0x334   : > { %v7429_v25 = vmul.f32 0.2, %v7397_v51  ;;  %v9547_v52 = vpop.f32.mrb[20].mxu0  ;;  %v7460_v54 = vmax.f32 %v7396_v57, %v7428_v58 }
 0x335   : > { %v7463_v59 = vmax.f32 %v7399_v18, %v7431_v8  ;;  %v9577_v37 = vadd.f32 %v9547_v52, %v9227_v14  ;;  %v7294_v10 = vpop.f32.mrb[21].mxu0 }
 0x336   : > { %v7461_v28 = vmax.f32 %v7397_v51, %v7429_v25  ;;  %v9578_v50 = vadd.f32 %v7294_v10, %v5334_v7  ;;  %v9548_v43 = vpop.f32.mrb[22].mxu0 }
 0x337   : > { %v8550_v15 = vpack.c.bf16 %v7463_v59, %v7462_v62  ;;  %v7402_v38 = vadd.f32 %v9577_v37, %v12998_v30  ;;  %v9579_v20 = vadd.f32 %v9548_v43, %v9228_v34  ;;  %v7297_v27 = vpop.f32.mrb[23].mxu0  ;;  %v9231_v29 = vpop.f32.mrb[24].mxu1 }
 0x338   : > { %v8545_v40 = vpack.c.bf16 %v7461_v28, %v7460_v54  ;;  %v7400_v26 = vadd.f32 %v9578_v50, %v12998_v30  ;;  %v9580_v35 = vadd.f32 %v7297_v27, %v5337_v6  ;;  %v5350_v4 = vpop.f32.mrb[25].mxu1 }
 0x339   : > { %8590 = vst [vmem:[%s13007_s7 + $0x48] sm:$0xff] %v8550_v15   ;;  %v7434_v11 = vmul.f32 0.2, %v7402_v38  ;;  %v7403_v1 = vadd.f32 %v9579_v20, %v12998_v30  ;;  %v9232_v21 = vpop.f32.mrb[26].mxu1 }
 0x33a   : > { %8589 = vst [vmem:[%s13007_s7 + $0x40] sm:$0xff] %v8545_v40   ;;  %v7432_v49 = vmul.f32 0.2, %v7400_v26  ;;  %v7401_v3 = vadd.f32 %v9580_v35, %v12998_v30  ;;  %v5353_v44 = vpop.f32.mrb[27].mxu1 }
 0x33b   : > { %v7435_v39 = vmul.f32 0.2, %v7403_v1  ;;  %v7466_v16 = vmax.f32 %v7402_v38, %v7434_v11 }
 0x33c   : > { %v7433_v60 = vmul.f32 0.2, %v7401_v3  ;;  %v9551_v2 = vpop.f32.mrb[24].mxu0  ;;  %v7464_v48 = vmax.f32 %v7400_v26, %v7432_v49 }
 0x33d   : > { %v7467_v31 = vmax.f32 %v7403_v1, %v7435_v39  ;;  %v9581_v46 = vadd.f32 %v9551_v2, %v9231_v29  ;;  %v7310_v47 = vpop.f32.mrb[25].mxu0 }
 0x33e   : > { %v7465_v24 = vmax.f32 %v7401_v3, %v7433_v60  ;;  %v9582_v17 = vadd.f32 %v7310_v47, %v5350_v4  ;;  %v9552_v41 = vpop.f32.mrb[26].mxu0 }
 0x33f   : > { %v8560_v13 = vpack.c.bf16 %v7467_v31, %v7466_v16  ;;  %v7406_v63 = vadd.f32 %v9581_v46, %v12998_v30  ;;  %v9583_v53 = vadd.f32 %v9552_v41, %v9232_v21  ;;  %v7313_v0 = vpop.f32.mrb[27].mxu0  ;;  %v9235_v56 = vpop.f32.mrb[28].mxu1 }
 0x340   : > { %v8555_v33 = vpack.c.bf16 %v7465_v24, %v7464_v48  ;;  %v7404_v22 = vadd.f32 %v9582_v17, %v12998_v30  ;;  %v9584_v5 = vadd.f32 %v7313_v0, %v5353_v44  ;;  %v5366_v9 = vpop.f32.mrb[29].mxu1 }
 0x341   : > { %8592 = vst [vmem:[%s13007_s7 + $0x58] sm:$0xff] %v8560_v13   ;;  %v7438_v32 = vmul.f32 0.2, %v7406_v63  ;;  %v7407_v55 = vadd.f32 %v9583_v53, %v12998_v30  ;;  %v9236_v57 = vpop.f32.mrb[30].mxu1 }
 0x342   : > { %8591 = vst [vmem:[%s13007_s7 + $0x50] sm:$0xff] %v8555_v33   ;;  %v7436_v42 = vmul.f32 0.2, %v7404_v22  ;;  %v7405_v23 = vadd.f32 %v9584_v5, %v12998_v30  ;;  %v5369_v51 = vpop.f32.mrb[31].mxu1 }
 0x343   : > { %v7439_v19 = vmul.f32 0.2, %v7407_v55  ;;  %v7470_v36 = vmax.f32 %v7406_v63, %v7438_v32 }
 0x344   : > { %v7437_v61 = vmul.f32 0.2, %v7405_v23  ;;  %v9555_v45 = vpop.f32.mrb[28].mxu0  ;;  %v7468_v14 = vmax.f32 %v7404_v22, %v7436_v42 }
 0x345   : > { %v7471_v12 = vmax.f32 %v7407_v55, %v7439_v19  ;;  %v9585_v18 = vadd.f32 %v9555_v45, %v9235_v56  ;;  %v7326_v58 = vpop.f32.mrb[29].mxu0 }
 0x346   : > { %v7469_v8 = vmax.f32 %v7405_v23, %v7437_v61  ;;  %v9586_v7 = vadd.f32 %v7326_v58, %v5366_v9  ;;  %v9556_v25 = vpop.f32.mrb[30].mxu0 }
 0x347   : > { %v8570_v52 = vpack.c.bf16 %v7471_v12, %v7470_v36  ;;  %v7410_v34 = vadd.f32 %v9585_v18, %v12998_v30  ;;  %v9587_v62 = vadd.f32 %v9556_v25, %v9236_v57  ;;  %v7329_v59 = vpop.f32.mrb[31].mxu0 }
 0x348   : > { %v8565_v37 = vpack.c.bf16 %v7469_v8, %v7468_v14  ;;  %v7408_v10 = vadd.f32 %v9586_v7, %v12998_v30  ;;  %v9588_v6 = vadd.f32 %v7329_v59, %v5369_v51 }
 0x349   : > { %8594 = vst [vmem:[%s13007_s7 + $0x68] sm:$0xff] %v8570_v52   ;;  %v7442_v54 = vmul.f32 0.2, %v7410_v34  ;;  %v7411_v28 = vadd.f32 %v9587_v62, %v12998_v30 }
 0x34a   : > { %8593 = vst [vmem:[%s13007_s7 + $0x60] sm:$0xff] %v8565_v37   ;;  %v7440_v50 = vmul.f32 0.2, %v7408_v10  ;;  %v7409_v43 = vadd.f32 %v9588_v6, %v12998_v30 }
 0x34b   : > { %v7443_v15 = vmul.f32 0.2, %v7411_v28  ;;  %v7474_v20 = vmax.f32 %v7410_v34, %v7442_v54 }
 0x34c   : > { %v7441_v38 = vmul.f32 0.2, %v7409_v43  ;;  %v7472_v40 = vmax.f32 %v7408_v10, %v7440_v50 }
 0x34d   : > { %v7475_v27 = vmax.f32 %v7411_v28, %v7443_v15 }
 0x34e   : > { %v7473_v26 = vmax.f32 %v7409_v43, %v7441_v38 }
 0x34f   : > { %v8580_v35 = vpack.c.bf16 %v7475_v27, %v7474_v20 }
 0x350   : > { %v8575_v11 = vpack.c.bf16 %v7473_v26, %v7472_v40 }
 0x351   : > { %8596 = vst [vmem:[%s13007_s7 + $0x78] sm:$0xff] %v8580_v35  }
 0x352   : > { %8595 = vst [vmem:[%s13007_s7 + $0x70] sm:$0xff] %v8575_v11  }
 0x353 PF: > { %p10_p9 = scmp.ge.s32.totalorder %s10257_s16, 4   ;;  %s13493_s12 = smov %s10214_s13 }
 0x354   : > { %s13494_s13 = smov %s10266_s19  ;;  %s13495_s14 = smov %s10257_s16 }
 0x355   :  { %12 = sbr.rel (!%p10_p9) target bundleno = 2 (0x2), region = 126 }

// kernel: _netD_forward_impl.6
= control target key start
LH: loop header
LB: loop body
LE: loop exit
PB: predicated region body
PF: predicated region fallthrough
CT: control target
= control target key end

     0   :  { %s5813_s12 = smov 0   ;;  %s5815_s13 = smov 0   ;;  %s7326_s0 = inlined_call_operand.vmem [shape: bf16[4,2,9,9,128], index: 0, kind: input, shape index: {}]   ;;  %s7327_s1 = inlined_call_operand.vmem [shape: bf16[16,128,256], index: 1, kind: input, shape index: {}]   ;;  %s7328_s2 = inlined_call_operand.vmem [shape: f32[1,256], index: 2, kind: input, shape index: {}]   ;;  %s7329_s3 = inlined_call_operand.vmem [shape: bf16[128,256], index: 3, kind: output, shape index: {}]  }
   0x1   :  { %s5817_s14 = smov 0  }
   0x2 LB: > { %s4442_s15 = sadd.s32 4294967295, %s5790_s14   ;;  %s5830_s16 = sadd.s32 1, %s5790_s14   ;;  %s5790_s14 = sphi %s5817_s14, %s7334_s14   ;;  %s5786_s13 = sphi %s5815_s13, %s7333_s13   ;;  %s5782_s12 = sphi %s5813_s12, %s7332_s12  }
   0x3   : > { %s17_s17 = ssub.s32 %s5790_s14, %s5830_s16  ;;  %s20_s18 = sadd.s32 1, %s5786_s13 }
   0x4   : > { %p18_p0 = scmp.eq.s32.totalorder %s17_s17, 0  ;;  %p27_p1 = scmp.ne.s32.totalorder %s5786_s13, %s5782_s12 }
   0x5   : > { %p28_p2 = scmp.eq.s32.totalorder %s5790_s14, 0  ;;  %p4445_p4 = scmp.ge.s32.totalorder %s5790_s14, 2 }
   0x6   : > { %s5839_s19 = scalar_select %p18_p0, %s5786_s13, %s20_s18  }
   0x7   : > { %p29_p3 = por %p28_p2, %p27_p1  ;;  %127 = sbr.rel (%p4445_p4) target bundleno = 37 (0x25), region = 24 }
   0xe   : > { %130 = sbr.rel (!%p29_p3) target bundleno = 37 (0x25), region = 28  ;;  %s132_s20 = sand.u32 (%p29_p3), 1, %s5786_s13  }
   0xf   : > { %s5325_s21 = smul.u32 (%p29_p3), 72, %s5790_s14 }
  0x10   : > { %s5324_s22 = smul.u32 (%p29_p3), 288, %s132_s20 }
  0x11   : > { %s5847_s25 = scalar_lea.vmem (%p29_p3), %s7326_s0, %s5325_s21 }
  0x12   : > { %v153_v0 = vld [vmem:[%s5847_s25] sm:$0xff] (%p29_p3)   ;;  %v157_v1 = vld [vmem:[%s5847_s25 + $0x8] sm:$0xff] (%p29_p3)   ;;  %v161_v2 = vld [vmem:[%s5847_s25 + $0x10] sm:$0xff] (%p29_p3)   ;;  %s5852_s26 = scalar_lea.vmem (%p29_p3), [#allocation2], %s5324_s22 }
  0x13   : > { %154 = vst [vmem:[%s5852_s26] sm:$0xff] (%p29_p3), %v153_v0   ;;  %158 = vst [vmem:[%s5852_s26 + $0x8] sm:$0xff] (%p29_p3), %v157_v1   ;;  %v165_v3 = vld [vmem:[%s5847_s25 + $0x18] sm:$0xff] (%p29_p3)   ;;  %v169_v4 = vld [vmem:[%s5847_s25 + $0x20] sm:$0xff] (%p29_p3)  }
  0x14   : > { %162 = vst [vmem:[%s5852_s26 + $0x10] sm:$0xff] (%p29_p3), %v161_v2   ;;  %v173_v5 = vld [vmem:[%s5847_s25 + $0x28] sm:$0xff] (%p29_p3)   ;;  %166 = vst [vmem:[%s5852_s26 + $0x18] sm:$0xff] (%p29_p3), %v165_v3   ;;  %v177_v6 = vld [vmem:[%s5847_s25 + $0x30] sm:$0xff] (%p29_p3)  }
  0x15   : > { %170 = vst [vmem:[%s5852_s26 + $0x20] sm:$0xff] %v169_v4   ;;  %174 = vst [vmem:[%s5852_s26 + $0x28] sm:$0xff] %v173_v5   ;;  %v181_v7 = vld [vmem:[%s5847_s25 + $0x38] sm:$0xff]   ;;  %v185_v8 = vld [vmem:[%s5847_s25 + $0x40] sm:$0xff]  }
  0x16   : > { %178 = vst [vmem:[%s5852_s26 + $0x30] sm:$0xff] %v177_v6   ;;  %182 = vst [vmem:[%s5852_s26 + $0x38] sm:$0xff] %v181_v7   ;;  %v189_v9 = vld [vmem:[%s5847_s25 + $0x90] sm:$0xff]   ;;  %v193_v10 = vld [vmem:[%s5847_s25 + $0x98] sm:$0xff]  }
  0x17   : > { %186 = vst [vmem:[%s5852_s26 + $0x40] sm:$0xff] %v185_v8   ;;  %v197_v11 = vld [vmem:[%s5847_s25 + $0xa0] sm:$0xff]   ;;  %190 = vst [vmem:[%s5852_s26 + $0x48] sm:$0xff] %v189_v9   ;;  %v201_v12 = vld [vmem:[%s5847_s25 + $0xa8] sm:$0xff]  }
  0x18   : > { %194 = vst [vmem:[%s5852_s26 + $0x50] sm:$0xff] %v193_v10   ;;  %198 = vst [vmem:[%s5852_s26 + $0x58] sm:$0xff] %v197_v11   ;;  %v205_v13 = vld [vmem:[%s5847_s25 + $0xb0] sm:$0xff]   ;;  %v209_v14 = vld [vmem:[%s5847_s25 + $0xb8] sm:$0xff]  }
  0x19   : > { %202 = vst [vmem:[%s5852_s26 + $0x60] sm:$0xff] %v201_v12   ;;  %206 = vst [vmem:[%s5852_s26 + $0x68] sm:$0xff] %v205_v13   ;;  %v213_v15 = vld [vmem:[%s5847_s25 + $0xc0] sm:$0xff]   ;;  %v217_v16 = vld [vmem:[%s5847_s25 + $0xc8] sm:$0xff]  }
  0x1a   : > { %210 = vst [vmem:[%s5852_s26 + $0x70] sm:$0xff] %v209_v14   ;;  %v221_v17 = vld [vmem:[%s5847_s25 + $0xd0] sm:$0xff]   ;;  %214 = vst [vmem:[%s5852_s26 + $0x78] sm:$0xff] %v213_v15   ;;  %v225_v18 = vld [vmem:[%s5847_s25 + $0x120] sm:$0xff]  }
  0x1b   : > { %218 = vst [vmem:[%s5852_s26 + $0x80] sm:$0xff] %v217_v16   ;;  %222 = vst [vmem:[%s5852_s26 + $0x88] sm:$0xff] %v221_v17   ;;  %v229_v19 = vld [vmem:[%s5847_s25 + $0x128] sm:$0xff]   ;;  %v233_v20 = vld [vmem:[%s5847_s25 + $0x130] sm:$0xff]  }
  0x1c   : > { %226 = vst [vmem:[%s5852_s26 + $0x90] sm:$0xff] %v225_v18   ;;  %230 = vst [vmem:[%s5852_s26 + $0x98] sm:$0xff] %v229_v19   ;;  %v237_v21 = vld [vmem:[%s5847_s25 + $0x138] sm:$0xff]   ;;  %v241_v22 = vld [vmem:[%s5847_s25 + $0x140] sm:$0xff]  }
  0x1d   : > { %234 = vst [vmem:[%s5852_s26 + $0xa0] sm:$0xff] %v233_v20   ;;  %v245_v23 = vld [vmem:[%s5847_s25 + $0x148] sm:$0xff]   ;;  %238 = vst [vmem:[%s5852_s26 + $0xa8] sm:$0xff] %v237_v21   ;;  %v249_v24 = vld [vmem:[%s5847_s25 + $0x150] sm:$0xff]  }
  0x1e   : > { %242 = vst [vmem:[%s5852_s26 + $0xb0] sm:$0xff] %v241_v22   ;;  %246 = vst [vmem:[%s5852_s26 + $0xb8] sm:$0xff] %v245_v23   ;;  %v253_v25 = vld [vmem:[%s5847_s25 + $0x158] sm:$0xff]   ;;  %v257_v26 = vld [vmem:[%s5847_s25 + $0x160] sm:$0xff]  }
  0x1f   : > { %250 = vst [vmem:[%s5852_s26 + $0xc0] sm:$0xff] %v249_v24   ;;  %254 = vst [vmem:[%s5852_s26 + $0xc8] sm:$0xff] %v253_v25   ;;  %v261_v27 = vld [vmem:[%s5847_s25 + $0x1b0] sm:$0xff]   ;;  %v265_v28 = vld [vmem:[%s5847_s25 + $0x1b8] sm:$0xff]  }
  0x20   : > { %258 = vst [vmem:[%s5852_s26 + $0xd0] sm:$0xff] %v257_v26   ;;  %v269_v29 = vld [vmem:[%s5847_s25 + $0x1c0] sm:$0xff]   ;;  %262 = vst [vmem:[%s5852_s26 + $0xd8] sm:$0xff] %v261_v27   ;;  %v273_v30 = vld [vmem:[%s5847_s25 + $0x1c8] sm:$0xff]  }
  0x21   : > { %266 = vst [vmem:[%s5852_s26 + $0xe0] sm:$0xff] %v265_v28   ;;  %270 = vst [vmem:[%s5852_s26 + $0xe8] sm:$0xff] %v269_v29   ;;  %v277_v31 = vld [vmem:[%s5847_s25 + $0x1d0] sm:$0xff]   ;;  %v281_v32 = vld [vmem:[%s5847_s25 + $0x1d8] sm:$0xff]  }
  0x22   : > { %274 = vst [vmem:[%s5852_s26 + $0xf0] sm:$0xff] %v273_v30   ;;  %278 = vst [vmem:[%s5852_s26 + $0xf8] sm:$0xff] %v277_v31   ;;  %v285_v33 = vld [vmem:[%s5847_s25 + $0x1e0] sm:$0xff]   ;;  %v289_v34 = vld [vmem:[%s5847_s25 + $0x1e8] sm:$0xff]  }
  0x23   : > { %282 = vst [vmem:[%s5852_s26 + $0x100] sm:$0xff] %v281_v32   ;;  %v293_v35 = vld [vmem:[%s5847_s25 + $0x1f0] sm:$0xff]   ;;  %286 = vst [vmem:[%s5852_s26 + $0x108] sm:$0xff] %v285_v33  }
  0x24   : > { %290 = vst [vmem:[%s5852_s26 + $0x110] sm:$0xff] %v289_v34   ;;  %294 = vst [vmem:[%s5852_s26 + $0x118] sm:$0xff] %v293_v35  }
  0x25 PF: > { %p4447_p5 = scmp.ge.s32.totalorder %s5790_s14, 1  ;;  %p462_p6 = scmp.lt.s32.totalorder %s5790_s14, 3 }
  0x27   : > { %p463_p7 = pnand %p4447_p5, %p462_p6 }
  0x28   : > { %v5352_v36 = vld [vmem:[%s7327_s1 + $0x84] ss:$8 sps:$4 sm:$0xff] (!%p463_p7)   ;;  %v5792_v38 = vmov (!%p463_p7), 0   ;;  %v5356_v39 = vld [vmem:[%s7327_s1 + $0x80] ss:$8 sps:$4 sm:$0xff] (!%p463_p7)   ;;  %s469_s27 = sand.u32 (!%p463_p7), 1, %s5782_s12  }
  0x29   : > { %466 = sbr.rel (%p463_p7) target bundleno = 548 (0x224), region = 69  ;;  %v5354_v37 = vld [vmem:[%s7327_s1 + $0x404] ss:$8 sps:$4 sm:$0xff] (!%p463_p7)   ;;  %745 = vmatprep.mubr.bf16.mxu1 (!%p463_p7), %v5792_v38  ;;  %2781 = vmatprep.mubr.bf16.mxu0 (!%p463_p7), %v5792_v38  ;;  %v5357_v40 = vld [vmem:[%s7327_s1 + $0x400] ss:$8 sps:$4 sm:$0xff] (!%p463_p7)  }
  0x2a   : > { %713 = vmatprep.subr.bf16.mxu1 (!%p463_p7), %v5352_v36  ;;  %2749 = vmatprep.subr.bf16.mxu0 (!%p463_p7), %v5354_v37  ;;  %v5358_v41 = vld [vmem:[%s7327_s1 + $0x94] ss:$8 sps:$4 sm:$0xff] (!%p463_p7)   ;;  %v5362_v43 = vld [vmem:[%s7327_s1 + $0x90] ss:$8 sps:$4 sm:$0xff] (!%p463_p7)   ;;  %v5364_v45 = vld [vmem:[%s7327_s1 + $0xa4] ss:$8 sps:$4 sm:$0xff] (!%p463_p7)  }
  0x2b   : > { %714 = vmatpush1.bf16.msra.mxu1 (!%p463_p7), %v5356_v39  ;;  %2750 = vmatpush1.bf16.msra.mxu0 (!%p463_p7), %v5357_v40  ;;  %v5360_v42 = vld [vmem:[%s7327_s1 + $0x414] ss:$8 sps:$4 sm:$0xff] (!%p463_p7)   ;;  %v5363_v44 = vld [vmem:[%s7327_s1 + $0x410] ss:$8 sps:$4 sm:$0xff] (!%p463_p7)   ;;  %v5366_v46 = vld [vmem:[%s7327_s1 + $0x424] ss:$8 sps:$4 sm:$0xff] (!%p463_p7)  }
  0x2c   : > { %715 = vmatprep.subr.bf16.mxu1 (!%p463_p7), %v5358_v41  ;;  %2751 = vmatprep.subr.bf16.mxu0 (!%p463_p7), %v5360_v42  ;;  %v5368_v47 = vld [vmem:[%s7327_s1 + $0xa0] ss:$8 sps:$4 sm:$0xff] (!%p463_p7)   ;;  %v5370_v49 = vld [vmem:[%s7327_s1 + $0xb4] ss:$8 sps:$4 sm:$0xff] (!%p463_p7)   ;;  %v5374_v51 = vld [vmem:[%s7327_s1 + $0xb0] ss:$8 sps:$4 sm:$0xff] (!%p463_p7)  }
  0x2d   : > { %v5369_v48 = vld [vmem:[%s7327_s1 + $0x420] ss:$8 sps:$4 sm:$0xff] (!%p463_p7)   ;;  %v5372_v50 = vld [vmem:[%s7327_s1 + $0x434] ss:$8 sps:$4 sm:$0xff] (!%p463_p7)   ;;  %v5375_v52 = vld [vmem:[%s7327_s1 + $0x430] ss:$8 sps:$4 sm:$0xff] (!%p463_p7)  }
  0x2e   : > { %v5376_v53 = vld [vmem:[%s7327_s1 + $0xc4] ss:$8 sps:$4 sm:$0xff] (!%p463_p7)   ;;  %v5380_v55 = vld [vmem:[%s7327_s1 + $0xc0] ss:$8 sps:$4 sm:$0xff] (!%p463_p7)   ;;  %v5382_v57 = vld [vmem:[%s7327_s1 + $0xd4] ss:$8 sps:$4 sm:$0xff] (!%p463_p7)  }
  0x2f   : > { %716 = vmatpush1.bf16.msra.mxu1 (!%p463_p7), %v5362_v43  ;;  %2752 = vmatpush1.bf16.msra.mxu0 (!%p463_p7), %v5363_v44  ;;  %v5378_v54 = vld [vmem:[%s7327_s1 + $0x444] ss:$8 sps:$4 sm:$0xff] (!%p463_p7)   ;;  %v5381_v56 = vld [vmem:[%s7327_s1 + $0x440] ss:$8 sps:$4 sm:$0xff] (!%p463_p7)   ;;  %v5384_v58 = vld [vmem:[%s7327_s1 + $0x454] ss:$8 sps:$4 sm:$0xff] (!%p463_p7)  }
  0x30   : > { %717 = vmatprep.subr.bf16.mxu1 %v5364_v45  ;;  %2753 = vmatprep.subr.bf16.mxu0 %v5366_v46  ;;  %s5326_s30 = smul.u32 288, %s469_s27  ;;  %v5386_v59 = vld [vmem:[%s7327_s1 + $0xd0] ss:$8 sps:$4 sm:$0xff]   ;;  %v5388_v61 = vld [vmem:[%s7327_s1 + $0xe4] ss:$8 sps:$4 sm:$0xff]  }
  0x31   : > { %v5387_v60 = vld [vmem:[%s7327_s1 + $0x450] ss:$8 sps:$4 sm:$0xff]   ;;  %v5390_v62 = vld [vmem:[%s7327_s1 + $0x464] ss:$8 sps:$4 sm:$0xff]   ;;  %v5392_v63 = vld [vmem:[%s7327_s1 + $0xe0] ss:$8 sps:$4 sm:$0xff]  }
  0x32   : > { %v5393_v0 = vld [vmem:[%s7327_s1 + $0x460] ss:$8 sps:$4 sm:$0xff]   ;;  %v5394_v1 = vld [vmem:[%s7327_s1 + $0xf4] ss:$8 sps:$4 sm:$0xff]   ;;  %v5398_v3 = vld [vmem:[%s7327_s1 + $0xf0] ss:$8 sps:$4 sm:$0xff]  }
  0x33   : > { %718 = vmatpush1.bf16.msra.mxu1 %v5368_v47  ;;  %2754 = vmatpush1.bf16.msra.mxu0 %v5369_v48  ;;  %v5396_v2 = vld [vmem:[%s7327_s1 + $0x474] ss:$8 sps:$4 sm:$0xff]   ;;  %v5399_v4 = vld [vmem:[%s7327_s1 + $0x470] ss:$8 sps:$4 sm:$0xff]   ;;  %s6024_s29 = scalar_lea.vmem [#allocation2], %s5326_s30 }
  0x34   : > { %719 = vmatprep.subr.bf16.mxu1 %v5370_v49  ;;  %2755 = vmatprep.subr.bf16.mxu0 %v5372_v50  ;;  %v6027_v5 = vld [vmem:[%s6024_s29 + $0x48] sm:$0xf]  ;;  %v6030_v6 = vld [vmem:[%s6024_s29 + $0x50] sm:$0xf]  ;;  %v5403_v9 = vld [vmem:[%s7327_s1 + $0x4] ss:$8 sps:$4 sm:$0xff]  }
  0x35   : > { %v6033_v7 = vld [vmem:[%s6024_s29 + $0x8] sm:$0xf]  ;;  %v6036_v8 = vld [vmem:[%s6024_s29 + $0x10] sm:$0xf]  ;;  %v5407_v10 = vld [vmem:[%s7327_s1 + $0x484] ss:$8 sps:$4 sm:$0xff]   ;;  %v4521_v11 = vcombine.low %v6027_v5, %v6030_v6 }
  0x36   : > { %v4793_v12 = vcombine.low %v6033_v7, %v6036_v8  ;;  %v5401_v13 = vld [vmem:[%s7327_s1] ss:$8 sps:$4 sm:$0xff]   ;;  %v5410_v15 = vld [vmem:[%s7327_s1 + $0x14] ss:$8 sps:$4 sm:$0xff]   ;;  %v5408_v17 = vld [vmem:[%s7327_s1 + $0x10] ss:$8 sps:$4 sm:$0xff]  }
  0x37   : > { %720 = vmatpush1.bf16.msra.mxu1 %v5374_v51  ;;  %2756 = vmatpush1.bf16.msra.mxu0 %v5375_v52  ;;  %v5405_v14 = vld [vmem:[%s7327_s1 + $0x480] ss:$8 sps:$4 sm:$0xff]   ;;  %v5413_v16 = vld [vmem:[%s7327_s1 + $0x494] ss:$8 sps:$4 sm:$0xff]   ;;  %v5411_v18 = vld [vmem:[%s7327_s1 + $0x490] ss:$8 sps:$4 sm:$0xff]  }
  0x38   : > { %721 = vmatprep.subr.bf16.mxu1 %v5376_v53  ;;  %2757 = vmatprep.subr.bf16.mxu0 %v5378_v54  ;;  %v6067_v19 = vld [vmem:[%s6024_s29 + $0x58] sm:$0xf]  ;;  %v6070_v20 = vld [vmem:[%s6024_s29 + $0x60] sm:$0xf]  ;;  %v5417_v23 = vld [vmem:[%s7327_s1 + $0x24] ss:$8 sps:$4 sm:$0xff]  }
  0x39   : > { %v6073_v21 = vld [vmem:[%s6024_s29 + $0x18] sm:$0xf]  ;;  %v6076_v22 = vld [vmem:[%s6024_s29 + $0x20] sm:$0xf]  ;;  %v5421_v24 = vld [vmem:[%s7327_s1 + $0x4a4] ss:$8 sps:$4 sm:$0xff]   ;;  %v4522_v25 = vcombine.low %v6067_v19, %v6070_v20 }
  0x3a   : > { %v4794_v26 = vcombine.low %v6073_v21, %v6076_v22  ;;  %v5415_v27 = vld [vmem:[%s7327_s1 + $0x20] ss:$8 sps:$4 sm:$0xff]   ;;  %v5424_v29 = vld [vmem:[%s7327_s1 + $0x34] ss:$8 sps:$4 sm:$0xff]   ;;  %v5422_v31 = vld [vmem:[%s7327_s1 + $0x30] ss:$8 sps:$4 sm:$0xff]  }
  0x3b   : > { %722 = vmatpush1.bf16.msra.mxu1 %v5380_v55  ;;  %2758 = vmatpush1.bf16.msra.mxu0 %v5381_v56  ;;  %v5419_v28 = vld [vmem:[%s7327_s1 + $0x4a0] ss:$8 sps:$4 sm:$0xff]   ;;  %v5427_v30 = vld [vmem:[%s7327_s1 + $0x4b4] ss:$8 sps:$4 sm:$0xff]   ;;  %v5425_v32 = vld [vmem:[%s7327_s1 + $0x4b0] ss:$8 sps:$4 sm:$0xff]  }
  0x3c   : > { %723 = vmatprep.subr.bf16.mxu1 %v5382_v57  ;;  %2759 = vmatprep.subr.bf16.mxu0 %v5384_v58  ;;  %v6109_v33 = vld [vmem:[%s6024_s29 + $0x68] sm:$0xf]  ;;  %v6112_v34 = vld [vmem:[%s6024_s29 + $0x70] sm:$0xf]  ;;  %v5431_v37 = vld [vmem:[%s7327_s1 + $0x44] ss:$8 sps:$4 sm:$0xff]  }
  0x3d   : > { %v6115_v35 = vld [vmem:[%s6024_s29 + $0x28] sm:$0xf]  ;;  %v6118_v36 = vld [vmem:[%s6024_s29 + $0x30] sm:$0xf]  ;;  %v5435_v39 = vld [vmem:[%s7327_s1 + $0x4c4] ss:$8 sps:$4 sm:$0xff]   ;;  %v4523_v40 = vcombine.low %v6109_v33, %v6112_v34 }
  0x3e   : > { %v5429_v41 = vld [vmem:[%s7327_s1 + $0x40] ss:$8 sps:$4 sm:$0xff]   ;;  %v4795_v42 = vcombine.low %v6115_v35, %v6118_v36  ;;  %v1281_v43 = vshrl.u32 %v6027_v5, 16  ;;  %v1284_v45 = vshll.u32 %v6027_v5, 16  ;;  %v1295_v46 = vshrl.u32 %v6030_v6, 16 }
  0x3f   : > { %724 = vmatpush1.bf16.msra.mxu1 %v5386_v59  ;;  %2760 = vmatpush1.bf16.msra.mxu0 %v5387_v60  ;;  %v5433_v44 = vld [vmem:[%s7327_s1 + $0x4c0] ss:$8 sps:$4 sm:$0xff]   ;;  %v5438_v47 = vld [vmem:[%s7327_s1 + $0x54] ss:$8 sps:$4 sm:$0xff]   ;;  %v1298_v49 = vshll.u32 %v6030_v6, 16  ;;  %v981_v55 = vshrl.u32 %v6033_v7, 16 }
  0x40   : > { %725 = vmatprep.subr.bf16.mxu1 %v5388_v61  ;;  %2761 = vmatprep.subr.bf16.mxu0 %v5390_v62  ;;  %v5441_v48 = vld [vmem:[%s7327_s1 + $0x4d4] ss:$8 sps:$4 sm:$0xff]   ;;  %v5436_v50 = vld [vmem:[%s7327_s1 + $0x50] ss:$8 sps:$4 sm:$0xff]   ;;  %v6158_v53 = vld [vmem:[%s6024_s29 + $0x80] sm:$0xf] }
  0x41   : > { %v5439_v51 = vld [vmem:[%s7327_s1 + $0x4d0] ss:$8 sps:$4 sm:$0xff]   ;;  %v5445_v54 = vld [vmem:[%s7327_s1 + $0x64] ss:$8 sps:$4 sm:$0xff]   ;;  %v6168_v57 = vld [vmem:[%s6024_s29 + $0x40] sm:$0xf] }
  0x42   : > { %v6155_v52 = vld [vmem:[%s6024_s29 + $0x78] sm:$0xf]  ;;  %v984_v58 = vshll.u32 %v6033_v7, 16  ;;  %v5449_v59 = vld [vmem:[%s7327_s1 + $0x4e4] ss:$8 sps:$4 sm:$0xff]   ;;  %v1283_v60 = vrot.slane %v1281_v43, 4 }
  0x43   : > { %726 = vmatpush1.bf16.msra.mxu1 %v5392_v63  ;;  %2762 = vmatpush1.bf16.msra.mxu0 %v5393_v0  ;;  %v6165_v56 = vld [vmem:[%s6024_s29 + $0x38] sm:$0xf]  ;;  %v1286_v61 = vrot.slane %v1284_v45, 5  ;;  %v1297_v62 = vrot.slane %v1295_v46, 4  ;;  %v1300_v63 = vrot.slane %v1298_v49, 5  ;;  %v995_v0 = vshrl.u32 %v6036_v8, 16 }
  0x44   : > { %727 = vmatprep.subr.bf16.mxu1 %v5394_v1  ;;  %2763 = vmatprep.subr.bf16.mxu0 %v5396_v2  ;;  %v998_v1 = vshll.u32 %v6036_v8, 16  ;;  %v4524_v2 = vcombine.low %v6155_v52, %v6158_v53  ;;  %v5443_v5 = vld [vmem:[%s7327_s1 + $0x60] ss:$8 sps:$4 sm:$0xff]   ;;  %v1323_v46 = vshrl.u32 %v6070_v20, 16  ;;  %vm963_vm0 = vsmask.f32 3328 }
  0x45   : > { %v5457_v43 = vld [vmem:[%s7327_s1 + $0x100] ss:$8 sps:$4 sm:$0xff]   ;;  %vm964_vm1 = vsmask.f32 7440 }
  0x46   : > { %vm6376_vm2 = vmor %vm963_vm0, %vm964_vm1 }
  0x47   : > { %728 = vmatpush1.bf16.msra.mxu1 %v5398_v3  ;;  %2764 = vmatpush1.bf16.msra.mxu0 %v5399_v4  ;;  %v4796_v3 = vcombine.low %v6165_v56, %v6168_v57  ;;  %v983_v4 = vrot.slane %v981_v55, 4 }
  0x48   : > { %890 = vmatprep.subr.bf16.mxu1 %v5403_v9  ;;  %2945 = vmatprep.subr.bf16.mxu0 %v5407_v10  ;;  %v5447_v9 = vld [vmem:[%s7327_s1 + $0x4e0] ss:$8 sps:$4 sm:$0xff]   ;;  %v986_v10 = vrot.slane %v984_v58, 5  ;;  %v5464_v58 = vld [vmem:[%s7327_s1 + $0x110] ss:$8 sps:$4 sm:$0xff]  }
  0x4a   : > { %746 = vmatmul.mubr.bf16.vlgmr.msra.gmra.mrb[0].mxu1 %v4521_v11  ;;  %2782 = vmatmul.mubr.bf16.vlgmr.msra.gmra.mrb[0].mxu0 %v4793_v12  ;;  %v5452_v11 = vld [vmem:[%s7327_s1 + $0x74] ss:$8 sps:$4 sm:$0xff]  }
  0x4b   : > { %891 = vmatpush1.bf16.msra.mxu1 %v5401_v13  ;;  %2946 = vmatpush1.bf16.msra.mxu0 %v5405_v14  ;;  %v5455_v12 = vld [vmem:[%s7327_s1 + $0x4f4] ss:$8 sps:$4 sm:$0xff]   ;;  %v1309_v13 = vshrl.u32 %v6067_v19, 16  ;;  %v1312_v14 = vshll.u32 %v6067_v19, 16 }
  0x4c   : > { %892 = vmatprep.subr.bf16.mxu1 %v5410_v15  ;;  %2947 = vmatprep.subr.bf16.mxu0 %v5413_v16  ;;  %v997_v15 = vrot.slane %v995_v0, 4  ;;  %v5450_v16 = vld [vmem:[%s7327_s1 + $0x70] ss:$8 sps:$4 sm:$0xff]   ;;  %v4542_v0 = vcombine.low %v6036_v8, %v6073_v21  ;;  %v1340_v8 = vshll.u32 %v6109_v33, 16 }
  0x4d   : > { %755 = vmatprep.mubr.bf16.mxu1 %v5792_v38  ;;  %2791 = vmatprep.mubr.bf16.mxu0 %v5792_v38 }
  0x4f   : > { %893 = vmatpush1.bf16.msra.mxu1 %v5408_v17  ;;  %2948 = vmatpush1.bf16.msra.mxu0 %v5411_v18  ;;  %v1000_v17 = vrot.slane %v998_v1, 5  ;;  %v5453_v18 = vld [vmem:[%s7327_s1 + $0x4f0] ss:$8 sps:$4 sm:$0xff]  }
  0x50   : > { %894 = vmatprep.subr.bf16.mxu1 %v5417_v23  ;;  %2949 = vmatprep.subr.bf16.mxu0 %v5421_v24  ;;  %v6203_v23 = vld [vmem:[%s6024_s29] sm:$0xf]  ;;  %v1287_v24 = vor.u32 %v1286_v61, %v1283_v60  ;;  %v1326_v60 = vshll.u32 %v6070_v20, 16  ;;  %v5473_v61 = vld [vmem:[%s7327_s1 + $0x124] ss:$8 sps:$4 sm:$0xff]  }
  0x52   : > { %756 = vmatmul.mubr.bf16.gmra.mrb[4].mxu1 %v4522_v25  ;;  %2792 = vmatmul.mubr.bf16.gmra.mrb[4].mxu0 %v4794_v26  ;;  %v1301_v25 = vor.u32 %v1300_v63, %v1297_v62  ;;  %v987_v26 = vor.u32 %v986_v10, %v983_v4  ;;  %v6227_v45 = vrot.slane %v1287_v24, 4  ;;  %v5477_v62 = vld [vmem:[%s7327_s1 + $0x524] ss:$8 sps:$4 sm:$0xff]   ;;  %v1037_v4 = vshrl.u32 %v6115_v35, 16  ;;  %v5475_v10 = vld [vmem:[%s7327_s1 + $0x520] ss:$8 sps:$4 sm:$0xff]  }
  0x53   : > { %895 = vmatpush1.bf16.msra.mxu1 %v5415_v27  ;;  %2950 = vmatpush1.bf16.msra.mxu0 %v5419_v28  ;;  %v5459_v27 = vld [vmem:[%s7327_s1 + $0x104] ss:$8 sps:$4 sm:$0xff]  }
  0x54   : > { %896 = vmatprep.subr.bf16.mxu1 %v5424_v29  ;;  %2951 = vmatprep.subr.bf16.mxu0 %v5427_v30  ;;  %v5463_v28 = vld [vmem:[%s7327_s1 + $0x504] ss:$8 sps:$4 sm:$0xff]   ;;  %v1311_v29 = vrot.slane %v1309_v13, 4  ;;  %v1314_v30 = vrot.slane %v1312_v14, 5  ;;  %v6236_v49 = vrot.slane %v1301_v25, 4  ;;  %v1354_v13 = vshll.u32 %v6112_v34, 16 }
  0x55   : > { %765 = vmatprep.mubr.bf16.mxu1 %v5792_v38  ;;  %2801 = vmatprep.mubr.bf16.mxu0 %v5792_v38  ;;  %v1040_v14 = vshll.u32 %v6115_v35, 16  ;;  %v1365_v25 = vshrl.u32 %v6155_v52, 16 }
  0x57   : > { %897 = vmatpush1.bf16.msra.mxu1 %v5422_v31  ;;  %2952 = vmatpush1.bf16.msra.mxu0 %v5425_v32  ;;  %v1009_v31 = vshrl.u32 %v6073_v21, 16  ;;  %v1012_v32 = vshll.u32 %v6073_v21, 16  ;;  %v1351_v21 = vshrl.u32 %v6112_v34, 16 }
  0x58   : > { %898 = vmatprep.subr.bf16.mxu1 %v5431_v37  ;;  %2953 = vmatprep.subr.bf16.mxu0 %v5435_v39  ;;  %v1023_v37 = vshrl.u32 %v6076_v22, 16  ;;  %v1026_v39 = vshll.u32 %v6076_v22, 16 }
  0x5a   : > { %766 = vmatmul.mubr.bf16.gmra.mrb[8].mxu1 %v4523_v40  ;;  %2802 = vmatmul.mubr.bf16.gmra.mrb[8].mxu0 %v4795_v42  ;;  %v4541_v40 = vcombine.low %v6203_v23, %v6033_v7  ;;  %v1001_v42 = vor.u32 %v1000_v17, %v997_v15  ;;  %v5466_v7 = vld [vmem:[%s7327_s1 + $0x114] ss:$8 sps:$4 sm:$0xff]   ;;  %v1054_v17 = vshll.u32 %v6118_v36, 16 }
  0x5b   : > { %899 = vmatpush1.bf16.msra.mxu1 %v5429_v41  ;;  %2954 = vmatpush1.bf16.msra.mxu0 %v5433_v44  ;;  %v4829_v41 = vcombine.low %v6030_v6, %v6067_v19  ;;  %v5461_v44 = vld [vmem:[%s7327_s1 + $0x500] ss:$8 sps:$4 sm:$0xff]   ;;  %v5469_v6 = vld [vmem:[%s7327_s1 + $0x514] ss:$8 sps:$4 sm:$0xff]   ;;  %v1315_v19 = vor.u32 %v1314_v30, %v1311_v29  ;;  %v1065_v29 = vshrl.u32 %v6165_v56, 16 }
  0x5c   : > { %900 = vmatprep.subr.bf16.mxu1 %v5438_v47  ;;  %2955 = vmatprep.subr.bf16.mxu0 %v5441_v48  ;;  %v1011_v47 = vrot.slane %v1009_v31, 4  ;;  %v1014_v48 = vrot.slane %v1012_v32, 5  ;;  %v6240_v55 = vrot.slane %v1001_v42, 4  ;;  %v5483_v15 = vld [vmem:[%s7327_s1 + $0x534] ss:$8 sps:$4 sm:$0xff]  }
  0x5d   : > { %775 = vmatprep.mubr.bf16.mxu1 %v5792_v38  ;;  %2811 = vmatprep.mubr.bf16.mxu0 %v5792_v38  ;;  %v6255_v63 = vrot.slane %v1315_v19, 4  ;;  %v5478_v30 = vld [vmem:[%s7327_s1 + $0x130] ss:$8 sps:$4 sm:$0xff]   ;;  %v5487_v32 = vld [vmem:[%s7327_s1 + $0x144] ss:$8 sps:$4 sm:$0xff]   ;;  %v1068_v19 = vshll.u32 %v6165_v56, 16 }
  0x5e   : > { %v1015_v1 = vor.u32 %v1014_v48, %v1011_v47  ;;  %v5481_v31 = vld [vmem:[%s7327_s1 + $0x530] ss:$8 sps:$4 sm:$0xff]   ;;  %v5489_v42 = vld [vmem:[%s7327_s1 + $0x540] ss:$8 sps:$4 sm:$0xff]   ;;  %v504_v47 = vld [vmem:[%s6024_s29 + $0xc] sm:$0x1] }
  0x5f   : > { %901 = vmatpush1.bf16.msra.mxu1 %v5436_v50  ;;  %2956 = vmatpush1.bf16.msra.mxu0 %v5439_v51  ;;  %v6238_v50 = vrot.slane %v987_v26, 4  ;;  %v1025_v51 = vrot.slane %v1023_v37, 4  ;;  %v970_v26 = vshll.u32 %v6203_v23, 16  ;;  %v5491_v37 = vld [vmem:[%s7327_s1 + $0x544] ss:$8 sps:$4 sm:$0xff]  }
  0x60   : > { %902 = vmatprep.subr.bf16.mxu1 %v5445_v54  ;;  %2957 = vmatprep.subr.bf16.mxu0 %v5449_v59  ;;  %v1028_v54 = vrot.slane %v1026_v39, 5  ;;  %v5467_v59 = vld [vmem:[%s7327_s1 + $0x510] ss:$8 sps:$4 sm:$0xff]   ;;  %v6286_v24 = vrot.slane %v1015_v1, 4  ;;  %v3038_v39 = vshll.u32 %v6168_v57, 16 }
  0x62   : > { %776 = vmatmul.mubr.bf16.gmra.mrb[12].mxu1 %v4524_v2  ;;  %2812 = vmatmul.mubr.bf16.gmra.mrb[12].mxu0 %v4796_v3  ;;  %v6261_v2 = vrot.slane %v1323_v46, 4  ;;  %v1337_v3 = vshrl.u32 %v6109_v33, 16  ;;  %v502_v46 = vld [vmem:[%s6024_s29 + $0x4] sm:$0x1] }
  0x63   : > { %903 = vmatpush1.bf16.msra.mxu1 %v5443_v5  ;;  %2958 = vmatpush1.bf16.msra.mxu0 %v5447_v9  ;;  %v5471_v5 = vld [vmem:[%s7327_s1 + $0x120] ss:$8 sps:$4 sm:$0xff]   ;;  %v4830_v9 = vcombine.low %v6070_v20, %v6109_v33  ;;  %v976_v1 = vshll.u32 %v502_v46, 16  ;;  %v5511_v20 = vld [vmem:[%s7327_s1 + $0x574] ss:$8 sps:$4 sm:$0xff]  }
  0x64   : > { %904 = vmatprep.subr.bf16.mxu1 %v5452_v11  ;;  %2959 = vmatprep.subr.bf16.mxu0 %v5455_v12  ;;  %v1029_v11 = vor.u32 %v1028_v54, %v1025_v51  ;;  %v5480_v12 = vld [vmem:[%s7327_s1 + $0x134] ss:$8 sps:$4 sm:$0xff]   ;;  %v3040_v51 = vrot.slane %v3038_v39, 5  ;;  %v510_v39 = vld [vmem:[%s6024_s29 + $0x24] sm:$0x1] }
  0x65   : > { %922 = vmatprep.mubr.bf16.mxu1 %v5792_v38  ;;  %2977 = vmatprep.mubr.bf16.mxu0 %v5792_v38  ;;  %v5514_v46 = vld [vmem:[%s7327_s1 + $0x184] ss:$8 sps:$4 sm:$0xff]   ;;  %v514_v33 = vld [vmem:[%s6024_s29 + $0x34] sm:$0x1] }
  0x67   : > { %905 = vmatpush1.bf16.msra.mxu1 %v5450_v16  ;;  %2960 = vmatpush1.bf16.msra.mxu0 %v5453_v18  ;;  %v1051_v16 = vshrl.u32 %v6118_v36, 16  ;;  %v967_v18 = vshrl.u32 %v6203_v23, 16  ;;  %v3035_v23 = vshrl.u32 %v6168_v57, 16  ;;  %v4831_v57 = vcombine.low %v6112_v34, %v6155_v52 }
  0x68   : > { %1191 = vmatprep.subr.bf16.mxu1 %v5459_v27  ;;  %3154 = vmatprep.subr.bf16.mxu0 %v5463_v28  ;;  %v6290_v27 = vrot.slane %v1029_v11, 4  ;;  %v6292_v28 = vrot.slane %v1037_v4, 4  ;;  %v6344_v4 = vld [vmem:[%s6024_s29 + $0x88] sm:$0xf]  ;;  %v5505_v11 = vld [vmem:[%s7327_s1 + $0x564] ss:$8 sps:$4 sm:$0xff]  }
  0x69   : > { %v3037_v48 = vrot.slane %v3035_v23, 4  ;;  %v6331_v54 = vrot.slane %v1051_v16, 4  ;;  %v5503_v16 = vld [vmem:[%s7327_s1 + $0x560] ss:$8 sps:$4 sm:$0xff]  }
  0x6a   : > { %923 = vmatmul.mubr.bf16.vlgmr.msra.gmra.mrb[0].mxu1 %v4541_v40  ;;  %2978 = vmatmul.mubr.bf16.vlgmr.msra.gmra.mrb[0].mxu0 %v4829_v41  ;;  %v969_v40 = vrot.slane %v967_v18, 4  ;;  %v5485_v41 = vld [vmem:[%s7327_s1 + $0x140] ss:$8 sps:$4 sm:$0xff]   ;;  %v1328_v18 = vrot.slane %v1326_v60, 5 }
  0x6b   : > { %1192 = vmatpush1.bf16.msra.mxu1 %v5457_v43  ;;  %3155 = vmatpush1.bf16.msra.mxu0 %v5461_v44  ;;  %v972_v43 = vrot.slane %v970_v26, 5  ;;  %v4543_v44 = vcombine.low %v6076_v22, %v6115_v35  ;;  %v506_v22 = vld [vmem:[%s6024_s29 + $0x14] sm:$0x1]  ;;  %v1042_v35 = vrot.slane %v1040_v14, 5  ;;  %v4544_v14 = vcombine.low %v6118_v36, %v6165_v56 }
  0x6c   : > { %1193 = vmatprep.subr.bf16.mxu1 %v5466_v7  ;;  %3156 = vmatprep.subr.bf16.mxu0 %v5469_v6  ;;  %v5494_v7 = vld [vmem:[%s7327_s1 + $0x154] ss:$8 sps:$4 sm:$0xff]   ;;  %v4832_v26 = vcombine.low %v6158_v53, %v6344_v4 }
  0x6d   : > { %932 = vmatprep.mubr.bf16.mxu1 %v5792_v38  ;;  %2987 = vmatprep.mubr.bf16.mxu0 %v5792_v38  ;;  %v5497_v6 = vld [vmem:[%s7327_s1 + $0x554] ss:$8 sps:$4 sm:$0xff]  }
  0x6e   : > { %v5508_v36 = vld [vmem:[%s7327_s1 + $0x174] ss:$8 sps:$4 sm:$0xff]  }
  0x6f   : > { %1194 = vmatpush1.bf16.msra.mxu1 %v5464_v58  ;;  %3157 = vmatpush1.bf16.msra.mxu0 %v5467_v59  ;;  %v6333_v58 = vrot.slane %v1054_v17, 5  ;;  %v6335_v59 = vrot.slane %v1065_v29, 4  ;;  %v1043_v17 = vor.u32 %v1042_v35, %v6292_v28  ;;  %v978_v29 = vrot.slane %v976_v1, 5  ;;  %v5517_v35 = vld [vmem:[%s7327_s1 + $0x584] ss:$8 sps:$4 sm:$0xff]  }
  0x70   : > { %1195 = vmatprep.subr.bf16.mxu1 %v5473_v61  ;;  %3158 = vmatprep.subr.bf16.mxu0 %v5477_v62  ;;  %v5492_v61 = vld [vmem:[%s7327_s1 + $0x150] ss:$8 sps:$4 sm:$0xff]   ;;  %v6436_v1 = vrot.slane %v1351_v21, 4  ;;  %v6447_v21 = vrot.slane %v1354_v13, 5  ;;  %v5526_v13 = vld [vmem:[%s7327_s1 + $0x1a4] ss:$8 sps:$4 sm:$0xff]  }
  0x71   : > { %v5495_v62 = vld [vmem:[%s7327_s1 + $0x550] ss:$8 sps:$4 sm:$0xff]  }
  0x72   : > { %933 = vmatmul.mubr.bf16.gmra.mrb[4].mxu1 %v4542_v0  ;;  %2988 = vmatmul.mubr.bf16.gmra.mrb[4].mxu0 %v4830_v9  ;;  %v973_v0 = vor.u32 %v972_v43, %v969_v40  ;;  %v1004_v9 = vshll.u32 %v506_v22, 16  ;;  %v1057_v40 = vor.u32 %v6333_v58, %v6331_v54  ;;  %v1032_v22 = vshll.u32 %v510_v39, 16 }
  0x73   : > { %1196 = vmatpush1.bf16.msra.mxu1 %v5471_v5  ;;  %3159 = vmatpush1.bf16.msra.mxu0 %v5475_v10  ;;  %v990_v5 = vshll.u32 %v504_v47, 16  ;;  %v5501_v10 = vld [vmem:[%s7327_s1 + $0x164] ss:$8 sps:$4 sm:$0xff]  }
  0x74   : > { %1197 = vmatprep.subr.bf16.mxu1 %v5480_v12  ;;  %3160 = vmatprep.subr.bf16.mxu0 %v5483_v15  ;;  %v1070_v12 = vrot.slane %v1068_v19, 5  ;;  %v5499_v15 = vld [vmem:[%s7327_s1 + $0x160] ss:$8 sps:$4 sm:$0xff]   ;;  %v974_v56 = vrot.slane %v973_v0, 4  ;;  %v1006_v23 = vrot.slane %v1004_v9, 5  ;;  %v1034_v9 = vrot.slane %v1032_v22, 5 }
  0x75   : > { %942 = vmatprep.mubr.bf16.mxu1 %v5792_v38  ;;  %2997 = vmatprep.mubr.bf16.mxu0 %v5792_v38  ;;  %v992_v28 = vrot.slane %v990_v5, 5  ;;  %v512_v0 = vld [vmem:[%s6024_s29 + $0x2c] sm:$0x1] }
  0x76   : > { %v1071_v43 = vor.u32 %v1070_v12, %v6335_v59  ;;  %v6409_v47 = vsel %vm6376_vm2, %v6240_v55, %v1006_v23  ;;  %v5512_v55 = vld [vmem:[%s7327_s1 + $0x180] ss:$8 sps:$4 sm:$0xff]   ;;  %v1342_v59 = vrot.slane %v1340_v8, 5  ;;  %v5520_v8 = vld [vmem:[%s7327_s1 + $0x194] ss:$8 sps:$4 sm:$0xff]  }
  0x77   : > { %1198 = vmatpush1.bf16.msra.mxu1 %v5478_v30  ;;  %3161 = vmatpush1.bf16.msra.mxu0 %v5481_v31  ;;  %v3041_v30 = vor.u32 %v3040_v51, %v3037_v48  ;;  %v1368_v31 = vshll.u32 %v6155_v52, 16  ;;  %v6414_v51 = vrot.slane %v1057_v40, 4  ;;  %v5521_v12 = vld [vmem:[%s7327_s1 + $0x590] ss:$8 sps:$4 sm:$0xff]   ;;  %v5532_v40 = vld [vmem:[%s7327_s1 + $0x1b4] ss:$8 sps:$4 sm:$0xff]  }
  0x78   : > { %1199 = vmatprep.subr.bf16.mxu1 %v5487_v32  ;;  %3162 = vmatprep.subr.bf16.mxu0 %v5491_v37  ;;  %v1379_v32 = vshrl.u32 %v6158_v53, 16  ;;  %v508_v37 = vld [vmem:[%s6024_s29 + $0x1c] sm:$0x1]  ;;  %v6423_v54 = vrot.slane %v1071_v43, 4  ;;  %v4460_v52 = vld [vmem:[%s6024_s29 + $0x6c] sm:$0x1] }
  0x79   : > { %v6398_v19 = vrot.slane %v3041_v30, 4  ;;  %v1018_v48 = vshll.u32 %v508_v37, 16  ;;  %v4456_v30 = vld [vmem:[%s6024_s29 + $0x5c] sm:$0x1] }
  0x7a   : > { %943 = vmatmul.mubr.bf16.gmra.mrb[8].mxu1 %v4543_v44  ;;  %2998 = vmatmul.mubr.bf16.gmra.mrb[8].mxu0 %v4831_v57  ;;  %v1329_v44 = vor.u32 %v1328_v18, %v6261_v2  ;;  %v5506_v57 = vld [vmem:[%s7327_s1 + $0x170] ss:$8 sps:$4 sm:$0xff]   ;;  %v993_v2 = vsel %vm6376_vm2, %v6238_v50, %v992_v28  ;;  %v1339_v50 = vrot.slane %v1337_v3, 4  ;;  %v5515_v3 = vld [vmem:[%s7327_s1 + $0x580] ss:$8 sps:$4 sm:$0xff]   ;;  %v1318_v37 = vshll.u32 %v4456_v30, 16 }
  0x7b   : > { %1200 = vmatpush1.bf16.msra.mxu1 %v5485_v41  ;;  %3163 = vmatpush1.bf16.msra.mxu0 %v5489_v42  ;;  %v1382_v41 = vshll.u32 %v6158_v53, 16  ;;  %v6386_v42 = vrot.slane %v1043_v17, 4  ;;  %v1020_v5 = vrot.slane %v1018_v48, 5  ;;  %v4454_v17 = vld [vmem:[%s6024_s29 + $0x54] sm:$0x1] }
  0x7c   : > { %1201 = vmatprep.subr.bf16.mxu1 %v5494_v7  ;;  %3164 = vmatprep.subr.bf16.mxu0 %v5497_v6  ;;  %v5509_v7 = vld [vmem:[%s7327_s1 + $0x570] ss:$8 sps:$4 sm:$0xff]   ;;  %v979_v6 = vsel %vm6376_vm2, %v974_v56, %v978_v29  ;;  %v6425_v58 = vrot.slane %v1329_v44, 4  ;;  %v1343_v18 = vor.u32 %v1342_v59, %v1339_v50  ;;  %v1304_v56 = vshll.u32 %v4454_v17, 16  ;;  %v5529_v29 = vld [vmem:[%s7327_s1 + $0x5a4] ss:$8 sps:$4 sm:$0xff]  }
  0x7d   : > { %952 = vmatprep.mubr.bf16.mxu1 %v5792_v38  ;;  %3007 = vmatprep.mubr.bf16.mxu0 %v5792_v38  ;;  %v1021_v34 = vsel %vm6376_vm2, %v6286_v24, %v1020_v5  ;;  %v6474_v24 = vrot.slane %v1365_v25, 4  ;;  %v518_v48 = vld [vmem:[%s6024_s29 + $0x44] sm:$0x1]  ;;  %v1370_v59 = vrot.slane %v1368_v31, 5  ;;  %v1381_v31 = vrot.slane %v1379_v32, 4 }
  0x7e   : > { %v1306_v23 = vrot.slane %v1304_v56, 5  ;;  %v4578_v25 = vcombine.low %v6409_v47, %v1021_v34  ;;  %v1384_v32 = vrot.slane %v1382_v41, 5 }
  0x7f   : > { %1202 = vmatpush1.bf16.msra.mxu1 %v5492_v61  ;;  %3165 = vmatpush1.bf16.msra.mxu0 %v5495_v62  ;;  %v4577_v61 = vcombine.low %v979_v6, %v993_v2  ;;  %v4865_v62 = vcombine.low %v993_v2, %v6409_v47  ;;  %v1320_v2 = vrot.slane %v1318_v37, 5  ;;  %v516_v47 = vld [vmem:[%s6024_s29 + $0x3c] sm:$0x1] }
  0x80   : > { %1203 = vmatprep.subr.bf16.mxu1 %v5501_v10  ;;  %3166 = vmatprep.subr.bf16.mxu0 %v5505_v11  ;;  %v5523_v10 = vld [vmem:[%s7327_s1 + $0x594] ss:$8 sps:$4 sm:$0xff]   ;;  %v5518_v11 = vld [vmem:[%s7327_s1 + $0x190] ss:$8 sps:$4 sm:$0xff]   ;;  %v6498_v6 = vsel %vm6376_vm2, %v6236_v49, %v1306_v23 }
  0x81   : > { %v6512_v49 = vsel %vm6376_vm2, %v6255_v63, %v1320_v2  ;;  %v5548_v2 = vld [vmem:[%s7327_s1 + $0x1e0] ss:$8 sps:$4 sm:$0xff]  }
  0x82   : > { %953 = vmatmul.mubr.bf16.gmra.mrb[12].mxu1 %v4544_v14  ;;  %3008 = vmatmul.mubr.bf16.gmra.mrb[12].mxu0 %v4832_v26  ;;  %v1046_v14 = vshll.u32 %v512_v0, 16  ;;  %v6466_v26 = vsel %vm6376_vm2, %v6290_v27, %v1034_v9  ;;  %v5524_v27 = vld [vmem:[%s7327_s1 + $0x1a0] ss:$8 sps:$4 sm:$0xff]   ;;  %v1074_v0 = vshll.u32 %v516_v47, 16  ;;  %v1346_v9 = vshll.u32 %v4460_v52, 16 }
  0x83   : > { %1204 = vmatpush1.bf16.msra.mxu1 %v5499_v15  ;;  %3167 = vmatpush1.bf16.msra.mxu0 %v5503_v16  ;;  %v1060_v15 = vshll.u32 %v514_v33, 16  ;;  %v4452_v16 = vld [vmem:[%s6024_s29 + $0x4c] sm:$0x1]  ;;  %v4866_v39 = vcombine.low %v1021_v34, %v6466_v26  ;;  %v5536_v33 = vld [vmem:[%s7327_s1 + $0x1c0] ss:$8 sps:$4 sm:$0xff]  }
  0x84   : > { %1205 = vmatprep.subr.bf16.mxu1 %v5508_v36  ;;  %3168 = vmatprep.subr.bf16.mxu0 %v5511_v20  ;;  %v1290_v36 = vshll.u32 %v4452_v16, 16  ;;  %v5527_v20 = vld [vmem:[%s7327_s1 + $0x5a0] ss:$8 sps:$4 sm:$0xff]   ;;  %v1048_v43 = vrot.slane %v1046_v14, 5  ;;  %v5544_v14 = vld [vmem:[%s7327_s1 + $0x1d4] ss:$8 sps:$4 sm:$0xff]  }
  0x85   : > { %1223 = vmatprep.mubr.bf16.mxu1 %v5792_v38  ;;  %3186 = vmatprep.mubr.bf16.mxu0 %v5792_v38  ;;  %v1062_v44 = vrot.slane %v1060_v15, 5  ;;  %v4462_v15 = vld [vmem:[%s6024_s29 + $0x74] sm:$0x1]  ;;  %v1076_v16 = vrot.slane %v1074_v0, 5  ;;  %v5565_v52 = vld [vmem:[%s7327_s1 + $0x604] ss:$8 sps:$4 sm:$0xff]  }
  0x86   : > { %v1292_v28 = vrot.slane %v1290_v36, 5  ;;  %v1360_v34 = vshll.u32 %v4462_v15, 16  ;;  %v4464_v36 = vld [vmem:[%s6024_s29 + $0x7c] sm:$0x1]  ;;  %v5563_v0 = vld [vmem:[%s7327_s1 + $0x600] ss:$8 sps:$4 sm:$0xff]  }
  0x87   : > { %1206 = vmatpush1.bf16.msra.mxu1 %v5506_v57  ;;  %3169 = vmatpush1.bf16.msra.mxu0 %v5509_v7  ;;  %v5535_v57 = vld [vmem:[%s7327_s1 + $0x5b4] ss:$8 sps:$4 sm:$0xff]   ;;  %v6527_v63 = vsel %vm6376_vm2, %v6414_v51, %v1062_v44  ;;  %v5541_v51 = vld [vmem:[%s7327_s1 + $0x5c4] ss:$8 sps:$4 sm:$0xff]   ;;  %v1374_v30 = vshll.u32 %v4464_v36, 16 }
  0x88   : > { %1505 = vmatprep.subr.bf16.mxu1 %v5514_v46  ;;  %3363 = vmatprep.subr.bf16.mxu0 %v5517_v35  ;;  %v1293_v7 = vsel %vm6376_vm2, %v6227_v45, %v1292_v28  ;;  %v1344_v46 = vrot.slane %v1343_v18, 4  ;;  %v4458_v35 = vld [vmem:[%s6024_s29 + $0x64] sm:$0x1]  ;;  %v5530_v45 = vld [vmem:[%s7327_s1 + $0x1b0] ss:$8 sps:$4 sm:$0xff]   ;;  %v1362_v56 = vrot.slane %v1360_v34, 5  ;;  %v1077_v28 = vsel %vm6376_vm2, %v6423_v54, %v1076_v16 }
  0x89   : > { %v6503_v22 = vcombine.low %v1293_v7, %v6498_v6  ;;  %v1332_v50 = vshll.u32 %v4458_v35, 16  ;;  %v4580_v7 = vcombine.low %v6527_v63, %v1077_v28  ;;  %v5584_v15 = vld [vmem:[%s7327_s1 + $0x240] ss:$8 sps:$4 sm:$0xff]   ;;  %v5592_v34 = vld [vmem:[%s7327_s1 + $0x254] ss:$8 sps:$4 sm:$0xff]  }
  0x8a   : > { %1224 = vmatmul.mubr.bf16.vlgmr.msra.gmra.mrb[0].mxu1 %v4577_v61  ;;  %3187 = vmatmul.mubr.bf16.vlgmr.msra.gmra.mrb[0].mxu0 %v4865_v62  ;;  %v5533_v61 = vld [vmem:[%s7327_s1 + $0x5b0] ss:$8 sps:$4 sm:$0xff]   ;;  %v1049_v62 = vsel %vm6376_vm2, %v6386_v42, %v1048_v43  ;;  %v5538_v42 = vld [vmem:[%s7327_s1 + $0x1c4] ss:$8 sps:$4 sm:$0xff]  }
  0x8b   : > { %1506 = vmatpush1.bf16.msra.mxu1 %v5512_v55  ;;  %3364 = vmatpush1.bf16.msra.mxu0 %v5515_v3  ;;  %v1357_v55 = vor.u32 %v6447_v21, %v6436_v1  ;;  %v4901_v3 = vcombine.low %v6498_v6, %v6512_v49  ;;  %v3044_v1 = vshll.u32 %v518_v48, 16  ;;  %v1334_v5 = vrot.slane %v1332_v50, 5  ;;  %v4466_v43 = vld [vmem:[%s6024_s29 + $0x84] sm:$0x1]  ;;  %v5551_v48 = vld [vmem:[%s7327_s1 + $0x5e0] ss:$8 sps:$4 sm:$0xff]  }
  0x8c   : > { %1507 = vmatprep.subr.bf16.mxu1 %v5520_v8  ;;  %3365 = vmatprep.subr.bf16.mxu0 %v5523_v10  ;;  %v1348_v10 = vrot.slane %v1346_v9, 5  ;;  %v4579_v53 = vcombine.low %v6466_v26, %v1049_v62  ;;  %v4867_v41 = vcombine.low %v1049_v62, %v6527_v63  ;;  %v5559_v50 = vld [vmem:[%s7327_s1 + $0x5f4] ss:$8 sps:$4 sm:$0xff]   ;;  %v5557_v62 = vld [vmem:[%s7327_s1 + $0x5f0] ss:$8 sps:$4 sm:$0xff]   ;;  %v3244_v9 = vshrl.u32 %v6344_v4, 16 }
  0x8d   : > { %1233 = vmatprep.mubr.bf16.mxu1 %v5792_v38  ;;  %3196 = vmatprep.mubr.bf16.mxu0 %v5792_v38  ;;  %v6550_v8 = vsel %vm6376_vm2, %v6425_v58, %v1334_v5  ;;  %v1358_v21 = vrot.slane %v1357_v55, 4  ;;  %v3046_v17 = vrot.slane %v3044_v1, 5  ;;  %v5562_v63 = vld [vmem:[%s7327_s1 + $0x204] ss:$8 sps:$4 sm:$0xff]   ;;  %v5568_v1 = vld [vmem:[%s7327_s1 + $0x214] ss:$8 sps:$4 sm:$0xff]  }
  0x8e   : > { %v4614_v58 = vcombine.low %v6512_v49, %v6550_v8  ;;  %v6566_v18 = vsel %vm6376_vm2, %v1344_v46, %v1348_v10  ;;  %v5571_v5 = vld [vmem:[%s7327_s1 + $0x614] ss:$8 sps:$4 sm:$0xff]   ;;  %v5577_v6 = vld [vmem:[%s7327_s1 + $0x624] ss:$8 sps:$4 sm:$0xff]   ;;  %v5575_v10 = vld [vmem:[%s7327_s1 + $0x620] ss:$8 sps:$4 sm:$0xff]  }
  0x8f   : > { %1508 = vmatpush1.bf16.msra.mxu1 %v5518_v11  ;;  %3366 = vmatpush1.bf16.msra.mxu0 %v5521_v12  ;;  %v1371_v11 = vor.u32 %v1370_v59, %v6474_v24  ;;  %v5539_v12 = vld [vmem:[%s7327_s1 + $0x5c0] ss:$8 sps:$4 sm:$0xff]   ;;  %v4902_v26 = vcombine.low %v6550_v8, %v6566_v18  ;;  %v1385_v24 = vor.u32 %v1384_v32, %v1381_v31  ;;  %v5554_v59 = vld [vmem:[%s7327_s1 + $0x1f0] ss:$8 sps:$4 sm:$0xff]   ;;  %v5586_v49 = vld [vmem:[%s7327_s1 + $0x244] ss:$8 sps:$4 sm:$0xff]  }
  0x90   : > { %1509 = vmatprep.subr.bf16.mxu1 %v5526_v13  ;;  %3367 = vmatprep.subr.bf16.mxu0 %v5529_v29  ;;  %v5547_v13 = vld [vmem:[%s7327_s1 + $0x5d4] ss:$8 sps:$4 sm:$0xff]   ;;  %v3047_v23 = vsel %vm6376_vm2, %v6398_v19, %v3046_v17  ;;  %v6588_v37 = vsel %vm6376_vm2, %v1358_v21, %v1362_v56  ;;  %v5560_v31 = vld [vmem:[%s7327_s1 + $0x200] ss:$8 sps:$4 sm:$0xff]   ;;  %v5569_v32 = vld [vmem:[%s7327_s1 + $0x610] ss:$8 sps:$4 sm:$0xff]  }
  0x91   : > { %v1372_v29 = vrot.slane %v1371_v11, 4  ;;  %v4615_v54 = vcombine.low %v6566_v18, %v6588_v37  ;;  %v1386_v44 = vrot.slane %v1385_v24, 4  ;;  %v4868_v46 = vcombine.low %v1077_v28, %v3047_v23  ;;  %v5580_v21 = vld [vmem:[%s7327_s1 + $0x234] ss:$8 sps:$4 sm:$0xff]   ;;  %v5589_v8 = vld [vmem:[%s7327_s1 + $0x644] ss:$8 sps:$4 sm:$0xff]  }
  0x92   : > { %1234 = vmatmul.mubr.bf16.gmra.mrb[4].mxu1 %v4578_v25  ;;  %3197 = vmatmul.mubr.bf16.gmra.mrb[4].mxu0 %v4866_v39  ;;  %v1376_v25 = vrot.slane %v1374_v30, 5  ;;  %v5550_v39 = vld [vmem:[%s7327_s1 + $0x1e4] ss:$8 sps:$4 sm:$0xff]   ;;  %v5583_v11 = vld [vmem:[%s7327_s1 + $0x634] ss:$8 sps:$4 sm:$0xff]  }
  0x93   : > { %1510 = vmatpush1.bf16.msra.mxu1 %v5524_v27  ;;  %3368 = vmatpush1.bf16.msra.mxu0 %v5527_v20  ;;  %v5542_v27 = vld [vmem:[%s7327_s1 + $0x1d0] ss:$8 sps:$4 sm:$0xff]   ;;  %v5587_v17 = vld [vmem:[%s7327_s1 + $0x640] ss:$8 sps:$4 sm:$0xff]   ;;  %v5601_v30 = vld [vmem:[%s7327_s1 + $0x664] ss:$8 sps:$4 sm:$0xff]  }
  0x94   : > { %1511 = vmatprep.subr.bf16.mxu1 %v5532_v40  ;;  %3369 = vmatprep.subr.bf16.mxu0 %v5535_v57  ;;  %v5545_v20 = vld [vmem:[%s7327_s1 + $0x5d0] ss:$8 sps:$4 sm:$0xff]   ;;  %v5553_v40 = vld [vmem:[%s7327_s1 + $0x5e4] ss:$8 sps:$4 sm:$0xff]   ;;  %v6603_v19 = vsel %vm6376_vm2, %v1372_v29, %v1376_v25  ;;  %v1388_v57 = vshll.u32 %v4466_v43, 16 }
  0x95   : > { %1243 = vmatprep.mubr.bf16.mxu1 %v5792_v38  ;;  %3206 = vmatprep.mubr.bf16.mxu0 %v5792_v38  ;;  %v4903_v47 = vcombine.low %v6588_v37, %v6603_v19  ;;  %v5590_v36 = vld [vmem:[%s7327_s1 + $0x250] ss:$8 sps:$4 sm:$0xff]   ;;  %v5598_v29 = vld [vmem:[%s7327_s1 + $0x264] ss:$8 sps:$4 sm:$0xff]   ;;  %v5604_v28 = vld [vmem:[%s7327_s1 + $0x274] ss:$8 sps:$4 sm:$0xff]  }
  0x96   : > { %v1390_v35 = vrot.slane %v1388_v57, 5  ;;  %v5593_v56 = vld [vmem:[%s7327_s1 + $0x650] ss:$8 sps:$4 sm:$0xff]   ;;  %v5607_v23 = vld [vmem:[%s7327_s1 + $0x674] ss:$8 sps:$4 sm:$0xff]  }
  0x97   : > { %1512 = vmatpush1.bf16.msra.mxu1 %v5530_v45  ;;  %3370 = vmatpush1.bf16.msra.mxu0 %v5533_v61  ;;  %v5556_v45 = vld [vmem:[%s7327_s1 + $0x1f4] ss:$8 sps:$4 sm:$0xff]   ;;  %v5602_v37 = vld [vmem:[%s7327_s1 + $0x270] ss:$8 sps:$4 sm:$0xff]   ;;  %v5611_v43 = vld [vmem:[%s7327_s1 + $0x284] ss:$8 sps:$4 sm:$0xff]  }
  0x98   : > { %1513 = vmatprep.subr.bf16.mxu1 %v5538_v42  ;;  %3371 = vmatprep.subr.bf16.mxu0 %v5541_v51  ;;  %v6622_v55 = vsel %vm6376_vm2, %v1386_v44, %v1390_v35  ;;  %v3247_v42 = vshll.u32 %v6344_v4, 16  ;;  %v5566_v51 = vld [vmem:[%s7327_s1 + $0x210] ss:$8 sps:$4 sm:$0xff]   ;;  %v5574_v4 = vld [vmem:[%s7327_s1 + $0x224] ss:$8 sps:$4 sm:$0xff]  }
  0x99   : > { %v4616_v61 = vcombine.low %v6603_v19, %v6622_v55  ;;  %v5605_v25 = vld [vmem:[%s7327_s1 + $0x670] ss:$8 sps:$4 sm:$0xff]   ;;  %v5615_v19 = vld [vmem:[%s7327_s1 + $0x684] ss:$8 sps:$4 sm:$0xff]   ;;  %v5609_v57 = vld [vmem:[%s7327_s1 + $0x280] ss:$8 sps:$4 sm:$0xff]  }
  0x9a   : > { %1244 = vmatmul.mubr.bf16.gmra.mrb[8].mxu1 %v4579_v53  ;;  %3207 = vmatmul.mubr.bf16.gmra.mrb[8].mxu0 %v4867_v41  ;;  %v4468_v53 = vld [vmem:[%s6024_s29 + $0x8c] sm:$0x1]  ;;  %v5578_v41 = vld [vmem:[%s7327_s1 + $0x230] ss:$8 sps:$4 sm:$0xff]  }
  0x9b   : > { %1514 = vmatpush1.bf16.msra.mxu1 %v5536_v33  ;;  %3372 = vmatpush1.bf16.msra.mxu0 %v5539_v12  ;;  %v5572_v33 = vld [vmem:[%s7327_s1 + $0x220] ss:$8 sps:$4 sm:$0xff]   ;;  %v5619_v35 = vld [vmem:[%s7327_s1 + $0x690] ss:$8 sps:$4 sm:$0xff]  }
  0x9c   : > { %1515 = vmatprep.subr.bf16.mxu1 %v5544_v14  ;;  %3373 = vmatprep.subr.bf16.mxu0 %v5547_v13  ;;  %v5581_v14 = vld [vmem:[%s7327_s1 + $0x630] ss:$8 sps:$4 sm:$0xff]  }
  0x9d   : > { %1253 = vmatprep.mubr.bf16.mxu1 %v5792_v38  ;;  %3216 = vmatprep.mubr.bf16.mxu0 %v5792_v38 }
  0x9f   : > { %1516 = vmatpush1.bf16.msra.mxu1 %v5542_v27  ;;  %3374 = vmatpush1.bf16.msra.mxu0 %v5545_v20  ;;  %v5596_v27 = vld [vmem:[%s7327_s1 + $0x260] ss:$8 sps:$4 sm:$0xff]  }
  0xa0   : > { %1517 = vmatprep.subr.bf16.mxu1 %v5550_v39  ;;  %3375 = vmatprep.subr.bf16.mxu0 %v5553_v40  ;;  %v5599_v20 = vld [vmem:[%s7327_s1 + $0x660] ss:$8 sps:$4 sm:$0xff]   ;;  %v6762_v39 = vld [vmem:[%s6024_s29 + $0x90] sm:$0xf]  ;;  %v6765_v40 = vld [vmem:[%s6024_s29 + $0x98] sm:$0xf] }
  0xa1   : > { %v4649_v44 = vcombine.low %v6762_v39, %v6765_v40 }
  0xa2   : > { %1254 = vmatmul.mubr.bf16.gmra.mrb[12].mxu1 %v4580_v7  ;;  %3217 = vmatmul.mubr.bf16.gmra.mrb[12].mxu0 %v4868_v46  ;;  %v5618_v46 = vld [vmem:[%s7327_s1 + $0x294] ss:$8 sps:$4 sm:$0xff]  }
  0xa3   : > { %1518 = vmatpush1.bf16.msra.mxu1 %v5548_v2  ;;  %3376 = vmatpush1.bf16.msra.mxu0 %v5551_v48  ;;  %v5613_v2 = vld [vmem:[%s7327_s1 + $0x680] ss:$8 sps:$4 sm:$0xff]   ;;  %v5616_v48 = vld [vmem:[%s7327_s1 + $0x290] ss:$8 sps:$4 sm:$0xff]  }
  0xa4   : > { %1519 = vmatprep.subr.bf16.mxu1 %v5556_v45  ;;  %3377 = vmatprep.subr.bf16.mxu0 %v5559_v50  ;;  %v6801_v45 = vld [vmem:[%s6024_s29 + $0xa8] sm:$0xf]  ;;  %v6804_v50 = vld [vmem:[%s6024_s29 + $0xb0] sm:$0xf] }
  0xa5   : > { %1537 = vmatprep.mubr.bf16.mxu1 %v5792_v38  ;;  %3395 = vmatprep.mubr.bf16.mxu0 %v5792_v38 }
  0xa7   : > { %1520 = vmatpush1.bf16.msra.mxu1 %v5554_v59  ;;  %3378 = vmatpush1.bf16.msra.mxu0 %v5557_v62  ;;  %v5629_v59 = vld [vmem:[%s7327_s1 + $0x6a4] ss:$8 sps:$4 sm:$0xff]   ;;  %v5623_v62 = vld [vmem:[%s7327_s1 + $0x2a0] ss:$8 sps:$4 sm:$0xff]  }
  0xa8   : > { %1715 = vmatprep.subr.bf16.mxu1 %v5562_v63  ;;  %3559 = vmatprep.subr.bf16.mxu0 %v5565_v52  ;;  %v4938_v63 = vcombine.low %v6801_v45, %v6804_v50  ;;  %v5627_v52 = vld [vmem:[%s7327_s1 + $0x6a0] ss:$8 sps:$4 sm:$0xff]  }
  0xaa   : > { %1538 = vmatmul.mubr.bf16.vlgmr.msra.gmra.mrb[0].mxu1 %v6503_v22  ;;  %3396 = vmatmul.mubr.bf16.vlgmr.msra.gmra.mrb[0].mxu0 %v4901_v3  ;;  %v3246_v22 = vrot.slane %v3244_v9, 4  ;;  %v3249_v3 = vrot.slane %v3247_v42, 5  ;;  %v6837_v9 = vld [vmem:[%s6024_s29 + $0xb8] sm:$0xf]  ;;  %v6840_v42 = vld [vmem:[%s6024_s29 + $0xc0] sm:$0xf] }
  0xab   : > { %1716 = vmatpush1.bf16.msra.mxu1 %v5560_v31  ;;  %3560 = vmatpush1.bf16.msra.mxu0 %v5563_v0  ;;  %v5632_v31 = vld [vmem:[%s7327_s1 + $0x2b4] ss:$8 sps:$4 sm:$0xff]  }
  0xac   : > { %1717 = vmatprep.subr.bf16.mxu1 %v5568_v1  ;;  %3561 = vmatprep.subr.bf16.mxu0 %v5571_v5  ;;  %v3250_v12 = vor.u32 %v3249_v3, %v3246_v22  ;;  %v5635_v0 = vld [vmem:[%s7327_s1 + $0x6b4] ss:$8 sps:$4 sm:$0xff]   ;;  %v5630_v1 = vld [vmem:[%s7327_s1 + $0x2b0] ss:$8 sps:$4 sm:$0xff]   ;;  %v4939_v22 = vcombine.low %v6837_v9, %v6840_v42  ;;  %v5641_v3 = vld [vmem:[%s7327_s1 + $0x6c0] ss:$8 sps:$4 sm:$0xff]  }
  0xad   : > { %1547 = vmatprep.mubr.bf16.mxu1 %v5792_v38  ;;  %3405 = vmatprep.mubr.bf16.mxu0 %v5792_v38  ;;  %v5633_v5 = vld [vmem:[%s7327_s1 + $0x6b0] ss:$8 sps:$4 sm:$0xff]  }
  0xae   : > { %v3251_v16 = vrot.slane %v3250_v12, 4  ;;  %v5653_v12 = vld [vmem:[%s7327_s1 + $0x2e4] ss:$8 sps:$4 sm:$0xff]  }
  0xaf   : > { %1718 = vmatpush1.bf16.msra.mxu1 %v5566_v51  ;;  %3562 = vmatpush1.bf16.msra.mxu0 %v5569_v32  ;;  %v5639_v51 = vld [vmem:[%s7327_s1 + $0x2c4] ss:$8 sps:$4 sm:$0xff]  }
  0xb0   : > { %1719 = vmatprep.subr.bf16.mxu1 %v5574_v4  ;;  %3563 = vmatprep.subr.bf16.mxu0 %v5577_v6  ;;  %v5643_v32 = vld [vmem:[%s7327_s1 + $0x6c4] ss:$8 sps:$4 sm:$0xff]   ;;  %v4651_v4 = vcombine.low %v6804_v50, %v6837_v9  ;;  %v5637_v6 = vld [vmem:[%s7327_s1 + $0x2c0] ss:$8 sps:$4 sm:$0xff]  }
  0xb2   : > { %1548 = vmatmul.mubr.bf16.gmra.mrb[4].mxu1 %v4614_v58  ;;  %3406 = vmatmul.mubr.bf16.gmra.mrb[4].mxu0 %v4902_v26  ;;  %v3253_v58 = vshll.u32 %v4468_v53, 16  ;;  %v5595_v26 = vld [vmem:[%s7327_s1 + $0x654] ss:$8 sps:$4 sm:$0xff]   ;;  %v6873_v53 = vld [vmem:[%s6024_s29 + $0xc8] sm:$0xf] }
  0xb3   : > { %1720 = vmatpush1.bf16.msra.mxu1 %v5572_v33  ;;  %3564 = vmatpush1.bf16.msra.mxu0 %v5575_v10  ;;  %v5646_v33 = vld [vmem:[%s7327_s1 + $0x2d4] ss:$8 sps:$4 sm:$0xff]  }
  0xb4   : > { %1721 = vmatprep.subr.bf16.mxu1 %v5580_v21  ;;  %3565 = vmatprep.subr.bf16.mxu0 %v5583_v11  ;;  %v3255_v13 = vrot.slane %v3253_v58, 5  ;;  %v5649_v10 = vld [vmem:[%s7327_s1 + $0x6d4] ss:$8 sps:$4 sm:$0xff]   ;;  %v5644_v21 = vld [vmem:[%s7327_s1 + $0x2d0] ss:$8 sps:$4 sm:$0xff]  }
  0xb5   : > { %1557 = vmatprep.mubr.bf16.mxu1 %v5792_v38  ;;  %3415 = vmatprep.mubr.bf16.mxu0 %v5792_v38  ;;  %v5647_v11 = vld [vmem:[%s7327_s1 + $0x6d0] ss:$8 sps:$4 sm:$0xff]  }
  0xb6   : > { %v3256_v18 = vsel %vm6376_vm2, %v3251_v16, %v3255_v13  ;;  %v5660_v16 = vld [vmem:[%s7327_s1 + $0x2f4] ss:$8 sps:$4 sm:$0xff]   ;;  %v5661_v13 = vld [vmem:[%s7327_s1 + $0x6f0] ss:$8 sps:$4 sm:$0xff]  }
  0xb7   : > { %1722 = vmatpush1.bf16.msra.mxu1 %v5578_v41  ;;  %3566 = vmatpush1.bf16.msra.mxu0 %v5581_v14  ;;  %v4904_v24 = vcombine.low %v6622_v55, %v3256_v18  ;;  %v5625_v55 = vld [vmem:[%s7327_s1 + $0x2a4] ss:$8 sps:$4 sm:$0xff]   ;;  %v6876_v41 = vld [vmem:[%s6024_s29 + $0xd0] sm:$0xf] }
  0xb8   : > { %1723 = vmatprep.subr.bf16.mxu1 %v5586_v49  ;;  %3567 = vmatprep.subr.bf16.mxu0 %v5589_v8  ;;  %v5657_v14 = vld [vmem:[%s7327_s1 + $0x6e4] ss:$8 sps:$4 sm:$0xff]   ;;  %v4652_v49 = vcombine.low %v6840_v42, %v6873_v53  ;;  %v4940_v58 = vcombine.low %v6873_v53, %v6876_v41  ;;  %v5651_v8 = vld [vmem:[%s7327_s1 + $0x2e0] ss:$8 sps:$4 sm:$0xff]  }
  0xb9   : > { %v5671_v18 = vld [vmem:[%s7327_s1 + $0x704] ss:$8 sps:$4 sm:$0xff]  }
  0xba   : > { %1558 = vmatmul.mubr.bf16.gmra.mrb[8].mxu1 %v4615_v54  ;;  %3416 = vmatmul.mubr.bf16.gmra.mrb[8].mxu0 %v4903_v47  ;;  %v6768_v54 = vld [vmem:[%s6024_s29 + $0xa0] sm:$0xf]  ;;  %v5621_v47 = vld [vmem:[%s7327_s1 + $0x694] ss:$8 sps:$4 sm:$0xff]  }
  0xbb   : > { %1724 = vmatpush1.bf16.msra.mxu1 %v5584_v15  ;;  %3568 = vmatpush1.bf16.msra.mxu0 %v5587_v17  ;;  %v4937_v7 = vcombine.low %v6765_v40, %v6768_v54  ;;  %v5655_v15 = vld [vmem:[%s7327_s1 + $0x6e0] ss:$8 sps:$4 sm:$0xff]   ;;  %v5663_v17 = vld [vmem:[%s7327_s1 + $0x6f4] ss:$8 sps:$4 sm:$0xff]  }
  0xbc   : > { %1725 = vmatprep.subr.bf16.mxu1 %v5592_v34  ;;  %3569 = vmatprep.subr.bf16.mxu0 %v5595_v26  ;;  %v5658_v34 = vld [vmem:[%s7327_s1 + $0x2f0] ss:$8 sps:$4 sm:$0xff]  }
  0xbd   : > { %1567 = vmatprep.mubr.bf16.mxu1 %v5792_v38  ;;  %3425 = vmatprep.mubr.bf16.mxu0 %v5792_v38  ;;  %v6909_v26 = vld [vmem:[%s6024_s29 + $0xd8] sm:$0xf] }
  0xbf   : > { %1726 = vmatpush1.bf16.msra.mxu1 %v5590_v36  ;;  %3570 = vmatpush1.bf16.msra.mxu0 %v5593_v56  ;;  %v6912_v36 = vld [vmem:[%s6024_s29 + $0xe0] sm:$0xf]  ;;  %v5667_v56 = vld [vmem:[%s7327_s1 + $0x304] ss:$8 sps:$4 sm:$0xff]  }
  0xc0   : > { %1727 = vmatprep.subr.bf16.mxu1 %v5598_v29  ;;  %3571 = vmatprep.subr.bf16.mxu0 %v5601_v30  ;;  %v6918_v29 = vld [vmem:[%s6024_s29 + $0xe8] sm:$0xf]  ;;  %v4685_v30 = vcombine.low %v6909_v26, %v6912_v36 }
  0xc2   : > { %1568 = vmatmul.mubr.bf16.gmra.mrb[12].mxu1 %v4616_v61  ;;  %3426 = vmatmul.mubr.bf16.gmra.mrb[12].mxu0 %v4904_v24  ;;  %v4650_v61 = vcombine.low %v6768_v54, %v6801_v45  ;;  %v5665_v24 = vld [vmem:[%s7327_s1 + $0x300] ss:$8 sps:$4 sm:$0xff]  }
  0xc3   : > { %1728 = vmatpush1.bf16.msra.mxu1 %v5596_v27  ;;  %3572 = vmatpush1.bf16.msra.mxu0 %v5599_v20  ;;  %v4973_v27 = vcombine.low %v6912_v36, %v6918_v29  ;;  %v5669_v20 = vld [vmem:[%s7327_s1 + $0x700] ss:$8 sps:$4 sm:$0xff]  }
  0xc4   : > { %1729 = vmatprep.subr.bf16.mxu1 %v5604_v28  ;;  %3573 = vmatprep.subr.bf16.mxu0 %v5607_v23  ;;  %v5674_v28 = vld [vmem:[%s7327_s1 + $0x314] ss:$8 sps:$4 sm:$0xff]  }
  0xc5   : > { %1747 = vmatprep.mubr.bf16.mxu1 %v5792_v38  ;;  %3591 = vmatprep.mubr.bf16.mxu0 %v5792_v38  ;;  %v5677_v23 = vld [vmem:[%s7327_s1 + $0x714] ss:$8 sps:$4 sm:$0xff]  }
  0xc7   : > { %1730 = vmatpush1.bf16.msra.mxu1 %v5602_v37  ;;  %3574 = vmatpush1.bf16.msra.mxu0 %v5605_v25  ;;  %v5672_v37 = vld [vmem:[%s7327_s1 + $0x310] ss:$8 sps:$4 sm:$0xff]  }
  0xc8   : > { %1925 = vmatprep.subr.bf16.mxu1 %v5611_v43  ;;  %3755 = vmatprep.subr.bf16.mxu0 %v5615_v19  ;;  %v5675_v25 = vld [vmem:[%s7327_s1 + $0x710] ss:$8 sps:$4 sm:$0xff]   ;;  %v2015_v43 = vshrl.u32 %v6762_v39, 16 }
  0xc9   : > { %v6949_v19 = vld [vmem:[%s6024_s29 + $0xf0] sm:$0xf] }
  0xca   : > { %1748 = vmatmul.mubr.bf16.vlgmr.msra.gmra.mrb[0].mxu1 %v4649_v44  ;;  %3592 = vmatmul.mubr.bf16.vlgmr.msra.gmra.mrb[0].mxu0 %v4937_v7  ;;  %v6952_v44 = vld [vmem:[%s6024_s29 + $0xf8] sm:$0xf]  ;;  %v5681_v7 = vld [vmem:[%s7327_s1 + $0x324] ss:$8 sps:$4 sm:$0xff]  }
  0xcb   : > { %1926 = vmatpush1.bf16.msra.mxu1 %v5609_v57  ;;  %3756 = vmatpush1.bf16.msra.mxu0 %v5613_v2  ;;  %v2018_v57 = vshll.u32 %v6762_v39, 16  ;;  %v5685_v2 = vld [vmem:[%s7327_s1 + $0x724] ss:$8 sps:$4 sm:$0xff]   ;;  %v4974_v39 = vcombine.low %v6949_v19, %v6952_v44 }
  0xcc   : > { %1927 = vmatprep.subr.bf16.mxu1 %v5618_v46  ;;  %3757 = vmatprep.subr.bf16.mxu0 %v5621_v47  ;;  %v4686_v46 = vcombine.low %v6918_v29, %v6949_v19  ;;  %v5679_v47 = vld [vmem:[%s7327_s1 + $0x320] ss:$8 sps:$4 sm:$0xff]  }
  0xcd   : > { %1757 = vmatprep.mubr.bf16.mxu1 %v5792_v38  ;;  %3601 = vmatprep.mubr.bf16.mxu0 %v5792_v38 }
  0xcf   : > { %1928 = vmatpush1.bf16.msra.mxu1 %v5616_v48  ;;  %3758 = vmatpush1.bf16.msra.mxu0 %v5619_v35  ;;  %v5683_v48 = vld [vmem:[%s7327_s1 + $0x720] ss:$8 sps:$4 sm:$0xff]   ;;  %v2017_v35 = vrot.slane %v2015_v43, 4 }
  0xd0   : > { %1929 = vmatprep.subr.bf16.mxu1 %v5625_v55  ;;  %3759 = vmatprep.subr.bf16.mxu0 %v5629_v59  ;;  %v2020_v55 = vrot.slane %v2018_v57, 5  ;;  %v5688_v59 = vld [vmem:[%s7327_s1 + $0x334] ss:$8 sps:$4 sm:$0xff]  }
  0xd2   : > { %1758 = vmatmul.mubr.bf16.gmra.mrb[4].mxu1 %v4650_v61  ;;  %3602 = vmatmul.mubr.bf16.gmra.mrb[4].mxu0 %v4938_v63  ;;  %v5691_v61 = vld [vmem:[%s7327_s1 + $0x734] ss:$8 sps:$4 sm:$0xff]   ;;  %v2032_v63 = vshll.u32 %v6765_v40, 16 }
  0xd3   : > { %1930 = vmatpush1.bf16.msra.mxu1 %v5623_v62  ;;  %3760 = vmatpush1.bf16.msra.mxu0 %v5627_v52  ;;  %v2029_v62 = vshrl.u32 %v6765_v40, 16  ;;  %v2043_v52 = vshrl.u32 %v6768_v54, 16  ;;  %v5695_v40 = vld [vmem:[%s7327_s1 + $0x344] ss:$8 sps:$4 sm:$0xff]  }
  0xd4   : > { %1931 = vmatprep.subr.bf16.mxu1 %v5632_v31  ;;  %3761 = vmatprep.subr.bf16.mxu0 %v5635_v0  ;;  %v2046_v31 = vshll.u32 %v6768_v54, 16  ;;  %v5686_v0 = vld [vmem:[%s7327_s1 + $0x330] ss:$8 sps:$4 sm:$0xff]   ;;  %v5699_v54 = vld [vmem:[%s7327_s1 + $0x744] ss:$8 sps:$4 sm:$0xff]  }
  0xd5   : > { %1767 = vmatprep.mubr.bf16.mxu1 %v5792_v38  ;;  %3611 = vmatprep.mubr.bf16.mxu0 %v5792_v38 }
  0xd7   : > { %1932 = vmatpush1.bf16.msra.mxu1 %v5630_v1  ;;  %3762 = vmatpush1.bf16.msra.mxu0 %v5633_v5  ;;  %v5689_v1 = vld [vmem:[%s7327_s1 + $0x730] ss:$8 sps:$4 sm:$0xff]   ;;  %v6990_v5 = vld [vmem:[%s6024_s29 + $0x100] sm:$0xf] }
  0xd8   : > { %1933 = vmatprep.subr.bf16.mxu1 %v5639_v51  ;;  %3763 = vmatprep.subr.bf16.mxu0 %v5643_v32  ;;  %v6993_v51 = vld [vmem:[%s6024_s29 + $0x108] sm:$0xf]  ;;  %v2021_v32 = vor.u32 %v2020_v55, %v2017_v35 }
  0xda   : > { %1768 = vmatmul.mubr.bf16.gmra.mrb[8].mxu1 %v4651_v4  ;;  %3612 = vmatmul.mubr.bf16.gmra.mrb[8].mxu0 %v4939_v22  ;;  %v2031_v4 = vrot.slane %v2029_v62, 4  ;;  %v2045_v22 = vrot.slane %v2043_v52, 4  ;;  %v5719_v52 = vld [vmem:[%s7327_s1 + $0x774] ss:$8 sps:$4 sm:$0xff]  }
  0xdb   : > { %1934 = vmatpush1.bf16.msra.mxu1 %v5637_v6  ;;  %3764 = vmatpush1.bf16.msra.mxu0 %v5641_v3  ;;  %v2034_v6 = vrot.slane %v2032_v63, 5  ;;  %v2048_v3 = vrot.slane %v2046_v31, 5  ;;  %v4476_v31 = vld [vmem:[%s6024_s29 + $0xac] sm:$0x1] }
  0xdc   : > { %1935 = vmatprep.subr.bf16.mxu1 %v5646_v33  ;;  %3765 = vmatprep.subr.bf16.mxu0 %v5649_v10  ;;  %v2057_v33 = vshrl.u32 %v6801_v45, 16  ;;  %v2060_v10 = vshll.u32 %v6801_v45, 16  ;;  %v5702_v45 = vld [vmem:[%s7327_s1 + $0x354] ss:$8 sps:$4 sm:$0xff]  }
  0xdd   : > { %1777 = vmatprep.mubr.bf16.mxu1 %v5792_v38  ;;  %3621 = vmatprep.mubr.bf16.mxu0 %v5792_v38 }
  0xde   : > { %v2062_v43 = vrot.slane %v2060_v10, 5 }
  0xdf   : > { %1936 = vmatpush1.bf16.msra.mxu1 %v5644_v21  ;;  %3766 = vmatpush1.bf16.msra.mxu0 %v5647_v11  ;;  %v4687_v21 = vcombine.low %v6952_v44, %v6990_v5  ;;  %v5693_v11 = vld [vmem:[%s7327_s1 + $0x340] ss:$8 sps:$4 sm:$0xff]  }
  0xe0   : > { %1937 = vmatprep.subr.bf16.mxu1 %v5653_v12  ;;  %3767 = vmatprep.subr.bf16.mxu0 %v5657_v14  ;;  %v4975_v12 = vcombine.low %v6990_v5, %v6993_v51  ;;  %v5697_v14 = vld [vmem:[%s7327_s1 + $0x740] ss:$8 sps:$4 sm:$0xff]  }
  0xe2   : > { %1778 = vmatmul.mubr.bf16.gmra.mrb[12].mxu1 %v4652_v49  ;;  %3622 = vmatmul.mubr.bf16.gmra.mrb[12].mxu0 %v4940_v58  ;;  %v4470_v49 = vld [vmem:[%s6024_s29 + $0x94] sm:$0x1] }
  0xe3   : > { %1938 = vmatpush1.bf16.msra.mxu1 %v5651_v8  ;;  %3768 = vmatpush1.bf16.msra.mxu0 %v5655_v15  ;;  %v5705_v58 = vld [vmem:[%s7327_s1 + $0x754] ss:$8 sps:$4 sm:$0xff]   ;;  %v4474_v15 = vld [vmem:[%s6024_s29 + $0xa4] sm:$0x1] }
  0xe4   : > { %1939 = vmatprep.subr.bf16.mxu1 %v5660_v16  ;;  %3769 = vmatprep.subr.bf16.mxu0 %v5663_v17  ;;  %v4472_v8 = vld [vmem:[%s6024_s29 + $0x9c] sm:$0x1]  ;;  %v2071_v16 = vshrl.u32 %v6804_v50, 16  ;;  %v2074_v17 = vshll.u32 %v6804_v50, 16  ;;  %v7038_v50 = vld [vmem:[%s6024_s29 + $0x118] sm:$0xf] }
  0xe5   : > { %1957 = vmatprep.mubr.bf16.mxu1 %v5792_v38  ;;  %3787 = vmatprep.mubr.bf16.mxu0 %v5792_v38 }
  0xe7   : > { %1940 = vmatpush1.bf16.msra.mxu1 %v5658_v34  ;;  %3770 = vmatpush1.bf16.msra.mxu0 %v5661_v13  ;;  %v2035_v34 = vor.u32 %v2034_v6, %v2031_v4  ;;  %v2049_v13 = vor.u32 %v2048_v3, %v2045_v22  ;;  %v2102_v4 = vshll.u32 %v6840_v42, 16  ;;  %v5714_v22 = vld [vmem:[%s7327_s1 + $0x370] ss:$8 sps:$4 sm:$0xff]  }
  0xe8   : > { %2239 = vmatprep.subr.bf16.mxu1 %v5667_v56  ;;  %3964 = vmatprep.subr.bf16.mxu0 %v5671_v18  ;;  %v5700_v56 = vld [vmem:[%s7327_s1 + $0x350] ss:$8 sps:$4 sm:$0xff]  }
  0xe9   : > { %v5703_v18 = vld [vmem:[%s7327_s1 + $0x750] ss:$8 sps:$4 sm:$0xff]   ;;  %v2036_v57 = vrot.slane %v2035_v34, 4 }
  0xea   : > { %1958 = vmatmul.mubr.bf16.vlgmr.msra.gmra.mrb[0].mxu1 %v4685_v30  ;;  %3788 = vmatmul.mubr.bf16.vlgmr.msra.gmra.mrb[0].mxu0 %v4973_v27  ;;  %v7032_v30 = vrot.slane %v2021_v32, 4  ;;  %v7035_v27 = vld [vmem:[%s6024_s29 + $0x110] sm:$0xf]  ;;  %v2099_v32 = vshrl.u32 %v6840_v42, 16 }
  0xeb   : > { %2240 = vmatpush1.bf16.msra.mxu1 %v5665_v24  ;;  %3965 = vmatpush1.bf16.msra.mxu0 %v5669_v20  ;;  %v2024_v24 = vshll.u32 %v4470_v49, 16  ;;  %v2038_v20 = vshll.u32 %v4472_v8, 16  ;;  %v4976_v35 = vcombine.low %v7035_v27, %v7038_v50  ;;  %v3848_v49 = vshll.u32 %v6876_v41, 16 }
  0xec   : > { %2241 = vmatprep.subr.bf16.mxu1 %v5674_v28  ;;  %3966 = vmatprep.subr.bf16.mxu0 %v5677_v23  ;;  %v2052_v28 = vshll.u32 %v4474_v15, 16  ;;  %v5709_v23 = vld [vmem:[%s7327_s1 + $0x364] ss:$8 sps:$4 sm:$0xff]   ;;  %v2101_v34 = vrot.slane %v2099_v32, 4 }
  0xed   : > { %1967 = vmatprep.mubr.bf16.mxu1 %v5792_v38  ;;  %3797 = vmatprep.mubr.bf16.mxu0 %v5792_v38  ;;  %v2026_v55 = vrot.slane %v2024_v24, 5  ;;  %v2040_v62 = vrot.slane %v2038_v20, 5  ;;  %v5731_v24 = vld [vmem:[%s7327_s1 + $0x794] ss:$8 sps:$4 sm:$0xff]  }
  0xee   : > { %v2054_v63 = vrot.slane %v2052_v28, 5  ;;  %v4480_v20 = vld [vmem:[%s6024_s29 + $0xbc] sm:$0x1]  ;;  %v4482_v28 = vld [vmem:[%s6024_s29 + $0xc4] sm:$0x1] }
  0xef   : > { %2242 = vmatpush1.bf16.msra.mxu1 %v5672_v37  ;;  %3967 = vmatpush1.bf16.msra.mxu0 %v5675_v25  ;;  %v5713_v37 = vld [vmem:[%s7327_s1 + $0x764] ss:$8 sps:$4 sm:$0xff]   ;;  %v2059_v25 = vrot.slane %v2057_v33, 4  ;;  %v2027_v6 = vsel %vm6376_vm2, %v7032_v30, %v2026_v55  ;;  %v2041_v3 = vsel %vm6376_vm2, %v2036_v57, %v2040_v62  ;;  %v2066_v33 = vshll.u32 %v4476_v31, 16  ;;  %v5726_v57 = vld [vmem:[%s7327_s1 + $0x390] ss:$8 sps:$4 sm:$0xff]  }
  0xf0   : > { %2243 = vmatprep.subr.bf16.mxu1 %v5681_v7  ;;  %3968 = vmatprep.subr.bf16.mxu0 %v5685_v2  ;;  %v2050_v7 = vrot.slane %v2049_v13, 4  ;;  %v2073_v2 = vrot.slane %v2071_v16, 4  ;;  %v4721_v15 = vcombine.low %v2027_v6, %v2041_v3  ;;  %v5720_v16 = vld [vmem:[%s7327_s1 + $0x380] ss:$8 sps:$4 sm:$0xff]   ;;  %v2104_v13 = vrot.slane %v2102_v4, 5 }
  0xf1   : > { %v5737_v55 = vld [vmem:[%s7327_s1 + $0x7a4] ss:$8 sps:$4 sm:$0xff]   ;;  %v5732_v31 = vld [vmem:[%s7327_s1 + $0x3a0] ss:$8 sps:$4 sm:$0xff]   ;;  %v5740_v6 = vld [vmem:[%s7327_s1 + $0x3b4] ss:$8 sps:$4 sm:$0xff]  }
  0xf2   : > { %1968 = vmatmul.mubr.bf16.gmra.mrb[4].mxu1 %v4686_v46  ;;  %3798 = vmatmul.mubr.bf16.gmra.mrb[4].mxu0 %v4974_v39  ;;  %v2076_v46 = vrot.slane %v2074_v17, 5  ;;  %v2085_v39 = vshrl.u32 %v6837_v9, 16  ;;  %v7083_v42 = vsel %vm6376_vm2, %v2050_v7, %v2054_v63  ;;  %v5729_v7 = vld [vmem:[%s7327_s1 + $0x790] ss:$8 sps:$4 sm:$0xff]   ;;  %v4484_v4 = vld [vmem:[%s6024_s29 + $0xcc] sm:$0x1] }
  0xf3   : > { %2244 = vmatpush1.bf16.msra.mxu1 %v5679_v47  ;;  %3969 = vmatpush1.bf16.msra.mxu0 %v5683_v48  ;;  %v4688_v47 = vcombine.low %v6993_v51, %v7035_v27  ;;  %v5707_v48 = vld [vmem:[%s7327_s1 + $0x360] ss:$8 sps:$4 sm:$0xff]   ;;  %v5009_v17 = vcombine.low %v2041_v3, %v7083_v42  ;;  %v2343_v3 = vshrl.u32 %v6912_v36, 16 }
  0xf4   : > { %2245 = vmatprep.subr.bf16.mxu1 %v5688_v59  ;;  %3970 = vmatprep.subr.bf16.mxu0 %v5691_v61  ;;  %v5711_v59 = vld [vmem:[%s7327_s1 + $0x760] ss:$8 sps:$4 sm:$0xff]   ;;  %v5716_v61 = vld [vmem:[%s7327_s1 + $0x374] ss:$8 sps:$4 sm:$0xff]  }
  0xf5   : > { %1977 = vmatprep.mubr.bf16.mxu1 %v5792_v38  ;;  %3807 = vmatprep.mubr.bf16.mxu0 %v5792_v38 }
  0xf7   : > { %2246 = vmatpush1.bf16.msra.mxu1 %v5686_v0  ;;  %3971 = vmatpush1.bf16.msra.mxu0 %v5689_v1  ;;  %v2063_v0 = vor.u32 %v2062_v43, %v2059_v25  ;;  %v4478_v1 = vld [vmem:[%s6024_s29 + $0xb4] sm:$0x1]  ;;  %v2105_v43 = vor.u32 %v2104_v13, %v2101_v34  ;;  %v2345_v34 = vrot.slane %v2343_v3, 4 }
  0xf8   : > { %2247 = vmatprep.subr.bf16.mxu1 %v5695_v40  ;;  %3972 = vmatprep.subr.bf16.mxu0 %v5699_v54  ;;  %v2088_v40 = vshll.u32 %v6837_v9, 16  ;;  %v2077_v54 = vor.u32 %v2076_v46, %v2073_v2  ;;  %v5717_v9 = vld [vmem:[%s7327_s1 + $0x770] ss:$8 sps:$4 sm:$0xff]   ;;  %v2080_v10 = vshll.u32 %v4478_v1, 16  ;;  %v2094_v46 = vshll.u32 %v4480_v20, 16 }
  0xfa   : > { %1978 = vmatmul.mubr.bf16.gmra.mrb[8].mxu1 %v4687_v21  ;;  %3808 = vmatmul.mubr.bf16.gmra.mrb[8].mxu0 %v4975_v12  ;;  %v5722_v21 = vld [vmem:[%s7327_s1 + $0x384] ss:$8 sps:$4 sm:$0xff]   ;;  %v2064_v12 = vrot.slane %v2063_v0, 4  ;;  %v2090_v8 = vrot.slane %v2088_v40, 5  ;;  %v2082_v30 = vrot.slane %v2080_v10, 5  ;;  %v2106_v40 = vrot.slane %v2105_v43, 4 }
  0xfb   : > { %2248 = vmatpush1.bf16.msra.mxu1 %v5693_v11  ;;  %3973 = vmatpush1.bf16.msra.mxu0 %v5697_v14  ;;  %v5725_v11 = vld [vmem:[%s7327_s1 + $0x784] ss:$8 sps:$4 sm:$0xff]   ;;  %v2087_v14 = vrot.slane %v2085_v39, 4  ;;  %v2108_v39 = vshll.u32 %v4482_v28, 16 }
  0xfc   : > { %2249 = vmatprep.subr.bf16.mxu1 %v5702_v45  ;;  %3974 = vmatprep.subr.bf16.mxu0 %v5705_v58  ;;  %v3845_v45 = vshrl.u32 %v6876_v41, 16  ;;  %v2078_v58 = vrot.slane %v2077_v54, 4  ;;  %v5723_v41 = vld [vmem:[%s7327_s1 + $0x780] ss:$8 sps:$4 sm:$0xff]   ;;  %v2096_v54 = vrot.slane %v2094_v46, 5  ;;  %v2374_v46 = vshll.u32 %v6949_v19, 16 }
  0xfd   : > { %1987 = vmatprep.mubr.bf16.mxu1 %v5792_v38  ;;  %3817 = vmatprep.mubr.bf16.mxu0 %v5792_v38  ;;  %v2091_v25 = vor.u32 %v2090_v8, %v2087_v14  ;;  %v2110_v32 = vrot.slane %v2108_v39, 5  ;;  %v5741_v14 = vld [vmem:[%s7327_s1 + $0x7b0] ss:$8 sps:$4 sm:$0xff]  }
  0xff   : > { %2250 = vmatpush1.bf16.msra.mxu1 %v5700_v56  ;;  %3975 = vmatpush1.bf16.msra.mxu0 %v5703_v18  ;;  %v5728_v56 = vld [vmem:[%s7327_s1 + $0x394] ss:$8 sps:$4 sm:$0xff]   ;;  %v2068_v18 = vrot.slane %v2066_v33, 5  ;;  %v2092_v1 = vrot.slane %v2091_v25, 4  ;;  %v2357_v33 = vshrl.u32 %v6918_v29, 16 }
 0x100   : > { %2251 = vmatprep.subr.bf16.mxu1 %v5709_v23  ;;  %3976 = vmatprep.subr.bf16.mxu0 %v5713_v37  ;;  %v2113_v23 = vshrl.u32 %v6873_v53, 16  ;;  %v2116_v37 = vshll.u32 %v6873_v53, 16  ;;  %v7122_v53 = vsel %vm6376_vm2, %v2078_v58, %v2082_v30 }
 0x101   : > { %v2069_v2 = vsel %vm6376_vm2, %v2064_v12, %v2068_v18  ;;  %v5738_v12 = vld [vmem:[%s7327_s1 + $0x3b0] ss:$8 sps:$4 sm:$0xff]   ;;  %v5744_v18 = vld [vmem:[%s7327_s1 + $0x3c0] ss:$8 sps:$4 sm:$0xff]  }
 0x102   : > { %1988 = vmatmul.mubr.bf16.gmra.mrb[12].mxu1 %v4688_v47  ;;  %3818 = vmatmul.mubr.bf16.gmra.mrb[12].mxu0 %v4976_v35  ;;  %v7124_v47 = vrot.slane %v3845_v45, 4  ;;  %v5734_v35 = vld [vmem:[%s7327_s1 + $0x3a4] ss:$8 sps:$4 sm:$0xff]   ;;  %v2115_v62 = vrot.slane %v2113_v23, 4  ;;  %v2118_v63 = vrot.slane %v2116_v37, 5  ;;  %v5010_v0 = vcombine.low %v2069_v2, %v7122_v53 }
 0x103   : > { %2252 = vmatpush1.bf16.msra.mxu1 %v5707_v48  ;;  %3977 = vmatpush1.bf16.msra.mxu0 %v5711_v59  ;;  %v7126_v48 = vrot.slane %v3848_v49, 5  ;;  %v2329_v59 = vshrl.u32 %v6909_v26, 16  ;;  %v7168_v45 = vsel %vm6376_vm2, %v2106_v40, %v2110_v32  ;;  %v5752_v23 = vld [vmem:[%s7327_s1 + $0x3d4] ss:$8 sps:$4 sm:$0xff]  }
 0x104   : > { %2253 = vmatprep.subr.bf16.mxu1 %v5716_v61  ;;  %3978 = vmatprep.subr.bf16.mxu0 %v5719_v52  ;;  %v2332_v61 = vshll.u32 %v6909_v26, 16  ;;  %v4722_v52 = vcombine.low %v7083_v42, %v2069_v2  ;;  %v5735_v26 = vld [vmem:[%s7327_s1 + $0x7a0] ss:$8 sps:$4 sm:$0xff]   ;;  %v2346_v42 = vshll.u32 %v6912_v36, 16  ;;  %v2119_v10 = vor.u32 %v2118_v63, %v2115_v62  ;;  %v5755_v37 = vld [vmem:[%s7327_s1 + $0x7d4] ss:$8 sps:$4 sm:$0xff]  }
 0x105   : > { %2271 = vmatprep.mubr.bf16.mxu1 %v5792_v38  ;;  %3996 = vmatprep.mubr.bf16.mxu0 %v5792_v38  ;;  %v2097_v36 = vsel %vm6376_vm2, %v2092_v1, %v2096_v54  ;;  %v2331_v58 = vrot.slane %v2329_v59, 4  ;;  %v4492_v2 = vld [vmem:[%s6024_s29 + $0xec] sm:$0x1]  ;;  %v2376_v54 = vrot.slane %v2374_v46, 5  ;;  %v2427_v46 = vshrl.u32 %v7035_v27, 16 }
 0x106   : > { %v2334_v8 = vrot.slane %v2332_v61, 5  ;;  %v2348_v13 = vrot.slane %v2346_v42, 5  ;;  %v5011_v30 = vcombine.low %v2097_v36, %v7168_v45 }
 0x107   : > { %2254 = vmatpush1.bf16.msra.mxu1 %v5714_v22  ;;  %3979 = vmatpush1.bf16.msra.mxu0 %v5717_v9  ;;  %v5743_v22 = vld [vmem:[%s7327_s1 + $0x7b4] ss:$8 sps:$4 sm:$0xff]  }
 0x108   : > { %2553 = vmatprep.subr.bf16.mxu1 %v5722_v21  ;;  %4173 = vmatprep.subr.bf16.mxu0 %v5725_v11  ;;  %v4486_v9 = vld [vmem:[%s6024_s29 + $0xd4] sm:$0x1]  ;;  %v2360_v21 = vshll.u32 %v6918_v29, 16  ;;  %v2122_v11 = vshll.u32 %v4484_v4, 16  ;;  %v3851_v29 = vor.u32 %v7126_v48, %v7124_v47  ;;  %v2335_v39 = vor.u32 %v2334_v8, %v2331_v58  ;;  %v5756_v4 = vld [vmem:[%s7327_s1 + $0x3e0] ss:$8 sps:$4 sm:$0xff]  }
 0x109   : > { %v3854_v49 = vshll.u32 %v4486_v9, 16  ;;  %v2349_v47 = vor.u32 %v2348_v13, %v2345_v34  ;;  %v2385_v48 = vshrl.u32 %v6952_v44, 16  ;;  %v2416_v58 = vshll.u32 %v6993_v51, 16  ;;  %v5765_v34 = vld [vmem:[%s7327_s1 + $0x7f0] ss:$8 sps:$4 sm:$0xff]  }
 0x10a   : > { %2272 = vmatmul.mubr.bf16.vlgmr.msra.gmra.mrb[0].mxu1 %v4721_v15  ;;  %3997 = vmatmul.mubr.bf16.vlgmr.msra.gmra.mrb[0].mxu0 %v5009_v17  ;;  %v5746_v15 = vld [vmem:[%s7327_s1 + $0x3c4] ss:$8 sps:$4 sm:$0xff]   ;;  %v2120_v17 = vrot.slane %v2119_v10, 4  ;;  %v2124_v20 = vrot.slane %v2122_v11, 5  ;;  %v2362_v28 = vrot.slane %v2360_v21, 5  ;;  %v3852_v25 = vrot.slane %v3851_v29, 4 }
 0x10b   : > { %2554 = vmatpush1.bf16.msra.mxu1 %v5720_v16  ;;  %4174 = vmatpush1.bf16.msra.mxu0 %v5723_v41  ;;  %v5749_v16 = vld [vmem:[%s7327_s1 + $0x7c4] ss:$8 sps:$4 sm:$0xff]   ;;  %v2359_v41 = vrot.slane %v2357_v33, 4  ;;  %v3856_v43 = vrot.slane %v3854_v49, 5  ;;  %v2336_v1 = vrot.slane %v2335_v39, 4  ;;  %v2350_v40 = vrot.slane %v2349_v47, 4 }
 0x10c   : > { %2555 = vmatprep.subr.bf16.mxu1 %v5728_v56  ;;  %4175 = vmatprep.subr.bf16.mxu0 %v5731_v24  ;;  %v4723_v56 = vcombine.low %v7122_v53, %v2097_v36  ;;  %v5747_v24 = vld [vmem:[%s7327_s1 + $0x7c0] ss:$8 sps:$4 sm:$0xff]   ;;  %v2371_v53 = vshrl.u32 %v6949_v19, 16  ;;  %v2125_v59 = vsel %vm6376_vm2, %v2120_v17, %v2124_v20  ;;  %v5753_v19 = vld [vmem:[%s7327_s1 + $0x7d0] ss:$8 sps:$4 sm:$0xff]   ;;  %v2387_v9 = vrot.slane %v2385_v48, 4 }
 0x10d   : > { %2281 = vmatprep.mubr.bf16.mxu1 %v5792_v38  ;;  %4006 = vmatprep.mubr.bf16.mxu0 %v5792_v38  ;;  %v2363_v61 = vor.u32 %v2362_v28, %v2359_v41  ;;  %v3857_v62 = vsel %vm6376_vm2, %v3852_v25, %v3856_v43  ;;  %v4724_v32 = vcombine.low %v7168_v45, %v2125_v59  ;;  %v4494_v11 = vld [vmem:[%s6024_s29 + $0xf4] sm:$0x1]  ;;  %v4496_v36 = vld [vmem:[%s6024_s29 + $0xfc] sm:$0x1]  ;;  %v2399_v45 = vshrl.u32 %v6990_v5, 16 }
 0x10e   : > { %v2402_v29 = vshll.u32 %v6990_v5, 16  ;;  %v2413_v49 = vshrl.u32 %v6993_v51, 16  ;;  %v5762_v17 = vld [vmem:[%s7327_s1 + $0x3f0] ss:$8 sps:$4 sm:$0xff]   ;;  %v2394_v41 = vshll.u32 %v4496_v36, 16  ;;  %v2418_v28 = vrot.slane %v2416_v58, 5 }
 0x10f   : > { %2556 = vmatpush1.bf16.msra.mxu1 %v5726_v57  ;;  %4176 = vmatpush1.bf16.msra.mxu0 %v5729_v7  ;;  %v4488_v57 = vld [vmem:[%s6024_s29 + $0xdc] sm:$0x1]  ;;  %v4490_v7 = vld [vmem:[%s6024_s29 + $0xe4] sm:$0x1]  ;;  %v2364_v10 = vrot.slane %v2363_v61, 4  ;;  %v2430_v39 = vshll.u32 %v7035_v27, 16 }
 0x110   : > { %2557 = vmatprep.subr.bf16.mxu1 %v5734_v35  ;;  %4177 = vmatprep.subr.bf16.mxu0 %v5737_v55  ;;  %v2388_v35 = vshll.u32 %v6952_v44, 16  ;;  %v5750_v55 = vld [vmem:[%s7327_s1 + $0x3d0] ss:$8 sps:$4 sm:$0xff]   ;;  %v2338_v44 = vshll.u32 %v4488_v57, 16  ;;  %v2352_v63 = vshll.u32 %v4490_v7, 16  ;;  %v2415_v20 = vrot.slane %v2413_v49, 4 }
 0x111   : > { %v2396_v43 = vrot.slane %v2394_v41, 5  ;;  %v4498_v57 = vld [vmem:[%s6024_s29 + $0x104] sm:$0x1]  ;;  %v4500_v7 = vld [vmem:[%s6024_s29 + $0x10c] sm:$0x1] }
 0x112   : > { %2282 = vmatmul.mubr.bf16.gmra.mrb[4].mxu1 %v4722_v52  ;;  %4007 = vmatmul.mubr.bf16.gmra.mrb[4].mxu0 %v5010_v0  ;;  %v2366_v52 = vshll.u32 %v4492_v2, 16  ;;  %v5761_v0 = vld [vmem:[%s7327_s1 + $0x7e4] ss:$8 sps:$4 sm:$0xff]   ;;  %v2390_v3 = vrot.slane %v2388_v35, 5  ;;  %v2340_v42 = vrot.slane %v2338_v44, 5  ;;  %v2354_v33 = vrot.slane %v2352_v63, 5 }
 0x113   : > { %2558 = vmatpush1.bf16.msra.mxu1 %v5732_v31  ;;  %4178 = vmatpush1.bf16.msra.mxu0 %v5735_v26  ;;  %v5758_v31 = vld [vmem:[%s7327_s1 + $0x3e4] ss:$8 sps:$4 sm:$0xff]   ;;  %v2373_v26 = vrot.slane %v2371_v53, 4  ;;  %v4054_v2 = vshrl.u32 %v7038_v50, 16  ;;  %v4057_v53 = vshll.u32 %v7038_v50, 16  ;;  %v2419_v48 = vor.u32 %v2418_v28, %v2415_v20 }
 0x114   : > { %2559 = vmatprep.subr.bf16.mxu1 %v5740_v6  ;;  %4179 = vmatprep.subr.bf16.mxu0 %v5743_v22  ;;  %v5012_v6 = vcombine.low %v2125_v59, %v3857_v62  ;;  %v5759_v22 = vld [vmem:[%s7327_s1 + $0x7e0] ss:$8 sps:$4 sm:$0xff]   ;;  %v2368_v21 = vrot.slane %v2366_v52, 5  ;;  %v2341_v5 = vsel %vm6376_vm2, %v2336_v1, %v2340_v42  ;;  %v2355_v51 = vsel %vm6376_vm2, %v2350_v40, %v2354_v33  ;;  %v4502_v40 = vld [vmem:[%s6024_s29 + $0x114] sm:$0x1] }
 0x115   : > { %2291 = vmatprep.mubr.bf16.mxu1 %v5792_v38  ;;  %4016 = vmatprep.mubr.bf16.mxu0 %v5792_v38  ;;  %v2377_v8 = vor.u32 %v2376_v54, %v2373_v26  ;;  %v2422_v59 = vshll.u32 %v4500_v7, 16  ;;  %v4056_v61 = vrot.slane %v4054_v2, 4  ;;  %v4059_v27 = vrot.slane %v4057_v53, 5  ;;  %v4504_v26 = vld [vmem:[%s6024_s29 + $0x11c] sm:$0x1]  ;;  %s4448_s29 = sshll.u32 %s4442_s15, 3 }
 0x116   : > { %v2369_v13 = vsel %vm6376_vm2, %v2364_v10, %v2368_v21  ;;  %v2429_v44 = vrot.slane %v2427_v46, 4  ;;  %v2432_v63 = vrot.slane %v2430_v39, 5  ;;  %p494_p8 = scmp.lt.s32.totalorder %s4448_s29, 15 }
 0x117   : > { %2560 = vmatpush1.bf16.msra.mxu1 %v5738_v12  ;;  %4180 = vmatpush1.bf16.msra.mxu0 %v5741_v14  ;;  %v5764_v12 = vld [vmem:[%s7327_s1 + $0x3f4] ss:$8 sps:$4 sm:$0xff]   ;;  %v2424_v1 = vrot.slane %v2422_v59, 5 }
 0x118   : > { %2561 = vmatprep.subr.bf16.mxu1 %v5746_v15  ;;  %4181 = vmatprep.subr.bf16.mxu0 %v5749_v16  ;;  %v5767_v14 = vld [vmem:[%s7327_s1 + $0x7f4] ss:$8 sps:$4 sm:$0xff]   ;;  %v2380_v15 = vshll.u32 %v4494_v11, 16  ;;  %v2391_v16 = vor.u32 %v2390_v3, %v2387_v9  ;;  %v2433_v54 = vor.u32 %v2432_v63, %v2429_v44  ;;  %v4063_v9 = vshll.u32 %v4504_v26, 16  ;;  %s7336_s29 = smov (!%p494_p8, %s4448_s29), 15 }
 0x119   : > { %s5075_s14 = sshll.u32 %s7336_s29, 3 }
 0x11a   : > { %2292 = vmatmul.mubr.bf16.gmra.mrb[8].mxu1 %v4723_v56  ;;  %4017 = vmatmul.mubr.bf16.gmra.mrb[8].mxu0 %v5011_v30  ;;  %v2401_v56 = vrot.slane %v2399_v45, 4  ;;  %v4757_v30 = vcombine.low %v2341_v5, %v2355_v51  ;;  %v2392_v25 = vrot.slane %v2391_v16, 4  ;;  %v2434_v33 = vrot.slane %v2433_v54, 4  ;;  %s7294_s17 = scalar_lea.vmem %s7329_s3, %s5075_s14 }
 0x11b   : > { %2562 = vmatpush1.bf16.msra.mxu1 %v5744_v18  ;;  %4182 = vmatpush1.bf16.msra.mxu0 %v5747_v24  ;;  %v2404_v18 = vrot.slane %v2402_v29, 5  ;;  %v5045_v24 = vcombine.low %v2355_v51, %v2369_v13  ;;  %v4065_v11 = vrot.slane %v4063_v9, 5  ;;  %v4264_v29 = vlaneseq }
 0x11c   : > { %2563 = vmatprep.subr.bf16.mxu1 %v5752_v23  ;;  %4183 = vmatprep.subr.bf16.mxu0 %v5755_v37  ;;  %v2378_v23 = vrot.slane %v2377_v8, 4  ;;  %v2382_v37 = vrot.slane %v2380_v15, 5  ;;  %v2397_v50 = vsel %vm6376_vm2, %v2392_v25, %v2396_v43  ;;  %v4262_v8 = vld [vmem:[%s7328_s2] sm:$0x3] }
 0x11d   : > { %2301 = vmatprep.mubr.bf16.mxu1 %v5792_v38  ;;  %4026 = vmatprep.mubr.bf16.mxu0 %v5792_v38  ;;  %v2405_v47 = vor.u32 %v2404_v18, %v2401_v56  ;;  %v4265_v49 = vshrl.u32 %v4264_v29, 7 }
 0x11e   : > { %v2383_v35 = vsel %vm6376_vm2, %v2378_v23, %v2382_v37 }
 0x11f   : > { %2564 = vmatpush1.bf16.msra.mxu1 %v5750_v55  ;;  %4184 = vmatpush1.bf16.msra.mxu0 %v5753_v19  ;;  %v2408_v55 = vshll.u32 %v4498_v57, 16  ;;  %v4758_v19 = vcombine.low %v2369_v13, %v2383_v35  ;;  %v5046_v62 = vcombine.low %v2383_v35, %v2397_v50  ;;  %v2406_v52 = vrot.slane %v2405_v47, 4 }
 0x120   : > { %2565 = vmatprep.subr.bf16.mxu1 %v5758_v31  ;;  %4185 = vmatprep.subr.bf16.mxu0 %v5761_v0  ;;  %v2420_v0 = vrot.slane %v2419_v48, 4  ;;  %v4266_v58 = vsub.s32 0, %v4265_v49 }
 0x121   : > { %v2410_v31 = vrot.slane %v2408_v55, 5 }
 0x122   : > { %2302 = vmatmul.mubr.bf16.gmra.mrb[12].mxu1 %v4724_v32  ;;  %4027 = vmatmul.mubr.bf16.gmra.mrb[12].mxu0 %v5012_v6  ;;  %v4060_v32 = vor.u32 %v4059_v27, %v4056_v61  ;;  %v2425_v6 = vsel %vm6376_vm2, %v2420_v0, %v2424_v1  ;;  %v7283_v15 = vrot.slane %v4262_v8, %v4266_v58 }
 0x123   : > { %2566 = vmatpush1.bf16.msra.mxu1 %v5756_v4  ;;  %4186 = vmatpush1.bf16.msra.mxu0 %v5759_v22  ;;  %v2411_v4 = vsel %vm6376_vm2, %v2406_v52, %v2410_v31  ;;  %v2436_v22 = vshll.u32 %v4502_v40, 16 }
 0x124   : > { %2567 = vmatprep.subr.bf16.mxu1 %v5764_v12  ;;  %4187 = vmatprep.subr.bf16.mxu0 %v5767_v14  ;;  %v4759_v3 = vcombine.low %v2397_v50, %v2411_v4  ;;  %v5047_v42 = vcombine.low %v2411_v4, %v2425_v6  ;;  %v4061_v21 = vrot.slane %v4060_v32, 4 }
 0x125   : > { %2585 = vmatprep.mubr.bf16.mxu1 %v5792_v38  ;;  %4205 = vmatprep.mubr.bf16.mxu0 %v5792_v38  ;;  %v2438_v10 = vrot.slane %v2436_v22, 5 }
 0x126   : > { %v4066_v14 = vsel %vm6376_vm2, %v4061_v21, %v4065_v11 }
 0x127   : > { %2568 = vmatpush1.bf16.msra.mxu1 %v5762_v17  ;;  %4188 = vmatpush1.bf16.msra.mxu0 %v5765_v34  ;;  %v2439_v12 = vsel %vm6376_vm2, %v2434_v33, %v2438_v10 }
 0x128   : > { %v4760_v36 = vcombine.low %v2425_v6, %v2439_v12  ;;  %v5048_v45 = vcombine.low %v2439_v12, %v4066_v14 }
 0x12a   : > { %2586 = vmatmul.mubr.bf16.vlgmr.msra.gmra.mrb[0].mxu1 %v4757_v30  ;;  %4206 = vmatmul.mubr.bf16.vlgmr.msra.gmra.mrb[0].mxu0 %v5045_v24 }
 0x12b   : > { %2595 = vmatprep.mubr.bf16.mxu1 %v5792_v38  ;;  %4215 = vmatprep.mubr.bf16.mxu0 %v5792_v38 }
 0x132   : > { %2596 = vmatmul.mubr.bf16.gmra.mrb[4].mxu1 %v4758_v19  ;;  %4216 = vmatmul.mubr.bf16.gmra.mrb[4].mxu0 %v5046_v62 }
 0x133   : > { %2605 = vmatprep.mubr.bf16.mxu1 %v5792_v38  ;;  %4225 = vmatprep.mubr.bf16.mxu0 %v5792_v38 }
 0x13a   : > { %2606 = vmatmul.mubr.bf16.gmra.mrb[8].mxu1 %v4759_v3  ;;  %4226 = vmatmul.mubr.bf16.gmra.mrb[8].mxu0 %v5047_v42 }
 0x13b   : > { %2615 = vmatprep.mubr.bf16.mxu1 %v5792_v38  ;;  %4235 = vmatprep.mubr.bf16.mxu0 %v5792_v38  ;;  %v4270_v38 = vsub.s32 1, %v4265_v49 }
 0x13d   : > { %v7285_v17 = vrot.slane %v4262_v8, %v4270_v38 }
 0x142   : > { %2616 = vmatmul.mubr.bf16.gmra.mrb[12].mxu1 %v4760_v36  ;;  %4236 = vmatmul.mubr.bf16.gmra.mrb[12].mxu0 %v5048_v45 }
 0x1fd   : > { %v2587_v16 = vpop.f32.mrb[0].mxu1  ;;  %v4207_v60 = vpop.f32.mrb[0].mxu0 }
 0x1fe   : > { %v5084_v34 = vadd.f32 %v4207_v60, %v2587_v16  ;;  %v2589_v5 = vpop.f32.mrb[1].mxu1  ;;  %v4209_v51 = vpop.f32.mrb[1].mxu0 }
 0x1ff   : > { %v5085_v13 = vadd.f32 %v4209_v51, %v2589_v5  ;;  %v2591_v41 = vpop.f32.mrb[2].mxu1  ;;  %v4211_v56 = vpop.f32.mrb[2].mxu0 }
 0x200   : > { %v4274_v18 = vadd.f32 %v5084_v34, %v7283_v15  ;;  %v5086_v30 = vadd.f32 %v4211_v56, %v2591_v41  ;;  %v2593_v24 = vpop.f32.mrb[3].mxu1  ;;  %v4213_v20 = vpop.f32.mrb[3].mxu0 }
 0x201   : > { %v4275_v28 = vadd.f32 %v5085_v13, %v7285_v17  ;;  %v5087_v23 = vadd.f32 %v4213_v20, %v2593_v24 }
 0x202   : > { %v4290_v37 = vmul.f32 0.2, %v4274_v18  ;;  %v4276_v25 = vadd.f32 %v5086_v30, %v7283_v15 }
 0x203   : > { %v4291_v43 = vmul.f32 0.2, %v4275_v28  ;;  %v4277_v57 = vadd.f32 %v5087_v23, %v7285_v17 }
 0x204   : > { %v4306_v7 = vmax.f32 %v4274_v18, %v4290_v37  ;;  %v4292_v2 = vmul.f32 0.2, %v4276_v25 }
 0x205   : > { %v4307_v53 = vmax.f32 %v4275_v28, %v4291_v43  ;;  %v4293_v46 = vmul.f32 0.2, %v4277_v57  ;;  %v2597_v39 = vpop.f32.mrb[4].mxu1  ;;  %v4217_v47 = vpop.f32.mrb[4].mxu0 }
 0x206   : > { %v4308_v48 = vmax.f32 %v4276_v25, %v4292_v2  ;;  %v5088_v35 = vadd.f32 %v4217_v47, %v2597_v39  ;;  %v2599_v50 = vpop.f32.mrb[5].mxu1  ;;  %v4219_v55 = vpop.f32.mrb[5].mxu0 }
 0x207   : > { %v5076_v59 = vpack.c.bf16 %v4307_v53, %v4306_v7  ;;  %v4309_v61 = vmax.f32 %v4277_v57, %v4293_v46  ;;  %v5089_v27 = vadd.f32 %v4219_v55, %v2599_v50  ;;  %v2601_v19 = vpop.f32.mrb[6].mxu1  ;;  %v4221_v62 = vpop.f32.mrb[6].mxu0 }
 0x208   : > { %v4278_v44 = vadd.f32 %v5088_v35, %v7283_v15  ;;  %v5090_v63 = vadd.f32 %v4221_v62, %v2601_v19  ;;  %v2603_v52 = vpop.f32.mrb[7].mxu1  ;;  %v4223_v31 = vpop.f32.mrb[7].mxu0 }
 0x209   : > { %4370 = vst [vmem:[%s7294_s17] sm:$0xff] %v5076_v59  ;;  %v5077_v0 = vpack.c.bf16 %v4309_v61, %v4308_v48  ;;  %v4279_v1 = vadd.f32 %v5089_v27, %v7285_v17  ;;  %v5091_v40 = vadd.f32 %v4223_v31, %v2603_v52 }
 0x20a   : > { %v4294_v26 = vmul.f32 0.2, %v4278_v44  ;;  %v4280_v54 = vadd.f32 %v5090_v63, %v7283_v15 }
 0x20b   : > { %4371 = vst [vmem:[%s7294_s17 + $0x8] sm:$0xff] %v5077_v0  ;;  %v4295_v32 = vmul.f32 0.2, %v4279_v1  ;;  %v4281_v4 = vadd.f32 %v5091_v40, %v7285_v17 }
 0x20c   : > { %v4310_v6 = vmax.f32 %v4278_v44, %v4294_v26  ;;  %v4296_v22 = vmul.f32 0.2, %v4280_v54 }
 0x20d   : > { %v4311_v9 = vmax.f32 %v4279_v1, %v4295_v32  ;;  %v4297_v3 = vmul.f32 0.2, %v4281_v4  ;;  %v2607_v42 = vpop.f32.mrb[8].mxu1  ;;  %v4227_v33 = vpop.f32.mrb[8].mxu0 }
 0x20e   : > { %v4312_v10 = vmax.f32 %v4280_v54, %v4296_v22  ;;  %v5092_v21 = vadd.f32 %v4227_v33, %v2607_v42  ;;  %v2609_v11 = vpop.f32.mrb[9].mxu1  ;;  %v4229_v12 = vpop.f32.mrb[9].mxu0 }
 0x20f   : > { %v5078_v14 = vpack.c.bf16 %v4311_v9, %v4310_v6  ;;  %v4313_v36 = vmax.f32 %v4281_v4, %v4297_v3  ;;  %v5093_v45 = vadd.f32 %v4229_v12, %v2609_v11  ;;  %v2611_v29 = vpop.f32.mrb[10].mxu1  ;;  %v4231_v49 = vpop.f32.mrb[10].mxu0 }
 0x210   : > { %v4282_v58 = vadd.f32 %v5092_v21, %v7283_v15  ;;  %v5094_v8 = vadd.f32 %v4231_v49, %v2611_v29  ;;  %v2613_v38 = vpop.f32.mrb[11].mxu1  ;;  %v4233_v16 = vpop.f32.mrb[11].mxu0 }
 0x211   : > { %4372 = vst [vmem:[%s7294_s17 + $0x10] sm:$0xff] %v5078_v14  ;;  %v5079_v60 = vpack.c.bf16 %v4313_v36, %v4312_v10  ;;  %v4283_v34 = vadd.f32 %v5093_v45, %v7285_v17  ;;  %v5095_v5 = vadd.f32 %v4233_v16, %v2613_v38 }
 0x212   : > { %v4298_v51 = vmul.f32 0.2, %v4282_v58  ;;  %v4284_v13 = vadd.f32 %v5094_v8, %v7283_v15 }
 0x213   : > { %4373 = vst [vmem:[%s7294_s17 + $0x18] sm:$0xff] %v5079_v60  ;;  %v4299_v41 = vmul.f32 0.2, %v4283_v34  ;;  %v4285_v56 = vadd.f32 %v5095_v5, %v7285_v17 }
 0x214   : > { %v4314_v18 = vmax.f32 %v4282_v58, %v4298_v51  ;;  %v4300_v30 = vmul.f32 0.2, %v4284_v13 }
 0x215   : > { %v4315_v24 = vmax.f32 %v4283_v34, %v4299_v41  ;;  %v4301_v20 = vmul.f32 0.2, %v4285_v56  ;;  %v2617_v28 = vpop.f32.mrb[12].mxu1  ;;  %v4237_v23 = vpop.f32.mrb[12].mxu0 }
 0x216   : > { %v4316_v37 = vmax.f32 %v4284_v13, %v4300_v30  ;;  %v5096_v25 = vadd.f32 %v4237_v23, %v2617_v28  ;;  %v2619_v43 = vpop.f32.mrb[13].mxu1  ;;  %v4239_v57 = vpop.f32.mrb[13].mxu0 }
 0x217   : > { %v5080_v7 = vpack.c.bf16 %v4315_v24, %v4314_v18  ;;  %v4317_v2 = vmax.f32 %v4285_v56, %v4301_v20  ;;  %v5097_v53 = vadd.f32 %v4239_v57, %v2619_v43  ;;  %v2621_v46 = vpop.f32.mrb[14].mxu1  ;;  %v4241_v39 = vpop.f32.mrb[14].mxu0 }
 0x218   : > { %v4286_v47 = vadd.f32 %v5096_v25, %v7283_v15  ;;  %v5098_v48 = vadd.f32 %v4241_v39, %v2621_v46  ;;  %v2623_v35 = vpop.f32.mrb[15].mxu1  ;;  %v4243_v50 = vpop.f32.mrb[15].mxu0 }
 0x219   : > { %4374 = vst [vmem:[%s7294_s17 + $0x20] sm:$0xff] %v5080_v7  ;;  %v5081_v55 = vpack.c.bf16 %v4317_v2, %v4316_v37  ;;  %v4287_v59 = vadd.f32 %v5097_v53, %v7285_v17  ;;  %v5099_v61 = vadd.f32 %v4243_v50, %v2623_v35 }
 0x21a   : > { %v4302_v27 = vmul.f32 0.2, %v4286_v47  ;;  %v4288_v19 = vadd.f32 %v5098_v48, %v7283_v15 }
 0x21b   : > { %4375 = vst [vmem:[%s7294_s17 + $0x28] sm:$0xff] %v5081_v55  ;;  %v4303_v62 = vmul.f32 0.2, %v4287_v59  ;;  %v4289_v44 = vadd.f32 %v5099_v61, %v7285_v17 }
 0x21c   : > { %v4318_v63 = vmax.f32 %v4286_v47, %v4302_v27  ;;  %v4304_v52 = vmul.f32 0.2, %v4288_v19 }
 0x21d   : > { %v4319_v31 = vmax.f32 %v4287_v59, %v4303_v62  ;;  %v4305_v0 = vmul.f32 0.2, %v4289_v44 }
 0x21e   : > { %v4320_v1 = vmax.f32 %v4288_v19, %v4304_v52 }
 0x21f   : > { %v5082_v40 = vpack.c.bf16 %v4319_v31, %v4318_v63  ;;  %v4321_v26 = vmax.f32 %v4289_v44, %v4305_v0 }
 0x221   : > { %4376 = vst [vmem:[%s7294_s17 + $0x30] sm:$0xff] %v5082_v40  ;;  %v5083_v54 = vpack.c.bf16 %v4321_v26, %v4320_v1 }
 0x223   : > { %4377 = vst [vmem:[%s7294_s17 + $0x38] sm:$0xff] %v5083_v54 }
 0x224 PF: > { %p10_p9 = scmp.ge.s32.totalorder %s5830_s16, 4   ;;  %s7332_s12 = smov %s5786_s13 }
 0x225   : > { %s7333_s13 = smov %s5839_s19  ;;  %s7334_s14 = smov %s5830_s16 }
 0x226   :  { %12 = sbr.rel (!%p10_p9) target bundleno = 2 (0x2), region = 126 }

// kernel: _netD_forward_impl.7
= control target key start
LH: loop header
LB: loop body
LE: loop exit
PB: predicated region body
PF: predicated region fallthrough
CT: control target
= control target key end

     0   :  { %s6217_s15 = smov 0   ;;  %s7089_s0 = inlined_call_operand.vmem [shape: bf16[32,4096], index: 0, kind: input, shape index: {}]   ;;  %s7090_s1 = inlined_call_operand.vmem [shape: bf16[2,4096,256], index: 1, kind: input, shape index: {}]   ;;  %s7091_s2 = inlined_call_operand.vmem [shape: f32[2,1,256], index: 2, kind: input, shape index: {}]   ;;  %s7092_s3 = inlined_call_operand.vmem [shape: bf16[2,16,256], index: 3, kind: input, shape index: {}]   ;;  %s7093_s4 = inlined_call_operand.vmem [shape: f32[2,2,1], index: 4, kind: output, shape index: {}]  }
   0x1 LB: > { %s4689_s16 = sadd.s32 4294967295, %s6190_s15   ;;  %p4693_p0 = scmp.ge.s32.totalorder %s6190_s15, 1  ;;  %s6190_s15 = sphi %s6217_s15, %s14_s15  }
   0x2   : > { %p181_p1 = scmp.lt.s32.totalorder %s6190_s15, 3 }
   0x4   : > { %p182_p2 = pnand %p4693_p0, %p181_p1 }
   0x5   : > { %p215_p3 = scmp.lt.s32.totalorder (!%p182_p2), %s4689_s16, 1  ;;  %v6228_v0 = vld [vmem:[%s7089_s0] sm:$0xff] (!%p182_p2)  ;;  %vm4607_vm0 = vcmask (!%p182_p2), 1041409   ;;  %vm4610_vm1 = vcmask (!%p182_p2), 1024  }
   0x6   : > { %185 = sbr.rel (%p182_p2) target bundleno = 924 (0x39c), region = 36  ;;  %v6233_v1 = vld [vmem:[%s7089_s0 + $0x80] sm:$0xff] (!%p182_p2) }
   0x7   : > { %v6238_v2 = vld [vmem:[%s7089_s0 + $0x40] sm:$0xff] (!%p182_p2)  ;;  %v4700_v3 = vcombine.low (!%p182_p2), %v6228_v0, %v6233_v1  ;;  %v4701_v4 = vcombine.high (!%p182_p2), %v6228_v0, %v6233_v1 }
   0x8   : > { %v6247_v5 = vld [vmem:[%s7089_s0 + $0xc0] sm:$0xff] (!%p182_p2) }
   0x9   : > { %v4716_v6 = vcombine.low (!%p182_p2), %v6238_v2, %v6247_v5  ;;  %v4717_v7 = vcombine.high (!%p182_p2), %v6238_v2, %v6247_v5  ;;  %3733 = vmatprep.mubr.bf16.mxu1 (!%p182_p2), %v4701_v4 }
   0xb   : > { %4157 = vmatprep.mubr.bf16.mxu0 (!%p182_p2), %v4717_v7 }
   0xd   : > { %s7095_s16 = smov (!%p215_p3, %s4689_s16), 1 }
   0xe   : > { %s5278_s25 = sshll.u32 %s7095_s16, 12  ;;  %s5279_s11 = sshll.u32 %s7095_s16, 4 }
   0xf   : > { %s6259_s28 = scalar_lea.vmem %s7090_s1, %s5278_s25  ;;  %s228_s14 = scalar_lea.vmem %s7092_s3, %s5279_s11 }
  0x10   : > { %v5416_v8 = vld [vmem:[%s6259_s28 + $0x4] ss:$8 sps:$4 sm:$0xff]   ;;  %v5420_v10 = vld [vmem:[%s6259_s28] ss:$8 sps:$4 sm:$0xff]   ;;  %v5422_v12 = vld [vmem:[%s6259_s28 + $0x14] ss:$8 sps:$4 sm:$0xff]  }
  0x11   : > { %v5418_v9 = vld [vmem:[%s6259_s28 + $0x804] ss:$8 sps:$4 sm:$0xff]   ;;  %3701 = vmatprep.subr.bf16.mxu1 %v5416_v8  ;;  %v5421_v11 = vld [vmem:[%s6259_s28 + $0x800] ss:$8 sps:$4 sm:$0xff]   ;;  %v5424_v13 = vld [vmem:[%s6259_s28 + $0x814] ss:$8 sps:$4 sm:$0xff]  }
  0x12   : > { %4125 = vmatprep.subr.bf16.mxu0 %v5418_v9  ;;  %3702 = vmatpush1.bf16.msra.mxu1 %v5420_v10  ;;  %v5426_v14 = vld [vmem:[%s6259_s28 + $0x10] ss:$8 sps:$4 sm:$0xff]   ;;  %v5428_v16 = vld [vmem:[%s6259_s28 + $0x24] ss:$8 sps:$4 sm:$0xff]   ;;  %v5432_v18 = vld [vmem:[%s6259_s28 + $0x20] ss:$8 sps:$4 sm:$0xff]  }
  0x13   : > { %4126 = vmatpush1.bf16.msra.mxu0 %v5421_v11  ;;  %3703 = vmatprep.subr.bf16.mxu1 %v5422_v12  ;;  %v5427_v15 = vld [vmem:[%s6259_s28 + $0x810] ss:$8 sps:$4 sm:$0xff]   ;;  %v5430_v17 = vld [vmem:[%s6259_s28 + $0x824] ss:$8 sps:$4 sm:$0xff]   ;;  %v5433_v19 = vld [vmem:[%s6259_s28 + $0x820] ss:$8 sps:$4 sm:$0xff]  }
  0x14   : > { %4127 = vmatprep.subr.bf16.mxu0 %v5424_v13  ;;  %v5434_v20 = vld [vmem:[%s6259_s28 + $0x34] ss:$8 sps:$4 sm:$0xff]   ;;  %v5438_v22 = vld [vmem:[%s6259_s28 + $0x30] ss:$8 sps:$4 sm:$0xff]   ;;  %v5440_v24 = vld [vmem:[%s6259_s28 + $0x44] ss:$8 sps:$4 sm:$0xff]  }
  0x15   : > { %v5436_v21 = vld [vmem:[%s6259_s28 + $0x834] ss:$8 sps:$4 sm:$0xff]   ;;  %v5439_v23 = vld [vmem:[%s6259_s28 + $0x830] ss:$8 sps:$4 sm:$0xff]   ;;  %v5442_v25 = vld [vmem:[%s6259_s28 + $0x844] ss:$8 sps:$4 sm:$0xff]  }
  0x16   : > { %3704 = vmatpush1.bf16.msra.mxu1 %v5426_v14  ;;  %v5444_v26 = vld [vmem:[%s6259_s28 + $0x40] ss:$8 sps:$4 sm:$0xff]   ;;  %v5446_v28 = vld [vmem:[%s6259_s28 + $0x54] ss:$8 sps:$4 sm:$0xff]   ;;  %v5450_v30 = vld [vmem:[%s6259_s28 + $0x50] ss:$8 sps:$4 sm:$0xff]  }
  0x17   : > { %4128 = vmatpush1.bf16.msra.mxu0 %v5427_v15  ;;  %3705 = vmatprep.subr.bf16.mxu1 %v5428_v16  ;;  %v5445_v27 = vld [vmem:[%s6259_s28 + $0x840] ss:$8 sps:$4 sm:$0xff]   ;;  %v5448_v29 = vld [vmem:[%s6259_s28 + $0x854] ss:$8 sps:$4 sm:$0xff]   ;;  %v5451_v31 = vld [vmem:[%s6259_s28 + $0x850] ss:$8 sps:$4 sm:$0xff]  }
  0x18   : > { %4129 = vmatprep.subr.bf16.mxu0 %v5430_v17  ;;  %v5452_v32 = vld [vmem:[%s6259_s28 + $0x64] ss:$8 sps:$4 sm:$0xff]   ;;  %v5456_v34 = vld [vmem:[%s6259_s28 + $0x60] ss:$8 sps:$4 sm:$0xff]   ;;  %v5458_v36 = vld [vmem:[%s6259_s28 + $0x74] ss:$8 sps:$4 sm:$0xff]  }
  0x19   : > { %v5454_v33 = vld [vmem:[%s6259_s28 + $0x864] ss:$8 sps:$4 sm:$0xff]   ;;  %v5457_v35 = vld [vmem:[%s6259_s28 + $0x860] ss:$8 sps:$4 sm:$0xff]   ;;  %v5460_v37 = vld [vmem:[%s6259_s28 + $0x874] ss:$8 sps:$4 sm:$0xff]  }
  0x1a   : > { %3706 = vmatpush1.bf16.msra.mxu1 %v5432_v18  ;;  %v5462_v38 = vld [vmem:[%s6259_s28 + $0x70] ss:$8 sps:$4 sm:$0xff]   ;;  %v5464_v40 = vld [vmem:[%s6259_s28 + $0x84] ss:$8 sps:$4 sm:$0xff]   ;;  %v5468_v42 = vld [vmem:[%s6259_s28 + $0x80] ss:$8 sps:$4 sm:$0xff]  }
  0x1b   : > { %4130 = vmatpush1.bf16.msra.mxu0 %v5433_v19  ;;  %3707 = vmatprep.subr.bf16.mxu1 %v5434_v20  ;;  %v5463_v39 = vld [vmem:[%s6259_s28 + $0x870] ss:$8 sps:$4 sm:$0xff]   ;;  %v5466_v41 = vld [vmem:[%s6259_s28 + $0x884] ss:$8 sps:$4 sm:$0xff]   ;;  %v5469_v43 = vld [vmem:[%s6259_s28 + $0x880] ss:$8 sps:$4 sm:$0xff]  }
  0x1c   : > { %4131 = vmatprep.subr.bf16.mxu0 %v5436_v21  ;;  %v5470_v44 = vld [vmem:[%s6259_s28 + $0x94] ss:$8 sps:$4 sm:$0xff]   ;;  %v5474_v46 = vld [vmem:[%s6259_s28 + $0x90] ss:$8 sps:$4 sm:$0xff]   ;;  %v5476_v48 = vld [vmem:[%s6259_s28 + $0xa4] ss:$8 sps:$4 sm:$0xff]  }
  0x1d   : > { %v5472_v45 = vld [vmem:[%s6259_s28 + $0x894] ss:$8 sps:$4 sm:$0xff]   ;;  %v5475_v47 = vld [vmem:[%s6259_s28 + $0x890] ss:$8 sps:$4 sm:$0xff]   ;;  %v5478_v49 = vld [vmem:[%s6259_s28 + $0x8a4] ss:$8 sps:$4 sm:$0xff]  }
  0x1e   : > { %3708 = vmatpush1.bf16.msra.mxu1 %v5438_v22  ;;  %v5480_v50 = vld [vmem:[%s6259_s28 + $0xa0] ss:$8 sps:$4 sm:$0xff]   ;;  %v5482_v52 = vld [vmem:[%s6259_s28 + $0xb4] ss:$8 sps:$4 sm:$0xff]   ;;  %v5486_v54 = vld [vmem:[%s6259_s28 + $0xb0] ss:$8 sps:$4 sm:$0xff]  }
  0x1f   : > { %4132 = vmatpush1.bf16.msra.mxu0 %v5439_v23  ;;  %3709 = vmatprep.subr.bf16.mxu1 %v5440_v24  ;;  %v5481_v51 = vld [vmem:[%s6259_s28 + $0x8a0] ss:$8 sps:$4 sm:$0xff]   ;;  %v5484_v53 = vld [vmem:[%s6259_s28 + $0x8b4] ss:$8 sps:$4 sm:$0xff]   ;;  %v5487_v55 = vld [vmem:[%s6259_s28 + $0x8b0] ss:$8 sps:$4 sm:$0xff]  }
  0x20   : > { %4133 = vmatprep.subr.bf16.mxu0 %v5442_v25  ;;  %v5488_v56 = vld [vmem:[%s6259_s28 + $0xc4] ss:$8 sps:$4 sm:$0xff]   ;;  %v5492_v58 = vld [vmem:[%s6259_s28 + $0xc0] ss:$8 sps:$4 sm:$0xff]   ;;  %v5494_v60 = vld [vmem:[%s6259_s28 + $0xd4] ss:$8 sps:$4 sm:$0xff]  }
  0x21   : > { %v5490_v57 = vld [vmem:[%s6259_s28 + $0x8c4] ss:$8 sps:$4 sm:$0xff]   ;;  %v5493_v59 = vld [vmem:[%s6259_s28 + $0x8c0] ss:$8 sps:$4 sm:$0xff]   ;;  %v5496_v61 = vld [vmem:[%s6259_s28 + $0x8d4] ss:$8 sps:$4 sm:$0xff]  }
  0x22   : > { %3710 = vmatpush1.bf16.msra.mxu1 %v5444_v26  ;;  %v5498_v62 = vld [vmem:[%s6259_s28 + $0xd0] ss:$8 sps:$4 sm:$0xff]   ;;  %v5500_v4 = vld [vmem:[%s6259_s28 + $0xe4] ss:$8 sps:$4 sm:$0xff]   ;;  %v5504_v8 = vld [vmem:[%s6259_s28 + $0xe0] ss:$8 sps:$4 sm:$0xff]  }
  0x23   : > { %4134 = vmatpush1.bf16.msra.mxu0 %v5445_v27  ;;  %3711 = vmatprep.subr.bf16.mxu1 %v5446_v28  ;;  %v5499_v63 = vld [vmem:[%s6259_s28 + $0x8d0] ss:$8 sps:$4 sm:$0xff]   ;;  %v5502_v7 = vld [vmem:[%s6259_s28 + $0x8e4] ss:$8 sps:$4 sm:$0xff]   ;;  %v5505_v9 = vld [vmem:[%s6259_s28 + $0x8e0] ss:$8 sps:$4 sm:$0xff]  }
  0x24   : > { %4135 = vmatprep.subr.bf16.mxu0 %v5448_v29  ;;  %v5506_v10 = vld [vmem:[%s6259_s28 + $0xf4] ss:$8 sps:$4 sm:$0xff]   ;;  %v5510_v12 = vld [vmem:[%s6259_s28 + $0xf0] ss:$8 sps:$4 sm:$0xff]   ;;  %v5514_v14 = vld [vmem:[%s6259_s28 + $0x104] ss:$8 sps:$4 sm:$0xff]  }
  0x25   : > { %v5508_v11 = vld [vmem:[%s6259_s28 + $0x8f4] ss:$8 sps:$4 sm:$0xff]   ;;  %v5511_v13 = vld [vmem:[%s6259_s28 + $0x8f0] ss:$8 sps:$4 sm:$0xff]   ;;  %v5517_v15 = vld [vmem:[%s6259_s28 + $0x904] ss:$8 sps:$4 sm:$0xff]  }
  0x26   : > { %3712 = vmatpush1.bf16.msra.mxu1 %v5450_v30  ;;  %v265_v16 = vld [vmem:[%s7089_s0 + $0x100] sm:$0xff]  ;;  %v5520_v22 = vld [vmem:[%s6259_s28 + $0x114] ss:$8 sps:$4 sm:$0xff]   ;;  %v5518_v26 = vld [vmem:[%s6259_s28 + $0x110] ss:$8 sps:$4 sm:$0xff]  }
  0x27   : > { %4136 = vmatpush1.bf16.msra.mxu0 %v5451_v31  ;;  %3713 = vmatprep.subr.bf16.mxu1 %v5452_v32  ;;  %v281_v17 = vld [vmem:[%s7089_s0 + $0x180] sm:$0xff]  ;;  %v5523_v23 = vld [vmem:[%s6259_s28 + $0x914] ss:$8 sps:$4 sm:$0xff]   ;;  %v5521_v27 = vld [vmem:[%s6259_s28 + $0x910] ss:$8 sps:$4 sm:$0xff]  }
  0x28   : > { %4137 = vmatprep.subr.bf16.mxu0 %v5454_v33  ;;  %v273_v18 = vld [vmem:[%s7089_s0 + $0x140] sm:$0xff]  ;;  %v4733_v24 = vcombine.high %v265_v16, %v281_v17  ;;  %v5532_v5 = vld [vmem:[%s6259_s28 + $0x134] ss:$8 sps:$4 sm:$0xff]   ;;  %v5530_v30 = vld [vmem:[%s6259_s28 + $0x130] ss:$8 sps:$4 sm:$0xff]  }
  0x29   : > { %v289_v19 = vld [vmem:[%s7089_s0 + $0x1c0] sm:$0xff]  ;;  %v5533_v31 = vld [vmem:[%s6259_s28 + $0x930] ss:$8 sps:$4 sm:$0xff]  }
  0x2a   : > { %3714 = vmatpush1.bf16.msra.mxu1 %v5456_v34  ;;  %v5512_v20 = vld [vmem:[%s6259_s28 + $0x100] ss:$8 sps:$4 sm:$0xff]   ;;  %v4749_v25 = vcombine.high %v273_v18, %v289_v19  ;;  %v5526_v28 = vld [vmem:[%s6259_s28 + $0x124] ss:$8 sps:$4 sm:$0xff]   ;;  %v4748_v2 = vcombine.low %v273_v18, %v289_v19  ;;  %v5590_v18 = vld [vmem:[%s6259_s28 + $0x1d0] ss:$8 sps:$4 sm:$0xff]  }
  0x2b   : > { %4138 = vmatpush1.bf16.msra.mxu0 %v5457_v35  ;;  %3715 = vmatprep.subr.bf16.mxu1 %v5458_v36  ;;  %v5515_v21 = vld [vmem:[%s6259_s28 + $0x900] ss:$8 sps:$4 sm:$0xff]   ;;  %v5529_v29 = vld [vmem:[%s6259_s28 + $0x924] ss:$8 sps:$4 sm:$0xff]   ;;  %v5544_v36 = vld [vmem:[%s6259_s28 + $0x154] ss:$8 sps:$4 sm:$0xff]  }
  0x2c   : > { %4139 = vmatprep.subr.bf16.mxu0 %v5460_v37  ;;  %v5524_v0 = vld [vmem:[%s6259_s28 + $0x120] ss:$8 sps:$4 sm:$0xff]   ;;  %v5538_v32 = vld [vmem:[%s6259_s28 + $0x144] ss:$8 sps:$4 sm:$0xff]   ;;  %v5547_v37 = vld [vmem:[%s6259_s28 + $0x954] ss:$8 sps:$4 sm:$0xff]  }
  0x2d   : > { %v5527_v1 = vld [vmem:[%s6259_s28 + $0x920] ss:$8 sps:$4 sm:$0xff]   ;;  %v5541_v33 = vld [vmem:[%s6259_s28 + $0x944] ss:$8 sps:$4 sm:$0xff]   ;;  %v5593_v19 = vld [vmem:[%s6259_s28 + $0x9d0] ss:$8 sps:$4 sm:$0xff]  }
  0x2e   : > { %3716 = vmatpush1.bf16.msra.mxu1 %v5462_v38  ;;  %v5536_v34 = vld [vmem:[%s6259_s28 + $0x140] ss:$8 sps:$4 sm:$0xff]   ;;  %v5542_v38 = vld [vmem:[%s6259_s28 + $0x150] ss:$8 sps:$4 sm:$0xff]  }
  0x2f   : > { %4140 = vmatpush1.bf16.msra.mxu0 %v5463_v39  ;;  %3717 = vmatprep.subr.bf16.mxu1 %v5464_v40  ;;  %v5539_v35 = vld [vmem:[%s6259_s28 + $0x940] ss:$8 sps:$4 sm:$0xff]   ;;  %v5545_v39 = vld [vmem:[%s6259_s28 + $0x950] ss:$8 sps:$4 sm:$0xff]   ;;  %v5550_v40 = vld [vmem:[%s6259_s28 + $0x164] ss:$8 sps:$4 sm:$0xff]  }
  0x30   : > { %4141 = vmatprep.subr.bf16.mxu0 %v5466_v41  ;;  %v5553_v41 = vld [vmem:[%s6259_s28 + $0x964] ss:$8 sps:$4 sm:$0xff]  }
  0x32   : > { %3718 = vmatpush1.bf16.msra.mxu1 %v5468_v42  ;;  %v6372_v42 = vld [vmem:[%s7089_s0 + $0x8] sm:$0xff] }
  0x33   : > { %4142 = vmatpush1.bf16.msra.mxu0 %v5469_v43  ;;  %3719 = vmatprep.subr.bf16.mxu1 %v5470_v44  ;;  %v6377_v43 = vld [vmem:[%s7089_s0 + $0x88] sm:$0xff] }
  0x34   : > { %4143 = vmatprep.subr.bf16.mxu0 %v5472_v45  ;;  %v5548_v44 = vld [vmem:[%s6259_s28 + $0x160] ss:$8 sps:$4 sm:$0xff]   ;;  %v4703_v45 = vcombine.high %v6372_v42, %v6377_v43 }
  0x36   : > { %3720 = vmatpush1.bf16.msra.mxu1 %v5474_v46  ;;  %v5551_v46 = vld [vmem:[%s6259_s28 + $0x960] ss:$8 sps:$4 sm:$0xff]  }
  0x37   : > { %4144 = vmatpush1.bf16.msra.mxu0 %v5475_v47  ;;  %3721 = vmatprep.subr.bf16.mxu1 %v5476_v48  ;;  %v6386_v47 = vld [vmem:[%s7089_s0 + $0x48] sm:$0xff] }
  0x38   : > { %4145 = vmatprep.subr.bf16.mxu0 %v5478_v49  ;;  %v6391_v48 = vld [vmem:[%s7089_s0 + $0xc8] sm:$0xff]  ;;  %v5556_v49 = vld [vmem:[%s6259_s28 + $0x174] ss:$8 sps:$4 sm:$0xff]  }
  0x3a   : > { %3722 = vmatpush1.bf16.msra.mxu1 %v5480_v50  ;;  %v4719_v50 = vcombine.high %v6386_v47, %v6391_v48 }
  0x3b   : > { %4146 = vmatpush1.bf16.msra.mxu0 %v5481_v51  ;;  %3723 = vmatprep.subr.bf16.mxu1 %v5482_v52  ;;  %v5559_v51 = vld [vmem:[%s6259_s28 + $0x974] ss:$8 sps:$4 sm:$0xff]   ;;  %v5554_v52 = vld [vmem:[%s6259_s28 + $0x170] ss:$8 sps:$4 sm:$0xff]  }
  0x3c   : > { %4147 = vmatprep.subr.bf16.mxu0 %v5484_v53  ;;  %v5557_v53 = vld [vmem:[%s6259_s28 + $0x970] ss:$8 sps:$4 sm:$0xff]  }
  0x3e   : > { %3724 = vmatpush1.bf16.msra.mxu1 %v5486_v54  ;;  %v5562_v54 = vld [vmem:[%s6259_s28 + $0x184] ss:$8 sps:$4 sm:$0xff]  }
  0x3f   : > { %4148 = vmatpush1.bf16.msra.mxu0 %v5487_v55  ;;  %3725 = vmatprep.subr.bf16.mxu1 %v5488_v56  ;;  %v5565_v55 = vld [vmem:[%s6259_s28 + $0x984] ss:$8 sps:$4 sm:$0xff]   ;;  %v5560_v56 = vld [vmem:[%s6259_s28 + $0x180] ss:$8 sps:$4 sm:$0xff]  }
  0x40   : > { %4149 = vmatprep.subr.bf16.mxu0 %v5490_v57  ;;  %v5563_v57 = vld [vmem:[%s6259_s28 + $0x980] ss:$8 sps:$4 sm:$0xff]  }
  0x42   : > { %3726 = vmatpush1.bf16.msra.mxu1 %v5492_v58  ;;  %v5568_v58 = vld [vmem:[%s6259_s28 + $0x194] ss:$8 sps:$4 sm:$0xff]  }
  0x43   : > { %4150 = vmatpush1.bf16.msra.mxu0 %v5493_v59  ;;  %3727 = vmatprep.subr.bf16.mxu1 %v5494_v60  ;;  %v5571_v59 = vld [vmem:[%s6259_s28 + $0x994] ss:$8 sps:$4 sm:$0xff]   ;;  %v5566_v60 = vld [vmem:[%s6259_s28 + $0x190] ss:$8 sps:$4 sm:$0xff]  }
  0x44   : > { %4151 = vmatprep.subr.bf16.mxu0 %v5496_v61  ;;  %v5569_v61 = vld [vmem:[%s6259_s28 + $0x990] ss:$8 sps:$4 sm:$0xff]  }
  0x46   : > { %3728 = vmatpush1.bf16.msra.mxu1 %v5498_v62  ;;  %v5574_v62 = vld [vmem:[%s6259_s28 + $0x1a4] ss:$8 sps:$4 sm:$0xff]  }
  0x47   : > { %4152 = vmatpush1.bf16.msra.mxu0 %v5499_v63  ;;  %3729 = vmatprep.subr.bf16.mxu1 %v5500_v4  ;;  %v5577_v63 = vld [vmem:[%s6259_s28 + $0x9a4] ss:$8 sps:$4 sm:$0xff]   ;;  %v5572_v4 = vld [vmem:[%s6259_s28 + $0x1a0] ss:$8 sps:$4 sm:$0xff]  }
  0x48   : > { %4153 = vmatprep.subr.bf16.mxu0 %v5502_v7  ;;  %v5575_v7 = vld [vmem:[%s6259_s28 + $0x9a0] ss:$8 sps:$4 sm:$0xff]  }
  0x4a   : > { %3730 = vmatpush1.bf16.msra.mxu1 %v5504_v8  ;;  %v5580_v8 = vld [vmem:[%s6259_s28 + $0x1b4] ss:$8 sps:$4 sm:$0xff]  }
  0x4b   : > { %4154 = vmatpush1.bf16.msra.mxu0 %v5505_v9  ;;  %3731 = vmatprep.subr.bf16.mxu1 %v5506_v10  ;;  %v5583_v9 = vld [vmem:[%s6259_s28 + $0x9b4] ss:$8 sps:$4 sm:$0xff]   ;;  %v5578_v10 = vld [vmem:[%s6259_s28 + $0x1b0] ss:$8 sps:$4 sm:$0xff]  }
  0x4c   : > { %4155 = vmatprep.subr.bf16.mxu0 %v5508_v11  ;;  %v5581_v11 = vld [vmem:[%s6259_s28 + $0x9b0] ss:$8 sps:$4 sm:$0xff]  }
  0x4e   : > { %3732 = vmatpush1.bf16.msra.mxu1 %v5510_v12  ;;  %v5586_v12 = vld [vmem:[%s6259_s28 + $0x1c4] ss:$8 sps:$4 sm:$0xff]  }
  0x4f   : > { %4156 = vmatpush1.bf16.msra.mxu0 %v5511_v13  ;;  %3754 = vmatprep.subr.bf16.mxu1 %v5514_v14  ;;  %v5589_v13 = vld [vmem:[%s6259_s28 + $0x9c4] ss:$8 sps:$4 sm:$0xff]   ;;  %v5584_v14 = vld [vmem:[%s6259_s28 + $0x1c0] ss:$8 sps:$4 sm:$0xff]  }
  0x50   : > { %4178 = vmatprep.subr.bf16.mxu0 %v5517_v15  ;;  %v5587_v15 = vld [vmem:[%s6259_s28 + $0x9c0] ss:$8 sps:$4 sm:$0xff]  }
  0x51   : > { %3734 = vmatmul.mubr.bf16.vlgmr.msra.gmra.mrb[0].mxu1 %v4700_v3  ;;  %v4732_v3 = vcombine.low %v265_v16, %v281_v17  ;;  %v5592_v16 = vld [vmem:[%s6259_s28 + $0x1d4] ss:$8 sps:$4 sm:$0xff]  }
  0x52   : > { %4158 = vmatmul.mubr.bf16.vlgmr.msra.gmra.mrb[0].mxu0 %v4716_v6  ;;  %3755 = vmatpush1.bf16.msra.mxu1 %v5512_v20  ;;  %v5535_v6 = vld [vmem:[%s6259_s28 + $0x934] ss:$8 sps:$4 sm:$0xff]   ;;  %v5598_v20 = vld [vmem:[%s6259_s28 + $0x1e4] ss:$8 sps:$4 sm:$0xff]  }
  0x53   : > { %4179 = vmatpush1.bf16.msra.mxu0 %v5515_v21  ;;  %3756 = vmatprep.subr.bf16.mxu1 %v5520_v22  ;;  %v5595_v17 = vld [vmem:[%s6259_s28 + $0x9d4] ss:$8 sps:$4 sm:$0xff]   ;;  %v5601_v21 = vld [vmem:[%s6259_s28 + $0x9e4] ss:$8 sps:$4 sm:$0xff]   ;;  %v5596_v22 = vld [vmem:[%s6259_s28 + $0x1e0] ss:$8 sps:$4 sm:$0xff]  }
  0x54   : > { %4180 = vmatprep.subr.bf16.mxu0 %v5523_v23  ;;  %3743 = vmatprep.mubr.bf16.mxu1 %v4733_v24  ;;  %v5599_v23 = vld [vmem:[%s6259_s28 + $0x9e0] ss:$8 sps:$4 sm:$0xff]   ;;  %v5604_v24 = vld [vmem:[%s6259_s28 + $0x1f4] ss:$8 sps:$4 sm:$0xff]  }
  0x55   : > { %4167 = vmatprep.mubr.bf16.mxu0 %v4749_v25  ;;  %v5607_v25 = vld [vmem:[%s6259_s28 + $0x9f4] ss:$8 sps:$4 sm:$0xff]  }
  0x56   : > { %3757 = vmatpush1.bf16.msra.mxu1 %v5518_v26  ;;  %v5602_v26 = vld [vmem:[%s6259_s28 + $0x1f0] ss:$8 sps:$4 sm:$0xff]  }
  0x57   : > { %4181 = vmatpush1.bf16.msra.mxu0 %v5521_v27  ;;  %3758 = vmatprep.subr.bf16.mxu1 %v5526_v28  ;;  %v5605_v27 = vld [vmem:[%s6259_s28 + $0x9f0] ss:$8 sps:$4 sm:$0xff]   ;;  %v5610_v28 = vld [vmem:[%s6259_s28 + $0x204] ss:$8 sps:$4 sm:$0xff]  }
  0x58   : > { %4182 = vmatprep.subr.bf16.mxu0 %v5529_v29  ;;  %v5613_v29 = vld [vmem:[%s6259_s28 + $0xa04] ss:$8 sps:$4 sm:$0xff]  }
  0x59   : > { %3744 = vmatmul.mubr.bf16.gmra.mrb[4].mxu1 %v4732_v3  ;;  %v266_v3 = vld [vmem:[%s7089_s0 + $0x108] sm:$0xff] }
  0x5a   : > { %4168 = vmatmul.mubr.bf16.gmra.mrb[4].mxu0 %v4748_v2  ;;  %3759 = vmatpush1.bf16.msra.mxu1 %v5524_v0  ;;  %v5608_v0 = vld [vmem:[%s6259_s28 + $0x200] ss:$8 sps:$4 sm:$0xff]  }
  0x5b   : > { %4183 = vmatpush1.bf16.msra.mxu0 %v5527_v1  ;;  %3760 = vmatprep.subr.bf16.mxu1 %v5532_v5  ;;  %v5611_v1 = vld [vmem:[%s6259_s28 + $0xa00] ss:$8 sps:$4 sm:$0xff]   ;;  %v4702_v5 = vcombine.low %v6372_v42, %v6377_v43  ;;  %v6462_v42 = vld [vmem:[%s7089_s0 + $0x10] sm:$0xff] }
  0x5c   : > { %4184 = vmatprep.subr.bf16.mxu0 %v5535_v6  ;;  %3786 = vmatprep.mubr.bf16.mxu1 %v4703_v45  ;;  %v282_v2 = vld [vmem:[%s7089_s0 + $0x188] sm:$0xff]  ;;  %v4718_v6 = vcombine.low %v6386_v47, %v6391_v48  ;;  %v6467_v43 = vld [vmem:[%s7089_s0 + $0x90] sm:$0xff] }
  0x5d   : > { %4210 = vmatprep.mubr.bf16.mxu0 %v4719_v50  ;;  %v6477_v47 = vld [vmem:[%s7089_s0 + $0xd0] sm:$0xff]  ;;  %v4705_v50 = vcombine.high %v6462_v42, %v6467_v43 }
  0x5e   : > { %3761 = vmatpush1.bf16.msra.mxu1 %v5530_v30  ;;  %v274_v30 = vld [vmem:[%s7089_s0 + $0x148] sm:$0xff]  ;;  %v5628_v48 = vld [vmem:[%s6259_s28 + $0x234] ss:$8 sps:$4 sm:$0xff]  }
  0x5f   : > { %4185 = vmatpush1.bf16.msra.mxu0 %v5533_v31  ;;  %3762 = vmatprep.subr.bf16.mxu1 %v5538_v32  ;;  %v290_v31 = vld [vmem:[%s7089_s0 + $0x1c8] sm:$0xff]  ;;  %v5616_v32 = vld [vmem:[%s6259_s28 + $0x214] ss:$8 sps:$4 sm:$0xff]  }
  0x60   : > { %4186 = vmatprep.subr.bf16.mxu0 %v5541_v33  ;;  %v5619_v33 = vld [vmem:[%s6259_s28 + $0xa14] ss:$8 sps:$4 sm:$0xff]   ;;  %v4750_v45 = vcombine.low %v274_v30, %v290_v31 }
  0x62   : > { %3763 = vmatpush1.bf16.msra.mxu1 %v5536_v34  ;;  %v4735_v34 = vcombine.high %v266_v3, %v282_v2 }
  0x63   : > { %4187 = vmatpush1.bf16.msra.mxu0 %v5539_v35  ;;  %3764 = vmatprep.subr.bf16.mxu1 %v5544_v36  ;;  %v4751_v35 = vcombine.high %v274_v30, %v290_v31  ;;  %v5614_v36 = vld [vmem:[%s6259_s28 + $0x210] ss:$8 sps:$4 sm:$0xff]   ;;  %v5694_v30 = vld [vmem:[%s6259_s28 + $0x2e4] ss:$8 sps:$4 sm:$0xff]  }
  0x64   : > { %4188 = vmatprep.subr.bf16.mxu0 %v5547_v37  ;;  %v5617_v37 = vld [vmem:[%s6259_s28 + $0xa10] ss:$8 sps:$4 sm:$0xff]   ;;  %v5697_v31 = vld [vmem:[%s6259_s28 + $0xae4] ss:$8 sps:$4 sm:$0xff]  }
  0x66   : > { %3765 = vmatpush1.bf16.msra.mxu1 %v5542_v38  ;;  %v5622_v38 = vld [vmem:[%s6259_s28 + $0x224] ss:$8 sps:$4 sm:$0xff]  }
  0x67   : > { %4189 = vmatpush1.bf16.msra.mxu0 %v5545_v39  ;;  %3766 = vmatprep.subr.bf16.mxu1 %v5550_v40  ;;  %v5625_v39 = vld [vmem:[%s6259_s28 + $0xa24] ss:$8 sps:$4 sm:$0xff]   ;;  %v5620_v40 = vld [vmem:[%s6259_s28 + $0x220] ss:$8 sps:$4 sm:$0xff]  }
  0x68   : > { %4190 = vmatprep.subr.bf16.mxu0 %v5553_v41  ;;  %v5623_v41 = vld [vmem:[%s6259_s28 + $0xa20] ss:$8 sps:$4 sm:$0xff]  }
  0x6a   : > { %3767 = vmatpush1.bf16.msra.mxu1 %v5548_v44  ;;  %v4734_v44 = vcombine.low %v266_v3, %v282_v2  ;;  %v5688_v3 = vld [vmem:[%s6259_s28 + $0x2d4] ss:$8 sps:$4 sm:$0xff]  }
  0x6b   : > { %4191 = vmatpush1.bf16.msra.mxu0 %v5551_v46  ;;  %3768 = vmatprep.subr.bf16.mxu1 %v5556_v49  ;;  %v6472_v46 = vld [vmem:[%s7089_s0 + $0x50] sm:$0xff] }
  0x6c   : > { %4192 = vmatprep.subr.bf16.mxu0 %v5559_v51  ;;  %v5631_v49 = vld [vmem:[%s6259_s28 + $0xa34] ss:$8 sps:$4 sm:$0xff]   ;;  %v4721_v51 = vcombine.high %v6472_v46, %v6477_v47 }
  0x6d   : > { %v5691_v2 = vld [vmem:[%s6259_s28 + $0xad4] ss:$8 sps:$4 sm:$0xff]  }
  0x6e   : > { %3769 = vmatpush1.bf16.msra.mxu1 %v5554_v52  ;;  %v5626_v52 = vld [vmem:[%s6259_s28 + $0x230] ss:$8 sps:$4 sm:$0xff]  }
  0x6f   : > { %4193 = vmatpush1.bf16.msra.mxu0 %v5557_v53  ;;  %3770 = vmatprep.subr.bf16.mxu1 %v5562_v54  ;;  %v5629_v53 = vld [vmem:[%s6259_s28 + $0xa30] ss:$8 sps:$4 sm:$0xff]   ;;  %v5634_v54 = vld [vmem:[%s6259_s28 + $0x244] ss:$8 sps:$4 sm:$0xff]  }
  0x70   : > { %4194 = vmatprep.subr.bf16.mxu0 %v5565_v55  ;;  %v5637_v55 = vld [vmem:[%s6259_s28 + $0xa44] ss:$8 sps:$4 sm:$0xff]  }
  0x72   : > { %3771 = vmatpush1.bf16.msra.mxu1 %v5560_v56  ;;  %v5632_v56 = vld [vmem:[%s6259_s28 + $0x240] ss:$8 sps:$4 sm:$0xff]  }
  0x73   : > { %4195 = vmatpush1.bf16.msra.mxu0 %v5563_v57  ;;  %3772 = vmatprep.subr.bf16.mxu1 %v5568_v58  ;;  %v5635_v57 = vld [vmem:[%s6259_s28 + $0xa40] ss:$8 sps:$4 sm:$0xff]   ;;  %v5640_v58 = vld [vmem:[%s6259_s28 + $0x254] ss:$8 sps:$4 sm:$0xff]  }
  0x74   : > { %4196 = vmatprep.subr.bf16.mxu0 %v5571_v59  ;;  %v5643_v59 = vld [vmem:[%s6259_s28 + $0xa54] ss:$8 sps:$4 sm:$0xff]  }
  0x76   : > { %3773 = vmatpush1.bf16.msra.mxu1 %v5566_v60  ;;  %v5638_v60 = vld [vmem:[%s6259_s28 + $0x250] ss:$8 sps:$4 sm:$0xff]  }
  0x77   : > { %4197 = vmatpush1.bf16.msra.mxu0 %v5569_v61  ;;  %3774 = vmatprep.subr.bf16.mxu1 %v5574_v62  ;;  %v5641_v61 = vld [vmem:[%s6259_s28 + $0xa50] ss:$8 sps:$4 sm:$0xff]   ;;  %v5646_v62 = vld [vmem:[%s6259_s28 + $0x264] ss:$8 sps:$4 sm:$0xff]  }
  0x78   : > { %4198 = vmatprep.subr.bf16.mxu0 %v5577_v63  ;;  %v5649_v63 = vld [vmem:[%s6259_s28 + $0xa64] ss:$8 sps:$4 sm:$0xff]  }
  0x7a   : > { %3775 = vmatpush1.bf16.msra.mxu1 %v5572_v4  ;;  %v5644_v4 = vld [vmem:[%s6259_s28 + $0x260] ss:$8 sps:$4 sm:$0xff]  }
  0x7b   : > { %4199 = vmatpush1.bf16.msra.mxu0 %v5575_v7  ;;  %3776 = vmatprep.subr.bf16.mxu1 %v5580_v8  ;;  %v5647_v7 = vld [vmem:[%s6259_s28 + $0xa60] ss:$8 sps:$4 sm:$0xff]   ;;  %v5652_v8 = vld [vmem:[%s6259_s28 + $0x274] ss:$8 sps:$4 sm:$0xff]  }
  0x7c   : > { %4200 = vmatprep.subr.bf16.mxu0 %v5583_v9  ;;  %v5655_v9 = vld [vmem:[%s6259_s28 + $0xa74] ss:$8 sps:$4 sm:$0xff]  }
  0x7e   : > { %3777 = vmatpush1.bf16.msra.mxu1 %v5578_v10  ;;  %v5650_v10 = vld [vmem:[%s6259_s28 + $0x270] ss:$8 sps:$4 sm:$0xff]  }
  0x7f   : > { %4201 = vmatpush1.bf16.msra.mxu0 %v5581_v11  ;;  %3778 = vmatprep.subr.bf16.mxu1 %v5586_v12  ;;  %v5653_v11 = vld [vmem:[%s6259_s28 + $0xa70] ss:$8 sps:$4 sm:$0xff]   ;;  %v5658_v12 = vld [vmem:[%s6259_s28 + $0x284] ss:$8 sps:$4 sm:$0xff]  }
  0x80   : > { %4202 = vmatprep.subr.bf16.mxu0 %v5589_v13  ;;  %v5661_v13 = vld [vmem:[%s6259_s28 + $0xa84] ss:$8 sps:$4 sm:$0xff]  }
  0x82   : > { %3779 = vmatpush1.bf16.msra.mxu1 %v5584_v14  ;;  %v5656_v14 = vld [vmem:[%s6259_s28 + $0x280] ss:$8 sps:$4 sm:$0xff]  }
  0x83   : > { %4203 = vmatpush1.bf16.msra.mxu0 %v5587_v15  ;;  %3780 = vmatprep.subr.bf16.mxu1 %v5592_v16  ;;  %v5659_v15 = vld [vmem:[%s6259_s28 + $0xa80] ss:$8 sps:$4 sm:$0xff]   ;;  %v5664_v16 = vld [vmem:[%s6259_s28 + $0x294] ss:$8 sps:$4 sm:$0xff]  }
  0x84   : > { %4204 = vmatprep.subr.bf16.mxu0 %v5595_v17  ;;  %v5667_v17 = vld [vmem:[%s6259_s28 + $0xa94] ss:$8 sps:$4 sm:$0xff]  }
  0x86   : > { %3781 = vmatpush1.bf16.msra.mxu1 %v5590_v18  ;;  %v5662_v18 = vld [vmem:[%s6259_s28 + $0x290] ss:$8 sps:$4 sm:$0xff]  }
  0x87   : > { %4205 = vmatpush1.bf16.msra.mxu0 %v5593_v19  ;;  %3782 = vmatprep.subr.bf16.mxu1 %v5598_v20  ;;  %v5665_v19 = vld [vmem:[%s6259_s28 + $0xa90] ss:$8 sps:$4 sm:$0xff]   ;;  %v5670_v20 = vld [vmem:[%s6259_s28 + $0x2a4] ss:$8 sps:$4 sm:$0xff]  }
  0x88   : > { %4206 = vmatprep.subr.bf16.mxu0 %v5601_v21  ;;  %v5673_v21 = vld [vmem:[%s6259_s28 + $0xaa4] ss:$8 sps:$4 sm:$0xff]  }
  0x8a   : > { %3783 = vmatpush1.bf16.msra.mxu1 %v5596_v22  ;;  %v5668_v22 = vld [vmem:[%s6259_s28 + $0x2a0] ss:$8 sps:$4 sm:$0xff]  }
  0x8b   : > { %4207 = vmatpush1.bf16.msra.mxu0 %v5599_v23  ;;  %3784 = vmatprep.subr.bf16.mxu1 %v5604_v24  ;;  %v5671_v23 = vld [vmem:[%s6259_s28 + $0xaa0] ss:$8 sps:$4 sm:$0xff]   ;;  %v5676_v24 = vld [vmem:[%s6259_s28 + $0x2b4] ss:$8 sps:$4 sm:$0xff]  }
  0x8c   : > { %4208 = vmatprep.subr.bf16.mxu0 %v5607_v25  ;;  %v5679_v25 = vld [vmem:[%s6259_s28 + $0xab4] ss:$8 sps:$4 sm:$0xff]  }
  0x8e   : > { %3785 = vmatpush1.bf16.msra.mxu1 %v5602_v26  ;;  %v5674_v26 = vld [vmem:[%s6259_s28 + $0x2b0] ss:$8 sps:$4 sm:$0xff]  }
  0x8f   : > { %4209 = vmatpush1.bf16.msra.mxu0 %v5605_v27  ;;  %3807 = vmatprep.subr.bf16.mxu1 %v5610_v28  ;;  %v5677_v27 = vld [vmem:[%s6259_s28 + $0xab0] ss:$8 sps:$4 sm:$0xff]   ;;  %v5682_v28 = vld [vmem:[%s6259_s28 + $0x2c4] ss:$8 sps:$4 sm:$0xff]  }
  0x90   : > { %4231 = vmatprep.subr.bf16.mxu0 %v5613_v29  ;;  %v5685_v29 = vld [vmem:[%s6259_s28 + $0xac4] ss:$8 sps:$4 sm:$0xff]  }
  0x91   : > { %3787 = vmatmul.mubr.bf16.vlgmr.msra.gmra.mrb[0].mxu1 %v4702_v5  ;;  %v5686_v5 = vld [vmem:[%s6259_s28 + $0x2d0] ss:$8 sps:$4 sm:$0xff]  }
  0x92   : > { %4211 = vmatmul.mubr.bf16.vlgmr.msra.gmra.mrb[0].mxu0 %v4718_v6  ;;  %3808 = vmatpush1.bf16.msra.mxu1 %v5608_v0  ;;  %v5680_v0 = vld [vmem:[%s6259_s28 + $0x2c0] ss:$8 sps:$4 sm:$0xff]   ;;  %v5689_v6 = vld [vmem:[%s6259_s28 + $0xad0] ss:$8 sps:$4 sm:$0xff]  }
  0x93   : > { %4232 = vmatpush1.bf16.msra.mxu0 %v5611_v1  ;;  %3809 = vmatprep.subr.bf16.mxu1 %v5616_v32  ;;  %v5683_v1 = vld [vmem:[%s6259_s28 + $0xac0] ss:$8 sps:$4 sm:$0xff]  }
  0x94   : > { %4233 = vmatprep.subr.bf16.mxu0 %v5619_v33  ;;  %3796 = vmatprep.mubr.bf16.mxu1 %v4735_v34  ;;  %v5692_v32 = vld [vmem:[%s6259_s28 + $0x2e0] ss:$8 sps:$4 sm:$0xff]   ;;  %v5700_v34 = vld [vmem:[%s6259_s28 + $0x2f4] ss:$8 sps:$4 sm:$0xff]  }
  0x95   : > { %4220 = vmatprep.mubr.bf16.mxu0 %v4751_v35  ;;  %v5695_v33 = vld [vmem:[%s6259_s28 + $0xae0] ss:$8 sps:$4 sm:$0xff]   ;;  %v5703_v35 = vld [vmem:[%s6259_s28 + $0xaf4] ss:$8 sps:$4 sm:$0xff]  }
  0x96   : > { %3810 = vmatpush1.bf16.msra.mxu1 %v5614_v36  ;;  %v5698_v36 = vld [vmem:[%s6259_s28 + $0x2f0] ss:$8 sps:$4 sm:$0xff]  }
  0x97   : > { %4234 = vmatpush1.bf16.msra.mxu0 %v5617_v37  ;;  %3811 = vmatprep.subr.bf16.mxu1 %v5622_v38  ;;  %v5701_v37 = vld [vmem:[%s6259_s28 + $0xaf0] ss:$8 sps:$4 sm:$0xff]   ;;  %v5706_v38 = vld [vmem:[%s6259_s28 + $0x304] ss:$8 sps:$4 sm:$0xff]  }
  0x98   : > { %4235 = vmatprep.subr.bf16.mxu0 %v5625_v39  ;;  %v5709_v39 = vld [vmem:[%s6259_s28 + $0xb04] ss:$8 sps:$4 sm:$0xff]  }
  0x99   : > { %3797 = vmatmul.mubr.bf16.gmra.mrb[4].mxu1 %v4734_v44  ;;  %v267_v44 = vld [vmem:[%s7089_s0 + $0x110] sm:$0xff] }
  0x9a   : > { %4221 = vmatmul.mubr.bf16.gmra.mrb[4].mxu0 %v4750_v45  ;;  %3812 = vmatpush1.bf16.msra.mxu1 %v5620_v40  ;;  %v5704_v40 = vld [vmem:[%s6259_s28 + $0x300] ss:$8 sps:$4 sm:$0xff]   ;;  %v283_v45 = vld [vmem:[%s7089_s0 + $0x190] sm:$0xff] }
  0x9b   : > { %4236 = vmatpush1.bf16.msra.mxu0 %v5623_v41  ;;  %3813 = vmatprep.subr.bf16.mxu1 %v5628_v48  ;;  %v5707_v41 = vld [vmem:[%s6259_s28 + $0xb00] ss:$8 sps:$4 sm:$0xff]   ;;  %v4704_v48 = vcombine.low %v6462_v42, %v6467_v43  ;;  %v5715_v42 = vld [vmem:[%s6259_s28 + $0xb14] ss:$8 sps:$4 sm:$0xff]   ;;  %v4737_v43 = vcombine.high %v267_v44, %v283_v45 }
  0x9c   : > { %4237 = vmatprep.subr.bf16.mxu0 %v5631_v49  ;;  %3839 = vmatprep.mubr.bf16.mxu1 %v4705_v50  ;;  %v4720_v49 = vcombine.low %v6472_v46, %v6477_v47  ;;  %v275_v50 = vld [vmem:[%s7089_s0 + $0x150] sm:$0xff] }
  0x9d   : > { %4263 = vmatprep.mubr.bf16.mxu0 %v4721_v51  ;;  %v291_v51 = vld [vmem:[%s7089_s0 + $0x1d0] sm:$0xff] }
  0x9e   : > { %3814 = vmatpush1.bf16.msra.mxu1 %v5626_v52  ;;  %v5712_v52 = vld [vmem:[%s6259_s28 + $0x314] ss:$8 sps:$4 sm:$0xff]   ;;  %v4753_v46 = vcombine.high %v275_v50, %v291_v51  ;;  %v5710_v47 = vld [vmem:[%s6259_s28 + $0x310] ss:$8 sps:$4 sm:$0xff]  }
  0x9f   : > { %4238 = vmatpush1.bf16.msra.mxu0 %v5629_v53  ;;  %3815 = vmatprep.subr.bf16.mxu1 %v5634_v54  ;;  %v5713_v53 = vld [vmem:[%s6259_s28 + $0xb10] ss:$8 sps:$4 sm:$0xff]   ;;  %v5718_v54 = vld [vmem:[%s6259_s28 + $0x324] ss:$8 sps:$4 sm:$0xff]  }
  0xa0   : > { %4239 = vmatprep.subr.bf16.mxu0 %v5637_v55  ;;  %v5721_v55 = vld [vmem:[%s6259_s28 + $0xb24] ss:$8 sps:$4 sm:$0xff]  }
  0xa2   : > { %3816 = vmatpush1.bf16.msra.mxu1 %v5632_v56  ;;  %v5716_v56 = vld [vmem:[%s6259_s28 + $0x320] ss:$8 sps:$4 sm:$0xff]  }
  0xa3   : > { %4240 = vmatpush1.bf16.msra.mxu0 %v5635_v57  ;;  %3817 = vmatprep.subr.bf16.mxu1 %v5640_v58  ;;  %v5719_v57 = vld [vmem:[%s6259_s28 + $0xb20] ss:$8 sps:$4 sm:$0xff]   ;;  %v6566_v58 = vld [vmem:[%s7089_s0 + $0x18] sm:$0xff] }
  0xa4   : > { %4241 = vmatprep.subr.bf16.mxu0 %v5643_v59  ;;  %v6571_v59 = vld [vmem:[%s7089_s0 + $0x98] sm:$0xff] }
  0xa6   : > { %3818 = vmatpush1.bf16.msra.mxu1 %v5638_v60  ;;  %v4736_v60 = vcombine.low %v267_v44, %v283_v45  ;;  %v5784_v44 = vld [vmem:[%s6259_s28 + $0x3d4] ss:$8 sps:$4 sm:$0xff]  }
  0xa7   : > { %4242 = vmatpush1.bf16.msra.mxu0 %v5641_v61  ;;  %3819 = vmatprep.subr.bf16.mxu1 %v5646_v62  ;;  %v4752_v61 = vcombine.low %v275_v50, %v291_v51  ;;  %v6576_v62 = vld [vmem:[%s7089_s0 + $0x58] sm:$0xff]  ;;  %v5790_v50 = vld [vmem:[%s6259_s28 + $0x3e4] ss:$8 sps:$4 sm:$0xff]  }
  0xa8   : > { %4243 = vmatprep.subr.bf16.mxu0 %v5649_v63  ;;  %v6581_v63 = vld [vmem:[%s7089_s0 + $0xd8] sm:$0xff]  ;;  %v5793_v51 = vld [vmem:[%s6259_s28 + $0xbe4] ss:$8 sps:$4 sm:$0xff]  }
  0xa9   : > { %v5787_v45 = vld [vmem:[%s6259_s28 + $0xbd4] ss:$8 sps:$4 sm:$0xff]  }
  0xaa   : > { %3820 = vmatpush1.bf16.msra.mxu1 %v5644_v4  ;;  %v5724_v4 = vld [vmem:[%s6259_s28 + $0x334] ss:$8 sps:$4 sm:$0xff]  }
  0xab   : > { %4244 = vmatpush1.bf16.msra.mxu0 %v5647_v7  ;;  %3821 = vmatprep.subr.bf16.mxu1 %v5652_v8  ;;  %v5727_v7 = vld [vmem:[%s6259_s28 + $0xb34] ss:$8 sps:$4 sm:$0xff]   ;;  %v4707_v8 = vcombine.high %v6566_v58, %v6571_v59 }
  0xac   : > { %4245 = vmatprep.subr.bf16.mxu0 %v5655_v9  ;;  %v4723_v9 = vcombine.high %v6576_v62, %v6581_v63 }
  0xae   : > { %3822 = vmatpush1.bf16.msra.mxu1 %v5650_v10  ;;  %v5722_v10 = vld [vmem:[%s6259_s28 + $0x330] ss:$8 sps:$4 sm:$0xff]  }
  0xaf   : > { %4246 = vmatpush1.bf16.msra.mxu0 %v5653_v11  ;;  %3823 = vmatprep.subr.bf16.mxu1 %v5658_v12  ;;  %v5725_v11 = vld [vmem:[%s6259_s28 + $0xb30] ss:$8 sps:$4 sm:$0xff]   ;;  %v5730_v12 = vld [vmem:[%s6259_s28 + $0x344] ss:$8 sps:$4 sm:$0xff]  }
  0xb0   : > { %4247 = vmatprep.subr.bf16.mxu0 %v5661_v13  ;;  %v5733_v13 = vld [vmem:[%s6259_s28 + $0xb44] ss:$8 sps:$4 sm:$0xff]  }
  0xb2   : > { %3824 = vmatpush1.bf16.msra.mxu1 %v5656_v14  ;;  %v5728_v14 = vld [vmem:[%s6259_s28 + $0x340] ss:$8 sps:$4 sm:$0xff]  }
  0xb3   : > { %4248 = vmatpush1.bf16.msra.mxu0 %v5659_v15  ;;  %3825 = vmatprep.subr.bf16.mxu1 %v5664_v16  ;;  %v5731_v15 = vld [vmem:[%s6259_s28 + $0xb40] ss:$8 sps:$4 sm:$0xff]   ;;  %v5736_v16 = vld [vmem:[%s6259_s28 + $0x354] ss:$8 sps:$4 sm:$0xff]  }
  0xb4   : > { %4249 = vmatprep.subr.bf16.mxu0 %v5667_v17  ;;  %v5739_v17 = vld [vmem:[%s6259_s28 + $0xb54] ss:$8 sps:$4 sm:$0xff]  }
  0xb6   : > { %3826 = vmatpush1.bf16.msra.mxu1 %v5662_v18  ;;  %v5734_v18 = vld [vmem:[%s6259_s28 + $0x350] ss:$8 sps:$4 sm:$0xff]  }
  0xb7   : > { %4250 = vmatpush1.bf16.msra.mxu0 %v5665_v19  ;;  %3827 = vmatprep.subr.bf16.mxu1 %v5670_v20  ;;  %v5737_v19 = vld [vmem:[%s6259_s28 + $0xb50] ss:$8 sps:$4 sm:$0xff]   ;;  %v5742_v20 = vld [vmem:[%s6259_s28 + $0x364] ss:$8 sps:$4 sm:$0xff]  }
  0xb8   : > { %4251 = vmatprep.subr.bf16.mxu0 %v5673_v21  ;;  %v5745_v21 = vld [vmem:[%s6259_s28 + $0xb64] ss:$8 sps:$4 sm:$0xff]  }
  0xba   : > { %3828 = vmatpush1.bf16.msra.mxu1 %v5668_v22  ;;  %v5740_v22 = vld [vmem:[%s6259_s28 + $0x360] ss:$8 sps:$4 sm:$0xff]  }
  0xbb   : > { %4252 = vmatpush1.bf16.msra.mxu0 %v5671_v23  ;;  %3829 = vmatprep.subr.bf16.mxu1 %v5676_v24  ;;  %v5743_v23 = vld [vmem:[%s6259_s28 + $0xb60] ss:$8 sps:$4 sm:$0xff]   ;;  %v5748_v24 = vld [vmem:[%s6259_s28 + $0x374] ss:$8 sps:$4 sm:$0xff]  }
  0xbc   : > { %4253 = vmatprep.subr.bf16.mxu0 %v5679_v25  ;;  %v5751_v25 = vld [vmem:[%s6259_s28 + $0xb74] ss:$8 sps:$4 sm:$0xff]  }
  0xbe   : > { %3830 = vmatpush1.bf16.msra.mxu1 %v5674_v26  ;;  %v5746_v26 = vld [vmem:[%s6259_s28 + $0x370] ss:$8 sps:$4 sm:$0xff]  }
  0xbf   : > { %4254 = vmatpush1.bf16.msra.mxu0 %v5677_v27  ;;  %3831 = vmatprep.subr.bf16.mxu1 %v5682_v28  ;;  %v5749_v27 = vld [vmem:[%s6259_s28 + $0xb70] ss:$8 sps:$4 sm:$0xff]   ;;  %v5754_v28 = vld [vmem:[%s6259_s28 + $0x384] ss:$8 sps:$4 sm:$0xff]  }
  0xc0   : > { %4255 = vmatprep.subr.bf16.mxu0 %v5685_v29  ;;  %v5757_v29 = vld [vmem:[%s6259_s28 + $0xb84] ss:$8 sps:$4 sm:$0xff]  }
  0xc2   : > { %3832 = vmatpush1.bf16.msra.mxu1 %v5680_v0  ;;  %v5752_v0 = vld [vmem:[%s6259_s28 + $0x380] ss:$8 sps:$4 sm:$0xff]  }
  0xc3   : > { %4256 = vmatpush1.bf16.msra.mxu0 %v5683_v1  ;;  %3833 = vmatprep.subr.bf16.mxu1 %v5688_v3  ;;  %v5755_v1 = vld [vmem:[%s6259_s28 + $0xb80] ss:$8 sps:$4 sm:$0xff]   ;;  %v5760_v3 = vld [vmem:[%s6259_s28 + $0x394] ss:$8 sps:$4 sm:$0xff]  }
  0xc4   : > { %4257 = vmatprep.subr.bf16.mxu0 %v5691_v2  ;;  %v5763_v2 = vld [vmem:[%s6259_s28 + $0xb94] ss:$8 sps:$4 sm:$0xff]  }
  0xc6   : > { %3834 = vmatpush1.bf16.msra.mxu1 %v5686_v5  ;;  %v5758_v5 = vld [vmem:[%s6259_s28 + $0x390] ss:$8 sps:$4 sm:$0xff]  }
  0xc7   : > { %4258 = vmatpush1.bf16.msra.mxu0 %v5689_v6  ;;  %3835 = vmatprep.subr.bf16.mxu1 %v5694_v30  ;;  %v5761_v6 = vld [vmem:[%s6259_s28 + $0xb90] ss:$8 sps:$4 sm:$0xff]   ;;  %v5766_v30 = vld [vmem:[%s6259_s28 + $0x3a4] ss:$8 sps:$4 sm:$0xff]  }
  0xc8   : > { %4259 = vmatprep.subr.bf16.mxu0 %v5697_v31  ;;  %v5769_v31 = vld [vmem:[%s6259_s28 + $0xba4] ss:$8 sps:$4 sm:$0xff]  }
  0xca   : > { %3836 = vmatpush1.bf16.msra.mxu1 %v5692_v32  ;;  %v5764_v32 = vld [vmem:[%s6259_s28 + $0x3a0] ss:$8 sps:$4 sm:$0xff]  }
  0xcb   : > { %4260 = vmatpush1.bf16.msra.mxu0 %v5695_v33  ;;  %3837 = vmatprep.subr.bf16.mxu1 %v5700_v34  ;;  %v5767_v33 = vld [vmem:[%s6259_s28 + $0xba0] ss:$8 sps:$4 sm:$0xff]   ;;  %v5772_v34 = vld [vmem:[%s6259_s28 + $0x3b4] ss:$8 sps:$4 sm:$0xff]  }
  0xcc   : > { %4261 = vmatprep.subr.bf16.mxu0 %v5703_v35  ;;  %v5775_v35 = vld [vmem:[%s6259_s28 + $0xbb4] ss:$8 sps:$4 sm:$0xff]  }
  0xce   : > { %3838 = vmatpush1.bf16.msra.mxu1 %v5698_v36  ;;  %v5770_v36 = vld [vmem:[%s6259_s28 + $0x3b0] ss:$8 sps:$4 sm:$0xff]  }
  0xcf   : > { %4262 = vmatpush1.bf16.msra.mxu0 %v5701_v37  ;;  %3860 = vmatprep.subr.bf16.mxu1 %v5706_v38  ;;  %v5773_v37 = vld [vmem:[%s6259_s28 + $0xbb0] ss:$8 sps:$4 sm:$0xff]   ;;  %v5778_v38 = vld [vmem:[%s6259_s28 + $0x3c4] ss:$8 sps:$4 sm:$0xff]  }
  0xd0   : > { %4284 = vmatprep.subr.bf16.mxu0 %v5709_v39  ;;  %v5781_v39 = vld [vmem:[%s6259_s28 + $0xbc4] ss:$8 sps:$4 sm:$0xff]  }
  0xd1   : > { %3840 = vmatmul.mubr.bf16.vlgmr.msra.gmra.mrb[0].mxu1 %v4704_v48  ;;  %v5782_v48 = vld [vmem:[%s6259_s28 + $0x3d0] ss:$8 sps:$4 sm:$0xff]  }
  0xd2   : > { %4264 = vmatmul.mubr.bf16.vlgmr.msra.gmra.mrb[0].mxu0 %v4720_v49  ;;  %3861 = vmatpush1.bf16.msra.mxu1 %v5704_v40  ;;  %v5776_v40 = vld [vmem:[%s6259_s28 + $0x3c0] ss:$8 sps:$4 sm:$0xff]   ;;  %v5785_v49 = vld [vmem:[%s6259_s28 + $0xbd0] ss:$8 sps:$4 sm:$0xff]  }
  0xd3   : > { %4285 = vmatpush1.bf16.msra.mxu0 %v5707_v41  ;;  %3862 = vmatprep.subr.bf16.mxu1 %v5712_v52  ;;  %v5779_v41 = vld [vmem:[%s6259_s28 + $0xbc0] ss:$8 sps:$4 sm:$0xff]  }
  0xd4   : > { %4286 = vmatprep.subr.bf16.mxu0 %v5715_v42  ;;  %3849 = vmatprep.mubr.bf16.mxu1 %v4737_v43  ;;  %v5788_v52 = vld [vmem:[%s6259_s28 + $0x3e0] ss:$8 sps:$4 sm:$0xff]   ;;  %v5796_v43 = vld [vmem:[%s6259_s28 + $0x3f4] ss:$8 sps:$4 sm:$0xff]  }
  0xd5   : > { %4273 = vmatprep.mubr.bf16.mxu0 %v4753_v46  ;;  %v5791_v42 = vld [vmem:[%s6259_s28 + $0xbe0] ss:$8 sps:$4 sm:$0xff]   ;;  %v5799_v46 = vld [vmem:[%s6259_s28 + $0xbf4] ss:$8 sps:$4 sm:$0xff]  }
  0xd6   : > { %3863 = vmatpush1.bf16.msra.mxu1 %v5710_v47  ;;  %v5794_v47 = vld [vmem:[%s6259_s28 + $0x3f0] ss:$8 sps:$4 sm:$0xff]  }
  0xd7   : > { %4287 = vmatpush1.bf16.msra.mxu0 %v5713_v53  ;;  %3864 = vmatprep.subr.bf16.mxu1 %v5718_v54  ;;  %v5797_v53 = vld [vmem:[%s6259_s28 + $0xbf0] ss:$8 sps:$4 sm:$0xff]   ;;  %v5802_v54 = vld [vmem:[%s6259_s28 + $0x404] ss:$8 sps:$4 sm:$0xff]  }
  0xd8   : > { %4288 = vmatprep.subr.bf16.mxu0 %v5721_v55  ;;  %v5805_v55 = vld [vmem:[%s6259_s28 + $0xc04] ss:$8 sps:$4 sm:$0xff]  }
  0xd9   : > { %3850 = vmatmul.mubr.bf16.gmra.mrb[4].mxu1 %v4736_v60  ;;  %v268_v60 = vld [vmem:[%s7089_s0 + $0x118] sm:$0xff] }
  0xda   : > { %4274 = vmatmul.mubr.bf16.gmra.mrb[4].mxu0 %v4752_v61  ;;  %3865 = vmatpush1.bf16.msra.mxu1 %v5716_v56  ;;  %v5800_v56 = vld [vmem:[%s6259_s28 + $0x400] ss:$8 sps:$4 sm:$0xff]   ;;  %v284_v61 = vld [vmem:[%s7089_s0 + $0x198] sm:$0xff] }
  0xdb   : > { %4289 = vmatpush1.bf16.msra.mxu0 %v5719_v57  ;;  %3866 = vmatprep.subr.bf16.mxu1 %v5724_v4  ;;  %v5803_v57 = vld [vmem:[%s6259_s28 + $0xc00] ss:$8 sps:$4 sm:$0xff]   ;;  %v4706_v4 = vcombine.low %v6566_v58, %v6571_v59  ;;  %v5811_v58 = vld [vmem:[%s6259_s28 + $0xc14] ss:$8 sps:$4 sm:$0xff]   ;;  %v4739_v59 = vcombine.high %v268_v60, %v284_v61 }
  0xdc   : > { %4290 = vmatprep.subr.bf16.mxu0 %v5727_v7  ;;  %3892 = vmatprep.mubr.bf16.mxu1 %v4707_v8  ;;  %v4722_v7 = vcombine.low %v6576_v62, %v6581_v63  ;;  %v276_v8 = vld [vmem:[%s7089_s0 + $0x158] sm:$0xff] }
  0xdd   : > { %4316 = vmatprep.mubr.bf16.mxu0 %v4723_v9  ;;  %v292_v9 = vld [vmem:[%s7089_s0 + $0x1d8] sm:$0xff] }
  0xde   : > { %3867 = vmatpush1.bf16.msra.mxu1 %v5722_v10  ;;  %v5808_v10 = vld [vmem:[%s6259_s28 + $0x414] ss:$8 sps:$4 sm:$0xff]   ;;  %v4755_v62 = vcombine.high %v276_v8, %v292_v9  ;;  %v5806_v63 = vld [vmem:[%s6259_s28 + $0x410] ss:$8 sps:$4 sm:$0xff]  }
  0xdf   : > { %4291 = vmatpush1.bf16.msra.mxu0 %v5725_v11  ;;  %3868 = vmatprep.subr.bf16.mxu1 %v5730_v12  ;;  %v5809_v11 = vld [vmem:[%s6259_s28 + $0xc10] ss:$8 sps:$4 sm:$0xff]   ;;  %v5814_v12 = vld [vmem:[%s6259_s28 + $0x424] ss:$8 sps:$4 sm:$0xff]  }
  0xe0   : > { %4292 = vmatprep.subr.bf16.mxu0 %v5733_v13  ;;  %v5817_v13 = vld [vmem:[%s6259_s28 + $0xc24] ss:$8 sps:$4 sm:$0xff]  }
  0xe2   : > { %3869 = vmatpush1.bf16.msra.mxu1 %v5728_v14  ;;  %v5812_v14 = vld [vmem:[%s6259_s28 + $0x420] ss:$8 sps:$4 sm:$0xff]  }
  0xe3   : > { %4293 = vmatpush1.bf16.msra.mxu0 %v5731_v15  ;;  %3870 = vmatprep.subr.bf16.mxu1 %v5736_v16  ;;  %v5815_v15 = vld [vmem:[%s6259_s28 + $0xc20] ss:$8 sps:$4 sm:$0xff]  }
  0xe4   : > { %4294 = vmatprep.subr.bf16.mxu0 %v5739_v17  ;;  %v6670_v16 = vld [vmem:[%s7089_s0 + $0x20] sm:$0xff] }
  0xe5   : > { %v6675_v17 = vld [vmem:[%s7089_s0 + $0xa0] sm:$0xff] }
  0xe6   : > { %3871 = vmatpush1.bf16.msra.mxu1 %v5734_v18  ;;  %v4738_v18 = vcombine.low %v268_v60, %v284_v61  ;;  %v5880_v60 = vld [vmem:[%s6259_s28 + $0x4d4] ss:$8 sps:$4 sm:$0xff]  }
  0xe7   : > { %4295 = vmatpush1.bf16.msra.mxu0 %v5737_v19  ;;  %3872 = vmatprep.subr.bf16.mxu1 %v5742_v20  ;;  %v4754_v19 = vcombine.low %v276_v8, %v292_v9  ;;  %v6680_v20 = vld [vmem:[%s7089_s0 + $0x60] sm:$0xff]  ;;  %v5883_v61 = vld [vmem:[%s6259_s28 + $0xcd4] ss:$8 sps:$4 sm:$0xff]  }
  0xe8   : > { %4296 = vmatprep.subr.bf16.mxu0 %v5745_v21  ;;  %v6685_v21 = vld [vmem:[%s7089_s0 + $0xe0] sm:$0xff] }
  0xe9   : > { %v5886_v8 = vld [vmem:[%s6259_s28 + $0x4e4] ss:$8 sps:$4 sm:$0xff]  }
  0xea   : > { %3873 = vmatpush1.bf16.msra.mxu1 %v5740_v22  ;;  %v5820_v22 = vld [vmem:[%s6259_s28 + $0x434] ss:$8 sps:$4 sm:$0xff]   ;;  %v5889_v9 = vld [vmem:[%s6259_s28 + $0xce4] ss:$8 sps:$4 sm:$0xff]  }
  0xeb   : > { %4297 = vmatpush1.bf16.msra.mxu0 %v5743_v23  ;;  %3874 = vmatprep.subr.bf16.mxu1 %v5748_v24  ;;  %v5823_v23 = vld [vmem:[%s6259_s28 + $0xc34] ss:$8 sps:$4 sm:$0xff]   ;;  %v4709_v24 = vcombine.high %v6670_v16, %v6675_v17 }
  0xec   : > { %4298 = vmatprep.subr.bf16.mxu0 %v5751_v25  ;;  %v4725_v25 = vcombine.high %v6680_v20, %v6685_v21 }
  0xee   : > { %3875 = vmatpush1.bf16.msra.mxu1 %v5746_v26  ;;  %v5818_v26 = vld [vmem:[%s6259_s28 + $0x430] ss:$8 sps:$4 sm:$0xff]  }
  0xef   : > { %4299 = vmatpush1.bf16.msra.mxu0 %v5749_v27  ;;  %3876 = vmatprep.subr.bf16.mxu1 %v5754_v28  ;;  %v5821_v27 = vld [vmem:[%s6259_s28 + $0xc30] ss:$8 sps:$4 sm:$0xff]   ;;  %v5826_v28 = vld [vmem:[%s6259_s28 + $0x444] ss:$8 sps:$4 sm:$0xff]  }
  0xf0   : > { %4300 = vmatprep.subr.bf16.mxu0 %v5757_v29  ;;  %v5829_v29 = vld [vmem:[%s6259_s28 + $0xc44] ss:$8 sps:$4 sm:$0xff]  }
  0xf2   : > { %3877 = vmatpush1.bf16.msra.mxu1 %v5752_v0  ;;  %v5824_v0 = vld [vmem:[%s6259_s28 + $0x440] ss:$8 sps:$4 sm:$0xff]  }
  0xf3   : > { %4301 = vmatpush1.bf16.msra.mxu0 %v5755_v1  ;;  %3878 = vmatprep.subr.bf16.mxu1 %v5760_v3  ;;  %v5827_v1 = vld [vmem:[%s6259_s28 + $0xc40] ss:$8 sps:$4 sm:$0xff]   ;;  %v5832_v3 = vld [vmem:[%s6259_s28 + $0x454] ss:$8 sps:$4 sm:$0xff]  }
  0xf4   : > { %4302 = vmatprep.subr.bf16.mxu0 %v5763_v2  ;;  %v5835_v2 = vld [vmem:[%s6259_s28 + $0xc54] ss:$8 sps:$4 sm:$0xff]  }
  0xf6   : > { %3879 = vmatpush1.bf16.msra.mxu1 %v5758_v5  ;;  %v5830_v5 = vld [vmem:[%s6259_s28 + $0x450] ss:$8 sps:$4 sm:$0xff]  }
  0xf7   : > { %4303 = vmatpush1.bf16.msra.mxu0 %v5761_v6  ;;  %3880 = vmatprep.subr.bf16.mxu1 %v5766_v30  ;;  %v5833_v6 = vld [vmem:[%s6259_s28 + $0xc50] ss:$8 sps:$4 sm:$0xff]   ;;  %v5838_v30 = vld [vmem:[%s6259_s28 + $0x464] ss:$8 sps:$4 sm:$0xff]  }
  0xf8   : > { %4304 = vmatprep.subr.bf16.mxu0 %v5769_v31  ;;  %v5841_v31 = vld [vmem:[%s6259_s28 + $0xc64] ss:$8 sps:$4 sm:$0xff]  }
  0xfa   : > { %3881 = vmatpush1.bf16.msra.mxu1 %v5764_v32  ;;  %v5836_v32 = vld [vmem:[%s6259_s28 + $0x460] ss:$8 sps:$4 sm:$0xff]  }
  0xfb   : > { %4305 = vmatpush1.bf16.msra.mxu0 %v5767_v33  ;;  %3882 = vmatprep.subr.bf16.mxu1 %v5772_v34  ;;  %v5839_v33 = vld [vmem:[%s6259_s28 + $0xc60] ss:$8 sps:$4 sm:$0xff]   ;;  %v5844_v34 = vld [vmem:[%s6259_s28 + $0x474] ss:$8 sps:$4 sm:$0xff]  }
  0xfc   : > { %4306 = vmatprep.subr.bf16.mxu0 %v5775_v35  ;;  %v5847_v35 = vld [vmem:[%s6259_s28 + $0xc74] ss:$8 sps:$4 sm:$0xff]  }
  0xfe   : > { %3883 = vmatpush1.bf16.msra.mxu1 %v5770_v36  ;;  %v5842_v36 = vld [vmem:[%s6259_s28 + $0x470] ss:$8 sps:$4 sm:$0xff]  }
  0xff   : > { %4307 = vmatpush1.bf16.msra.mxu0 %v5773_v37  ;;  %3884 = vmatprep.subr.bf16.mxu1 %v5778_v38  ;;  %v5845_v37 = vld [vmem:[%s6259_s28 + $0xc70] ss:$8 sps:$4 sm:$0xff]   ;;  %v5850_v38 = vld [vmem:[%s6259_s28 + $0x484] ss:$8 sps:$4 sm:$0xff]  }
 0x100   : > { %4308 = vmatprep.subr.bf16.mxu0 %v5781_v39  ;;  %v5853_v39 = vld [vmem:[%s6259_s28 + $0xc84] ss:$8 sps:$4 sm:$0xff]  }
 0x102   : > { %3885 = vmatpush1.bf16.msra.mxu1 %v5776_v40  ;;  %v5848_v40 = vld [vmem:[%s6259_s28 + $0x480] ss:$8 sps:$4 sm:$0xff]  }
 0x103   : > { %4309 = vmatpush1.bf16.msra.mxu0 %v5779_v41  ;;  %3886 = vmatprep.subr.bf16.mxu1 %v5784_v44  ;;  %v5851_v41 = vld [vmem:[%s6259_s28 + $0xc80] ss:$8 sps:$4 sm:$0xff]   ;;  %v5856_v44 = vld [vmem:[%s6259_s28 + $0x494] ss:$8 sps:$4 sm:$0xff]  }
 0x104   : > { %4310 = vmatprep.subr.bf16.mxu0 %v5787_v45  ;;  %v5859_v45 = vld [vmem:[%s6259_s28 + $0xc94] ss:$8 sps:$4 sm:$0xff]  }
 0x106   : > { %3887 = vmatpush1.bf16.msra.mxu1 %v5782_v48  ;;  %v5854_v48 = vld [vmem:[%s6259_s28 + $0x490] ss:$8 sps:$4 sm:$0xff]  }
 0x107   : > { %4311 = vmatpush1.bf16.msra.mxu0 %v5785_v49  ;;  %3888 = vmatprep.subr.bf16.mxu1 %v5790_v50  ;;  %v5857_v49 = vld [vmem:[%s6259_s28 + $0xc90] ss:$8 sps:$4 sm:$0xff]   ;;  %v5862_v50 = vld [vmem:[%s6259_s28 + $0x4a4] ss:$8 sps:$4 sm:$0xff]  }
 0x108   : > { %4312 = vmatprep.subr.bf16.mxu0 %v5793_v51  ;;  %v5865_v51 = vld [vmem:[%s6259_s28 + $0xca4] ss:$8 sps:$4 sm:$0xff]  }
 0x10a   : > { %3889 = vmatpush1.bf16.msra.mxu1 %v5788_v52  ;;  %v5860_v52 = vld [vmem:[%s6259_s28 + $0x4a0] ss:$8 sps:$4 sm:$0xff]  }
 0x10b   : > { %4313 = vmatpush1.bf16.msra.mxu0 %v5791_v42  ;;  %3890 = vmatprep.subr.bf16.mxu1 %v5796_v43  ;;  %v5863_v42 = vld [vmem:[%s6259_s28 + $0xca0] ss:$8 sps:$4 sm:$0xff]   ;;  %v5868_v43 = vld [vmem:[%s6259_s28 + $0x4b4] ss:$8 sps:$4 sm:$0xff]  }
 0x10c   : > { %4314 = vmatprep.subr.bf16.mxu0 %v5799_v46  ;;  %v5871_v46 = vld [vmem:[%s6259_s28 + $0xcb4] ss:$8 sps:$4 sm:$0xff]  }
 0x10e   : > { %3891 = vmatpush1.bf16.msra.mxu1 %v5794_v47  ;;  %v5866_v47 = vld [vmem:[%s6259_s28 + $0x4b0] ss:$8 sps:$4 sm:$0xff]  }
 0x10f   : > { %4315 = vmatpush1.bf16.msra.mxu0 %v5797_v53  ;;  %3913 = vmatprep.subr.bf16.mxu1 %v5802_v54  ;;  %v5869_v53 = vld [vmem:[%s6259_s28 + $0xcb0] ss:$8 sps:$4 sm:$0xff]   ;;  %v5874_v54 = vld [vmem:[%s6259_s28 + $0x4c4] ss:$8 sps:$4 sm:$0xff]  }
 0x110   : > { %4337 = vmatprep.subr.bf16.mxu0 %v5805_v55  ;;  %v5877_v55 = vld [vmem:[%s6259_s28 + $0xcc4] ss:$8 sps:$4 sm:$0xff]  }
 0x111   : > { %3893 = vmatmul.mubr.bf16.vlgmr.msra.gmra.mrb[0].mxu1 %v4706_v4  ;;  %v5878_v4 = vld [vmem:[%s6259_s28 + $0x4d0] ss:$8 sps:$4 sm:$0xff]  }
 0x112   : > { %4317 = vmatmul.mubr.bf16.vlgmr.msra.gmra.mrb[0].mxu0 %v4722_v7  ;;  %3914 = vmatpush1.bf16.msra.mxu1 %v5800_v56  ;;  %v5872_v56 = vld [vmem:[%s6259_s28 + $0x4c0] ss:$8 sps:$4 sm:$0xff]   ;;  %v5881_v7 = vld [vmem:[%s6259_s28 + $0xcd0] ss:$8 sps:$4 sm:$0xff]  }
 0x113   : > { %4338 = vmatpush1.bf16.msra.mxu0 %v5803_v57  ;;  %3915 = vmatprep.subr.bf16.mxu1 %v5808_v10  ;;  %v5875_v57 = vld [vmem:[%s6259_s28 + $0xcc0] ss:$8 sps:$4 sm:$0xff]  }
 0x114   : > { %4339 = vmatprep.subr.bf16.mxu0 %v5811_v58  ;;  %3902 = vmatprep.mubr.bf16.mxu1 %v4739_v59  ;;  %v5884_v10 = vld [vmem:[%s6259_s28 + $0x4e0] ss:$8 sps:$4 sm:$0xff]   ;;  %v5892_v59 = vld [vmem:[%s6259_s28 + $0x4f4] ss:$8 sps:$4 sm:$0xff]  }
 0x115   : > { %4326 = vmatprep.mubr.bf16.mxu0 %v4755_v62  ;;  %v5887_v58 = vld [vmem:[%s6259_s28 + $0xce0] ss:$8 sps:$4 sm:$0xff]   ;;  %v5895_v62 = vld [vmem:[%s6259_s28 + $0xcf4] ss:$8 sps:$4 sm:$0xff]  }
 0x116   : > { %3916 = vmatpush1.bf16.msra.mxu1 %v5806_v63  ;;  %v5890_v63 = vld [vmem:[%s6259_s28 + $0x4f0] ss:$8 sps:$4 sm:$0xff]  }
 0x117   : > { %4340 = vmatpush1.bf16.msra.mxu0 %v5809_v11  ;;  %3917 = vmatprep.subr.bf16.mxu1 %v5814_v12  ;;  %v5893_v11 = vld [vmem:[%s6259_s28 + $0xcf0] ss:$8 sps:$4 sm:$0xff]   ;;  %v5898_v12 = vld [vmem:[%s6259_s28 + $0x504] ss:$8 sps:$4 sm:$0xff]  }
 0x118   : > { %4341 = vmatprep.subr.bf16.mxu0 %v5817_v13  ;;  %v5901_v13 = vld [vmem:[%s6259_s28 + $0xd04] ss:$8 sps:$4 sm:$0xff]  }
 0x119   : > { %3903 = vmatmul.mubr.bf16.gmra.mrb[4].mxu1 %v4738_v18  ;;  %v277_v18 = vld [vmem:[%s7089_s0 + $0x160] sm:$0xff] }
 0x11a   : > { %4327 = vmatmul.mubr.bf16.gmra.mrb[4].mxu0 %v4754_v19  ;;  %3918 = vmatpush1.bf16.msra.mxu1 %v5812_v14  ;;  %v269_v14 = vld [vmem:[%s7089_s0 + $0x120] sm:$0xff] }
 0x11b   : > { %4342 = vmatpush1.bf16.msra.mxu0 %v5815_v15  ;;  %3919 = vmatprep.subr.bf16.mxu1 %v5820_v22  ;;  %v285_v15 = vld [vmem:[%s7089_s0 + $0x1a0] sm:$0xff]  ;;  %v4708_v22 = vcombine.low %v6670_v16, %v6675_v17 }
 0x11c   : > { %4343 = vmatprep.subr.bf16.mxu0 %v5823_v23  ;;  %3945 = vmatprep.mubr.bf16.mxu1 %v4709_v24  ;;  %v293_v19 = vld [vmem:[%s7089_s0 + $0x1e0] sm:$0xff]  ;;  %v4724_v23 = vcombine.low %v6680_v20, %v6685_v21  ;;  %v6772_v20 = vld [vmem:[%s7089_s0 + $0x28] sm:$0xff] }
 0x11d   : > { %4369 = vmatprep.mubr.bf16.mxu0 %v4725_v25  ;;  %v5896_v24 = vld [vmem:[%s6259_s28 + $0x500] ss:$8 sps:$4 sm:$0xff]   ;;  %v5910_v16 = vld [vmem:[%s6259_s28 + $0x524] ss:$8 sps:$4 sm:$0xff]  }
 0x11e   : > { %3920 = vmatpush1.bf16.msra.mxu1 %v5818_v26  ;;  %v5899_v25 = vld [vmem:[%s6259_s28 + $0xd00] ss:$8 sps:$4 sm:$0xff]   ;;  %v5904_v26 = vld [vmem:[%s6259_s28 + $0x514] ss:$8 sps:$4 sm:$0xff]   ;;  %v5913_v17 = vld [vmem:[%s6259_s28 + $0xd24] ss:$8 sps:$4 sm:$0xff]  }
 0x11f   : > { %4344 = vmatpush1.bf16.msra.mxu0 %v5821_v27  ;;  %3921 = vmatprep.subr.bf16.mxu1 %v5826_v28  ;;  %v5907_v27 = vld [vmem:[%s6259_s28 + $0xd14] ss:$8 sps:$4 sm:$0xff]   ;;  %v5902_v28 = vld [vmem:[%s6259_s28 + $0x510] ss:$8 sps:$4 sm:$0xff]   ;;  %v6777_v21 = vld [vmem:[%s7089_s0 + $0xa8] sm:$0xff] }
 0x120   : > { %4345 = vmatprep.subr.bf16.mxu0 %v5829_v29  ;;  %v5905_v29 = vld [vmem:[%s6259_s28 + $0xd10] ss:$8 sps:$4 sm:$0xff]  }
 0x122   : > { %3922 = vmatpush1.bf16.msra.mxu1 %v5824_v0  ;;  %v4741_v0 = vcombine.high %v269_v14, %v285_v15 }
 0x123   : > { %4346 = vmatpush1.bf16.msra.mxu0 %v5827_v1  ;;  %3923 = vmatprep.subr.bf16.mxu1 %v5832_v3  ;;  %v4757_v1 = vcombine.high %v277_v18, %v293_v19  ;;  %v6782_v3 = vld [vmem:[%s7089_s0 + $0x68] sm:$0xff] }
 0x124   : > { %4347 = vmatprep.subr.bf16.mxu0 %v5835_v2  ;;  %v6787_v2 = vld [vmem:[%s7089_s0 + $0xe8] sm:$0xff] }
 0x126   : > { %3924 = vmatpush1.bf16.msra.mxu1 %v5830_v5  ;;  %v4740_v5 = vcombine.low %v269_v14, %v285_v15  ;;  %v5968_v14 = vld [vmem:[%s6259_s28 + $0x5c0] ss:$8 sps:$4 sm:$0xff]  }
 0x127   : > { %4348 = vmatpush1.bf16.msra.mxu0 %v5833_v6  ;;  %3925 = vmatprep.subr.bf16.mxu1 %v5838_v30  ;;  %v4756_v6 = vcombine.low %v277_v18, %v293_v19  ;;  %v5908_v30 = vld [vmem:[%s6259_s28 + $0x520] ss:$8 sps:$4 sm:$0xff]   ;;  %v5976_v18 = vld [vmem:[%s6259_s28 + $0x5d4] ss:$8 sps:$4 sm:$0xff]  }
 0x128   : > { %4349 = vmatprep.subr.bf16.mxu0 %v5841_v31  ;;  %v5911_v31 = vld [vmem:[%s6259_s28 + $0xd20] ss:$8 sps:$4 sm:$0xff]   ;;  %v5979_v19 = vld [vmem:[%s6259_s28 + $0xdd4] ss:$8 sps:$4 sm:$0xff]  }
 0x129   : > { %v5971_v15 = vld [vmem:[%s6259_s28 + $0xdc0] ss:$8 sps:$4 sm:$0xff]  }
 0x12a   : > { %3926 = vmatpush1.bf16.msra.mxu1 %v5836_v32  ;;  %v5916_v32 = vld [vmem:[%s6259_s28 + $0x534] ss:$8 sps:$4 sm:$0xff]  }
 0x12b   : > { %4350 = vmatpush1.bf16.msra.mxu0 %v5839_v33  ;;  %3927 = vmatprep.subr.bf16.mxu1 %v5844_v34  ;;  %v5919_v33 = vld [vmem:[%s6259_s28 + $0xd34] ss:$8 sps:$4 sm:$0xff]   ;;  %v4711_v34 = vcombine.high %v6772_v20, %v6777_v21 }
 0x12c   : > { %4351 = vmatprep.subr.bf16.mxu0 %v5847_v35  ;;  %v4727_v35 = vcombine.high %v6782_v3, %v6787_v2 }
 0x12e   : > { %3928 = vmatpush1.bf16.msra.mxu1 %v5842_v36  ;;  %v5914_v36 = vld [vmem:[%s6259_s28 + $0x530] ss:$8 sps:$4 sm:$0xff]  }
 0x12f   : > { %4352 = vmatpush1.bf16.msra.mxu0 %v5845_v37  ;;  %3929 = vmatprep.subr.bf16.mxu1 %v5850_v38  ;;  %v5917_v37 = vld [vmem:[%s6259_s28 + $0xd30] ss:$8 sps:$4 sm:$0xff]   ;;  %v5922_v38 = vld [vmem:[%s6259_s28 + $0x544] ss:$8 sps:$4 sm:$0xff]  }
 0x130   : > { %4353 = vmatprep.subr.bf16.mxu0 %v5853_v39  ;;  %v5925_v39 = vld [vmem:[%s6259_s28 + $0xd44] ss:$8 sps:$4 sm:$0xff]  }
 0x132   : > { %3930 = vmatpush1.bf16.msra.mxu1 %v5848_v40  ;;  %v5920_v40 = vld [vmem:[%s6259_s28 + $0x540] ss:$8 sps:$4 sm:$0xff]  }
 0x133   : > { %4354 = vmatpush1.bf16.msra.mxu0 %v5851_v41  ;;  %3931 = vmatprep.subr.bf16.mxu1 %v5856_v44  ;;  %v5923_v41 = vld [vmem:[%s6259_s28 + $0xd40] ss:$8 sps:$4 sm:$0xff]   ;;  %v5928_v44 = vld [vmem:[%s6259_s28 + $0x554] ss:$8 sps:$4 sm:$0xff]  }
 0x134   : > { %4355 = vmatprep.subr.bf16.mxu0 %v5859_v45  ;;  %v5931_v45 = vld [vmem:[%s6259_s28 + $0xd54] ss:$8 sps:$4 sm:$0xff]  }
 0x136   : > { %3932 = vmatpush1.bf16.msra.mxu1 %v5854_v48  ;;  %v5926_v48 = vld [vmem:[%s6259_s28 + $0x550] ss:$8 sps:$4 sm:$0xff]  }
 0x137   : > { %4356 = vmatpush1.bf16.msra.mxu0 %v5857_v49  ;;  %3933 = vmatprep.subr.bf16.mxu1 %v5862_v50  ;;  %v5929_v49 = vld [vmem:[%s6259_s28 + $0xd50] ss:$8 sps:$4 sm:$0xff]   ;;  %v5934_v50 = vld [vmem:[%s6259_s28 + $0x564] ss:$8 sps:$4 sm:$0xff]  }
 0x138   : > { %4357 = vmatprep.subr.bf16.mxu0 %v5865_v51  ;;  %v5937_v51 = vld [vmem:[%s6259_s28 + $0xd64] ss:$8 sps:$4 sm:$0xff]  }
 0x13a   : > { %3934 = vmatpush1.bf16.msra.mxu1 %v5860_v52  ;;  %v5932_v52 = vld [vmem:[%s6259_s28 + $0x560] ss:$8 sps:$4 sm:$0xff]  }
 0x13b   : > { %4358 = vmatpush1.bf16.msra.mxu0 %v5863_v42  ;;  %3935 = vmatprep.subr.bf16.mxu1 %v5868_v43  ;;  %v5935_v42 = vld [vmem:[%s6259_s28 + $0xd60] ss:$8 sps:$4 sm:$0xff]   ;;  %v5940_v43 = vld [vmem:[%s6259_s28 + $0x574] ss:$8 sps:$4 sm:$0xff]  }
 0x13c   : > { %4359 = vmatprep.subr.bf16.mxu0 %v5871_v46  ;;  %v5943_v46 = vld [vmem:[%s6259_s28 + $0xd74] ss:$8 sps:$4 sm:$0xff]  }
 0x13e   : > { %3936 = vmatpush1.bf16.msra.mxu1 %v5866_v47  ;;  %v5938_v47 = vld [vmem:[%s6259_s28 + $0x570] ss:$8 sps:$4 sm:$0xff]  }
 0x13f   : > { %4360 = vmatpush1.bf16.msra.mxu0 %v5869_v53  ;;  %3937 = vmatprep.subr.bf16.mxu1 %v5874_v54  ;;  %v5941_v53 = vld [vmem:[%s6259_s28 + $0xd70] ss:$8 sps:$4 sm:$0xff]   ;;  %v5946_v54 = vld [vmem:[%s6259_s28 + $0x584] ss:$8 sps:$4 sm:$0xff]  }
 0x140   : > { %4361 = vmatprep.subr.bf16.mxu0 %v5877_v55  ;;  %v5949_v55 = vld [vmem:[%s6259_s28 + $0xd84] ss:$8 sps:$4 sm:$0xff]  }
 0x142   : > { %3938 = vmatpush1.bf16.msra.mxu1 %v5872_v56  ;;  %v5944_v56 = vld [vmem:[%s6259_s28 + $0x580] ss:$8 sps:$4 sm:$0xff]  }
 0x143   : > { %4362 = vmatpush1.bf16.msra.mxu0 %v5875_v57  ;;  %3939 = vmatprep.subr.bf16.mxu1 %v5880_v60  ;;  %v5947_v57 = vld [vmem:[%s6259_s28 + $0xd80] ss:$8 sps:$4 sm:$0xff]   ;;  %v5952_v60 = vld [vmem:[%s6259_s28 + $0x594] ss:$8 sps:$4 sm:$0xff]  }
 0x144   : > { %4363 = vmatprep.subr.bf16.mxu0 %v5883_v61  ;;  %v5955_v61 = vld [vmem:[%s6259_s28 + $0xd94] ss:$8 sps:$4 sm:$0xff]  }
 0x146   : > { %3940 = vmatpush1.bf16.msra.mxu1 %v5878_v4  ;;  %v5950_v4 = vld [vmem:[%s6259_s28 + $0x590] ss:$8 sps:$4 sm:$0xff]  }
 0x147   : > { %4364 = vmatpush1.bf16.msra.mxu0 %v5881_v7  ;;  %3941 = vmatprep.subr.bf16.mxu1 %v5886_v8  ;;  %v5953_v7 = vld [vmem:[%s6259_s28 + $0xd90] ss:$8 sps:$4 sm:$0xff]   ;;  %v5958_v8 = vld [vmem:[%s6259_s28 + $0x5a4] ss:$8 sps:$4 sm:$0xff]  }
 0x148   : > { %4365 = vmatprep.subr.bf16.mxu0 %v5889_v9  ;;  %v5961_v9 = vld [vmem:[%s6259_s28 + $0xda4] ss:$8 sps:$4 sm:$0xff]  }
 0x14a   : > { %3942 = vmatpush1.bf16.msra.mxu1 %v5884_v10  ;;  %v5956_v10 = vld [vmem:[%s6259_s28 + $0x5a0] ss:$8 sps:$4 sm:$0xff]  }
 0x14b   : > { %4366 = vmatpush1.bf16.msra.mxu0 %v5887_v58  ;;  %3943 = vmatprep.subr.bf16.mxu1 %v5892_v59  ;;  %v5959_v58 = vld [vmem:[%s6259_s28 + $0xda0] ss:$8 sps:$4 sm:$0xff]   ;;  %v5964_v59 = vld [vmem:[%s6259_s28 + $0x5b4] ss:$8 sps:$4 sm:$0xff]  }
 0x14c   : > { %4367 = vmatprep.subr.bf16.mxu0 %v5895_v62  ;;  %v5967_v62 = vld [vmem:[%s6259_s28 + $0xdb4] ss:$8 sps:$4 sm:$0xff]  }
 0x14e   : > { %3944 = vmatpush1.bf16.msra.mxu1 %v5890_v63  ;;  %v5962_v63 = vld [vmem:[%s6259_s28 + $0x5b0] ss:$8 sps:$4 sm:$0xff]  }
 0x14f   : > { %4368 = vmatpush1.bf16.msra.mxu0 %v5893_v11  ;;  %3966 = vmatprep.subr.bf16.mxu1 %v5898_v12  ;;  %v5965_v11 = vld [vmem:[%s6259_s28 + $0xdb0] ss:$8 sps:$4 sm:$0xff]   ;;  %v5970_v12 = vld [vmem:[%s6259_s28 + $0x5c4] ss:$8 sps:$4 sm:$0xff]  }
 0x150   : > { %4390 = vmatprep.subr.bf16.mxu0 %v5901_v13  ;;  %v5973_v13 = vld [vmem:[%s6259_s28 + $0xdc4] ss:$8 sps:$4 sm:$0xff]  }
 0x151   : > { %3946 = vmatmul.mubr.bf16.vlgmr.msra.gmra.mrb[0].mxu1 %v4708_v22  ;;  %v5974_v22 = vld [vmem:[%s6259_s28 + $0x5d0] ss:$8 sps:$4 sm:$0xff]  }
 0x152   : > { %4370 = vmatmul.mubr.bf16.vlgmr.msra.gmra.mrb[0].mxu0 %v4724_v23  ;;  %3967 = vmatpush1.bf16.msra.mxu1 %v5896_v24  ;;  %v5977_v23 = vld [vmem:[%s6259_s28 + $0xdd0] ss:$8 sps:$4 sm:$0xff]   ;;  %v5982_v24 = vld [vmem:[%s6259_s28 + $0x5e4] ss:$8 sps:$4 sm:$0xff]  }
 0x153   : > { %4391 = vmatpush1.bf16.msra.mxu0 %v5899_v25  ;;  %3968 = vmatprep.subr.bf16.mxu1 %v5904_v26  ;;  %v5985_v25 = vld [vmem:[%s6259_s28 + $0xde4] ss:$8 sps:$4 sm:$0xff]   ;;  %v5980_v26 = vld [vmem:[%s6259_s28 + $0x5e0] ss:$8 sps:$4 sm:$0xff]  }
 0x154   : > { %4392 = vmatprep.subr.bf16.mxu0 %v5907_v27  ;;  %3955 = vmatprep.mubr.bf16.mxu1 %v4741_v0  ;;  %v5983_v27 = vld [vmem:[%s6259_s28 + $0xde0] ss:$8 sps:$4 sm:$0xff]   ;;  %v5986_v0 = vld [vmem:[%s6259_s28 + $0x5f0] ss:$8 sps:$4 sm:$0xff]  }
 0x155   : > { %4379 = vmatprep.mubr.bf16.mxu0 %v4757_v1  ;;  %v5989_v1 = vld [vmem:[%s6259_s28 + $0xdf0] ss:$8 sps:$4 sm:$0xff]  }
 0x156   : > { %3969 = vmatpush1.bf16.msra.mxu1 %v5902_v28  ;;  %v5988_v28 = vld [vmem:[%s6259_s28 + $0x5f4] ss:$8 sps:$4 sm:$0xff]  }
 0x157   : > { %4393 = vmatpush1.bf16.msra.mxu0 %v5905_v29  ;;  %3970 = vmatprep.subr.bf16.mxu1 %v5910_v16  ;;  %v5991_v29 = vld [vmem:[%s6259_s28 + $0xdf4] ss:$8 sps:$4 sm:$0xff]   ;;  %v5994_v16 = vld [vmem:[%s6259_s28 + $0x604] ss:$8 sps:$4 sm:$0xff]  }
 0x158   : > { %4394 = vmatprep.subr.bf16.mxu0 %v5913_v17  ;;  %v5997_v17 = vld [vmem:[%s6259_s28 + $0xe04] ss:$8 sps:$4 sm:$0xff]  }
 0x159   : > { %3956 = vmatmul.mubr.bf16.gmra.mrb[4].mxu1 %v4740_v5  ;;  %v270_v5 = vld [vmem:[%s7089_s0 + $0x128] sm:$0xff] }
 0x15a   : > { %4380 = vmatmul.mubr.bf16.gmra.mrb[4].mxu0 %v4756_v6  ;;  %3971 = vmatpush1.bf16.msra.mxu1 %v5908_v30  ;;  %v4710_v6 = vcombine.low %v6772_v20, %v6777_v21  ;;  %v4726_v30 = vcombine.low %v6782_v3, %v6787_v2  ;;  %v5992_v20 = vld [vmem:[%s6259_s28 + $0x600] ss:$8 sps:$4 sm:$0xff]   ;;  %v6000_v3 = vld [vmem:[%s6259_s28 + $0x614] ss:$8 sps:$4 sm:$0xff]  }
 0x15b   : > { %4395 = vmatpush1.bf16.msra.mxu0 %v5911_v31  ;;  %3972 = vmatprep.subr.bf16.mxu1 %v5916_v32  ;;  %v286_v31 = vld [vmem:[%s7089_s0 + $0x1a8] sm:$0xff]  ;;  %v6003_v2 = vld [vmem:[%s6259_s28 + $0xe14] ss:$8 sps:$4 sm:$0xff]  }
 0x15c   : > { %4396 = vmatprep.subr.bf16.mxu0 %v5919_v33  ;;  %3998 = vmatprep.mubr.bf16.mxu1 %v4711_v34  ;;  %v278_v32 = vld [vmem:[%s7089_s0 + $0x168] sm:$0xff]  ;;  %v4743_v34 = vcombine.high %v270_v5, %v286_v31 }
 0x15d   : > { %4422 = vmatprep.mubr.bf16.mxu0 %v4727_v35  ;;  %v294_v33 = vld [vmem:[%s7089_s0 + $0x1e8] sm:$0xff] }
 0x15e   : > { %3973 = vmatpush1.bf16.msra.mxu1 %v5914_v36  ;;  %v5995_v21 = vld [vmem:[%s6259_s28 + $0xe00] ss:$8 sps:$4 sm:$0xff]   ;;  %v4759_v35 = vcombine.high %v278_v32, %v294_v33  ;;  %v5998_v36 = vld [vmem:[%s6259_s28 + $0x610] ss:$8 sps:$4 sm:$0xff]  }
 0x15f   : > { %4397 = vmatpush1.bf16.msra.mxu0 %v5917_v37  ;;  %3974 = vmatprep.subr.bf16.mxu1 %v5922_v38  ;;  %v6001_v37 = vld [vmem:[%s6259_s28 + $0xe10] ss:$8 sps:$4 sm:$0xff]   ;;  %v6006_v38 = vld [vmem:[%s6259_s28 + $0x624] ss:$8 sps:$4 sm:$0xff]  }
 0x160   : > { %4398 = vmatprep.subr.bf16.mxu0 %v5925_v39  ;;  %v6009_v39 = vld [vmem:[%s6259_s28 + $0xe24] ss:$8 sps:$4 sm:$0xff]  }
 0x162   : > { %3975 = vmatpush1.bf16.msra.mxu1 %v5920_v40  ;;  %v6876_v40 = vld [vmem:[%s7089_s0 + $0x30] sm:$0xff] }
 0x163   : > { %4399 = vmatpush1.bf16.msra.mxu0 %v5923_v41  ;;  %3976 = vmatprep.subr.bf16.mxu1 %v5928_v44  ;;  %v4742_v41 = vcombine.low %v270_v5, %v286_v31  ;;  %v4758_v44 = vcombine.low %v278_v32, %v294_v33  ;;  %v6064_v5 = vld [vmem:[%s6259_s28 + $0x6c0] ss:$8 sps:$4 sm:$0xff]   ;;  %v6075_v31 = vld [vmem:[%s6259_s28 + $0xed4] ss:$8 sps:$4 sm:$0xff]   ;;  %v6070_v32 = vld [vmem:[%s6259_s28 + $0x6d0] ss:$8 sps:$4 sm:$0xff]  }
 0x164   : > { %4400 = vmatprep.subr.bf16.mxu0 %v5931_v45  ;;  %v6881_v45 = vld [vmem:[%s7089_s0 + $0xb0] sm:$0xff] }
 0x165   : > { %v6073_v33 = vld [vmem:[%s6259_s28 + $0xed0] ss:$8 sps:$4 sm:$0xff]  }
 0x166   : > { %3977 = vmatpush1.bf16.msra.mxu1 %v5926_v48  ;;  %v6886_v48 = vld [vmem:[%s7089_s0 + $0x70] sm:$0xff] }
 0x167   : > { %4401 = vmatpush1.bf16.msra.mxu0 %v5929_v49  ;;  %3978 = vmatprep.subr.bf16.mxu1 %v5934_v50  ;;  %v6891_v49 = vld [vmem:[%s7089_s0 + $0xf0] sm:$0xff]  ;;  %v6004_v50 = vld [vmem:[%s6259_s28 + $0x620] ss:$8 sps:$4 sm:$0xff]  }
 0x168   : > { %4402 = vmatprep.subr.bf16.mxu0 %v5937_v51  ;;  %v6007_v51 = vld [vmem:[%s6259_s28 + $0xe20] ss:$8 sps:$4 sm:$0xff]  }
 0x16a   : > { %3979 = vmatpush1.bf16.msra.mxu1 %v5932_v52  ;;  %v6012_v52 = vld [vmem:[%s6259_s28 + $0x634] ss:$8 sps:$4 sm:$0xff]  }
 0x16b   : > { %4403 = vmatpush1.bf16.msra.mxu0 %v5935_v42  ;;  %3980 = vmatprep.subr.bf16.mxu1 %v5940_v43  ;;  %v6015_v42 = vld [vmem:[%s6259_s28 + $0xe34] ss:$8 sps:$4 sm:$0xff]   ;;  %v4713_v43 = vcombine.high %v6876_v40, %v6881_v45 }
 0x16c   : > { %4404 = vmatprep.subr.bf16.mxu0 %v5943_v46  ;;  %v4729_v46 = vcombine.high %v6886_v48, %v6891_v49 }
 0x16e   : > { %3981 = vmatpush1.bf16.msra.mxu1 %v5938_v47  ;;  %v6010_v47 = vld [vmem:[%s6259_s28 + $0x630] ss:$8 sps:$4 sm:$0xff]  }
 0x16f   : > { %4405 = vmatpush1.bf16.msra.mxu0 %v5941_v53  ;;  %3982 = vmatprep.subr.bf16.mxu1 %v5946_v54  ;;  %v6013_v53 = vld [vmem:[%s6259_s28 + $0xe30] ss:$8 sps:$4 sm:$0xff]   ;;  %v6018_v54 = vld [vmem:[%s6259_s28 + $0x644] ss:$8 sps:$4 sm:$0xff]  }
 0x170   : > { %4406 = vmatprep.subr.bf16.mxu0 %v5949_v55  ;;  %v6021_v55 = vld [vmem:[%s6259_s28 + $0xe44] ss:$8 sps:$4 sm:$0xff]  }
 0x172   : > { %3983 = vmatpush1.bf16.msra.mxu1 %v5944_v56  ;;  %v6016_v56 = vld [vmem:[%s6259_s28 + $0x640] ss:$8 sps:$4 sm:$0xff]  }
 0x173   : > { %4407 = vmatpush1.bf16.msra.mxu0 %v5947_v57  ;;  %3984 = vmatprep.subr.bf16.mxu1 %v5952_v60  ;;  %v6019_v57 = vld [vmem:[%s6259_s28 + $0xe40] ss:$8 sps:$4 sm:$0xff]   ;;  %v6024_v60 = vld [vmem:[%s6259_s28 + $0x654] ss:$8 sps:$4 sm:$0xff]  }
 0x174   : > { %4408 = vmatprep.subr.bf16.mxu0 %v5955_v61  ;;  %v6027_v61 = vld [vmem:[%s6259_s28 + $0xe54] ss:$8 sps:$4 sm:$0xff]  }
 0x176   : > { %3985 = vmatpush1.bf16.msra.mxu1 %v5950_v4  ;;  %v6022_v4 = vld [vmem:[%s6259_s28 + $0x650] ss:$8 sps:$4 sm:$0xff]  }
 0x177   : > { %4409 = vmatpush1.bf16.msra.mxu0 %v5953_v7  ;;  %3986 = vmatprep.subr.bf16.mxu1 %v5958_v8  ;;  %v6025_v7 = vld [vmem:[%s6259_s28 + $0xe50] ss:$8 sps:$4 sm:$0xff]   ;;  %v6030_v8 = vld [vmem:[%s6259_s28 + $0x664] ss:$8 sps:$4 sm:$0xff]  }
 0x178   : > { %4410 = vmatprep.subr.bf16.mxu0 %v5961_v9  ;;  %v6033_v9 = vld [vmem:[%s6259_s28 + $0xe64] ss:$8 sps:$4 sm:$0xff]  }
 0x17a   : > { %3987 = vmatpush1.bf16.msra.mxu1 %v5956_v10  ;;  %v6028_v10 = vld [vmem:[%s6259_s28 + $0x660] ss:$8 sps:$4 sm:$0xff]  }
 0x17b   : > { %4411 = vmatpush1.bf16.msra.mxu0 %v5959_v58  ;;  %3988 = vmatprep.subr.bf16.mxu1 %v5964_v59  ;;  %v6031_v58 = vld [vmem:[%s6259_s28 + $0xe60] ss:$8 sps:$4 sm:$0xff]   ;;  %v6036_v59 = vld [vmem:[%s6259_s28 + $0x674] ss:$8 sps:$4 sm:$0xff]  }
 0x17c   : > { %4412 = vmatprep.subr.bf16.mxu0 %v5967_v62  ;;  %v6039_v62 = vld [vmem:[%s6259_s28 + $0xe74] ss:$8 sps:$4 sm:$0xff]  }
 0x17e   : > { %3989 = vmatpush1.bf16.msra.mxu1 %v5962_v63  ;;  %v6034_v63 = vld [vmem:[%s6259_s28 + $0x670] ss:$8 sps:$4 sm:$0xff]  }
 0x17f   : > { %4413 = vmatpush1.bf16.msra.mxu0 %v5965_v11  ;;  %3990 = vmatprep.subr.bf16.mxu1 %v5970_v12  ;;  %v6037_v11 = vld [vmem:[%s6259_s28 + $0xe70] ss:$8 sps:$4 sm:$0xff]   ;;  %v6042_v12 = vld [vmem:[%s6259_s28 + $0x684] ss:$8 sps:$4 sm:$0xff]  }
 0x180   : > { %4414 = vmatprep.subr.bf16.mxu0 %v5973_v13  ;;  %v6045_v13 = vld [vmem:[%s6259_s28 + $0xe84] ss:$8 sps:$4 sm:$0xff]  }
 0x182   : > { %3991 = vmatpush1.bf16.msra.mxu1 %v5968_v14  ;;  %v6040_v14 = vld [vmem:[%s6259_s28 + $0x680] ss:$8 sps:$4 sm:$0xff]  }
 0x183   : > { %4415 = vmatpush1.bf16.msra.mxu0 %v5971_v15  ;;  %3992 = vmatprep.subr.bf16.mxu1 %v5976_v18  ;;  %v6043_v15 = vld [vmem:[%s6259_s28 + $0xe80] ss:$8 sps:$4 sm:$0xff]   ;;  %v6048_v18 = vld [vmem:[%s6259_s28 + $0x694] ss:$8 sps:$4 sm:$0xff]  }
 0x184   : > { %4416 = vmatprep.subr.bf16.mxu0 %v5979_v19  ;;  %v6051_v19 = vld [vmem:[%s6259_s28 + $0xe94] ss:$8 sps:$4 sm:$0xff]  }
 0x186   : > { %3993 = vmatpush1.bf16.msra.mxu1 %v5974_v22  ;;  %v6046_v22 = vld [vmem:[%s6259_s28 + $0x690] ss:$8 sps:$4 sm:$0xff]  }
 0x187   : > { %4417 = vmatpush1.bf16.msra.mxu0 %v5977_v23  ;;  %3994 = vmatprep.subr.bf16.mxu1 %v5982_v24  ;;  %v6049_v23 = vld [vmem:[%s6259_s28 + $0xe90] ss:$8 sps:$4 sm:$0xff]   ;;  %v6054_v24 = vld [vmem:[%s6259_s28 + $0x6a4] ss:$8 sps:$4 sm:$0xff]  }
 0x188   : > { %4418 = vmatprep.subr.bf16.mxu0 %v5985_v25  ;;  %v6057_v25 = vld [vmem:[%s6259_s28 + $0xea4] ss:$8 sps:$4 sm:$0xff]  }
 0x18a   : > { %3995 = vmatpush1.bf16.msra.mxu1 %v5980_v26  ;;  %v6052_v26 = vld [vmem:[%s6259_s28 + $0x6a0] ss:$8 sps:$4 sm:$0xff]  }
 0x18b   : > { %4419 = vmatpush1.bf16.msra.mxu0 %v5983_v27  ;;  %3996 = vmatprep.subr.bf16.mxu1 %v5988_v28  ;;  %v6055_v27 = vld [vmem:[%s6259_s28 + $0xea0] ss:$8 sps:$4 sm:$0xff]   ;;  %v6060_v28 = vld [vmem:[%s6259_s28 + $0x6b4] ss:$8 sps:$4 sm:$0xff]  }
 0x18c   : > { %4420 = vmatprep.subr.bf16.mxu0 %v5991_v29  ;;  %v6063_v29 = vld [vmem:[%s6259_s28 + $0xeb4] ss:$8 sps:$4 sm:$0xff]  }
 0x18e   : > { %3997 = vmatpush1.bf16.msra.mxu1 %v5986_v0  ;;  %v6058_v0 = vld [vmem:[%s6259_s28 + $0x6b0] ss:$8 sps:$4 sm:$0xff]  }
 0x18f   : > { %4421 = vmatpush1.bf16.msra.mxu0 %v5989_v1  ;;  %4019 = vmatprep.subr.bf16.mxu1 %v5994_v16  ;;  %v6061_v1 = vld [vmem:[%s6259_s28 + $0xeb0] ss:$8 sps:$4 sm:$0xff]   ;;  %v6066_v16 = vld [vmem:[%s6259_s28 + $0x6c4] ss:$8 sps:$4 sm:$0xff]  }
 0x190   : > { %4443 = vmatprep.subr.bf16.mxu0 %v5997_v17  ;;  %v6069_v17 = vld [vmem:[%s6259_s28 + $0xec4] ss:$8 sps:$4 sm:$0xff]  }
 0x191   : > { %3999 = vmatmul.mubr.bf16.vlgmr.msra.gmra.mrb[0].mxu1 %v4710_v6  ;;  %v6067_v6 = vld [vmem:[%s6259_s28 + $0xec0] ss:$8 sps:$4 sm:$0xff]  }
 0x192   : > { %4423 = vmatmul.mubr.bf16.vlgmr.msra.gmra.mrb[0].mxu0 %v4726_v30  ;;  %4020 = vmatpush1.bf16.msra.mxu1 %v5992_v20  ;;  %v6072_v30 = vld [vmem:[%s6259_s28 + $0x6d4] ss:$8 sps:$4 sm:$0xff]   ;;  %v6078_v20 = vld [vmem:[%s6259_s28 + $0x6e4] ss:$8 sps:$4 sm:$0xff]  }
 0x193   : > { %4444 = vmatpush1.bf16.msra.mxu0 %v5995_v21  ;;  %4021 = vmatprep.subr.bf16.mxu1 %v6000_v3  ;;  %v6081_v21 = vld [vmem:[%s6259_s28 + $0xee4] ss:$8 sps:$4 sm:$0xff]   ;;  %v6076_v3 = vld [vmem:[%s6259_s28 + $0x6e0] ss:$8 sps:$4 sm:$0xff]  }
 0x194   : > { %4445 = vmatprep.subr.bf16.mxu0 %v6003_v2  ;;  %4008 = vmatprep.mubr.bf16.mxu1 %v4743_v34  ;;  %v6079_v2 = vld [vmem:[%s6259_s28 + $0xee0] ss:$8 sps:$4 sm:$0xff]   ;;  %v6084_v34 = vld [vmem:[%s6259_s28 + $0x6f4] ss:$8 sps:$4 sm:$0xff]  }
 0x195   : > { %4432 = vmatprep.mubr.bf16.mxu0 %v4759_v35  ;;  %v6087_v35 = vld [vmem:[%s6259_s28 + $0xef4] ss:$8 sps:$4 sm:$0xff]  }
 0x196   : > { %4022 = vmatpush1.bf16.msra.mxu1 %v5998_v36  ;;  %v6082_v36 = vld [vmem:[%s6259_s28 + $0x6f0] ss:$8 sps:$4 sm:$0xff]  }
 0x197   : > { %4446 = vmatpush1.bf16.msra.mxu0 %v6001_v37  ;;  %4023 = vmatprep.subr.bf16.mxu1 %v6006_v38  ;;  %v6085_v37 = vld [vmem:[%s6259_s28 + $0xef0] ss:$8 sps:$4 sm:$0xff]   ;;  %v6090_v38 = vld [vmem:[%s6259_s28 + $0x704] ss:$8 sps:$4 sm:$0xff]  }
 0x198   : > { %4447 = vmatprep.subr.bf16.mxu0 %v6009_v39  ;;  %v6093_v39 = vld [vmem:[%s6259_s28 + $0xf04] ss:$8 sps:$4 sm:$0xff]  }
 0x199   : > { %4009 = vmatmul.mubr.bf16.gmra.mrb[4].mxu1 %v4742_v41  ;;  %v271_v41 = vld [vmem:[%s7089_s0 + $0x130] sm:$0xff] }
 0x19a   : > { %4433 = vmatmul.mubr.bf16.gmra.mrb[4].mxu0 %v4758_v44  ;;  %4024 = vmatpush1.bf16.msra.mxu1 %v6004_v50  ;;  %v4712_v44 = vcombine.low %v6876_v40, %v6881_v45  ;;  %v4728_v50 = vcombine.low %v6886_v48, %v6891_v49  ;;  %v6088_v40 = vld [vmem:[%s6259_s28 + $0x700] ss:$8 sps:$4 sm:$0xff]   ;;  %v6096_v48 = vld [vmem:[%s6259_s28 + $0x714] ss:$8 sps:$4 sm:$0xff]  }
 0x19b   : > { %4448 = vmatpush1.bf16.msra.mxu0 %v6007_v51  ;;  %4025 = vmatprep.subr.bf16.mxu1 %v6012_v52  ;;  %v287_v51 = vld [vmem:[%s7089_s0 + $0x1b0] sm:$0xff]  ;;  %v6091_v45 = vld [vmem:[%s6259_s28 + $0xf00] ss:$8 sps:$4 sm:$0xff]  }
 0x19c   : > { %4449 = vmatprep.subr.bf16.mxu0 %v6015_v42  ;;  %4051 = vmatprep.mubr.bf16.mxu1 %v4713_v43  ;;  %v279_v52 = vld [vmem:[%s7089_s0 + $0x170] sm:$0xff]  ;;  %v4745_v43 = vcombine.high %v271_v41, %v287_v51 }
 0x19d   : > { %4475 = vmatprep.mubr.bf16.mxu0 %v4729_v46  ;;  %v295_v42 = vld [vmem:[%s7089_s0 + $0x1f0] sm:$0xff] }
 0x19e   : > { %4026 = vmatpush1.bf16.msra.mxu1 %v6010_v47  ;;  %v6099_v49 = vld [vmem:[%s6259_s28 + $0xf14] ss:$8 sps:$4 sm:$0xff]   ;;  %v4761_v46 = vcombine.high %v279_v52, %v295_v42  ;;  %v6094_v47 = vld [vmem:[%s6259_s28 + $0x710] ss:$8 sps:$4 sm:$0xff]  }
 0x19f   : > { %4450 = vmatpush1.bf16.msra.mxu0 %v6013_v53  ;;  %4027 = vmatprep.subr.bf16.mxu1 %v6018_v54  ;;  %v6097_v53 = vld [vmem:[%s6259_s28 + $0xf10] ss:$8 sps:$4 sm:$0xff]   ;;  %v6102_v54 = vld [vmem:[%s6259_s28 + $0x724] ss:$8 sps:$4 sm:$0xff]  }
 0x1a0   : > { %4451 = vmatprep.subr.bf16.mxu0 %v6021_v55  ;;  %v6105_v55 = vld [vmem:[%s6259_s28 + $0xf24] ss:$8 sps:$4 sm:$0xff]  }
 0x1a2   : > { %4028 = vmatpush1.bf16.msra.mxu1 %v6016_v56  ;;  %v6980_v56 = vld [vmem:[%s7089_s0 + $0x38] sm:$0xff] }
 0x1a3   : > { %4452 = vmatpush1.bf16.msra.mxu0 %v6019_v57  ;;  %4029 = vmatprep.subr.bf16.mxu1 %v6024_v60  ;;  %v4744_v57 = vcombine.low %v271_v41, %v287_v51  ;;  %v4760_v60 = vcombine.low %v279_v52, %v295_v42  ;;  %v6160_v41 = vld [vmem:[%s6259_s28 + $0x7c0] ss:$8 sps:$4 sm:$0xff]   ;;  %v6171_v51 = vld [vmem:[%s6259_s28 + $0xfd4] ss:$8 sps:$4 sm:$0xff]   ;;  %v6166_v52 = vld [vmem:[%s6259_s28 + $0x7d0] ss:$8 sps:$4 sm:$0xff]  }
 0x1a4   : > { %4453 = vmatprep.subr.bf16.mxu0 %v6027_v61  ;;  %v6985_v61 = vld [vmem:[%s7089_s0 + $0xb8] sm:$0xff] }
 0x1a5   : > { %v6169_v42 = vld [vmem:[%s6259_s28 + $0xfd0] ss:$8 sps:$4 sm:$0xff]  }
 0x1a6   : > { %4030 = vmatpush1.bf16.msra.mxu1 %v6022_v4  ;;  %v6990_v4 = vld [vmem:[%s7089_s0 + $0x78] sm:$0xff] }
 0x1a7   : > { %4454 = vmatpush1.bf16.msra.mxu0 %v6025_v7  ;;  %4031 = vmatprep.subr.bf16.mxu1 %v6030_v8  ;;  %v6995_v7 = vld [vmem:[%s7089_s0 + $0xf8] sm:$0xff]  ;;  %v6100_v8 = vld [vmem:[%s6259_s28 + $0x720] ss:$8 sps:$4 sm:$0xff]  }
 0x1a8   : > { %4455 = vmatprep.subr.bf16.mxu0 %v6033_v9  ;;  %v6103_v9 = vld [vmem:[%s6259_s28 + $0xf20] ss:$8 sps:$4 sm:$0xff]  }
 0x1aa   : > { %4032 = vmatpush1.bf16.msra.mxu1 %v6028_v10  ;;  %v6108_v10 = vld [vmem:[%s6259_s28 + $0x734] ss:$8 sps:$4 sm:$0xff]  }
 0x1ab   : > { %4456 = vmatpush1.bf16.msra.mxu0 %v6031_v58  ;;  %4033 = vmatprep.subr.bf16.mxu1 %v6036_v59  ;;  %v6111_v58 = vld [vmem:[%s6259_s28 + $0xf34] ss:$8 sps:$4 sm:$0xff]   ;;  %v4715_v59 = vcombine.high %v6980_v56, %v6985_v61 }
 0x1ac   : > { %4457 = vmatprep.subr.bf16.mxu0 %v6039_v62  ;;  %v4731_v62 = vcombine.high %v6990_v4, %v6995_v7 }
 0x1ae   : > { %4034 = vmatpush1.bf16.msra.mxu1 %v6034_v63  ;;  %v6106_v63 = vld [vmem:[%s6259_s28 + $0x730] ss:$8 sps:$4 sm:$0xff]  }
 0x1af   : > { %4458 = vmatpush1.bf16.msra.mxu0 %v6037_v11  ;;  %4035 = vmatprep.subr.bf16.mxu1 %v6042_v12  ;;  %v6109_v11 = vld [vmem:[%s6259_s28 + $0xf30] ss:$8 sps:$4 sm:$0xff]   ;;  %v6114_v12 = vld [vmem:[%s6259_s28 + $0x744] ss:$8 sps:$4 sm:$0xff]  }
 0x1b0   : > { %4459 = vmatprep.subr.bf16.mxu0 %v6045_v13  ;;  %v6117_v13 = vld [vmem:[%s6259_s28 + $0xf44] ss:$8 sps:$4 sm:$0xff]  }
 0x1b2   : > { %4036 = vmatpush1.bf16.msra.mxu1 %v6040_v14  ;;  %v6112_v14 = vld [vmem:[%s6259_s28 + $0x740] ss:$8 sps:$4 sm:$0xff]  }
 0x1b3   : > { %4460 = vmatpush1.bf16.msra.mxu0 %v6043_v15  ;;  %4037 = vmatprep.subr.bf16.mxu1 %v6048_v18  ;;  %v6115_v15 = vld [vmem:[%s6259_s28 + $0xf40] ss:$8 sps:$4 sm:$0xff]   ;;  %v6120_v18 = vld [vmem:[%s6259_s28 + $0x754] ss:$8 sps:$4 sm:$0xff]  }
 0x1b4   : > { %4461 = vmatprep.subr.bf16.mxu0 %v6051_v19  ;;  %v6123_v19 = vld [vmem:[%s6259_s28 + $0xf54] ss:$8 sps:$4 sm:$0xff]  }
 0x1b6   : > { %4038 = vmatpush1.bf16.msra.mxu1 %v6046_v22  ;;  %v6118_v22 = vld [vmem:[%s6259_s28 + $0x750] ss:$8 sps:$4 sm:$0xff]  }
 0x1b7   : > { %4462 = vmatpush1.bf16.msra.mxu0 %v6049_v23  ;;  %4039 = vmatprep.subr.bf16.mxu1 %v6054_v24  ;;  %v6121_v23 = vld [vmem:[%s6259_s28 + $0xf50] ss:$8 sps:$4 sm:$0xff]   ;;  %v6126_v24 = vld [vmem:[%s6259_s28 + $0x764] ss:$8 sps:$4 sm:$0xff]  }
 0x1b8   : > { %4463 = vmatprep.subr.bf16.mxu0 %v6057_v25  ;;  %v6129_v25 = vld [vmem:[%s6259_s28 + $0xf64] ss:$8 sps:$4 sm:$0xff]  }
 0x1ba   : > { %4040 = vmatpush1.bf16.msra.mxu1 %v6052_v26  ;;  %v6124_v26 = vld [vmem:[%s6259_s28 + $0x760] ss:$8 sps:$4 sm:$0xff]  }
 0x1bb   : > { %4464 = vmatpush1.bf16.msra.mxu0 %v6055_v27  ;;  %4041 = vmatprep.subr.bf16.mxu1 %v6060_v28  ;;  %v6127_v27 = vld [vmem:[%s6259_s28 + $0xf60] ss:$8 sps:$4 sm:$0xff]   ;;  %v6132_v28 = vld [vmem:[%s6259_s28 + $0x774] ss:$8 sps:$4 sm:$0xff]  }
 0x1bc   : > { %4465 = vmatprep.subr.bf16.mxu0 %v6063_v29  ;;  %v6135_v29 = vld [vmem:[%s6259_s28 + $0xf74] ss:$8 sps:$4 sm:$0xff]  }
 0x1be   : > { %4042 = vmatpush1.bf16.msra.mxu1 %v6058_v0  ;;  %v6130_v0 = vld [vmem:[%s6259_s28 + $0x770] ss:$8 sps:$4 sm:$0xff]  }
 0x1bf   : > { %4466 = vmatpush1.bf16.msra.mxu0 %v6061_v1  ;;  %4043 = vmatprep.subr.bf16.mxu1 %v6066_v16  ;;  %v6133_v1 = vld [vmem:[%s6259_s28 + $0xf70] ss:$8 sps:$4 sm:$0xff]   ;;  %v6138_v16 = vld [vmem:[%s6259_s28 + $0x784] ss:$8 sps:$4 sm:$0xff]  }
 0x1c0   : > { %4467 = vmatprep.subr.bf16.mxu0 %v6069_v17  ;;  %v6141_v17 = vld [vmem:[%s6259_s28 + $0xf84] ss:$8 sps:$4 sm:$0xff]  }
 0x1c2   : > { %4044 = vmatpush1.bf16.msra.mxu1 %v6064_v5  ;;  %v6136_v5 = vld [vmem:[%s6259_s28 + $0x780] ss:$8 sps:$4 sm:$0xff]  }
 0x1c3   : > { %4468 = vmatpush1.bf16.msra.mxu0 %v6067_v6  ;;  %4045 = vmatprep.subr.bf16.mxu1 %v6072_v30  ;;  %v6139_v6 = vld [vmem:[%s6259_s28 + $0xf80] ss:$8 sps:$4 sm:$0xff]   ;;  %v6144_v30 = vld [vmem:[%s6259_s28 + $0x794] ss:$8 sps:$4 sm:$0xff]  }
 0x1c4   : > { %4469 = vmatprep.subr.bf16.mxu0 %v6075_v31  ;;  %v6147_v31 = vld [vmem:[%s6259_s28 + $0xf94] ss:$8 sps:$4 sm:$0xff]  }
 0x1c6   : > { %4046 = vmatpush1.bf16.msra.mxu1 %v6070_v32  ;;  %v6142_v32 = vld [vmem:[%s6259_s28 + $0x790] ss:$8 sps:$4 sm:$0xff]  }
 0x1c7   : > { %4470 = vmatpush1.bf16.msra.mxu0 %v6073_v33  ;;  %4047 = vmatprep.subr.bf16.mxu1 %v6078_v20  ;;  %v6145_v33 = vld [vmem:[%s6259_s28 + $0xf90] ss:$8 sps:$4 sm:$0xff]   ;;  %v6150_v20 = vld [vmem:[%s6259_s28 + $0x7a4] ss:$8 sps:$4 sm:$0xff]  }
 0x1c8   : > { %4471 = vmatprep.subr.bf16.mxu0 %v6081_v21  ;;  %v6153_v21 = vld [vmem:[%s6259_s28 + $0xfa4] ss:$8 sps:$4 sm:$0xff]  }
 0x1ca   : > { %4048 = vmatpush1.bf16.msra.mxu1 %v6076_v3  ;;  %v6148_v3 = vld [vmem:[%s6259_s28 + $0x7a0] ss:$8 sps:$4 sm:$0xff]  }
 0x1cb   : > { %4472 = vmatpush1.bf16.msra.mxu0 %v6079_v2  ;;  %4049 = vmatprep.subr.bf16.mxu1 %v6084_v34  ;;  %v6151_v2 = vld [vmem:[%s6259_s28 + $0xfa0] ss:$8 sps:$4 sm:$0xff]   ;;  %v6156_v34 = vld [vmem:[%s6259_s28 + $0x7b4] ss:$8 sps:$4 sm:$0xff]  }
 0x1cc   : > { %4473 = vmatprep.subr.bf16.mxu0 %v6087_v35  ;;  %v6159_v35 = vld [vmem:[%s6259_s28 + $0xfb4] ss:$8 sps:$4 sm:$0xff]  }
 0x1ce   : > { %4050 = vmatpush1.bf16.msra.mxu1 %v6082_v36  ;;  %v6154_v36 = vld [vmem:[%s6259_s28 + $0x7b0] ss:$8 sps:$4 sm:$0xff]  }
 0x1cf   : > { %4474 = vmatpush1.bf16.msra.mxu0 %v6085_v37  ;;  %4072 = vmatprep.subr.bf16.mxu1 %v6090_v38  ;;  %v6157_v37 = vld [vmem:[%s6259_s28 + $0xfb0] ss:$8 sps:$4 sm:$0xff]   ;;  %v6162_v38 = vld [vmem:[%s6259_s28 + $0x7c4] ss:$8 sps:$4 sm:$0xff]  }
 0x1d0   : > { %4496 = vmatprep.subr.bf16.mxu0 %v6093_v39  ;;  %v6165_v39 = vld [vmem:[%s6259_s28 + $0xfc4] ss:$8 sps:$4 sm:$0xff]  }
 0x1d1   : > { %4052 = vmatmul.mubr.bf16.vlgmr.msra.gmra.mrb[0].mxu1 %v4712_v44  ;;  %v6163_v44 = vld [vmem:[%s6259_s28 + $0xfc0] ss:$8 sps:$4 sm:$0xff]  }
 0x1d2   : > { %4476 = vmatmul.mubr.bf16.vlgmr.msra.gmra.mrb[0].mxu0 %v4728_v50  ;;  %4073 = vmatpush1.bf16.msra.mxu1 %v6088_v40  ;;  %v6168_v50 = vld [vmem:[%s6259_s28 + $0x7d4] ss:$8 sps:$4 sm:$0xff]   ;;  %v6174_v40 = vld [vmem:[%s6259_s28 + $0x7e4] ss:$8 sps:$4 sm:$0xff]  }
 0x1d3   : > { %4497 = vmatpush1.bf16.msra.mxu0 %v6091_v45  ;;  %4074 = vmatprep.subr.bf16.mxu1 %v6096_v48  ;;  %v6177_v45 = vld [vmem:[%s6259_s28 + $0xfe4] ss:$8 sps:$4 sm:$0xff]   ;;  %v6172_v48 = vld [vmem:[%s6259_s28 + $0x7e0] ss:$8 sps:$4 sm:$0xff]  }
 0x1d4   : > { %4498 = vmatprep.subr.bf16.mxu0 %v6099_v49  ;;  %4061 = vmatprep.mubr.bf16.mxu1 %v4745_v43  ;;  %v6175_v49 = vld [vmem:[%s6259_s28 + $0xfe0] ss:$8 sps:$4 sm:$0xff]   ;;  %v6180_v43 = vld [vmem:[%s6259_s28 + $0x7f4] ss:$8 sps:$4 sm:$0xff]  }
 0x1d5   : > { %4485 = vmatprep.mubr.bf16.mxu0 %v4761_v46  ;;  %v6183_v46 = vld [vmem:[%s6259_s28 + $0xff4] ss:$8 sps:$4 sm:$0xff]  }
 0x1d6   : > { %4075 = vmatpush1.bf16.msra.mxu1 %v6094_v47  ;;  %v6178_v47 = vld [vmem:[%s6259_s28 + $0x7f0] ss:$8 sps:$4 sm:$0xff]  }
 0x1d7   : > { %4499 = vmatpush1.bf16.msra.mxu0 %v6097_v53  ;;  %4076 = vmatprep.subr.bf16.mxu1 %v6102_v54  ;;  %v6181_v53 = vld [vmem:[%s6259_s28 + $0xff0] ss:$8 sps:$4 sm:$0xff]   ;;  %s4696_s28 = sshll.u32 %s7095_s16, 1 }
 0x1d8   : > { %4500 = vmatprep.subr.bf16.mxu0 %v6105_v55  ;;  %v272_v54 = vld [vmem:[%s7089_s0 + $0x138] sm:$0xff]  ;;  %s223_s10 = scalar_lea.vmem %s7091_s2, %s4696_s28  ;;  %s232_s19 = scalar_lea.vmem %s7093_s4, %s4696_s28 }
 0x1d9   : > { %4062 = vmatmul.mubr.bf16.gmra.mrb[4].mxu1 %v4744_v57  ;;  %v288_v55 = vld [vmem:[%s7089_s0 + $0x1b8] sm:$0xff] }
 0x1da   : > { %4486 = vmatmul.mubr.bf16.gmra.mrb[4].mxu0 %v4760_v60  ;;  %4077 = vmatpush1.bf16.msra.mxu1 %v6100_v8  ;;  %v280_v57 = vld [vmem:[%s7089_s0 + $0x178] sm:$0xff]  ;;  %v4714_v8 = vcombine.low %v6980_v56, %v6985_v61 }
 0x1db   : > { %4501 = vmatpush1.bf16.msra.mxu0 %v6103_v9  ;;  %4078 = vmatprep.subr.bf16.mxu1 %v6108_v10  ;;  %v296_v60 = vld [vmem:[%s7089_s0 + $0x1f8] sm:$0xff]  ;;  %v4730_v9 = vcombine.low %v6990_v4, %v6995_v7  ;;  %v4747_v10 = vcombine.high %v272_v54, %v288_v55  ;;  %v809_v4 = vld [vmem:[%s223_s10] sm:$0x3] }
 0x1dc   : > { %4502 = vmatprep.subr.bf16.mxu0 %v6111_v58  ;;  %4104 = vmatprep.mubr.bf16.mxu1 %v4715_v59  ;;  %v4763_v58 = vcombine.high %v280_v57, %v296_v60  ;;  %v4746_v59 = vcombine.low %v272_v54, %v288_v55 }
 0x1dd   : > { %4528 = vmatprep.mubr.bf16.mxu0 %v4731_v62  ;;  %v4762_v62 = vcombine.low %v280_v57, %v296_v60 }
 0x1de   : > { %4079 = vmatpush1.bf16.msra.mxu1 %v6106_v63  ;;  %v811_v63 = vlaneseq }
 0x1df   : > { %4503 = vmatpush1.bf16.msra.mxu0 %v6109_v11  ;;  %4080 = vmatprep.subr.bf16.mxu1 %v6114_v12 }
 0x1e0   : > { %4504 = vmatprep.subr.bf16.mxu0 %v6117_v13  ;;  %v812_v56 = vshrl.u32 %v811_v63, 7 }
 0x1e2   : > { %4081 = vmatpush1.bf16.msra.mxu1 %v6112_v14  ;;  %v813_v61 = vsub.s32 0, %v812_v56  ;;  %v817_v7 = vsub.s32 1, %v812_v56 }
 0x1e3   : > { %4505 = vmatpush1.bf16.msra.mxu0 %v6115_v15  ;;  %4082 = vmatprep.subr.bf16.mxu1 %v6120_v18 }
 0x1e4   : > { %4506 = vmatprep.subr.bf16.mxu0 %v6123_v19  ;;  %v814_v11 = vrot.slane %v809_v4, %v813_v61  ;;  %v818_v12 = vrot.slane %v809_v4, %v817_v7 }
 0x1e6   : > { %4083 = vmatpush1.bf16.msra.mxu1 %v6118_v22 }
 0x1e7   : > { %4507 = vmatpush1.bf16.msra.mxu0 %v6121_v23  ;;  %4084 = vmatprep.subr.bf16.mxu1 %v6126_v24 }
 0x1e8   : > { %4508 = vmatprep.subr.bf16.mxu0 %v6129_v25  ;;  %v4565_v25 = vld [vmem:[%s228_s14] sm:$0xff] }
 0x1ea   : > { %4085 = vmatpush1.bf16.msra.mxu1 %v6124_v26 }
 0x1eb   : > { %4509 = vmatpush1.bf16.msra.mxu0 %v6127_v27  ;;  %4086 = vmatprep.subr.bf16.mxu1 %v6132_v28 }
 0x1ec   : > { %4510 = vmatprep.subr.bf16.mxu0 %v6135_v29 }
 0x1ee   : > { %4087 = vmatpush1.bf16.msra.mxu1 %v6130_v0 }
 0x1ef   : > { %4511 = vmatpush1.bf16.msra.mxu0 %v6133_v1  ;;  %4088 = vmatprep.subr.bf16.mxu1 %v6138_v16  ;;  %v4566_v16 = vld [vmem:[%s228_s14 + $0x8] sm:$0xff] }
 0x1f0   : > { %4512 = vmatprep.subr.bf16.mxu0 %v6141_v17 }
 0x1f2   : > { %4089 = vmatpush1.bf16.msra.mxu1 %v6136_v5 }
 0x1f3   : > { %4513 = vmatpush1.bf16.msra.mxu0 %v6139_v6  ;;  %4090 = vmatprep.subr.bf16.mxu1 %v6144_v30  ;;  %v4567_v6 = vunpack.c.l.bf16 %v4565_v25 }
 0x1f4   : > { %4514 = vmatprep.subr.bf16.mxu0 %v6147_v31 }
 0x1f6   : > { %4091 = vmatpush1.bf16.msra.mxu1 %v6142_v32  ;;  %v4568_v32 = vunpack.c.h.bf16 %v4565_v25 }
 0x1f7   : > { %4515 = vmatpush1.bf16.msra.mxu0 %v6145_v33  ;;  %4092 = vmatprep.subr.bf16.mxu1 %v6150_v20 }
 0x1f8   : > { %4516 = vmatprep.subr.bf16.mxu0 %v6153_v21  ;;  %v4569_v21 = vunpack.c.l.bf16 %v4566_v16 }
 0x1fa   : > { %4093 = vmatpush1.bf16.msra.mxu1 %v6148_v3 }
 0x1fb   : > { %4517 = vmatpush1.bf16.msra.mxu0 %v6151_v2  ;;  %4094 = vmatprep.subr.bf16.mxu1 %v6156_v34 }
 0x1fc   : > { %4518 = vmatprep.subr.bf16.mxu0 %v6159_v35 }
 0x1fe   : > { %4095 = vmatpush1.bf16.msra.mxu1 %v6154_v36  ;;  %v4570_v36 = vunpack.c.h.bf16 %v4566_v16 }
 0x1ff   : > { %4519 = vmatpush1.bf16.msra.mxu0 %v6157_v37  ;;  %4096 = vmatprep.subr.bf16.mxu1 %v6162_v38 }
 0x200   : > { %4520 = vmatprep.subr.bf16.mxu0 %v6165_v39 }
 0x202   : > { %4097 = vmatpush1.bf16.msra.mxu1 %v6160_v41 }
 0x203   : > { %4521 = vmatpush1.bf16.msra.mxu0 %v6163_v44  ;;  %4098 = vmatprep.subr.bf16.mxu1 %v6168_v50 }
 0x204   : > { %4522 = vmatprep.subr.bf16.mxu0 %v6171_v51 }
 0x206   : > { %4099 = vmatpush1.bf16.msra.mxu1 %v6166_v52 }
 0x207   : > { %4523 = vmatpush1.bf16.msra.mxu0 %v6169_v42  ;;  %4100 = vmatprep.subr.bf16.mxu1 %v6174_v40 }
 0x208   : > { %4524 = vmatprep.subr.bf16.mxu0 %v6177_v45 }
 0x20a   : > { %4101 = vmatpush1.bf16.msra.mxu1 %v6172_v48 }
 0x20b   : > { %4525 = vmatpush1.bf16.msra.mxu0 %v6175_v49  ;;  %4102 = vmatprep.subr.bf16.mxu1 %v6180_v43 }
 0x20c   : > { %4526 = vmatprep.subr.bf16.mxu0 %v6183_v46 }
 0x20e   : > { %4103 = vmatpush1.bf16.msra.mxu1 %v6178_v47 }
 0x20f   : > { %4527 = vmatpush1.bf16.msra.mxu0 %v6181_v53 }
 0x211   : > { %4105 = vmatmul.mubr.bf16.vlgmr.msra.gmra.mrb[0].mxu1 %v4714_v8 }
 0x212   : > { %4529 = vmatmul.mubr.bf16.vlgmr.msra.gmra.mrb[0].mxu0 %v4730_v9  ;;  %4114 = vmatprep.mubr.bf16.mxu1 %v4747_v10 }
 0x213   : > { %4538 = vmatprep.mubr.bf16.mxu0 %v4763_v58 }
 0x219   : > { %4115 = vmatmul.mubr.bf16.gmra.mrb[4].mxu1 %v4746_v59 }
 0x21a   : > { %4539 = vmatmul.mubr.bf16.gmra.mrb[4].mxu0 %v4762_v62 }
 0x2e4   : > { %v4106_v13 = vpop.f32.mrb[0].mxu1 }
 0x2e5   : > { %v4530_v14 = vpop.f32.mrb[0].mxu0  ;;  %v5280_v15 = vadd.f32 %v4106_v13, %v814_v11  ;;  %v4108_v18 = vpop.f32.mrb[1].mxu1 }
 0x2e6   : > { %v4532_v19 = vpop.f32.mrb[1].mxu0  ;;  %v5282_v22 = vadd.f32 %v4108_v18, %v818_v12  ;;  %v4110_v23 = vpop.f32.mrb[2].mxu1 }
 0x2e7   : > { %v4534_v24 = vpop.f32.mrb[2].mxu0  ;;  %v5281_v26 = vadd.f32 %v5280_v15, %v4530_v14  ;;  %v5284_v27 = vadd.f32 %v4110_v23, %v814_v11  ;;  %v4112_v28 = vpop.f32.mrb[3].mxu1 }
 0x2e8   : > { %v4536_v29 = vpop.f32.mrb[3].mxu0  ;;  %v5283_v0 = vadd.f32 %v5282_v22, %v4532_v19  ;;  %v5286_v1 = vadd.f32 %v4112_v28, %v818_v12 }
 0x2e9   : > { %v4549_v17 = vmul.f32 0.2, %v5281_v26  ;;  %v5285_v5 = vadd.f32 %v5284_v27, %v4534_v24 }
 0x2ea   : > { %v4550_v30 = vmul.f32 0.2, %v5283_v0  ;;  %v5287_v31 = vadd.f32 %v5286_v1, %v4536_v29 }
 0x2eb   : > { %v4557_v33 = vmax.f32 %v5281_v26, %v4549_v17  ;;  %v4551_v20 = vmul.f32 0.2, %v5285_v5 }
 0x2ec   : > { %v4558_v3 = vmax.f32 %v5283_v0, %v4550_v30  ;;  %v4552_v2 = vmul.f32 0.2, %v5287_v31  ;;  %v4116_v34 = vpop.f32.mrb[4].mxu1 }
 0x2ed   : > { %v4540_v35 = vpop.f32.mrb[4].mxu0  ;;  %v4559_v37 = vmax.f32 %v5285_v5, %v4551_v20  ;;  %v5288_v38 = vadd.f32 %v4116_v34, %v814_v11  ;;  %v4118_v39 = vpop.f32.mrb[5].mxu1  ;;  %v4571_v44 = vmul.f32 %v4567_v6, %v4557_v33 }
 0x2ee   : > { %v4542_v41 = vpop.f32.mrb[5].mxu0  ;;  %v4560_v50 = vmax.f32 %v5287_v31, %v4552_v2  ;;  %v5290_v51 = vadd.f32 %v4118_v39, %v818_v12  ;;  %v4120_v52 = vpop.f32.mrb[6].mxu1  ;;  %v4572_v40 = vmul.f32 %v4568_v32, %v4558_v3 }
 0x2ef   : > { %v4544_v42 = vpop.f32.mrb[6].mxu0  ;;  %v5289_v45 = vadd.f32 %v5288_v38, %v4540_v35  ;;  %v5292_v48 = vadd.f32 %v4120_v52, %v814_v11  ;;  %v4122_v49 = vpop.f32.mrb[7].mxu1  ;;  %v4573_v46 = vmul.f32 %v4569_v21, %v4559_v37 }
 0x2f0   : > { %v4546_v43 = vpop.f32.mrb[7].mxu0  ;;  %v5291_v47 = vadd.f32 %v5290_v51, %v4542_v41  ;;  %v5294_v53 = vadd.f32 %v4122_v49, %v818_v12  ;;  %v4579_v54 = vadd.f32 %v4572_v40, %v4571_v44  ;;  %v4574_v55 = vmul.f32 %v4570_v36, %v4560_v50 }
 0x2f1   : > { %v4553_v57 = vmul.f32 0.2, %v5289_v45  ;;  %v5293_v60 = vadd.f32 %v5292_v48, %v4544_v42 }
 0x2f2   : > { %v4554_v8 = vmul.f32 0.2, %v5291_v47  ;;  %v5295_v9 = vadd.f32 %v5294_v53, %v4546_v43  ;;  %4580 = vadd.xlane.f32.xlu0 %v4579_v54  ;;  %v4582_v10 = vadd.f32 %v4574_v55, %v4573_v46 }
 0x2f3   : > { %v4561_v58 = vmax.f32 %v5289_v45, %v4553_v57  ;;  %v4555_v59 = vmul.f32 0.2, %v5293_v60 }
 0x2f4   : > { %v4562_v62 = vmax.f32 %v5291_v47, %v4554_v8  ;;  %v4556_v63 = vmul.f32 0.2, %v5295_v9 }
 0x2f5   : > { %v4563_v56 = vmax.f32 %v5293_v60, %v4555_v59  ;;  %v4575_v61 = vmul.f32 %v4567_v6, %v4561_v58 }
 0x2f6   : > { %v4564_v4 = vmax.f32 %v5295_v9, %v4556_v63  ;;  %4583 = vadd.xlane.f32.xlu0 %v4582_v10  ;;  %v4576_v7 = vmul.f32 %v4568_v32, %v4562_v62 }
 0x2f7   : > { %v4577_v11 = vmul.f32 %v4569_v21, %v4563_v56 }
 0x2f8   : > { %v4585_v13 = vadd.f32 %v4576_v7, %v4575_v61  ;;  %v4578_v12 = vmul.f32 %v4570_v36, %v4564_v4 }
 0x2fa   : > { %4586 = vadd.xlane.f32.xlu1 %v4585_v13  ;;  %v4588_v14 = vadd.f32 %v4578_v12, %v4577_v11 }
 0x2fe   : > { %4589 = vadd.xlane.f32.xlu1 %v4588_v14 }
 0x37f   : > { %v4581_v15 = vpop.xlane.xlu0 %4580 }
 0x383   : > { %v4584_v18 = vpop.xlane.xlu0 %4583 }
 0x384   : > { %v4591_v19 = vadd.f32 %v4584_v18, %v4581_v15 }
 0x386   : > { %v4592_v22 = vrot.slane %v4591_v19, 4 }
 0x387   : > { %v4587_v23 = vpop.xlane.xlu1 %4586 }
 0x388   : > { %v4593_v24 = vadd.f32 %v4592_v22, %v4591_v19 }
 0x38a   : > { %v4594_v26 = vrot.slane %v4593_v24, 2 }
 0x38b   : > { %v4590_v25 = vpop.xlane.xlu1 %4589 }
 0x38c   : > { %v4598_v27 = vadd.f32 %v4590_v25, %v4587_v23  ;;  %v4595_v29 = vadd.f32 %v4594_v26, %v4593_v24 }
 0x38e   : > { %v4599_v28 = vrot.slane %v4598_v27, 4  ;;  %v4596_v16 = vrot.slane %v4595_v29, 1 }
 0x390   : > { %v4600_v0 = vadd.f32 %v4599_v28, %v4598_v27  ;;  %v4597_v6 = vadd.f32 %v4596_v16, %v4595_v29 }
 0x392   : > { %v4601_v1 = vrot.slane %v4600_v0, 2 }
 0x394   : > { %v4602_v17 = vadd.f32 %v4601_v1, %v4600_v0 }
 0x396   : > { %v4603_v5 = vrot.slane %v4602_v17, 1 }
 0x398   : > { %v4604_v30 = vadd.f32 %v4603_v5, %v4602_v17 }
 0x39a   : > { %v4608_v31 = vsel %vm4607_vm0, %v4604_v30, %v4597_v6 }
 0x39b   : > { %4611 = vst.msk [vmem:[%s232_s19] sm:$0x3] %vm4610_vm1, %v4608_v31 }
 0x39c PF: > { %s14_s15 = sadd.s32 1, %s6190_s15  }
 0x39d   : > { %p11_p4 = scmp.ge.s32.totalorder %s14_s15, 4  }
 0x39f   :  { %13 = sbr.rel (!%p11_p4) target bundleno = 1 (0x1), region = 72 }

</bundles_post_ra>
